<compile_context>
chip_gen: v6e
topology: v6e:2x2x1
jax: 0.10.0
libtpu: 0.0.40
codegen_flags: <defaults>
</compile_context>

<pallas_src>
import functools

import jax
import jax.numpy as jnp
from jax import lax
from jax.experimental import pallas as pl
from jax.experimental.pallas import tpu as pltpu


def _basic_block_kernel(xflat_ref, w1_ref, w2_ref, b1_ref, b2_ref, mask_ref,
                        out_ref, y1pad_ref, acc_ref, *, H, W, Cp):
    """One batch element per grid step.

    xflat_ref : ((H+3)*(W+2), Cp) bf16  zero-padded input, spatially flattened
    w*_ref    : (9, Cp, Cp)       bf16  3x3 weights, tap-major, BN scale folded
    b*_ref    : (1, Cp)           f32   folded BN bias
    mask_ref  : (H*(W+2), 1)      f32   1.0 on valid wide columns, 0.0 on junk
    out_ref   : (H*(W+2), Cp)     f32   "wide" output (junk cols dropped later)
    y1pad_ref : ((H+3)*(W+2), Cp) bf16  scratch: padded conv2 input staging
    acc_ref   : (H*(W+2), Cp)     f32   scratch: shared conv accumulator
    """
    f32 = jnp.float32
    Wp = W + 2                 # padded width
    L = H * Wp                 # "wide" output length (includes junk columns)
    P = (H + 3) * Wp           # flattened padded rows per image
    HEAD = Wp + 1              # top pad row + left pad of image row 0

    def tap(k):                # flat offset of tap (dy, dx) = (k//3, k%3)
        return (k // 3) * Wp + (k % 3)

    # ---- conv1 (3x3, pad=1): 9 MXU matmuls on sublane-shifted flat slices.
    # BN1 scale is pre-folded into w1; BN1 bias seeds the accumulator.
    acc_ref[...] = b1_ref[...] + jnp.dot(
        xflat_ref[0:L, :], w1_ref[0], preferred_element_type=f32)
    for k in range(1, 9):
        s = tap(k)
        acc_ref[...] += jnp.dot(xflat_ref[s:s + L, :], w1_ref[k],
                                preferred_element_type=f32)

    # ---- relu, zero the wide junk columns, stage as conv2's padded input ----
    # Border strips are tiny (3*(W+2) rows); zero them every step so the kernel
    # stays correct even if the batch grid axis is sharded across cores.
    y1pad_ref[0:HEAD, :] = jnp.zeros((HEAD, Cp), y1pad_ref.dtype)
    y1pad_ref[HEAD + L:P, :] = jnp.zeros((P - HEAD - L, Cp), y1pad_ref.dtype)
    y1 = jnp.maximum(acc_ref[...], 0.0) * mask_ref[...]
    y1pad_ref[HEAD:HEAD + L, :] = y1.astype(y1pad_ref.dtype)

    # ---- conv2 (3x3, pad=1), BN2 folded the same way ----
    acc_ref[...] = b2_ref[...] + jnp.dot(
        y1pad_ref[0:L, :], w2_ref[0], preferred_element_type=f32)
    for k in range(1, 9):
        s = tap(k)
        acc_ref[...] += jnp.dot(y1pad_ref[s:s + L, :], w2_ref[k],
                                preferred_element_type=f32)

    # ---- residual add + relu.  x[h, w] sits at flat offset HEAD in the wide
    # frame, so the residual is one more sublane-offset slice (no reshape). ----
    res = xflat_ref[HEAD:HEAD + L, :].astype(f32)
    out_ref[...] = jnp.maximum(acc_ref[...] + res, 0.0)


def basic_block_pallas(x_nchw, w1, w2, bn1, bn2):
    """x_nchw: (N, Cin, H, W) f32.  w1: (Cout, Cin, 3, 3), w2: (Cout, Cout, 3, 3).
    bn*: dict with gamma, beta, mean, var (eval-mode BN)."""
    N, Cin, H, W = x_nchw.shape
    Cout = w1.shape[0]
    assert Cin == Cout, "stride=1 BasicBlock identity residual requires Cin == Cout"
    eps = 1e-5
    LANE = 128
    Cp = ((max(Cin, Cout) + LANE - 1) // LANE) * LANE   # lane-dense channel count
    Wp = W + 2
    L = H * Wp
    P = (H + 3) * Wp

    # ---- fold eval-mode BN into conv weights (scale) and a bias vector ----
    def fold(bn):
        s = bn["gamma"] / jnp.sqrt(bn["var"] + eps)
        b = bn["beta"] - bn["mean"] * s
        return s.astype(jnp.float32), b.astype(jnp.float32)

    s1, b1 = fold(bn1)
    s2, b2 = fold(bn2)

    def prep_w(w, s, cin):
        # (Cout, cin, 3, 3) -> (9, cin, Cout) tap-major, BN scale folded into
        # the output channel, zero-padded to Cp, bf16 for the MXU.
        wt = jnp.transpose(w.astype(jnp.float32), (2, 3, 1, 0)).reshape(9, cin, Cout)
        wt = wt * s[None, None, :]
        wt = jnp.pad(wt, ((0, 0), (0, Cp - cin), (0, Cp - Cout)))
        return wt.astype(jnp.bfloat16)

    w1_t = prep_w(w1, s1, Cin)
    w2_t = prep_w(w2, s2, Cout)
    b1_p = jnp.pad(b1, (0, Cp - Cout)).reshape(1, Cp)
    b2_p = jnp.pad(b2, (0, Cp - Cout)).reshape(1, Cp)

    # ---- NCHW -> NHWC, spatial pad (top 1, bottom 2, left/right 1), channel
    # pad to Cp, flatten spatial -> (P, Cp), cast to bf16 for the MXU. ----
    x = jnp.transpose(x_nchw, (0, 2, 3, 1)).astype(jnp.float32)
    xp = jnp.pad(x, ((0, 0), (1, 2), (1, 1), (0, Cp - Cin)))
    xflat = xp.reshape(N, P, Cp).astype(jnp.bfloat16)

    # valid-column mask for the "wide" frame (columns >= W are junk)
    mask = ((jnp.arange(L, dtype=jnp.int32) % Wp) < W).astype(jnp.float32)
    mask = mask.reshape(L, 1)

    kernel = functools.partial(_basic_block_kernel, H=H, W=W, Cp=Cp)

    # Scoped-VMEM hint: inputs/outputs double-buffered + scratch, with headroom,
    # clamped to stay safe on v7x (64 MiB physical per TensorCore).
    vmem_bytes = (2 * P * Cp * 2 + 2 * L * Cp * 4 + 4 * 9 * Cp * Cp * 2
                  + P * Cp * 2 + L * Cp * 4 + 4 * L)
    vmem_limit = int(min(max(vmem_bytes * 3 // 2, 32 * 1024 * 1024),
                         60 * 1024 * 1024))

    out_wide = pl.pallas_call(
        kernel,
        out_shape=jax.ShapeDtypeStruct((N, L, Cp), jnp.float32),
        grid_spec=pltpu.PrefetchScalarGridSpec(
            num_scalar_prefetch=0,
            grid=(N,),
            in_specs=[
                pl.BlockSpec((None, P, Cp), lambda n: (n, 0, 0)),   # xflat
                pl.BlockSpec((9, Cp, Cp), lambda n: (0, 0, 0)),     # w1
                pl.BlockSpec((9, Cp, Cp), lambda n: (0, 0, 0)),     # w2
                pl.BlockSpec((1, Cp), lambda n: (0, 0)),            # b1
                pl.BlockSpec((1, Cp), lambda n: (0, 0)),            # b2
                pl.BlockSpec((L, 1), lambda n: (0, 0)),             # mask
            ],
            out_specs=pl.BlockSpec((None, L, Cp), lambda n: (n, 0, 0)),
            scratch_shapes=[
                pltpu.VMEM((P, Cp), jnp.bfloat16),   # y1 staging (conv2 input)
                pltpu.VMEM((L, Cp), jnp.float32),    # shared conv accumulator
            ],
        ),
        compiler_params=pltpu.CompilerParams(
            dimension_semantics=("parallel",),
            vmem_limit_bytes=vmem_limit,
        ),
    )(xflat, w1_t, w2_t, b1_p, b2_p, mask)

    # un-widen: drop junk columns and padded channels, back to NCHW
    out = out_wide.reshape(N, H, Wp, Cp)[:, :, :W, :Cout]
    return jnp.transpose(out, (0, 3, 1, 2))


def basic_block_reference(x_nchw, w1, w2, bn1, bn2):
    """Pure-JAX f32 reference (NCHW, matches PyTorch eval-mode semantics)."""
    eps = 1e-5

    def conv3x3(x, w):
        return lax.conv_general_dilated(
            x, w, window_strides=(1, 1), padding=((1, 1), (1, 1)),
            dimension_numbers=("NCHW", "OIHW", "NCHW"))

    def bn(x, p):
        s = (p["gamma"] / jnp.sqrt(p["var"] + eps)).reshape(1, -1, 1, 1)
        b = (p["beta"] - p["mean"] * p["gamma"] / jnp.sqrt(p["var"] + eps)).reshape(1, -1, 1, 1)
        return x * s + b

    y = jnp.maximum(bn(conv3x3(x_nchw, w1), bn1), 0.0)
    y = bn(conv3x3(y, w2), bn2)
    return jnp.maximum(x_nchw + y, 0.0)


if __name__ == "__main__":
    key = jax.random.PRNGKey(0)
    N, C, H, W = 2, 8, 16, 16  # in_planes == planes, stride=1

    ks = jax.random.split(key, 12)
    x = jax.random.normal(ks[0], (N, C, H, W), jnp.float32)
    w1 = 0.1 * jax.random.normal(ks[1], (C, C, 3, 3), jnp.float32)
    w2 = 0.1 * jax.random.normal(ks[2], (C, C, 3, 3), jnp.float32)
    bn1 = {
        "gamma": 1.0 + 0.1 * jax.random.normal(ks[3], (C,), jnp.float32),
        "beta": 0.1 * jax.random.normal(ks[4], (C,), jnp.float32),
        "mean": 0.1 * jax.random.normal(ks[5], (C,), jnp.float32),
        "var": 1.0 + jnp.abs(0.1 * jax.random.normal(ks[6], (C,), jnp.float32)),
    }
    bn2 = {
        "gamma": 1.0 + 0.1 * jax.random.normal(ks[7], (C,), jnp.float32),
        "beta": 0.1 * jax.random.normal(ks[8], (C,), jnp.float32),
        "mean": 0.1 * jax.random.normal(ks[9], (C,), jnp.float32),
        "var": 1.0 + jnp.abs(0.1 * jax.random.normal(ks[10], (C,), jnp.float32)),
    }

    out = basic_block_pallas(x, w1, w2, bn1, bn2)
    out = jax.block_until_ready(out)

    ref = basic_block_reference(x, w1, w2, bn1, bn2)
    assert out.shape == (N, C, H, W)
    # bf16 MXU inputs with f32 accumulation -> compare at bf16-level tolerance
    assert jnp.allclose(out, ref, atol=5e-2, rtol=5e-2), "mismatch vs reference"

    print("KERNEL_OK")
</pallas_src>

<mosaic_0001>
module attributes {stable_mosaic.version = 11 : i64} {
  func.func @_basic_block_kernel(%arg0: i32, %arg1: memref<1x342x128xbf16, #tpu.memory_space<vmem>>, %arg2: memref<9x128x128xbf16, #tpu.memory_space<vmem>>, %arg3: memref<9x128x128xbf16, #tpu.memory_space<vmem>>, %arg4: memref<1x128xf32, #tpu.memory_space<vmem>>, %arg5: memref<1x128xf32, #tpu.memory_space<vmem>>, %arg6: memref<288x1xf32, #tpu.memory_space<vmem>>, %arg7: memref<1x288x128xf32, #tpu.memory_space<vmem>>, %arg8: memref<342x128xbf16, #tpu.memory_space<vmem>>, %arg9: memref<288x128xf32, #tpu.memory_space<vmem>>) attributes {dimension_semantics = [#tpu.dimension_semantics<parallel>], iteration_bounds = array<i64: 2>, scalar_prefetch = 0 : i64, scratch_operands = 2 : i64, tpu.core_type = #tpu.core_type<tc>, window_params = [{transform_indices = @transform_0, window_bounds = array<i64: 1, 342, 128>}, {pipeline_mode = #tpu.pipeline_mode<synchronous>, transform_indices = @transform_1, window_bounds = array<i64: 9, 128, 128>}, {pipeline_mode = #tpu.pipeline_mode<synchronous>, transform_indices = @transform_2, window_bounds = array<i64: 9, 128, 128>}, {pipeline_mode = #tpu.pipeline_mode<synchronous>, transform_indices = @transform_3, window_bounds = array<i64: 1, 128>}, {pipeline_mode = #tpu.pipeline_mode<synchronous>, transform_indices = @transform_4, window_bounds = array<i64: 1, 128>}, {pipeline_mode = #tpu.pipeline_mode<synchronous>, transform_indices = @transform_5, window_bounds = array<i64: 288, 1>}, {transform_indices = @transform_6, window_bounds = array<i64: 1, 288, 128>}]} {
    %c0 = arith.constant 0 : index
    %c0_0 = arith.constant 0 : index
    %0 = vector.load %arg4[%c0, %c0_0] : memref<1x128xf32, #tpu.memory_space<vmem>>, vector<1x128xf32>
    %c0_1 = arith.constant 0 : index
    %c0_2 = arith.constant 0 : index
    %c0_3 = arith.constant 0 : index
    %1 = vector.load %arg1[%c0_1, %c0_2, %c0_3] : memref<1x342x128xbf16, #tpu.memory_space<vmem>>, vector<1x288x128xbf16>
    %2 = vector.shape_cast %1 : vector<1x288x128xbf16> to vector<288x128xbf16>
    %c0_4 = arith.constant 0 : index
    %c0_5 = arith.constant 0 : index
    %c0_6 = arith.constant 0 : index
    %3 = vector.load %arg2[%c0_4, %c0_5, %c0_6] : memref<9x128x128xbf16, #tpu.memory_space<vmem>>, vector<1x128x128xbf16>
    %4 = vector.shape_cast %3 : vector<1x128x128xbf16> to vector<128x128xbf16>
    %cst = arith.constant dense<0.000000e+00> : vector<288x128xf32>
    %5 = tpu.matmul %2, %4, %cst {dimension_numbers = #tpu.dot_dimension_numbers<[1], [0], [0], [1], [0, 0, 1, 1], [], []>} : vector<288x128xbf16>, vector<128x128xbf16>, vector<288x128xf32> -> vector<288x128xf32>
    %6 = vector.broadcast %0 : vector<1x128xf32> to vector<288x128xf32>
    %7 = arith.addf %6, %5 : vector<288x128xf32>
    %c0_7 = arith.constant 0 : index
    %c0_8 = arith.constant 0 : index
    %8 = vector.load %arg9[%c0_7, %c0_8] : memref<288x128xf32, #tpu.memory_space<vmem>>, vector<288x128xf32>
    tpu.vector_store %arg9[%c0_7, %c0_8], %7 {strides = array<i32>} : memref<288x128xf32, #tpu.memory_space<vmem>>, vector<288x128xf32>,
    %c0_9 = arith.constant 0 : index
    %c0_10 = arith.constant 0 : index
    %9 = vector.load %arg9[%c0_9, %c0_10] : memref<288x128xf32, #tpu.memory_space<vmem>>, vector<288x128xf32>
    %c0_11 = arith.constant 0 : index
    %c1 = arith.constant 1 : index
    %c0_12 = arith.constant 0 : index
    %10 = vector.load %arg1[%c0_11, %c1, %c0_12] : memref<1x342x128xbf16, #tpu.memory_space<vmem>>, vector<1x288x128xbf16>
    %11 = vector.shape_cast %10 : vector<1x288x128xbf16> to vector<288x128xbf16>
    %c1_13 = arith.constant 1 : index
    %c0_14 = arith.constant 0 : index
    %c0_15 = arith.constant 0 : index
    %12 = vector.load %arg2[%c1_13, %c0_14, %c0_15] : memref<9x128x128xbf16, #tpu.memory_space<vmem>>, vector<1x128x128xbf16>
    %13 = vector.shape_cast %12 : vector<1x128x128xbf16> to vector<128x128xbf16>
    %cst_16 = arith.constant dense<0.000000e+00> : vector<288x128xf32>
    %14 = tpu.matmul %11, %13, %cst_16 {dimension_numbers = #tpu.dot_dimension_numbers<[1], [0], [0], [1], [0, 0, 1, 1], [], []>} : vector<288x128xbf16>, vector<128x128xbf16>, vector<288x128xf32> -> vector<288x128xf32>
    %15 = arith.addf %9, %14 : vector<288x128xf32>
    %c0_17 = arith.constant 0 : index
    %c0_18 = arith.constant 0 : index
    %16 = vector.load %arg9[%c0_17, %c0_18] : memref<288x128xf32, #tpu.memory_space<vmem>>, vector<288x128xf32>
    tpu.vector_store %arg9[%c0_17, %c0_18], %15 {strides = array<i32>} : memref<288x128xf32, #tpu.memory_space<vmem>>, vector<288x128xf32>,
    %c0_19 = arith.constant 0 : index
    %c0_20 = arith.constant 0 : index
    %17 = vector.load %arg9[%c0_19, %c0_20] : memref<288x128xf32, #tpu.memory_space<vmem>>, vector<288x128xf32>
    %c0_21 = arith.constant 0 : index
    %c2 = arith.constant 2 : index
    %c0_22 = arith.constant 0 : index
    %18 = vector.load %arg1[%c0_21, %c2, %c0_22] : memref<1x342x128xbf16, #tpu.memory_space<vmem>>, vector<1x288x128xbf16>
    %19 = vector.shape_cast %18 : vector<1x288x128xbf16> to vector<288x128xbf16>
    %c2_23 = arith.constant 2 : index
    %c0_24 = arith.constant 0 : index
    %c0_25 = arith.constant 0 : index
    %20 = vector.load %arg2[%c2_23, %c0_24, %c0_25] : memref<9x128x128xbf16, #tpu.memory_space<vmem>>, vector<1x128x128xbf16>
    %21 = vector.shape_cast %20 : vector<1x128x128xbf16> to vector<128x128xbf16>
    %cst_26 = arith.constant dense<0.000000e+00> : vector<288x128xf32>
    %22 = tpu.matmul %19, %21, %cst_26 {dimension_numbers = #tpu.dot_dimension_numbers<[1], [0], [0], [1], [0, 0, 1, 1], [], []>} : vector<288x128xbf16>, vector<128x128xbf16>, vector<288x128xf32> -> vector<288x128xf32>
    %23 = arith.addf %17, %22 : vector<288x128xf32>
    %c0_27 = arith.constant 0 : index
    %c0_28 = arith.constant 0 : index
    %24 = vector.load %arg9[%c0_27, %c0_28] : memref<288x128xf32, #tpu.memory_space<vmem>>, vector<288x128xf32>
    tpu.vector_store %arg9[%c0_27, %c0_28], %23 {strides = array<i32>} : memref<288x128xf32, #tpu.memory_space<vmem>>, vector<288x128xf32>,
    %c0_29 = arith.constant 0 : index
    %c0_30 = arith.constant 0 : index
    %25 = vector.load %arg9[%c0_29, %c0_30] : memref<288x128xf32, #tpu.memory_space<vmem>>, vector<288x128xf32>
    %c0_31 = arith.constant 0 : index
    %c18 = arith.constant 18 : index
    %c0_32 = arith.constant 0 : index
    %26 = vector.load %arg1[%c0_31, %c18, %c0_32] : memref<1x342x128xbf16, #tpu.memory_space<vmem>>, vector<1x288x128xbf16>
    %27 = vector.shape_cast %26 : vector<1x288x128xbf16> to vector<288x128xbf16>
    %c3 = arith.constant 3 : index
    %c0_33 = arith.constant 0 : index
    %c0_34 = arith.constant 0 : index
    %28 = vector.load %arg2[%c3, %c0_33, %c0_34] : memref<9x128x128xbf16, #tpu.memory_space<vmem>>, vector<1x128x128xbf16>
    %29 = vector.shape_cast %28 : vector<1x128x128xbf16> to vector<128x128xbf16>
    %cst_35 = arith.constant dense<0.000000e+00> : vector<288x128xf32>
    %30 = tpu.matmul %27, %29, %cst_35 {dimension_numbers = #tpu.dot_dimension_numbers<[1], [0], [0], [1], [0, 0, 1, 1], [], []>} : vector<288x128xbf16>, vector<128x128xbf16>, vector<288x128xf32> -> vector<288x128xf32>
    %31 = arith.addf %25, %30 : vector<288x128xf32>
    %c0_36 = arith.constant 0 : index
    %c0_37 = arith.constant 0 : index
    %32 = vector.load %arg9[%c0_36, %c0_37] : memref<288x128xf32, #tpu.memory_space<vmem>>, vector<288x128xf32>
    tpu.vector_store %arg9[%c0_36, %c0_37], %31 {strides = array<i32>} : memref<288x128xf32, #tpu.memory_space<vmem>>, vector<288x128xf32>,
    %c0_38 = arith.constant 0 : index
    %c0_39 = arith.constant 0 : index
    %33 = vector.load %arg9[%c0_38, %c0_39] : memref<288x128xf32, #tpu.memory_space<vmem>>, vector<288x128xf32>
    %c0_40 = arith.constant 0 : index
    %c19 = arith.constant 19 : index
    %c0_41 = arith.constant 0 : index
    %34 = vector.load %arg1[%c0_40, %c19, %c0_41] : memref<1x342x128xbf16, #tpu.memory_space<vmem>>, vector<1x288x128xbf16>
    %35 = vector.shape_cast %34 : vector<1x288x128xbf16> to vector<288x128xbf16>
    %c4 = arith.constant 4 : index
    %c0_42 = arith.constant 0 : index
    %c0_43 = arith.constant 0 : index
    %36 = vector.load %arg2[%c4, %c0_42, %c0_43] : memref<9x128x128xbf16, #tpu.memory_space<vmem>>, vector<1x128x128xbf16>
    %37 = vector.shape_cast %36 : vector<1x128x128xbf16> to vector<128x128xbf16>
    %cst_44 = arith.constant dense<0.000000e+00> : vector<288x128xf32>
    %38 = tpu.matmul %35, %37, %cst_44 {dimension_numbers = #tpu.dot_dimension_numbers<[1], [0], [0], [1], [0, 0, 1, 1], [], []>} : vector<288x128xbf16>, vector<128x128xbf16>, vector<288x128xf32> -> vector<288x128xf32>
    %39 = arith.addf %33, %38 : vector<288x128xf32>
    %c0_45 = arith.constant 0 : index
    %c0_46 = arith.constant 0 : index
    %40 = vector.load %arg9[%c0_45, %c0_46] : memref<288x128xf32, #tpu.memory_space<vmem>>, vector<288x128xf32>
    tpu.vector_store %arg9[%c0_45, %c0_46], %39 {strides = array<i32>} : memref<288x128xf32, #tpu.memory_space<vmem>>, vector<288x128xf32>,
    %c0_47 = arith.constant 0 : index
    %c0_48 = arith.constant 0 : index
    %41 = vector.load %arg9[%c0_47, %c0_48] : memref<288x128xf32, #tpu.memory_space<vmem>>, vector<288x128xf32>
    %c0_49 = arith.constant 0 : index
    %c20 = arith.constant 20 : index
    %c0_50 = arith.constant 0 : index
    %42 = vector.load %arg1[%c0_49, %c20, %c0_50] : memref<1x342x128xbf16, #tpu.memory_space<vmem>>, vector<1x288x128xbf16>
    %43 = vector.shape_cast %42 : vector<1x288x128xbf16> to vector<288x128xbf16>
    %c5 = arith.constant 5 : index
    %c0_51 = arith.constant 0 : index
    %c0_52 = arith.constant 0 : index
    %44 = vector.load %arg2[%c5, %c0_51, %c0_52] : memref<9x128x128xbf16, #tpu.memory_space<vmem>>, vector<1x128x128xbf16>
    %45 = vector.shape_cast %44 : vector<1x128x128xbf16> to vector<128x128xbf16>
    %cst_53 = arith.constant dense<0.000000e+00> : vector<288x128xf32>
    %46 = tpu.matmul %43, %45, %cst_53 {dimension_numbers = #tpu.dot_dimension_numbers<[1], [0], [0], [1], [0, 0, 1, 1], [], []>} : vector<288x128xbf16>, vector<128x128xbf16>, vector<288x128xf32> -> vector<288x128xf32>
    %47 = arith.addf %41, %46 : vector<288x128xf32>
    %c0_54 = arith.constant 0 : index
    %c0_55 = arith.constant 0 : index
    %48 = vector.load %arg9[%c0_54, %c0_55] : memref<288x128xf32, #tpu.memory_space<vmem>>, vector<288x128xf32>
    tpu.vector_store %arg9[%c0_54, %c0_55], %47 {strides = array<i32>} : memref<288x128xf32, #tpu.memory_space<vmem>>, vector<288x128xf32>,
    %c0_56 = arith.constant 0 : index
    %c0_57 = arith.constant 0 : index
    %49 = vector.load %arg9[%c0_56, %c0_57] : memref<288x128xf32, #tpu.memory_space<vmem>>, vector<288x128xf32>
    %c0_58 = arith.constant 0 : index
    %c36 = arith.constant 36 : index
    %c0_59 = arith.constant 0 : index
    %50 = vector.load %arg1[%c0_58, %c36, %c0_59] : memref<1x342x128xbf16, #tpu.memory_space<vmem>>, vector<1x288x128xbf16>
    %51 = vector.shape_cast %50 : vector<1x288x128xbf16> to vector<288x128xbf16>
    %c6 = arith.constant 6 : index
    %c0_60 = arith.constant 0 : index
    %c0_61 = arith.constant 0 : index
    %52 = vector.load %arg2[%c6, %c0_60, %c0_61] : memref<9x128x128xbf16, #tpu.memory_space<vmem>>, vector<1x128x128xbf16>
    %53 = vector.shape_cast %52 : vector<1x128x128xbf16> to vector<128x128xbf16>
    %cst_62 = arith.constant dense<0.000000e+00> : vector<288x128xf32>
    %54 = tpu.matmul %51, %53, %cst_62 {dimension_numbers = #tpu.dot_dimension_numbers<[1], [0], [0], [1], [0, 0, 1, 1], [], []>} : vector<288x128xbf16>, vector<128x128xbf16>, vector<288x128xf32> -> vector<288x128xf32>
    %55 = arith.addf %49, %54 : vector<288x128xf32>
    %c0_63 = arith.constant 0 : index
    %c0_64 = arith.constant 0 : index
    %56 = vector.load %arg9[%c0_63, %c0_64] : memref<288x128xf32, #tpu.memory_space<vmem>>, vector<288x128xf32>
    tpu.vector_store %arg9[%c0_63, %c0_64], %55 {strides = array<i32>} : memref<288x128xf32, #tpu.memory_space<vmem>>, vector<288x128xf32>,
    %c0_65 = arith.constant 0 : index
    %c0_66 = arith.constant 0 : index
    %57 = vector.load %arg9[%c0_65, %c0_66] : memref<288x128xf32, #tpu.memory_space<vmem>>, vector<288x128xf32>
    %c0_67 = arith.constant 0 : index
    %c37 = arith.constant 37 : index
    %c0_68 = arith.constant 0 : index
    %58 = vector.load %arg1[%c0_67, %c37, %c0_68] : memref<1x342x128xbf16, #tpu.memory_space<vmem>>, vector<1x288x128xbf16>
    %59 = vector.shape_cast %58 : vector<1x288x128xbf16> to vector<288x128xbf16>
    %c7 = arith.constant 7 : index
    %c0_69 = arith.constant 0 : index
    %c0_70 = arith.constant 0 : index
    %60 = vector.load %arg2[%c7, %c0_69, %c0_70] : memref<9x128x128xbf16, #tpu.memory_space<vmem>>, vector<1x128x128xbf16>
    %61 = vector.shape_cast %60 : vector<1x128x128xbf16> to vector<128x128xbf16>
    %cst_71 = arith.constant dense<0.000000e+00> : vector<288x128xf32>
    %62 = tpu.matmul %59, %61, %cst_71 {dimension_numbers = #tpu.dot_dimension_numbers<[1], [0], [0], [1], [0, 0, 1, 1], [], []>} : vector<288x128xbf16>, vector<128x128xbf16>, vector<288x128xf32> -> vector<288x128xf32>
    %63 = arith.addf %57, %62 : vector<288x128xf32>
    %c0_72 = arith.constant 0 : index
    %c0_73 = arith.constant 0 : index
    %64 = vector.load %arg9[%c0_72, %c0_73] : memref<288x128xf32, #tpu.memory_space<vmem>>, vector<288x128xf32>
    tpu.vector_store %arg9[%c0_72, %c0_73], %63 {strides = array<i32>} : memref<288x128xf32, #tpu.memory_space<vmem>>, vector<288x128xf32>,
    %c0_74 = arith.constant 0 : index
    %c0_75 = arith.constant 0 : index
    %65 = vector.load %arg9[%c0_74, %c0_75] : memref<288x128xf32, #tpu.memory_space<vmem>>, vector<288x128xf32>
    %c0_76 = arith.constant 0 : index
    %c38 = arith.constant 38 : index
    %c0_77 = arith.constant 0 : index
    %66 = vector.load %arg1[%c0_76, %c38, %c0_77] : memref<1x342x128xbf16, #tpu.memory_space<vmem>>, vector<1x288x128xbf16>
    %67 = vector.shape_cast %66 : vector<1x288x128xbf16> to vector<288x128xbf16>
    %c8 = arith.constant 8 : index
    %c0_78 = arith.constant 0 : index
    %c0_79 = arith.constant 0 : index
    %68 = vector.load %arg2[%c8, %c0_78, %c0_79] : memref<9x128x128xbf16, #tpu.memory_space<vmem>>, vector<1x128x128xbf16>
    %69 = vector.shape_cast %68 : vector<1x128x128xbf16> to vector<128x128xbf16>
    %cst_80 = arith.constant dense<0.000000e+00> : vector<288x128xf32>
    %70 = tpu.matmul %67, %69, %cst_80 {dimension_numbers = #tpu.dot_dimension_numbers<[1], [0], [0], [1], [0, 0, 1, 1], [], []>} : vector<288x128xbf16>, vector<128x128xbf16>, vector<288x128xf32> -> vector<288x128xf32>
    %71 = arith.addf %65, %70 : vector<288x128xf32>
    %c0_81 = arith.constant 0 : index
    %c0_82 = arith.constant 0 : index
    %72 = vector.load %arg9[%c0_81, %c0_82] : memref<288x128xf32, #tpu.memory_space<vmem>>, vector<288x128xf32>
    tpu.vector_store %arg9[%c0_81, %c0_82], %71 {strides = array<i32>} : memref<288x128xf32, #tpu.memory_space<vmem>>, vector<288x128xf32>,
    %cst_83 = arith.constant 0.000000e+00 : bf16
    %73 = vector.broadcast %cst_83 : bf16 to vector<19x128xbf16>
    %c0_84 = arith.constant 0 : index
    %c0_85 = arith.constant 0 : index
    %74 = vector.load %arg8[%c0_84, %c0_85] : memref<342x128xbf16, #tpu.memory_space<vmem>>, vector<19x128xbf16>
    tpu.vector_store %arg8[%c0_84, %c0_85], %73 {strides = array<i32>} : memref<342x128xbf16, #tpu.memory_space<vmem>>, vector<19x128xbf16>,
    %cst_86 = arith.constant 0.000000e+00 : bf16
    %75 = vector.broadcast %cst_86 : bf16 to vector<35x128xbf16>
    %c307 = arith.constant 307 : index
    %c0_87 = arith.constant 0 : index
    %76 = vector.load %arg8[%c307, %c0_87] : memref<342x128xbf16, #tpu.memory_space<vmem>>, vector<35x128xbf16>
    tpu.vector_store %arg8[%c307, %c0_87], %75 {strides = array<i32>} : memref<342x128xbf16, #tpu.memory_space<vmem>>, vector<35x128xbf16>,
    %c0_88 = arith.constant 0 : index
    %c0_89 = arith.constant 0 : index
    %77 = vector.load %arg9[%c0_88, %c0_89] : memref<288x128xf32, #tpu.memory_space<vmem>>, vector<288x128xf32>
    %cst_90 = arith.constant 0.000000e+00 : f32
    %78 = vector.broadcast %cst_90 : f32 to vector<288x128xf32>
    %79 = arith.maximumf %77, %78 : vector<288x128xf32>
    %c0_91 = arith.constant 0 : index
    %c0_92 = arith.constant 0 : index
    %80 = vector.load %arg6[%c0_91, %c0_92] : memref<288x1xf32, #tpu.memory_space<vmem>>, vector<288x1xf32>
    %81 = vector.broadcast %80 : vector<288x1xf32> to vector<288x128xf32>
    %82 = arith.mulf %79, %81 : vector<288x128xf32>
    %83 = arith.truncf %82 : vector<288x128xf32> to vector<288x128xbf16>
    %c19_93 = arith.constant 19 : index
    %c0_94 = arith.constant 0 : index
    %84 = vector.load %arg8[%c19_93, %c0_94] : memref<342x128xbf16, #tpu.memory_space<vmem>>, vector<288x128xbf16>
    tpu.vector_store %arg8[%c19_93, %c0_94], %83 {strides = array<i32>} : memref<342x128xbf16, #tpu.memory_space<vmem>>, vector<288x128xbf16>,
    %c0_95 = arith.constant 0 : index
    %c0_96 = arith.constant 0 : index
    %85 = vector.load %arg5[%c0_95, %c0_96] : memref<1x128xf32, #tpu.memory_space<vmem>>, vector<1x128xf32>
    %c0_97 = arith.constant 0 : index
    %c0_98 = arith.constant 0 : index
    %86 = vector.load %arg8[%c0_97, %c0_98] : memref<342x128xbf16, #tpu.memory_space<vmem>>, vector<288x128xbf16>
    %c0_99 = arith.constant 0 : index
    %c0_100 = arith.constant 0 : index
    %c0_101 = arith.constant 0 : index
    %87 = vector.load %arg3[%c0_99, %c0_100, %c0_101] : memref<9x128x128xbf16, #tpu.memory_space<vmem>>, vector<1x128x128xbf16>
    %88 = vector.shape_cast %87 : vector<1x128x128xbf16> to vector<128x128xbf16>
    %cst_102 = arith.constant dense<0.000000e+00> : vector<288x128xf32>
    %89 = tpu.matmul %86, %88, %cst_102 {dimension_numbers = #tpu.dot_dimension_numbers<[1], [0], [0], [1], [0, 0, 1, 1], [], []>} : vector<288x128xbf16>, vector<128x128xbf16>, vector<288x128xf32> -> vector<288x128xf32>
    %90 = vector.broadcast %85 : vector<1x128xf32> to vector<288x128xf32>
    %91 = arith.addf %90, %89 : vector<288x128xf32>
    %c0_103 = arith.constant 0 : index
    %c0_104 = arith.constant 0 : index
    %92 = vector.load %arg9[%c0_103, %c0_104] : memref<288x128xf32, #tpu.memory_space<vmem>>, vector<288x128xf32>
    tpu.vector_store %arg9[%c0_103, %c0_104], %91 {strides = array<i32>} : memref<288x128xf32, #tpu.memory_space<vmem>>, vector<288x128xf32>,
    %c0_105 = arith.constant 0 : index
    %c0_106 = arith.constant 0 : index
    %93 = vector.load %arg9[%c0_105, %c0_106] : memref<288x128xf32, #tpu.memory_space<vmem>>, vector<288x128xf32>
    %c1_107 = arith.constant 1 : index
    %c0_108 = arith.constant 0 : index
    %94 = vector.load %arg8[%c1_107, %c0_108] : memref<342x128xbf16, #tpu.memory_space<vmem>>, vector<288x128xbf16>
    %c1_109 = arith.constant 1 : index
    %c0_110 = arith.constant 0 : index
    %c0_111 = arith.constant 0 : index
    %95 = vector.load %arg3[%c1_109, %c0_110, %c0_111] : memref<9x128x128xbf16, #tpu.memory_space<vmem>>, vector<1x128x128xbf16>
    %96 = vector.shape_cast %95 : vector<1x128x128xbf16> to vector<128x128xbf16>
    %cst_112 = arith.constant dense<0.000000e+00> : vector<288x128xf32>
    %97 = tpu.matmul %94, %96, %cst_112 {dimension_numbers = #tpu.dot_dimension_numbers<[1], [0], [0], [1], [0, 0, 1, 1], [], []>} : vector<288x128xbf16>, vector<128x128xbf16>, vector<288x128xf32> -> vector<288x128xf32>
    %98 = arith.addf %93, %97 : vector<288x128xf32>
    %c0_113 = arith.constant 0 : index
    %c0_114 = arith.constant 0 : index
    %99 = vector.load %arg9[%c0_113, %c0_114] : memref<288x128xf32, #tpu.memory_space<vmem>>, vector<288x128xf32>
    tpu.vector_store %arg9[%c0_113, %c0_114], %98 {strides = array<i32>} : memref<288x128xf32, #tpu.memory_space<vmem>>, vector<288x128xf32>,
    %c0_115 = arith.constant 0 : index
    %c0_116 = arith.constant 0 : index
    %100 = vector.load %arg9[%c0_115, %c0_116] : memref<288x128xf32, #tpu.memory_space<vmem>>, vector<288x128xf32>
    %c2_117 = arith.constant 2 : index
    %c0_118 = arith.constant 0 : index
    %101 = vector.load %arg8[%c2_117, %c0_118] : memref<342x128xbf16, #tpu.memory_space<vmem>>, vector<288x128xbf16>
    %c2_119 = arith.constant 2 : index
    %c0_120 = arith.constant 0 : index
    %c0_121 = arith.constant 0 : index
    %102 = vector.load %arg3[%c2_119, %c0_120, %c0_121] : memref<9x128x128xbf16, #tpu.memory_space<vmem>>, vector<1x128x128xbf16>
    %103 = vector.shape_cast %102 : vector<1x128x128xbf16> to vector<128x128xbf16>
    %cst_122 = arith.constant dense<0.000000e+00> : vector<288x128xf32>
    %104 = tpu.matmul %101, %103, %cst_122 {dimension_numbers = #tpu.dot_dimension_numbers<[1], [0], [0], [1], [0, 0, 1, 1], [], []>} : vector<288x128xbf16>, vector<128x128xbf16>, vector<288x128xf32> -> vector<288x128xf32>
    %105 = arith.addf %100, %104 : vector<288x128xf32>
    %c0_123 = arith.constant 0 : index
    %c0_124 = arith.constant 0 : index
    %106 = vector.load %arg9[%c0_123, %c0_124] : memref<288x128xf32, #tpu.memory_space<vmem>>, vector<288x128xf32>
    tpu.vector_store %arg9[%c0_123, %c0_124], %105 {strides = array<i32>} : memref<288x128xf32, #tpu.memory_space<vmem>>, vector<288x128xf32>,
    %c0_125 = arith.constant 0 : index
    %c0_126 = arith.constant 0 : index
    %107 = vector.load %arg9[%c0_125, %c0_126] : memref<288x128xf32, #tpu.memory_space<vmem>>, vector<288x128xf32>
    %c18_127 = arith.constant 18 : index
    %c0_128 = arith.constant 0 : index
    %108 = vector.load %arg8[%c18_127, %c0_128] : memref<342x128xbf16, #tpu.memory_space<vmem>>, vector<288x128xbf16>
    %c3_129 = arith.constant 3 : index
    %c0_130 = arith.constant 0 : index
    %c0_131 = arith.constant 0 : index
    %109 = vector.load %arg3[%c3_129, %c0_130, %c0_131] : memref<9x128x128xbf16, #tpu.memory_space<vmem>>, vector<1x128x128xbf16>
    %110 = vector.shape_cast %109 : vector<1x128x128xbf16> to vector<128x128xbf16>
    %cst_132 = arith.constant dense<0.000000e+00> : vector<288x128xf32>
    %111 = tpu.matmul %108, %110, %cst_132 {dimension_numbers = #tpu.dot_dimension_numbers<[1], [0], [0], [1], [0, 0, 1, 1], [], []>} : vector<288x128xbf16>, vector<128x128xbf16>, vector<288x128xf32> -> vector<288x128xf32>
    %112 = arith.addf %107, %111 : vector<288x128xf32>
    %c0_133 = arith.constant 0 : index
    %c0_134 = arith.constant 0 : index
    %113 = vector.load %arg9[%c0_133, %c0_134] : memref<288x128xf32, #tpu.memory_space<vmem>>, vector<288x128xf32>
    tpu.vector_store %arg9[%c0_133, %c0_134], %112 {strides = array<i32>} : memref<288x128xf32, #tpu.memory_space<vmem>>, vector<288x128xf32>,
    %c0_135 = arith.constant 0 : index
    %c0_136 = arith.constant 0 : index
    %114 = vector.load %arg9[%c0_135, %c0_136] : memref<288x128xf32, #tpu.memory_space<vmem>>, vector<288x128xf32>
    %c19_137 = arith.constant 19 : index
    %c0_138 = arith.constant 0 : index
    %115 = vector.load %arg8[%c19_137, %c0_138] : memref<342x128xbf16, #tpu.memory_space<vmem>>, vector<288x128xbf16>
    %c4_139 = arith.constant 4 : index
    %c0_140 = arith.constant 0 : index
    %c0_141 = arith.constant 0 : index
    %116 = vector.load %arg3[%c4_139, %c0_140, %c0_141] : memref<9x128x128xbf16, #tpu.memory_space<vmem>>, vector<1x128x128xbf16>
    %117 = vector.shape_cast %116 : vector<1x128x128xbf16> to vector<128x128xbf16>
    %cst_142 = arith.constant dense<0.000000e+00> : vector<288x128xf32>
    %118 = tpu.matmul %115, %117, %cst_142 {dimension_numbers = #tpu.dot_dimension_numbers<[1], [0], [0], [1], [0, 0, 1, 1], [], []>} : vector<288x128xbf16>, vector<128x128xbf16>, vector<288x128xf32> -> vector<288x128xf32>
    %119 = arith.addf %114, %118 : vector<288x128xf32>
    %c0_143 = arith.constant 0 : index
    %c0_144 = arith.constant 0 : index
    %120 = vector.load %arg9[%c0_143, %c0_144] : memref<288x128xf32, #tpu.memory_space<vmem>>, vector<288x128xf32>
    tpu.vector_store %arg9[%c0_143, %c0_144], %119 {strides = array<i32>} : memref<288x128xf32, #tpu.memory_space<vmem>>, vector<288x128xf32>,
    %c0_145 = arith.constant 0 : index
    %c0_146 = arith.constant 0 : index
    %121 = vector.load %arg9[%c0_145, %c0_146] : memref<288x128xf32, #tpu.memory_space<vmem>>, vector<288x128xf32>
    %c20_147 = arith.constant 20 : index
    %c0_148 = arith.constant 0 : index
    %122 = vector.load %arg8[%c20_147, %c0_148] : memref<342x128xbf16, #tpu.memory_space<vmem>>, vector<288x128xbf16>
    %c5_149 = arith.constant 5 : index
    %c0_150 = arith.constant 0 : index
    %c0_151 = arith.constant 0 : index
    %123 = vector.load %arg3[%c5_149, %c0_150, %c0_151] : memref<9x128x128xbf16, #tpu.memory_space<vmem>>, vector<1x128x128xbf16>
    %124 = vector.shape_cast %123 : vector<1x128x128xbf16> to vector<128x128xbf16>
    %cst_152 = arith.constant dense<0.000000e+00> : vector<288x128xf32>
    %125 = tpu.matmul %122, %124, %cst_152 {dimension_numbers = #tpu.dot_dimension_numbers<[1], [0], [0], [1], [0, 0, 1, 1], [], []>} : vector<288x128xbf16>, vector<128x128xbf16>, vector<288x128xf32> -> vector<288x128xf32>
    %126 = arith.addf %121, %125 : vector<288x128xf32>
    %c0_153 = arith.constant 0 : index
    %c0_154 = arith.constant 0 : index
    %127 = vector.load %arg9[%c0_153, %c0_154] : memref<288x128xf32, #tpu.memory_space<vmem>>, vector<288x128xf32>
    tpu.vector_store %arg9[%c0_153, %c0_154], %126 {strides = array<i32>} : memref<288x128xf32, #tpu.memory_space<vmem>>, vector<288x128xf32>,
    %c0_155 = arith.constant 0 : index
    %c0_156 = arith.constant 0 : index
    %128 = vector.load %arg9[%c0_155, %c0_156] : memref<288x128xf32, #tpu.memory_space<vmem>>, vector<288x128xf32>
    %c36_157 = arith.constant 36 : index
    %c0_158 = arith.constant 0 : index
    %129 = vector.load %arg8[%c36_157, %c0_158] : memref<342x128xbf16, #tpu.memory_space<vmem>>, vector<288x128xbf16>
    %c6_159 = arith.constant 6 : index
    %c0_160 = arith.constant 0 : index
    %c0_161 = arith.constant 0 : index
    %130 = vector.load %arg3[%c6_159, %c0_160, %c0_161] : memref<9x128x128xbf16, #tpu.memory_space<vmem>>, vector<1x128x128xbf16>
    %131 = vector.shape_cast %130 : vector<1x128x128xbf16> to vector<128x128xbf16>
    %cst_162 = arith.constant dense<0.000000e+00> : vector<288x128xf32>
    %132 = tpu.matmul %129, %131, %cst_162 {dimension_numbers = #tpu.dot_dimension_numbers<[1], [0], [0], [1], [0, 0, 1, 1], [], []>} : vector<288x128xbf16>, vector<128x128xbf16>, vector<288x128xf32> -> vector<288x128xf32>
    %133 = arith.addf %128, %132 : vector<288x128xf32>
    %c0_163 = arith.constant 0 : index
    %c0_164 = arith.constant 0 : index
    %134 = vector.load %arg9[%c0_163, %c0_164] : memref<288x128xf32, #tpu.memory_space<vmem>>, vector<288x128xf32>
    tpu.vector_store %arg9[%c0_163, %c0_164], %133 {strides = array<i32>} : memref<288x128xf32, #tpu.memory_space<vmem>>, vector<288x128xf32>,
    %c0_165 = arith.constant 0 : index
    %c0_166 = arith.constant 0 : index
    %135 = vector.load %arg9[%c0_165, %c0_166] : memref<288x128xf32, #tpu.memory_space<vmem>>, vector<288x128xf32>
    %c37_167 = arith.constant 37 : index
    %c0_168 = arith.constant 0 : index
    %136 = vector.load %arg8[%c37_167, %c0_168] : memref<342x128xbf16, #tpu.memory_space<vmem>>, vector<288x128xbf16>
    %c7_169 = arith.constant 7 : index
    %c0_170 = arith.constant 0 : index
    %c0_171 = arith.constant 0 : index
    %137 = vector.load %arg3[%c7_169, %c0_170, %c0_171] : memref<9x128x128xbf16, #tpu.memory_space<vmem>>, vector<1x128x128xbf16>
    %138 = vector.shape_cast %137 : vector<1x128x128xbf16> to vector<128x128xbf16>
    %cst_172 = arith.constant dense<0.000000e+00> : vector<288x128xf32>
    %139 = tpu.matmul %136, %138, %cst_172 {dimension_numbers = #tpu.dot_dimension_numbers<[1], [0], [0], [1], [0, 0, 1, 1], [], []>} : vector<288x128xbf16>, vector<128x128xbf16>, vector<288x128xf32> -> vector<288x128xf32>
    %140 = arith.addf %135, %139 : vector<288x128xf32>
    %c0_173 = arith.constant 0 : index
    %c0_174 = arith.constant 0 : index
    %141 = vector.load %arg9[%c0_173, %c0_174] : memref<288x128xf32, #tpu.memory_space<vmem>>, vector<288x128xf32>
    tpu.vector_store %arg9[%c0_173, %c0_174], %140 {strides = array<i32>} : memref<288x128xf32, #tpu.memory_space<vmem>>, vector<288x128xf32>,
    %c0_175 = arith.constant 0 : index
    %c0_176 = arith.constant 0 : index
    %142 = vector.load %arg9[%c0_175, %c0_176] : memref<288x128xf32, #tpu.memory_space<vmem>>, vector<288x128xf32>
    %c38_177 = arith.constant 38 : index
    %c0_178 = arith.constant 0 : index
    %143 = vector.load %arg8[%c38_177, %c0_178] : memref<342x128xbf16, #tpu.memory_space<vmem>>, vector<288x128xbf16>
    %c8_179 = arith.constant 8 : index
    %c0_180 = arith.constant 0 : index
    %c0_181 = arith.constant 0 : index
    %144 = vector.load %arg3[%c8_179, %c0_180, %c0_181] : memref<9x128x128xbf16, #tpu.memory_space<vmem>>, vector<1x128x128xbf16>
    %145 = vector.shape_cast %144 : vector<1x128x128xbf16> to vector<128x128xbf16>
    %cst_182 = arith.constant dense<0.000000e+00> : vector<288x128xf32>
    %146 = tpu.matmul %143, %145, %cst_182 {dimension_numbers = #tpu.dot_dimension_numbers<[1], [0], [0], [1], [0, 0, 1, 1], [], []>} : vector<288x128xbf16>, vector<128x128xbf16>, vector<288x128xf32> -> vector<288x128xf32>
    %147 = arith.addf %142, %146 : vector<288x128xf32>
    %c0_183 = arith.constant 0 : index
    %c0_184 = arith.constant 0 : index
    %148 = vector.load %arg9[%c0_183, %c0_184] : memref<288x128xf32, #tpu.memory_space<vmem>>, vector<288x128xf32>
    tpu.vector_store %arg9[%c0_183, %c0_184], %147 {strides = array<i32>} : memref<288x128xf32, #tpu.memory_space<vmem>>, vector<288x128xf32>,
    %c0_185 = arith.constant 0 : index
    %c19_186 = arith.constant 19 : index
    %c0_187 = arith.constant 0 : index
    %149 = vector.load %arg1[%c0_185, %c19_186, %c0_187] : memref<1x342x128xbf16, #tpu.memory_space<vmem>>, vector<1x288x128xbf16>
    %150 = vector.shape_cast %149 : vector<1x288x128xbf16> to vector<288x128xbf16>
    %151 = arith.extf %150 : vector<288x128xbf16> to vector<288x128xf32>
    %c0_188 = arith.constant 0 : index
    %c0_189 = arith.constant 0 : index
    %152 = vector.load %arg9[%c0_188, %c0_189] : memref<288x128xf32, #tpu.memory_space<vmem>>, vector<288x128xf32>
    %153 = arith.addf %152, %151 : vector<288x128xf32>
    %cst_190 = arith.constant 0.000000e+00 : f32
    %154 = vector.broadcast %cst_190 : f32 to vector<288x128xf32>
    %155 = arith.maximumf %153, %154 : vector<288x128xf32>
    %c0_191 = arith.constant 0 : index
    %c0_192 = arith.constant 0 : index
    %c0_193 = arith.constant 0 : index
    %156 = vector.load %arg7[%c0_191, %c0_192, %c0_193] : memref<1x288x128xf32, #tpu.memory_space<vmem>>, vector<1x288x128xf32>
    %157 = vector.shape_cast %156 : vector<1x288x128xf32> to vector<288x128xf32>
    %158 = vector.shape_cast %155 : vector<288x128xf32> to vector<1x288x128xf32>
    tpu.vector_store %arg7[%c0_191, %c0_192, %c0_193], %158 {strides = array<i32>} : memref<1x288x128xf32, #tpu.memory_space<vmem>>, vector<1x288x128xf32>,
    return
  }
  func.func @transform_0(%arg0: i32) -> (i32, i32, i32) {
    %c0_i32 = arith.constant 0 : i32
    %c0_i32_0 = arith.constant 0 : i32
    %c0_i32_1 = arith.constant 0 : i32
    return %arg0, %c0_i32, %c0_i32_0 : i32, i32, i32
  }
  func.func @transform_1(%arg0: i32) -> (i32, i32, i32) {
    %c0_i32 = arith.constant 0 : i32
    %c0_i32_0 = arith.constant 0 : i32
    %c0_i32_1 = arith.constant 0 : i32
    %c0_i32_2 = arith.constant 0 : i32
    return %c0_i32, %c0_i32_0, %c0_i32_1 : i32, i32, i32
  }
  func.func @transform_2(%arg0: i32) -> (i32, i32, i32) {
    %c0_i32 = arith.constant 0 : i32
    %c0_i32_0 = arith.constant 0 : i32
    %c0_i32_1 = arith.constant 0 : i32
    %c0_i32_2 = arith.constant 0 : i32
    return %c0_i32, %c0_i32_0, %c0_i32_1 : i32, i32, i32
  }
  func.func @transform_3(%arg0: i32) -> (i32, i32) {
    %c0_i32 = arith.constant 0 : i32
    %c0_i32_0 = arith.constant 0 : i32
    %c0_i32_1 = arith.constant 0 : i32
    return %c0_i32, %c0_i32_0 : i32, i32
  }
  func.func @transform_4(%arg0: i32) -> (i32, i32) {
    %c0_i32 = arith.constant 0 : i32
    %c0_i32_0 = arith.constant 0 : i32
    %c0_i32_1 = arith.constant 0 : i32
    return %c0_i32, %c0_i32_0 : i32, i32
  }
  func.func @transform_5(%arg0: i32) -> (i32, i32) {
    %c0_i32 = arith.constant 0 : i32
    %c0_i32_0 = arith.constant 0 : i32
    %c0_i32_1 = arith.constant 0 : i32
    return %c0_i32, %c0_i32_0 : i32, i32
  }
  func.func @transform_6(%arg0: i32) -> (i32, i32, i32) {
    %c0_i32 = arith.constant 0 : i32
    %c0_i32_0 = arith.constant 0 : i32
    %c0_i32_1 = arith.constant 0 : i32
    return %arg0, %c0_i32, %c0_i32_0 : i32, i32, i32
  }
}

</mosaic_0001>

<bundles_post_ra>
// kernel: tpu_custom_call.1
= control target key start
LH: loop header
LB: loop body
LE: loop exit
PB: predicated region body
PF: predicated region fallthrough
CT: control target
= control target key end

     0   :  { %11 = vsyncpa [#allocation5], 0  ;;  %s17937_s0 = inlined_call_operand.vmem [shape: bf16[2,342,128], index: 0, kind: input, shape index: {}]   ;;  %s17938_s1 = inlined_call_operand.vmem [shape: bf16[9,128,128], index: 1, kind: input, shape index: {}]   ;;  %s17939_s2 = inlined_call_operand.hbm [shape: bf16[9,128,128], index: 2, kind: input, shape index: {}]   ;;  %s17940_s3 = inlined_call_operand.vmem [shape: f32[1,128], index: 3, kind: input, shape index: {}]   ;;  %s17941_s4 = inlined_call_operand.vmem [shape: f32[1,128], index: 4, kind: input, shape index: {}]   ;;  %s17942_s5 = inlined_call_operand.vmem [shape: f32[288,1], index: 5, kind: input, shape index: {}]   ;;  %s17943_s6 = inlined_call_operand.hbm [shape: f32[2,288,128], index: 6, kind: output, shape index: {}]  }
   0x1   :  { %12 = vsyncpa [#allocation6], 0 }
   0x2   :  { %14 = vsyncpa [#allocation6 + $0x1], 0  ;;  %s14722_s21 = smov 0   ;;  %s14724_s22 = smov 0  }
   0x3   :  { %s14726_s23 = smov 0   ;;  %s14728_s24 = smov 0  }
   0x4 LB: > { %s14743_s25 = sadd.s32 4294967295, %s14678_s24   ;;  %s11856_s26 = sadd.s32 4294967294, %s14678_s24   ;;  %s14678_s24 = sphi %s14728_s24, %s18155_s24   ;;  %s14674_s23 = sphi %s14726_s23, %s18154_s23   ;;  %s14670_s22 = sphi %s14724_s22, %s18153_s22   ;;  %s14666_s21 = sphi %s14722_s21, %s18152_s21  }
   0x5   : > { %s14747_s27 = sadd.s32 1, %s14678_s24   ;;  %s158_s28 = sadd.s32 1, %s14674_s23 }
   0x6   : > { %s155_s29 = ssub.s32 %s14678_s24, %s14747_s27  ;;  %p168_p0 = scmp.ne.s32.totalorder %s14674_s23, %s14670_s22 }
   0x7   : > { %p156_p1 = scmp.eq.s32.totalorder %s155_s29, 0  ;;  %p169_p2 = scmp.eq.s32.totalorder %s14743_s25, 1 }
   0x8   : > { %p174_p3 = scmp.ne.s32.totalorder %s14670_s22, %s14666_s21  ;;  %p175_p4 = scmp.eq.s32.totalorder %s11856_s26, 1 }
   0x9   : > { %s14758_s30 = scalar_select %p156_p1, %s14674_s23, %s158_s28  }
   0xa   : > { %p14760_p5 = por %p169_p2, %p168_p0  ;;  %p14764_p6 = por %p175_p4, %p174_p3 }
   0xb   : > { %p11857_p7 = scmp.ge.s32.totalorder %s14678_s24, 1  ;;  %p182_p8 = scmp.lt.s32.totalorder %s14678_s24, 3 }
   0xc   : > { %s17950_s8 = scalar_select %p14764_p6, 1, 0 }
   0xd   : > { %p14058_p9 = scmp.eq.s32.totalorder %s14743_s25, 0  ;;  %p14771_p10 = pnand %p11857_p7, %p182_p8 }
   0xe   : > { %s14680_s10 = smov [#allocation4]  }
   0xf   : > { %s197_s11 = sshll.u32 %s14680_s10, 4  ;;  %p14050_p11 = pneg %p14771_p10  ;;  %s198_s11 = int_to_ptr.vmem [resolvable:$true] %s197_s11 }
  0x10   : > { %s14599_s12 = scalar_lea.vmem %s198_s11, 9216  ;;  %p14607_p3 = scmp.lt.s32.totalorder %s198_s11, %s198_s11 }
  0x11   : > { %p14051_p12 = pnand %p14058_p9, %p14050_p11  ;;  %p14600_p0 = scmp.ne.s32.totalorder %s198_s11, %s14599_s12 }
  0x12   : > { %p14608_p4 = scmp.lt.s32.totalorder %s14599_s12, %s14599_s12 }
  0x13   : > { %p14590_p13 = pneg %p14051_p12 }
  0x14   : > { %p14609_p6 = por %p14608_p4, %p14607_p3 }
  0x15   : > { %p14602_p1 = pnand %p14600_p0, %p14590_p13 }
  0x17   : > { %p14603_p2 = pneg %p14602_p1 }
  0x19   : > { %p14610_p7 = pnand %p14609_p6, %p14603_p2 }
  0x1b   : > { %14613 = shalt.err (!%p14610_p7)
}
  0x1c   : > { %s14681_s13 = smov 64   ;;  %s14682_s14 = smov 4  }
  0x1d   : > { %14053 = dma.hbm_to_vmem [thread:$0]  (!%p14051_p12), %s17939_s2, 9216, %s198_s11, [#allocation5], %s14681_s13, %s14681_s13, %s14682_s14  }
  0x1e   : > { %230 = sbr.rel (%p14771_p10) target bundleno = 1187 (0x4a3), region = 44 }
  0x23   : > { %14657 = dma.done.wait (%p14058_p9), [#allocation5], 9216  }
  0x24   : > { %14659 = vsyncadd (%p14058_p9), [#allocation5], 4294958080  ;;  %v14101_v0 = vld [vmem:[%s17938_s1 + $0x38] sm:$0xff]   ;;  %v14103_v2 = vld [vmem:[%s17938_s1 + $0x30] sm:$0xff]   ;;  %p260_p6 = scmp.lt.s32.totalorder %s14743_s25, 1  ;;  %vm1560_vm1 = vcmask 1046528  }
  0x25   : > { %v14102_v1 = vld [vmem:[%s17938_s1 + $0x78] sm:$0xff]   ;;  %13105 = vmatprep.subr.bf16.mxu0 %v14101_v0  ;;  %v14104_v3 = vld [vmem:[%s17938_s1 + $0x70] sm:$0xff]   ;;  %v14105_v4 = vld [vmem:[%s17938_s1 + $0x28] sm:$0xff]   ;;  %vm913_vm0 = vsmask.f32 7424  ;;  %vm3300_vm2 = vcmask 1045504  }
  0x26   : > { %13106 = vmatpush3.bf16.msra.mxu0 %v14101_v0  ;;  %13157 = vmatprep.subr.bf16.mxu1 %v14102_v1  ;;  %v14106_v5 = vld [vmem:[%s17938_s1 + $0x68] sm:$0xff]   ;;  %s261_s14 = scalar_select %p260_p6, %s14743_s25, 1  ;;  %v14107_v6 = vld [vmem:[%s17938_s1 + $0x20] sm:$0xff]   ;;  %v14109_v8 = vld [vmem:[%s17938_s1 + $0x18] sm:$0xff]   ;;  %vm2631_vm3 = vsmask.f32 6400 }
  0x27   : > { %13158 = vmatpush3.bf16.msra.mxu1 %v14102_v1  ;;  %13107 = vmatprep.subr.bf16.mxu0 %v14103_v2  ;;  %v14108_v7 = vld [vmem:[%s17938_s1 + $0x60] sm:$0xff]   ;;  %v14110_v9 = vld [vmem:[%s17938_s1 + $0x58] sm:$0xff]   ;;  %v14111_v10 = vld [vmem:[%s17938_s1 + $0x10] sm:$0xff]   ;;  %vm4371_vm4 = vsmask.f32 5376  ;;  %vm5040_vm5 = vcmask 1044480  }
  0x28   : > { %13159 = vmatprep.subr.bf16.mxu1 %v14104_v3  ;;  %s14042_s19 = smul.u32 172, %s261_s14  ;;  %v14112_v12 = vld [vmem:[%s17938_s1 + $0x50] sm:$0xff]   ;;  %v14113_v13 = vld [vmem:[%s17938_s1 + $0x8] sm:$0xff]   ;;  %v14115_v21 = vld [vmem:[%s17938_s1] sm:$0xff]   ;;  %vm5395_vm6 = vcmask 1041408   ;;  %vm5401_vm9 = vcmask 1043457  }
  0x29   : > { %v14114_v14 = vld [vmem:[%s17938_s1 + $0x48] sm:$0xff]   ;;  %v14116_v27 = vld [vmem:[%s17938_s1 + $0x40] sm:$0xff]   ;;  %v14119_v33 = vld [vmem:[%s17938_s1 + $0xb8] sm:$0xff]   ;;  %vm5396_vm7 = vsmask.f32 1280  ;;  %s257_s20 = sand.u32 1, %s14670_s22  }
  0x2a   : > { %13108 = vmatpush3.bf16.msra.mxu0 %v14103_v2  ;;  %s14826_s13 = scalar_lea.vmem %s17937_s0, %s14042_s19  ;;  %v14126_v43 = vld [vmem:[%s17938_s1 + $0xb0] sm:$0xff]   ;;  %v14132_v50 = vld [vmem:[%s17938_s1 + $0xa8] sm:$0xff]   ;;  %v14137_v63 = vld [vmem:[%s17938_s1 + $0xa0] sm:$0xff]   ;;  %vm5402_vm10 = vsmask.f32 7942  ;;  %s17677_s26 = smul.u32 288, %s257_s20 }
  0x2b   : > { %13160 = vmatpush3.bf16.msra.mxu1 %v14104_v3  ;;  %13109 = vmatprep.subr.bf16.mxu0 %v14105_v4  ;;  %v14117_v11 = vld [vmem:[%s14826_s13] sm:$0xff]   ;;  %v14121_v16 = vld [vmem:[%s14826_s13 + $0x8] sm:$0xff]   ;;  %v14122_v17 = vld [vmem:[%s14826_s13 + $0x10] sm:$0xff]   ;;  %vm5843_vm12 = vsmask.f32 5392  ;;  %s14684_s14 = smov [#allocation7]  }
  0x2c   : > { %13161 = vmatprep.subr.bf16.mxu1 %v14106_v5  ;;  %13121 = vmatprep.mubr.bf16.mxu0 %v14117_v11  ;;  %v14120_v15 = vld [vmem:[%s14826_s13] sm:$0xff]   ;;  %v922_v20 = vshll.u32 %v14121_v16, 16  ;;  %v930_v22 = vshll.u32 %v14122_v17, 16  ;;  %v926_v25 = vshrl.u32 %v14121_v16, 16  ;;  %v14125_v26 = vld [vmem:[%s14826_s13 + $0x18] sm:$0xff]   ;;  %v934_v28 = vshrl.u32 %v14122_v17, 16  ;;  %vm16151_vm8 = vmand %vm5395_vm6, %vm5396_vm7 }
  0x2d   : > { %v915_v18 = vshrl.u32 %v14120_v15, 16  ;;  %v917_v19 = vshll.u32 %v14120_v15, 16  ;;  %v938_v30 = vshll.u32 %v14125_v26, 16  ;;  %v14127_v32 = vld [vmem:[%s14826_s13 + $0x20] sm:$0xff]   ;;  %v14118_v36 = vld [vmem:[%s14826_s13 + $0x8] sm:$0xff]   ;;  %v14123_v40 = vld [vmem:[%s14826_s13 + $0x10] sm:$0xff]  }
  0x2e   : > { %13110 = vmatpush3.bf16.msra.mxu0 %v14105_v4  ;;  %v924_v24 = vrot.slane %v922_v20, 1  ;;  %v932_v31 = vrot.slane %v930_v22, 1  ;;  %v14130_v39 = vld [vmem:[%s14826_s13 + $0x28] sm:$0xff]   ;;  %v946_v41 = vshll.u32 %v14127_v32, 16  ;;  %v942_v44 = vshrl.u32 %v14125_v26, 16  ;;  %v14131_v48 = vld [vmem:[%s14826_s13 + $0x30] sm:$0xff]   ;;  %vm16170_vm11 = vmand %vm5401_vm9, %vm5402_vm10 }
  0x2f   : > { %13162 = vmatpush3.bf16.msra.mxu1 %v14106_v5  ;;  %13111 = vmatprep.subr.bf16.mxu0 %v14107_v6  ;;  %v919_v23 = vrot.slane %v917_v19, 1  ;;  %v940_v38 = vrot.slane %v938_v30, 1  ;;  %v950_v46 = vshrl.u32 %v14127_v32, 16  ;;  %v954_v47 = vshll.u32 %v14130_v39, 16  ;;  %v14135_v52 = vld [vmem:[%s14826_s13 + $0x38] sm:$0xff]   ;;  %v14128_v57 = vld [vmem:[%s14826_s13 + $0x20] sm:$0xff]   ;;  %vm16602_vm13 = vmor %vm5396_vm7, %vm5843_vm12 }
  0x30   : > { %13163 = vmatprep.subr.bf16.mxu1 %v14108_v7  ;;  %v928_v35 = vor.u32 %v926_v25, %v924_v24  ;;  %v936_v37 = vor.u32 %v934_v28, %v932_v31  ;;  %v948_v49 = vrot.slane %v946_v41, 1  ;;  %v14124_v55 = vld [vmem:[%s14826_s13 + $0x18] sm:$0xff]   ;;  %v962_v56 = vshll.u32 %v14131_v48, 16  ;;  %v14136_v1 = vld [vmem:[%s14826_s13 + $0x40] sm:$0xff]   ;;  %v14140_v4 = vld [vmem:[%s14826_s13 + $0x48] sm:$0xff]   ;;  %s17701_s28 = scalar_lea.vmem [#allocation7], %s17677_s26 }
  0x31   : > { %v920_v29 = vor.u32 %v919_v23, %v915_v18  ;;  %v944_v51 = vor.u32 %v942_v44, %v940_v38  ;;  %v956_v54 = vrot.slane %v954_v47, 1  ;;  %v958_v59 = vshrl.u32 %v14130_v39, 16  ;;  %v14142_v5 = vld [vmem:[%s17938_s1 + $0x98] sm:$0xff]   ;;  %v14148_v17 = vld [vmem:[%s17938_s1 + $0x90] sm:$0xff]   ;;  %v14138_v25 = vld [vmem:[%s14826_s13 + $0x40] sm:$0xff]   ;;  %s11782_s29 = sshll.u32 %s17701_s28, 4  ;;  %s17892_s29 = int_to_ptr.vmem [resolvable:$true] %s11782_s29 }
  0x32   : > { %13112 = vmatpush3.bf16.msra.mxu0 %v14107_v6  ;;  %v933_v42 = vsel %vm913_vm0, %v928_v35, %v932_v31  ;;  %v941_v45 = vsel %vm913_vm0, %v936_v37, %v940_v38  ;;  %v952_v53 = vor.u32 %v950_v46, %v948_v49  ;;  %v970_v60 = vshll.u32 %v14135_v52, 16  ;;  %v14149_v18 = vld [vmem:[%s17938_s1 + $0xf0] sm:$0xff]   ;;  %v14134_v20 = vld [vmem:[%s14826_s13 + $0x38] sm:$0xff]   ;;  %v14155_v28 = vld [vmem:[%s17938_s1 + $0x88] sm:$0xff]   ;;  %s14614_s12 = scalar_lea.vmem %s17892_s29, 4608  ;;  %s14618_s15 = sshll.u32 %s14684_s14, 4  ;;  %s14619_s15 = int_to_ptr.vmem [resolvable:$false] %s14618_s15 }
  0x33   : > { %13164 = vmatpush3.bf16.msra.mxu1 %v14108_v7  ;;  %13113 = vmatprep.subr.bf16.mxu0 %v14109_v8  ;;  %v925_v34 = vsel %vm913_vm0, %v920_v29, %v924_v24  ;;  %v949_v58 = vsel %vm913_vm0, %v944_v51, %v948_v49  ;;  %v966_v62 = vshrl.u32 %v14131_v48, 16  ;;  %v964_v0 = vrot.slane %v962_v56, 1  ;;  %v14129_v7 = vld [vmem:[%s14826_s13 + $0x28] sm:$0xff]   ;;  %v14145_v24 = vld [vmem:[%s14826_s13 + $0x58] sm:$0xff]   ;;  %v14153_v48 = vld [vmem:[%s14826_s13 + $0x70] sm:$0xff]   ;;  %p14615_p8 = scmp.ne.s32.totalorder %s17892_s29, %s14614_s12  ;;  %s14620_s16 = scalar_lea.vmem %s14619_s15, 9216 }
  0x34   : > { %13165 = vmatprep.subr.bf16.mxu1 %v14110_v9  ;;  %13173 = vmatprep.mubr.bf16.mxu1 %v925_v34  ;;  %v957_v61 = vsel %vm913_vm0, %v952_v53, %v956_v54  ;;  %v960_v2 = vor.u32 %v958_v59, %v956_v54  ;;  %v972_v3 = vrot.slane %v970_v60, 1  ;;  %v974_v11 = vshrl.u32 %v14135_v52, 16  ;;  %v14146_v34 = vld [vmem:[%s14826_s13 + $0x60] sm:$0xff]   ;;  %v14139_v37 = vld [vmem:[%s14826_s13 + $0x48] sm:$0xff]   ;;  %v14162_v52 = vld [vmem:[%s17938_s1 + $0xd0] sm:$0xff]   ;;  %p14621_p11 = scmp.lt.s32.totalorder %s17892_s29, %s14619_s15  ;;  %p14622_p12 = scmp.lt.s32.totalorder %s14620_s16, %s14614_s12 }
  0x35   : > { %v968_v6 = vor.u32 %v966_v62, %v964_v0  ;;  %v986_v16 = vshll.u32 %v14140_v4, 16  ;;  %v990_v30 = vshrl.u32 %v14140_v4, 16  ;;  %v14152_v41 = vld [vmem:[%s14826_s13 + $0x68] sm:$0xff]   ;;  %v1006_v44 = vshrl.u32 %v14145_v24, 16  ;;  %v14164_v49 = vld [vmem:[%s17938_s1 + $0x80] sm:$0xff]   ;;  %v14144_v54 = vld [vmem:[%s14826_s13 + $0x58] sm:$0xff]   ;;  %p14616_p9 = pnand %p14615_p8, %p14760_p5 }
  0x36   : > { %13114 = vmatpush3.bf16.msra.mxu0 %v14109_v8  ;;  %v14133_v8 = vld [vmem:[%s14826_s13 + $0x30] sm:$0xff]   ;;  %v1014_v47 = vshrl.u32 %v14146_v34, 16  ;;  %v1018_v51 = vshll.u32 %v14152_v41, 16  ;;  %v1026_v59 = vshll.u32 %v14153_v48, 16  ;;  %v14168_v60 = vld [vmem:[%s17938_s1 + $0xc8] sm:$0xff]   ;;  %v14934_v4 = vld [vmem:[%s17938_s1 + $0x138] sm:$0xff]   ;;  %p14623_p13 = por %p14622_p12, %p14621_p11 }
  0x37   : > { %13166 = vmatpush3.bf16.msra.mxu1 %v14110_v9  ;;  %13115 = vmatprep.subr.bf16.mxu0 %v14111_v10  ;;  %v978_v9 = vshll.u32 %v14136_v1, 16  ;;  %v973_v15 = vsel %vm913_vm0, %v968_v6, %v972_v3  ;;  %v988_v23 = vrot.slane %v986_v16, 1  ;;  %v14169_v6 = vld [vmem:[%s17938_s1 + $0xc0] sm:$0xff]   ;;  %v14167_v16 = vld [vmem:[%s14826_s13 + $0x90] ss:$0 sps:$4 sm:$0x11]   ;;  %p14617_p10 = pneg %p14616_p9 }
  0x38   : > { %13167 = vmatprep.subr.bf16.mxu1 %v14112_v12 }
  0x39   : > { %v980_v19 = vrot.slane %v978_v9, 1  ;;  %v992_v38 = vor.u32 %v990_v30, %v988_v23  ;;  %p14624_p0 = pnand %p14623_p13, %p14617_p10 }
  0x3a   : > { %13116 = vmatpush3.bf16.msra.mxu0 %v14111_v10  ;;  %v965_v10 = vsel %vm913_vm0, %v960_v2, %v964_v0  ;;  %v1030_v0 = vshrl.u32 %v14153_v48, 16 }
  0x3b   : > { %13168 = vmatpush3.bf16.msra.mxu1 %v14112_v12  ;;  %13117 = vmatprep.subr.bf16.mxu0 %v14113_v13  ;;  %v982_v12 = vshrl.u32 %v14136_v1, 16 }
  0x3c   : > { %13169 = vmatprep.subr.bf16.mxu1 %v14114_v14 }
  0x3d   : > { %v984_v22 = vor.u32 %v982_v12, %v980_v19  ;;  %v14157_v12 = vld [vmem:[%s14826_s13 + $0x70] sm:$0xff]  }
  0x3e   : > { %13118 = vmatpush3.bf16.msra.mxu0 %v14113_v13  ;;  %v14141_v13 = vld [vmem:[%s14826_s13 + $0x50] sm:$0xff]  }
  0x3f   : > { %13170 = vmatpush3.bf16.msra.mxu1 %v14114_v14  ;;  %13119 = vmatprep.subr.bf16.mxu0 %v14115_v21  ;;  %v14147_v14 = vld [vmem:[%s17938_s1 + $0xf8] sm:$0xff]   ;;  %v994_v26 = vshll.u32 %v14141_v13, 16  ;;  %v998_v31 = vshrl.u32 %v14141_v13, 16  ;;  %v989_v32 = vsel %vm913_vm0, %v984_v22, %v988_v23  ;;  %v14163_v23 = vld [vmem:[%s14826_s13 + $0x80] sm:$0xff]  }
  0x40   : > { %13171 = vmatprep.subr.bf16.mxu1 %v14116_v27 }
  0x41   : > { %v996_v35 = vrot.slane %v994_v26, 1 }
  0x42   : > { %13120 = vmatpush3.bf16.msra.mxu0 %v14115_v21  ;;  %v976_v21 = vor.u32 %v974_v11, %v972_v3  ;;  %v14160_v3 = vld [vmem:[%s14826_s13 + $0x80] sm:$0xff]   ;;  %v14151_v11 = vld [vmem:[%s14826_s13 + $0x68] sm:$0xff]  }
  0x43   : > { %13172 = vmatpush3.bf16.msra.mxu1 %v14116_v27  ;;  %13209 = vmatprep.subr.bf16.mxu0 %v14119_v33  ;;  %v14154_v27 = vld [vmem:[%s17938_s1 + $0xe8] sm:$0xff]   ;;  %v1000_v39 = vor.u32 %v998_v31, %v996_v35  ;;  %v997_v46 = vsel %vm913_vm0, %v992_v38, %v996_v35  ;;  %v1042_v13 = vshll.u32 %v14160_v3, 16 }
  0x44   : > { %13261 = vmatprep.subr.bf16.mxu1 %v14147_v14  ;;  %v981_v29 = vsel %vm913_vm0, %v976_v21, %v980_v19  ;;  %v14158_v21 = vld [vmem:[%s14826_s13 + $0x78] sm:$0xff]   ;;  %v14174_v31 = vld [vmem:[%s14826_s13 + $0x8] sm:$0xfe]  }
  0x45   : > { %13122 = vmatmul.mubr.bf16.vlgmr.msra.gmra.mxu0 %v14118_v36  ;;  %v14156_v36 = vld [vmem:[%s17938_s1 + $0xe0] sm:$0xff]   ;;  %v14165_v35 = vld [vmem:[%s14826_s13 + $0x88] sm:$0xff]  }
  0x46   : > { %13210 = vmatpush3.bf16.msra.mxu0 %v14119_v33  ;;  %13174 = vmatmul.mubr.bf16.vlgmr.msra.gmra.mxu1 %v933_v42  ;;  %v1002_v33 = vshll.u32 %v14145_v24, 16  ;;  %v14143_v42 = vld [vmem:[%s14826_s13 + $0x50] sm:$0xff]  }
  0x47   : > { %13125 = vmatprep.mubr.bf16.mxu0 %v14123_v40  ;;  %13177 = vmatprep.mubr.bf16.mxu1 %v941_v45  ;;  %v1010_v45 = vshll.u32 %v14146_v34, 16 }
  0x48   : > { %13211 = vmatprep.subr.bf16.mxu0 %v14126_v43  ;;  %13262 = vmatpush3.bf16.msra.mxu1 %v14147_v14  ;;  %v1004_v40 = vrot.slane %v1002_v33, 1  ;;  %v14175_v33 = vld [vmem:[%s14826_s13 + $0x10] sm:$0xff]  }
  0x49   : > { %13263 = vmatprep.subr.bf16.mxu1 %v14149_v18  ;;  %v1012_v53 = vrot.slane %v1010_v45, 1  ;;  %v14177_v45 = vld [vmem:[%s14826_s13 + $0x18] sm:$0xff]  }
  0x4a   : > { %13212 = vmatpush3.bf16.msra.mxu0 %v14126_v43  ;;  %v14161_v43 = vld [vmem:[%s17938_s1 + $0xd8] sm:$0xff]  }
  0x4b   : > { %13213 = vmatprep.subr.bf16.mxu0 %v14132_v50  ;;  %v1016_v56 = vor.u32 %v1014_v47, %v1012_v53  ;;  %v14179_v47 = vld [vmem:[%s14826_s13 + $0x20] sm:$0xff]  }
  0x4c   : > { %13264 = vmatpush3.bf16.msra.mxu1 %v14149_v18  ;;  %v1046_v18 = vshrl.u32 %v14160_v3, 16  ;;  %v14183_v3 = vld [vmem:[%s14826_s13 + $0x30] sm:$0xff]  }
  0x4d   : > { %13126 = vmatmul.mubr.bf16.gmra.mxu0 %v14124_v55  ;;  %13265 = vmatprep.subr.bf16.mxu1 %v14154_v27  ;;  %v1008_v55 = vor.u32 %v1006_v44, %v1004_v40 }
  0x4e   : > { %13178 = vmatmul.mubr.bf16.gmra.mxu1 %v949_v58  ;;  %13129 = vmatprep.mubr.bf16.mxu0 %v14128_v57  ;;  %v1020_v57 = vrot.slane %v1018_v51, 1  ;;  %v14159_v58 = vld [vmem:[%s14826_s13 + $0x78] sm:$0xff]   ;;  %v14178_v51 = vld [vmem:[%s14826_s13 + $0x20] sm:$0xff]  }
  0x4f   : > { %13181 = vmatprep.mubr.bf16.mxu1 %v957_v61  ;;  %13214 = vmatpush3.bf16.msra.mxu0 %v14132_v50  ;;  %v1005_v50 = vsel %vm913_vm0, %v1000_v39, %v1004_v40  ;;  %v14150_v61 = vld [vmem:[%s14826_s13 + $0x60] sm:$0xff]   ;;  %v1013_v62 = vsel %vm913_vm0, %v1008_v55, %v1012_v53  ;;  %v1034_v2 = vshll.u32 %v14159_v58, 16  ;;  %v2096_v39 = vrot.slane %v14174_v31, 1  ;;  %v14181_v53 = vld [vmem:[%s14826_s13 + $0x28] sm:$0xff]   ;;  %v14180_v55 = vld [vmem:[%s17938_s1 + $0x130] sm:$0xff]  }
  0x50   : > { %13215 = vmatprep.subr.bf16.mxu0 %v14137_v63  ;;  %13266 = vmatpush3.bf16.msra.mxu1 %v14154_v27  ;;  %v1021_v1 = vsel %vm913_vm0, %v1016_v56, %v1020_v57  ;;  %v1058_v27 = vshll.u32 %v14167_v16, 16  ;;  %v2097_v40 = vrot.slane %v14175_v33, 1  ;;  %v14201_v56 = vld [vmem:[%s17938_s1 + $0x178] sm:$0xff]   ;;  %v14216_v31 = vld [vmem:[%s17938_s1 + $0x150] sm:$0xff]  }
  0x51   : > { %13267 = vmatprep.subr.bf16.mxu1 %v14156_v36  ;;  %v1036_v9 = vrot.slane %v1034_v2, 1  ;;  %v14186_v2 = vld [vmem:[%s17938_s1 + $0x128] sm:$0xff]  }
  0x52   : > { %v1060_v34 = vrot.slane %v1058_v27, 1  ;;  %v14194_v27 = vld [vmem:[%s14826_s13 + $0x50] sm:$0xff]  }
  0x53   : > { %13216 = vmatpush3.bf16.msra.mxu0 %v14137_v63  ;;  %v1022_v63 = vshrl.u32 %v14152_v41, 16  ;;  %v14172_v41 = vld [vmem:[%s14826_s13 + $0x10] sm:$0xff]  }
  0x54   : > { %13217 = vmatprep.subr.bf16.mxu0 %v14142_v5  ;;  %13268 = vmatpush3.bf16.msra.mxu1 %v14156_v36  ;;  %v1564_v48 = vrot.slane %v14172_v41, 1 }
  0x55   : > { %13130 = vmatmul.mubr.bf16.gmra.mxu0 %v14129_v7  ;;  %13269 = vmatprep.subr.bf16.mxu1 %v14161_v43  ;;  %v1024_v7 = vor.u32 %v1022_v63, %v1020_v57  ;;  %v1568_v63 = vrot.slane %v14178_v51, 1  ;;  %v15043_v51 = vld [vmem:[%s17938_s1 + $0x1b8] sm:$0xff]  }
  0x56   : > { %13182 = vmatmul.mubr.bf16.gmra.mxu1 %v965_v10  ;;  %13133 = vmatprep.mubr.bf16.mxu0 %v14133_v8  ;;  %v14166_v10 = vld [vmem:[%s14826_s13 + $0x88] sm:$0xff]  }
  0x57   : > { %13185 = vmatprep.mubr.bf16.mxu1 %v973_v15  ;;  %13218 = vmatpush3.bf16.msra.mxu0 %v14142_v5  ;;  %v1028_v5 = vrot.slane %v1026_v59, 1  ;;  %v1038_v15 = vshrl.u32 %v14159_v58, 16  ;;  %v1050_v19 = vshll.u32 %v14166_v10, 16  ;;  %v1054_v26 = vshrl.u32 %v14166_v10, 16  ;;  %v14182_v58 = vld [vmem:[%s14826_s13 + $0x28] sm:$0xff]  }
  0x58   : > { %13219 = vmatprep.subr.bf16.mxu0 %v14148_v17  ;;  %13270 = vmatpush3.bf16.msra.mxu1 %v14161_v43 }
  0x59   : > { %13271 = vmatprep.subr.bf16.mxu1 %v14162_v52  ;;  %v1032_v8 = vor.u32 %v1030_v0, %v1028_v5  ;;  %v1029_v14 = vsel %vm913_vm0, %v1024_v7, %v1028_v5  ;;  %v1040_v22 = vor.u32 %v1038_v15, %v1036_v9  ;;  %v2103_v0 = vrot.slane %v14181_v53, 1 }
  0x5a   : > { %v1572_v15 = vrot.slane %v14183_v3, 1 }
  0x5b   : > { %13220 = vmatpush3.bf16.msra.mxu0 %v14148_v17  ;;  %v1037_v17 = vsel %vm913_vm0, %v1032_v8, %v1036_v9  ;;  %v14187_v8 = vld [vmem:[%s14826_s13 + $0x38] sm:$0xff]  }
  0x5c   : > { %13221 = vmatprep.subr.bf16.mxu0 %v14155_v28  ;;  %13272 = vmatpush3.bf16.msra.mxu1 %v14162_v52  ;;  %v2101_v52 = vrot.slane %v14179_v47, 1 }
  0x5d   : > { %13134 = vmatmul.mubr.bf16.gmra.mxu0 %v14134_v20  ;;  %13273 = vmatprep.subr.bf16.mxu1 %v14168_v60  ;;  %v1044_v20 = vrot.slane %v1042_v13, 1  ;;  %v14191_v13 = vld [vmem:[%s17938_s1 + $0x120] sm:$0xff]  }
  0x5e   : > { %13186 = vmatmul.mubr.bf16.gmra.mxu1 %v981_v29  ;;  %13137 = vmatprep.mubr.bf16.mxu0 %v14138_v25  ;;  %v1052_v25 = vrot.slane %v1050_v19, 1  ;;  %v14170_v29 = vld [vmem:[%s14826_s13] sm:$0xfe]   ;;  %v2104_v9 = vsel %vm1560_vm1, %v2101_v52, %v2103_v0 }
  0x5f   : > { %13189 = vmatprep.mubr.bf16.mxu1 %v989_v32  ;;  %13222 = vmatpush3.bf16.msra.mxu0 %v14155_v28  ;;  %v1048_v24 = vor.u32 %v1046_v18, %v1044_v20  ;;  %v14171_v28 = vld [vmem:[%s14826_s13 + $0x8] sm:$0xff]   ;;  %v1045_v30 = vsel %vm913_vm0, %v1040_v22, %v1044_v20  ;;  %v14188_v18 = vld [vmem:[%s14826_s13 + $0x40] sm:$0xff]   ;;  %v14215_v22 = vld [vmem:[%s17938_s1 + $0x158] sm:$0xff]  }
  0x60   : > { %13223 = vmatprep.subr.bf16.mxu0 %v14164_v49  ;;  %13274 = vmatpush3.bf16.msra.mxu1 %v14168_v60  ;;  %v1056_v36 = vor.u32 %v1054_v26, %v1052_v25  ;;  %v1562_v38 = vrot.slane %v14171_v28, 1  ;;  %v14190_v20 = vld [vmem:[%s14826_s13 + $0x48] sm:$0xff]  }
  0x61   : > { %13275 = vmatprep.subr.bf16.mxu1 %v14169_v6  ;;  %v1053_v32 = vsel %vm913_vm0, %v1048_v24, %v1052_v25  ;;  %v14192_v24 = vld [vmem:[%s14826_s13 + $0x48] sm:$0xff]  }
  0x62   : > { %v1061_v43 = vsel %vm913_vm0, %v1056_v36, %v1060_v34  ;;  %v1578_v33 = vrot.slane %v14192_v24, 1  ;;  %v2113_v34 = vrot.slane %v14194_v27, 1  ;;  %v14193_v36 = vld [vmem:[%s14826_s13 + $0x50] sm:$0xff]  }
  0x63   : > { %13224 = vmatpush3.bf16.msra.mxu0 %v14164_v49  ;;  %v1580_v47 = vrot.slane %v14193_v36, 1  ;;  %v14219_v27 = vld [vmem:[%s14826_s13 + $0x90] ss:$0 sps:$4 sm:$0x11]   ;;  %v14228_v36 = vld [vmem:[%s14826_s13 + $0x8] sm:$0xfc]  }
  0x64   : > { %13313 = vmatprep.subr.bf16.mxu0 %v14934_v4  ;;  %13276 = vmatpush3.bf16.msra.mxu1 %v14169_v6  ;;  %v14185_v6 = vld [vmem:[%s14826_s13 + $0x38] sm:$0xff]  }
  0x65   : > { %13138 = vmatmul.mubr.bf16.gmra.mxu0 %v14139_v37  ;;  %v1561_v37 = vrot.slane %v14170_v29, 1  ;;  %13365 = vmatprep.subr.bf16.mxu1 %v14201_v56  ;;  %v2107_v16 = vrot.slane %v14185_v6, 1  ;;  %v14202_v29 = vld [vmem:[%s17938_s1 + $0x110] sm:$0xff]   ;;  %v1581_v53 = vsel %vm1560_vm1, %v1578_v33, %v1580_v47  ;;  %v14211_v6 = vld [vmem:[%s14826_s13 + $0x78] sm:$0xff]  }
  0x66   : > { %13190 = vmatmul.mubr.bf16.gmra.mxu1 %v997_v46  ;;  %13141 = vmatprep.mubr.bf16.mxu0 %v14143_v42  ;;  %v14176_v42 = vld [vmem:[%s14826_s13 + $0x18] sm:$0xff]   ;;  %v2098_v46 = vsel %vm1560_vm1, %v2096_v39, %v2097_v40 }
  0x67   : > { %13193 = vmatprep.mubr.bf16.mxu1 %v1005_v50  ;;  %v1563_v44 = vsel %vm1560_vm1, %v1561_v37, %v1562_v38  ;;  %v2099_v49 = vrot.slane %v14176_v42, 1  ;;  %v1566_v50 = vrot.slane %v14177_v45, 1  ;;  %v14222_v37 = vld [vmem:[%s17938_s1 + $0x148] sm:$0xff]   ;;  %v14195_v39 = vld [vmem:[%s14826_s13 + $0x58] sm:$0xff]  }
  0x68   : > { %v14197_v42 = vld [vmem:[%s14826_s13 + $0x58] sm:$0xff]  }
  0x69   : > { %v2100_v57 = vsel %vm1560_vm1, %v2097_v40, %v2099_v49  ;;  %v1567_v59 = vsel %vm1560_vm1, %v1564_v48, %v1566_v50  ;;  %v2102_v60 = vsel %vm1560_vm1, %v2099_v49, %v2101_v52  ;;  %v1569_v7 = vsel %vm1560_vm1, %v1566_v50, %v1568_v63  ;;  %v14198_v52 = vld [vmem:[%s14826_s13 + $0x60] sm:$0xff]  }
  0x6a   : > { %v1582_v49 = vrot.slane %v14197_v42, 1  ;;  %v14231_v42 = vld [vmem:[%s14826_s13 + $0x20] sm:$0xff]  }
  0x6d   : > { %13142 = vmatmul.mubr.bf16.gmra.mxu0 %v14144_v54  ;;  %v1565_v54 = vsel %vm1560_vm1, %v1562_v38, %v1564_v48  ;;  %v2115_v48 = vrot.slane %v14195_v39, 1 }
  0x6e   : > { %13194 = vmatmul.mubr.bf16.gmra.mxu1 %v1013_v62  ;;  %13145 = vmatprep.mubr.bf16.mxu0 %v14150_v61  ;;  %v14184_v61 = vld [vmem:[%s14826_s13 + $0x30] sm:$0xff]  }
  0x6f   : > { %13197 = vmatprep.mubr.bf16.mxu1 %v1021_v1  ;;  %v14203_v62 = vld [vmem:[%s17938_s1 + $0x170] sm:$0xff]   ;;  %v1570_v1 = vrot.slane %v14182_v58, 1  ;;  %v2105_v5 = vrot.slane %v14184_v61, 1 }
  0x71   : > { %v1571_v10 = vsel %vm1560_vm1, %v1568_v63, %v1570_v1  ;;  %v2108_v25 = vsel %vm1560_vm1, %v2105_v5, %v2107_v16 }
  0x75   : > { %13146 = vmatmul.mubr.bf16.gmra.mxu0 %v14151_v11  ;;  %v14189_v11 = vld [vmem:[%s14826_s13 + $0x40] sm:$0xff]  }
  0x76   : > { %13198 = vmatmul.mubr.bf16.gmra.mxu1 %v1029_v14  ;;  %13149 = vmatprep.mubr.bf16.mxu0 %v14157_v12  ;;  %v2106_v12 = vsel %vm1560_vm1, %v2103_v0, %v2105_v5  ;;  %v14210_v14 = vld [vmem:[%s17938_s1 + $0x160] sm:$0xff]   ;;  %v2109_v19 = vrot.slane %v14189_v11, 1  ;;  %v14207_v5 = vld [vmem:[%s14826_s13 + $0x78] sm:$0xff]  }
  0x77   : > { %13201 = vmatprep.mubr.bf16.mxu1 %v1037_v17  ;;  %v1574_v17 = vrot.slane %v14187_v8, 1  ;;  %v14212_v11 = vld [vmem:[%s14826_s13 + $0x80] sm:$0xff]  }
  0x78   : > { %v2110_v28 = vsel %vm1560_vm1, %v2107_v16, %v2109_v19  ;;  %v14217_v16 = vld [vmem:[%s14826_s13 + $0x88] sm:$0xff]   ;;  %v1592_v24 = vrot.slane %v14212_v11, 1 }
  0x79   : > { %v1575_v26 = vsel %vm1560_vm1, %v1572_v15, %v1574_v17 }
  0x7d   : > { %13150 = vmatmul.mubr.bf16.gmra.mxu0 %v14158_v21  ;;  %v14196_v21 = vld [vmem:[%s17938_s1 + $0x118] sm:$0xff]  }
  0x7e   : > { %13202 = vmatmul.mubr.bf16.gmra.mxu1 %v1045_v30  ;;  %13153 = vmatprep.mubr.bf16.mxu0 %v14163_v23  ;;  %v1573_v23 = vsel %vm1560_vm1, %v1570_v1, %v1572_v15  ;;  %v1576_v30 = vrot.slane %v14188_v18, 1  ;;  %v14205_v1 = vld [vmem:[%s14826_s13 + $0x70] sm:$0xff]   ;;  %v14214_v15 = vld [vmem:[%s14826_s13 + $0x88] sm:$0xff]  }
  0x7f   : > { %13205 = vmatprep.mubr.bf16.mxu1 %v1053_v32  ;;  %v2111_v32 = vrot.slane %v14190_v20, 1  ;;  %v1588_v8 = vrot.slane %v14205_v1, 1 }
  0x80   : > { %v1577_v38 = vsel %vm1560_vm1, %v1574_v17, %v1576_v30  ;;  %v1579_v41 = vsel %vm1560_vm1, %v1576_v30, %v1578_v33 }
  0x81   : > { %v2112_v40 = vsel %vm1560_vm1, %v2109_v19, %v2111_v32  ;;  %v2114_v45 = vsel %vm1560_vm1, %v2111_v32, %v2113_v34  ;;  %v14225_v19 = vld [vmem:[%s14826_s13 + $0x10] sm:$0xff]  }
  0x85   : > { %13154 = vmatmul.mubr.bf16.gmra.mxu0 %v14165_v35  ;;  %v14209_v35 = vld [vmem:[%s17938_s1 + $0x108] sm:$0xff]  }
  0x86   : > { %13206 = vmatmul.mubr.bf16.gmra.mxu1 %v1061_v43  ;;  %13225 = vmatprep.mubr.bf16.mxu0 %v1563_v44  ;;  %v14199_v43 = vld [vmem:[%s14826_s13 + $0x60] sm:$0xff]  }
  0x87   : > { %13277 = vmatprep.mubr.bf16.mxu1 %v2098_v46  ;;  %v14218_v44 = vld [vmem:[%s17938_s1 + $0x100] sm:$0xff]   ;;  %v2117_v50 = vrot.slane %v14199_v43, 1 }
  0x88   : > { %v14223_v46 = vld [vmem:[%s17938_s1 + $0x140] sm:$0xff]  }
  0x89   : > { %v2118_v58 = vsel %vm1560_vm1, %v2115_v48, %v2117_v50 }
  0x8d   : > { %13226 = vmatmul.mubr.bf16.vlgmr.msra.gmra.mxu0 %v1565_v54  ;;  %v14200_v54 = vld [vmem:[%s14826_s13 + $0x68] sm:$0xff]  }
  0x8e   : > { %13314 = vmatpush3.bf16.msra.mxu0 %v14934_v4  ;;  %13278 = vmatmul.mubr.bf16.vlgmr.msra.gmra.mxu1 %v2100_v57  ;;  %v14208_v4 = vld [vmem:[%s17938_s1 + $0x168] sm:$0xff]   ;;  %v1583_v57 = vsel %vm1560_vm1, %v1580_v47, %v1582_v49  ;;  %v2119_v61 = vrot.slane %v14200_v54, 1  ;;  %v3301_v54 = vrot.slane %v14228_v36, 2 }
  0x8f   : > { %13229 = vmatprep.mubr.bf16.mxu0 %v1567_v59  ;;  %13281 = vmatprep.mubr.bf16.mxu1 %v2102_v60  ;;  %v14206_v59 = vld [vmem:[%s14826_s13 + $0x70] sm:$0xff]   ;;  %v1584_v60 = vrot.slane %v14198_v52, 1  ;;  %v2659_v52 = vshrl.u32 %v14231_v42, 16 }
  0x90   : > { %13315 = vmatprep.subr.bf16.mxu0 %v14180_v55  ;;  %13366 = vmatpush3.bf16.msra.mxu1 %v14201_v56  ;;  %v2116_v56 = vsel %vm1560_vm1, %v2113_v34, %v2115_v48  ;;  %v2121_v63 = vrot.slane %v14206_v59, 1  ;;  %v14226_v34 = vld [vmem:[%s14826_s13 + $0x18] sm:$0xff]  }
  0x91   : > { %13367 = vmatprep.subr.bf16.mxu1 %v14203_v62  ;;  %v1585_v0 = vsel %vm1560_vm1, %v1582_v49, %v1584_v60  ;;  %v2653_v47 = vshll.u32 %v14226_v34, 16  ;;  %v15085_v48 = vld [vmem:[%s17938_s1 + $0x1f8] sm:$0xff]  }
  0x92   : > { %13316 = vmatpush3.bf16.msra.mxu0 %v14180_v55  ;;  %v14204_v55 = vld [vmem:[%s14826_s13 + $0x68] sm:$0xff]  }
  0x93   : > { %13317 = vmatprep.subr.bf16.mxu0 %v14186_v2  ;;  %v2655_v59 = vrot.slane %v2653_v47, 2 }
  0x94   : > { %13368 = vmatpush3.bf16.msra.mxu1 %v14203_v62  ;;  %v1586_v62 = vrot.slane %v14204_v55, 1 }
  0x95   : > { %13230 = vmatmul.mubr.bf16.gmra.mxu0 %v1569_v7  ;;  %13369 = vmatprep.subr.bf16.mxu1 %v14208_v4  ;;  %v14213_v7 = vld [vmem:[%s14826_s13 + $0x80] sm:$0xff]  }
  0x96   : > { %13282 = vmatmul.mubr.bf16.gmra.mxu1 %v2104_v9  ;;  %13233 = vmatprep.mubr.bf16.mxu0 %v1571_v10  ;;  %v1587_v3 = vsel %vm1560_vm1, %v1584_v60, %v1586_v62  ;;  %v2123_v9 = vrot.slane %v14207_v5, 1  ;;  %v1590_v10 = vrot.slane %v14211_v6, 1  ;;  %v14236_v60 = vld [vmem:[%s14826_s13 + $0x30] sm:$0xff]  }
  0x97   : > { %13285 = vmatprep.mubr.bf16.mxu1 %v2106_v12  ;;  %13318 = vmatpush3.bf16.msra.mxu0 %v14186_v2  ;;  %v2120_v2 = vsel %vm1560_vm1, %v2117_v50, %v2119_v61  ;;  %v2125_v12 = vrot.slane %v14213_v7, 1  ;;  %v2677_v7 = vshrl.u32 %v14236_v60, 16 }
  0x98   : > { %13319 = vmatprep.subr.bf16.mxu0 %v14191_v13  ;;  %13370 = vmatpush3.bf16.msra.mxu1 %v14208_v4  ;;  %v2122_v4 = vsel %vm1560_vm1, %v2119_v61, %v2121_v63  ;;  %v2124_v17 = vsel %vm1560_vm1, %v2121_v63, %v2123_v9  ;;  %v1591_v18 = vsel %vm1560_vm1, %v1588_v8, %v1590_v10  ;;  %v14230_v63 = vld [vmem:[%s14826_s13 + $0x18] sm:$0xff]  }
  0x99   : > { %13371 = vmatprep.subr.bf16.mxu1 %v14210_v14  ;;  %v2126_v20 = vsel %vm1560_vm1, %v2123_v9, %v2125_v12 }
  0x9b   : > { %13320 = vmatpush3.bf16.msra.mxu0 %v14191_v13  ;;  %v14224_v13 = vld [vmem:[%s14826_s13 + $0x8] sm:$0xfe]  }
  0x9c   : > { %13321 = vmatprep.subr.bf16.mxu0 %v14196_v21  ;;  %13372 = vmatpush3.bf16.msra.mxu1 %v14210_v14  ;;  %v1589_v14 = vsel %vm1560_vm1, %v1586_v62, %v1588_v8  ;;  %v3304_v8 = vrot.slane %v14230_v63, 2 }
  0x9d   : > { %13234 = vmatmul.mubr.bf16.gmra.mxu0 %v1573_v23  ;;  %13373 = vmatprep.subr.bf16.mxu1 %v14215_v22  ;;  %v2636_v23 = vshll.u32 %v14224_v13, 16 }
  0x9e   : > { %13286 = vmatmul.mubr.bf16.gmra.mxu1 %v2108_v25  ;;  %13237 = vmatprep.mubr.bf16.mxu0 %v1575_v26  ;;  %v2127_v25 = vrot.slane %v14214_v15, 1  ;;  %v1594_v26 = vrot.slane %v14217_v16, 1  ;;  %v14234_v16 = vld [vmem:[%s17938_s1 + $0x1b0] sm:$0xff]  }
  0x9f   : > { %13289 = vmatprep.mubr.bf16.mxu1 %v2110_v28  ;;  %13322 = vmatpush3.bf16.msra.mxu0 %v14196_v21  ;;  %v14220_v21 = vld [vmem:[%s14826_s13 + $0x90] sm:$0xff]   ;;  %v2641_v28 = vshrl.u32 %v14225_v19, 16  ;;  %v2638_v33 = vrot.slane %v2636_v23, 2 }
  0xa0   : > { %13323 = vmatprep.subr.bf16.mxu0 %v14202_v29  ;;  %13374 = vmatpush3.bf16.msra.mxu1 %v14215_v22  ;;  %v2633_v22 = vshrl.u32 %v14224_v13, 16  ;;  %v2129_v30 = vrot.slane %v14220_v21, 1  ;;  %v14241_v21 = vld [vmem:[%s14826_s13 + $0x40] sm:$0xff]  }
  0xa1   : > { %13375 = vmatprep.subr.bf16.mxu1 %v14216_v31  ;;  %v2643_v39 = vrot.slane %v2641_v28, 1 }
  0xa2   : > { %v2635_v32 = vrot.slane %v2633_v22, 1  ;;  %v2130_v43 = vsel %vm1560_vm1, %v2127_v25, %v2129_v30 }
  0xa3   : > { %13324 = vmatpush3.bf16.msra.mxu0 %v14202_v29  ;;  %v2644_v29 = vshll.u32 %v14225_v19, 16 }
  0xa4   : > { %13325 = vmatprep.subr.bf16.mxu0 %v14209_v35  ;;  %13376 = vmatpush3.bf16.msra.mxu1 %v14216_v31  ;;  %v14221_v31 = vld [vmem:[%s14826_s13 + $0x98] ss:$0 sps:$4 sm:$0x11]   ;;  %v2639_v49 = vor.u32 %v2638_v33, %v2635_v32  ;;  %v2695_v33 = vshrl.u32 %v14241_v21, 16 }
  0xa5   : > { %13238 = vmatmul.mubr.bf16.gmra.mxu0 %v1577_v38  ;;  %13377 = vmatprep.subr.bf16.mxu1 %v14222_v37  ;;  %v1595_v38 = vsel %vm1560_vm1, %v1592_v24, %v1594_v26 }
  0xa6   : > { %13290 = vmatmul.mubr.bf16.gmra.mxu1 %v2112_v40  ;;  %13241 = vmatprep.mubr.bf16.mxu0 %v1579_v41  ;;  %v2646_v40 = vrot.slane %v2644_v29, 2  ;;  %v14229_v41 = vld [vmem:[%s14826_s13 + $0x10] sm:$0xff]  }
  0xa7   : > { %13293 = vmatprep.mubr.bf16.mxu1 %v2114_v45  ;;  %13326 = vmatpush3.bf16.msra.mxu0 %v14209_v35  ;;  %v1593_v35 = vsel %vm1560_vm1, %v1590_v10, %v1592_v24  ;;  %v2131_v45 = vrot.slane %v14221_v31, 1  ;;  %v3302_v55 = vrot.slane %v14229_v41, 2  ;;  %v2680_v10 = vshll.u32 %v14236_v60, 16  ;;  %v15107_v24 = vld [vmem:[%s14826_s13 + $0x30] sm:$0xff]   ;;  %v14240_v31 = vld [vmem:[%s17938_s1 + $0x1a8] sm:$0xff]   ;;  %v15125_v41 = vld [vmem:[%s14826_s13 + $0x40] sm:$0xff]  }
  0xa8   : > { %13327 = vmatprep.subr.bf16.mxu0 %v14218_v44  ;;  %13378 = vmatpush3.bf16.msra.mxu1 %v14222_v37  ;;  %v2128_v37 = vsel %vm1560_vm1, %v2125_v12, %v2127_v25  ;;  %v2647_v50 = vor.u32 %v2646_v40, %v2643_v39  ;;  %v14235_v12 = vld [vmem:[%s14826_s13 + $0x28] sm:$0xff]  }
  0xa9   : > { %13379 = vmatprep.subr.bf16.mxu1 %v14223_v46  ;;  %v2132_v61 = vsel %vm1560_vm1, %v2129_v30, %v2131_v45  ;;  %v3305_v19 = vsel %vm3300_vm2, %v3302_v55, %v3304_v8  ;;  %v14242_v25 = vld [vmem:[%s14826_s13 + $0x48] sm:$0xff]   ;;  %v3308_v28 = vrot.slane %v14235_v12, 2  ;;  %v2697_v45 = vrot.slane %v2695_v33, 1  ;;  %v14259_v33 = vld [vmem:[%s14826_s13 + $0x78] sm:$0xff]  }
  0xaa   : > { %v2648_v62 = vsel %vm2631_vm3, %v2639_v49, %v2647_v50  ;;  %v2704_v36 = vshrl.u32 %v14242_v25, 16 }
  0xab   : > { %13328 = vmatpush3.bf16.msra.mxu0 %v14218_v44  ;;  %v1596_v44 = vrot.slane %v14219_v27, 1 }
  0xac   : > { %13380 = vmatpush3.bf16.msra.mxu1 %v14223_v46  ;;  %13417 = vmatprep.subr.bf16.mxu0 %v15043_v51  ;;  %v2650_v46 = vshrl.u32 %v14226_v34, 16  ;;  %v2698_v34 = vshll.u32 %v14241_v21, 16 }
  0xad   : > { %13242 = vmatmul.mubr.bf16.gmra.mxu0 %v1581_v53  ;;  %v2662_v53 = vshll.u32 %v14231_v42, 16  ;;  %13469 = vmatprep.subr.bf16.mxu1 %v15085_v48  ;;  %v14246_v42 = vld [vmem:[%s14826_s13 + $0x50] sm:$0xff]  }
  0xae   : > { %13294 = vmatmul.mubr.bf16.gmra.mxu1 %v2116_v56  ;;  %13245 = vmatprep.mubr.bf16.mxu0 %v1583_v57  ;;  %v2652_v56 = vrot.slane %v2650_v46, 1  ;;  %v14232_v57 = vld [vmem:[%s14826_s13 + $0x28] sm:$0xff]   ;;  %v2700_v46 = vrot.slane %v2698_v34, 2  ;;  %v2716_v60 = vshll.u32 %v14246_v42, 16 }
  0xaf   : > { %13297 = vmatprep.mubr.bf16.mxu1 %v2118_v58  ;;  %v1597_v58 = vsel %vm1560_vm1, %v1594_v26, %v1596_v44  ;;  %v2664_v1 = vrot.slane %v2662_v53, 2  ;;  %v2668_v5 = vshrl.u32 %v14232_v57, 16  ;;  %v2671_v6 = vshll.u32 %v14232_v57, 16  ;;  %v14257_v26 = vld [vmem:[%s17938_s1 + $0x1f0] sm:$0xff]   ;;  %v14264_v53 = vld [vmem:[%s17938_s1 + $0x1e0] sm:$0xff]   ;;  %v14247_v57 = vld [vmem:[%s14826_s13 + $0x58] sm:$0xff]  }
  0xb1   : > { %v2670_v13 = vrot.slane %v2668_v5, 1 }
  0xb5   : > { %13246 = vmatmul.mubr.bf16.gmra.mxu0 %v1585_v0  ;;  %v2661_v0 = vrot.slane %v2659_v52, 1  ;;  %v2707_v52 = vshll.u32 %v14242_v25, 16 }
  0xb6   : > { %13298 = vmatmul.mubr.bf16.gmra.mxu1 %v2120_v2  ;;  %13249 = vmatprep.mubr.bf16.mxu0 %v1587_v3  ;;  %v14233_v2 = vld [vmem:[%s14826_s13 + $0x20] sm:$0xff]   ;;  %v3303_v3 = vsel %vm3300_vm2, %v3301_v54, %v3302_v55  ;;  %v3314_v55 = vrot.slane %v15125_v41, 2  ;;  %v14683_v41 = vmov 0  }
  0xb7   : > { %13301 = vmatprep.mubr.bf16.mxu1 %v2122_v4  ;;  %v2656_v4 = vor.u32 %v2655_v59, %v2652_v56  ;;  %v3306_v9 = vrot.slane %v14233_v2, 2  ;;  %v2665_v11 = vor.u32 %v2664_v1, %v2661_v0  ;;  %v2713_v56 = vshrl.u32 %v14246_v42, 16  ;;  %v15145_v0 = vld [vmem:[%s14826_s13 + $0x50] sm:$0xff]   ;;  %v15148_v1 = vld [vmem:[%s14826_s13 + $0x58] sm:$0xff]   ;;  %5393 = vst [vmem:[#allocation2] sm:$0xf] %v14683_v41  ;;  %14099 = vset.pattern.permute.xlu0 %v14683_v41 }
  0xb8   : > { %v2701_v59 = vor.u32 %v2700_v46, %v2697_v45  ;;  %v2709_v63 = vrot.slane %v2707_v52, 2  ;;  %v14269_v2 = vld [vmem:[%s17938_s1 + $0x1d8] sm:$0xff]   ;;  %v3320_v21 = vrot.slane %v15148_v1, 2  ;;  %5394 = vst [vmem:[#allocation2 + $0x4] sm:$0xf] %v14683_v41  ;;  %v2758_v46 = vshrl.u32 %v14259_v33, 16  ;;  %14100 = vset.pattern.permute.xlu1 %v14683_v41 }
  0xb9   : > { %v2657_v15 = vsel %vm2631_vm3, %v2647_v50, %v2656_v4  ;;  %v2666_v22 = vsel %vm2631_vm3, %v2656_v4, %v2665_v11  ;;  %v3307_v23 = vsel %vm3300_vm2, %v3304_v8, %v3306_v9  ;;  %v2706_v50 = vrot.slane %v2704_v36, 1  ;;  %5407 = vst [vmem:[#allocation2 + $0x9c] sm:$0xf] %v14683_v41  ;;  %5408 = vst [vmem:[#allocation2 + $0xa0] sm:$0xf] %v14683_v41  ;;  %v14266_v52 = vld [vmem:[%s14826_s13 + $0x88] sm:$0xff]  }
  0xba   : > { %v2715_v5 = vrot.slane %v2713_v56, 1  ;;  %v2718_v8 = vrot.slane %v2716_v60, 2  ;;  %v2760_v60 = vrot.slane %v2758_v46, 1 }
  0xbd   : > { %13250 = vmatmul.mubr.bf16.gmra.mxu0 %v1589_v14  ;;  %v2673_v14 = vrot.slane %v2671_v6, 2  ;;  %v2722_v6 = vshrl.u32 %v14247_v57, 16 }
  0xbe   : > { %13302 = vmatmul.mubr.bf16.gmra.mxu1 %v2124_v17  ;;  %13253 = vmatprep.mubr.bf16.mxu0 %v1591_v18  ;;  %v2679_v17 = vrot.slane %v2677_v7, 1  ;;  %v14237_v18 = vld [vmem:[%s14826_s13 + $0x38] sm:$0xff]  }
  0xbf   : > { %13305 = vmatprep.mubr.bf16.mxu1 %v2126_v20  ;;  %v2682_v20 = vrot.slane %v2680_v10, 2  ;;  %v2674_v27 = vor.u32 %v2673_v14, %v2670_v13  ;;  %v2686_v29 = vshrl.u32 %v14237_v18, 16  ;;  %v2689_v30 = vshll.u32 %v14237_v18, 16  ;;  %v14270_v14 = vld [vmem:[%s17938_s1 + $0x1d0] sm:$0xff]  }
  0xc0   : > { %v15164_v18 = vor.u32 %v2718_v8, %v2715_v5 }
  0xc1   : > { %v2683_v32 = vor.u32 %v2682_v20, %v2679_v17  ;;  %v2688_v39 = vrot.slane %v2686_v29, 1  ;;  %v2691_v40 = vrot.slane %v2689_v30, 2  ;;  %v14252_v17 = vld [vmem:[%s14826_s13 + $0x68] sm:$0xff]   ;;  %v3318_v20 = vrot.slane %v15145_v0, 2  ;;  %v14271_v0 = vld [vmem:[%s14826_s13 + $0x90] sm:$0xff]  }
  0xc2   : > { %v2740_v30 = vshrl.u32 %v14252_v17, 16 }
  0xc3   : > { %v2684_v44 = vsel %vm2631_vm3, %v2674_v27, %v2683_v32  ;;  %v2692_v54 = vor.u32 %v2691_v40, %v2688_v39  ;;  %v14265_v39 = vld [vmem:[%s14826_s13 + $0x80] sm:$0xff]  }
  0xc4   : > { %v14272_v40 = vld [vmem:[%s17938_s1 + $0x180] sm:$0xff]   ;;  %v2742_v45 = vrot.slane %v2740_v30, 1 }
  0xc5   : > { %13254 = vmatmul.mubr.bf16.gmra.mxu0 %v1593_v35  ;;  %v3310_v35 = vrot.slane %v15107_v24, 2  ;;  %v2702_v7 = vsel %vm2631_vm3, %v2692_v54, %v2701_v59  ;;  %v14263_v24 = vld [vmem:[%s17938_s1 + $0x188] sm:$0xff]  }
  0xc6   : > { %13306 = vmatmul.mubr.bf16.gmra.mxu1 %v2128_v37  ;;  %13257 = vmatprep.mubr.bf16.mxu0 %v1595_v38  ;;  %v14262_v37 = vld [vmem:[%s17938_s1 + $0x1e8] sm:$0xff]   ;;  %v2675_v38 = vsel %vm2631_vm3, %v2665_v11, %v2674_v27  ;;  %v2725_v11 = vshll.u32 %v14247_v57, 16 }
  0xc7   : > { %13309 = vmatprep.mubr.bf16.mxu1 %v2130_v43  ;;  %v3309_v43 = vsel %vm3300_vm2, %v3306_v9, %v3308_v28  ;;  %v3311_v47 = vsel %vm3300_vm2, %v3308_v28, %v3310_v35  ;;  %v14256_v9 = vld [vmem:[%s17938_s1 + $0x190] sm:$0xff]   ;;  %v14276_v28 = vld [vmem:[%s17938_s1 + $0x1c8] sm:$0xff]  }
  0xc8   : > { %v2727_v25 = vrot.slane %v2725_v11, 2  ;;  %v14273_v11 = vld [vmem:[%s14826_s13 + $0x98] ss:$0 sps:$4 sm:$0x33]  }
  0xcd   : > { %13258 = vmatmul.mubr.bf16.gmra.mxu0 %v1597_v58  ;;  %v14250_v58 = vld [vmem:[%s17938_s1 + $0x198] sm:$0xff]  }
  0xce   : > { %13310 = vmatmul.mubr.bf16.gmra.mxu1 %v2132_v61  ;;  %13329 = vmatprep.mubr.bf16.mxu0 %v2648_v62  ;;  %v14251_v61 = vld [vmem:[%s14826_s13 + $0x60] sm:$0xff]   ;;  %v14244_v62 = vld [vmem:[%s14826_s13 + $0x48] sm:$0xff]  }
  0xcf   : > { %13381 = vmatprep.mubr.bf16.mxu1 %v3303_v3  ;;  %v2693_v3 = vsel %vm2631_vm3, %v2683_v32, %v2692_v54  ;;  %v2731_v12 = vshrl.u32 %v14251_v61, 16  ;;  %v2734_v13 = vshll.u32 %v14251_v61, 16  ;;  %v15180_v32 = vld [vmem:[%s14826_s13 + $0x68] sm:$0xff]   ;;  %v15208_v54 = vld [vmem:[%s17938_s1 + $0x238] sm:$0xff]   ;;  %v2770_v61 = vshll.u32 %v14265_v39, 16 }
  0xd1   : > { %v2736_v27 = vrot.slane %v2734_v13, 2 }
  0xd5   : > { %13330 = vmatmul.mubr.bf16.vlgmr.msra.gmra.mxu0 %v2657_v15  ;;  %v2710_v15 = vor.u32 %v2709_v63, %v2706_v50  ;;  %v15202_v50 = vld [vmem:[%s14826_s13 + $0x78] sm:$0xff]  }
  0xd6   : > { %13418 = vmatpush3.bf16.msra.mxu0 %v15043_v51  ;;  %13382 = vmatmul.mubr.bf16.vlgmr.msra.gmra.mxu1 %v3305_v19  ;;  %v14239_v51 = vld [vmem:[%s14826_s13 + $0x38] sm:$0xff]   ;;  %v2724_v19 = vrot.slane %v2722_v6, 1 }
  0xd7   : > { %13333 = vmatprep.mubr.bf16.mxu0 %v2666_v22  ;;  %13385 = vmatprep.mubr.bf16.mxu1 %v3307_v23  ;;  %v3312_v49 = vrot.slane %v14239_v51, 2  ;;  %v15169_v22 = vld [vmem:[%s14826_s13 + $0x60] sm:$0xff]   ;;  %v14258_v23 = vld [vmem:[%s14826_s13 + $0x70] sm:$0xff]   ;;  %v2711_v29 = vsel %vm2631_vm3, %v2701_v59, %v2710_v15 }
  0xd8   : > { %13419 = vmatprep.subr.bf16.mxu0 %v14234_v16  ;;  %13470 = vmatpush3.bf16.msra.mxu1 %v15085_v48  ;;  %v14245_v48 = vld [vmem:[%s17938_s1 + $0x1a0] sm:$0xff]   ;;  %v15187_v51 = vld [vmem:[%s14826_s13 + $0x70] sm:$0xff]   ;;  %v2752_v42 = vshll.u32 %v14258_v23, 16 }
  0xd9   : > { %13471 = vmatprep.subr.bf16.mxu1 %v14257_v26  ;;  %v3313_v4 = vsel %vm3300_vm2, %v3310_v35, %v3312_v49  ;;  %v3315_v10 = vsel %vm3300_vm2, %v3312_v49, %v3314_v55  ;;  %v2720_v35 = vsel %vm2631_vm3, %v2710_v15, %v15164_v18  ;;  %v3324_v49 = vrot.slane %v15180_v32, 2 }
  0xda   : > { %13420 = vmatpush3.bf16.msra.mxu0 %v14234_v16  ;;  %v3316_v16 = vrot.slane %v14244_v62, 2  ;;  %v2754_v56 = vrot.slane %v2752_v42, 2  ;;  %v3326_v57 = vrot.slane %v15187_v51, 2  ;;  %v3321_v62 = vsel %vm3300_vm2, %v3318_v20, %v3320_v21 }
  0xdb   : > { %13421 = vmatprep.subr.bf16.mxu0 %v14240_v31 }
  0xdc   : > { %13472 = vmatpush3.bf16.msra.mxu1 %v14257_v26  ;;  %v2733_v26 = vrot.slane %v2731_v12, 1  ;;  %v3317_v34 = vsel %vm3300_vm2, %v3314_v55, %v3316_v16  ;;  %v3319_v36 = vsel %vm3300_vm2, %v3316_v16, %v3318_v20  ;;  %v2785_v16 = vshrl.u32 %v14271_v0, 16 }
  0xdd   : > { %13334 = vmatmul.mubr.bf16.gmra.mxu0 %v2675_v38  ;;  %13473 = vmatprep.subr.bf16.mxu1 %v14262_v37  ;;  %v2749_v38 = vshrl.u32 %v14258_v23, 16  ;;  %v15241_v23 = vld [vmem:[%s14826_s13 + $0x90] sm:$0xff]  }
  0xde   : > { %13386 = vmatmul.mubr.bf16.gmra.mxu1 %v3309_v43  ;;  %13337 = vmatprep.mubr.bf16.mxu0 %v2684_v44  ;;  %v14277_v43 = vld [vmem:[%s17938_s1 + $0x1c0] sm:$0xff]   ;;  %v2728_v44 = vor.u32 %v2727_v25, %v2724_v19  ;;  %v15237_v19 = vld [vmem:[%s14826_s13 + $0x98] ss:$0 sps:$4 sm:$0x33]   ;;  %v2787_v30 = vrot.slane %v2785_v16, 1 }
  0xdf   : > { %13389 = vmatprep.mubr.bf16.mxu1 %v3311_v47  ;;  %13422 = vmatpush3.bf16.msra.mxu0 %v14240_v31  ;;  %v2743_v31 = vshll.u32 %v14252_v17, 16  ;;  %v2737_v47 = vor.u32 %v2736_v27, %v2733_v26  ;;  %v2751_v55 = vrot.slane %v2749_v38, 1  ;;  %v2797_v27 = vshll.u32 %v14273_v11, 16 }
  0xe0   : > { %13423 = vmatprep.subr.bf16.mxu0 %v14245_v48  ;;  %13474 = vmatpush3.bf16.msra.mxu1 %v14262_v37  ;;  %v3322_v37 = vrot.slane %v15169_v22, 2  ;;  %v2729_v59 = vsel %vm2631_vm3, %v15164_v18, %v2728_v44  ;;  %v2788_v18 = vshll.u32 %v14271_v0, 16  ;;  %v15303_v0 = vld [vmem:[%s14826_s13 + $0x30] sm:$0xff]  }
  0xe1   : > { %13475 = vmatprep.subr.bf16.mxu1 %v14264_v53  ;;  %v2738_v63 = vsel %vm2631_vm3, %v2728_v44, %v2737_v47  ;;  %v2755_v12 = vor.u32 %v2754_v56, %v2751_v55  ;;  %v15263_v38 = vrot.slane %v2797_v27, 2  ;;  %v15271_v44 = vld [vmem:[%s17940_s3] ss:$0 sm:$0xff] }
  0xe2   : > { %v3323_v5 = vsel %vm3300_vm2, %v3320_v21, %v3322_v37  ;;  %v2794_v21 = vshrl.u32 %v14273_v11, 16  ;;  %v3325_v25 = vsel %vm3300_vm2, %v3322_v37, %v3324_v49  ;;  %v2790_v32 = vrot.slane %v2788_v18, 2 }
  0xe3   : > { %13424 = vmatpush3.bf16.msra.mxu0 %v14245_v48  ;;  %v2745_v48 = vrot.slane %v2743_v31, 2  ;;  %v14283_v31 = vld [vmem:[%s14826_s13 + $0x18] sm:$0xff]  }
  0xe4   : > { %13425 = vmatprep.subr.bf16.mxu0 %v14250_v58  ;;  %13476 = vmatpush3.bf16.msra.mxu1 %v14264_v53  ;;  %v2761_v53 = vshll.u32 %v14259_v33, 16  ;;  %v15256_v33 = vld [vmem:[%s14826_s13 + $0x10] sm:$0xfc]   ;;  %v4381_v42 = vshrl.u32 %v14283_v31, 16 }
  0xe5   : > { %13338 = vmatmul.mubr.bf16.gmra.mxu0 %v2693_v3  ;;  %13477 = vmatprep.subr.bf16.mxu1 %v14269_v2  ;;  %v2779_v3 = vshll.u32 %v14266_v52, 16  ;;  %v2746_v1 = vor.u32 %v2745_v48, %v2742_v45  ;;  %v3836_v45 = vrot.slane %v15256_v33, 2  ;;  %v4384_v48 = vshll.u32 %v14283_v31, 16  ;;  %v14292_v31 = vld [vmem:[%s14826_s13 + $0x38] sm:$0xff]  }
  0xe6   : > { %13390 = vmatmul.mubr.bf16.gmra.mxu1 %v3313_v4  ;;  %13341 = vmatprep.mubr.bf16.mxu0 %v2702_v7  ;;  %v2763_v6 = vrot.slane %v2761_v53, 2  ;;  %v3328_v4 = vrot.slane %v15202_v50, 2  ;;  %v15226_v7 = vld [vmem:[%s14826_s13 + $0x80] sm:$0xff]   ;;  %v15280_v53 = vld [vmem:[%s14826_s13 + $0x28] sm:$0xff]  }
  0xe7   : > { %13393 = vmatprep.mubr.bf16.mxu1 %v3315_v10  ;;  %13426 = vmatpush3.bf16.msra.mxu0 %v14250_v58  ;;  %v2767_v58 = vshrl.u32 %v14265_v39, 16  ;;  %v2772_v10 = vrot.slane %v2770_v61, 2  ;;  %v3330_v15 = vrot.slane %v15226_v7, 2  ;;  %v2747_v20 = vsel %vm2631_vm3, %v2737_v47, %v2746_v1 }
  0xe8   : > { %13427 = vmatprep.subr.bf16.mxu0 %v14256_v9  ;;  %13478 = vmatpush3.bf16.msra.mxu1 %v14269_v2  ;;  %v2776_v2 = vshrl.u32 %v14266_v52, 16  ;;  %v2756_v26 = vsel %vm2631_vm3, %v2746_v1, %v2755_v12  ;;  %v2764_v22 = vor.u32 %v2763_v6, %v2760_v60  ;;  %v3334_v39 = vrot.slane %v15241_v23, 2 }
  0xe9   : > { %13479 = vmatprep.subr.bf16.mxu1 %v14270_v14  ;;  %v2769_v8 = vrot.slane %v2767_v58, 1  ;;  %v3329_v55 = vsel %vm3300_vm2, %v3326_v57, %v3328_v4  ;;  %v3331_v60 = vsel %vm3300_vm2, %v3328_v4, %v3330_v15  ;;  %v15296_v61 = vrot.slane %v4381_v42, 2  ;;  %v14293_v42 = vld [vmem:[%s14826_s13 + $0x40] sm:$0xff]  }
  0xea   : > { %v2778_v13 = vrot.slane %v2776_v2, 1  ;;  %v15299_v2 = vld [vmem:[%s14826_s13 + $0x30] sm:$0xff]   ;;  %v4386_v6 = vrot.slane %v4384_v48, 3  ;;  %v2791_v4 = vor.u32 %v2790_v32, %v2787_v30  ;;  %v3843_v30 = vrot.slane %v15303_v0, 2 }
  0xeb   : > { %13428 = vmatpush3.bf16.msra.mxu0 %v14256_v9  ;;  %v15231_v9 = vld [vmem:[%s14826_s13 + $0x88] sm:$0xff]  }
  0xec   : > { %13429 = vmatprep.subr.bf16.mxu0 %v14263_v24  ;;  %13480 = vmatpush3.bf16.msra.mxu1 %v14270_v14  ;;  %v2781_v14 = vrot.slane %v2779_v3, 2  ;;  %v3332_v17 = vrot.slane %v15231_v9, 2 }
  0xed   : > { %13342 = vmatmul.mubr.bf16.gmra.mxu0 %v2711_v29  ;;  %13481 = vmatprep.subr.bf16.mxu1 %v14276_v28  ;;  %v3327_v29 = vsel %vm3300_vm2, %v3324_v49, %v3326_v57  ;;  %v2765_v49 = vsel %vm2631_vm3, %v2755_v12, %v2764_v22 }
  0xee   : > { %13394 = vmatmul.mubr.bf16.gmra.mxu1 %v3317_v34  ;;  %13345 = vmatprep.mubr.bf16.mxu0 %v2720_v35  ;;  %v15259_v34 = vld [vmem:[%s14826_s13 + $0x20] sm:$0xff]   ;;  %v2773_v35 = vor.u32 %v2772_v10, %v2769_v8  ;;  %v3841_v8 = vrot.slane %v15280_v53, 2 }
  0xef   : > { %13397 = vmatprep.mubr.bf16.mxu1 %v3319_v36  ;;  %13430 = vmatpush3.bf16.msra.mxu0 %v14263_v24  ;;  %v14282_v24 = vld [vmem:[%s14826_s13 + $0x10] sm:$0xfc]   ;;  %v15261_v36 = vrot.slane %v2794_v21, 1  ;;  %v3839_v47 = vrot.slane %v15259_v34, 2  ;;  %v15315_v21 = vld [vmem:[%s14826_s13 + $0x38] sm:$0xff]   ;;  %v5487_v53 = vld [vmem:[%s17942_s5 + $0x20] sm:$0xff] }
  0xf0   : > { %13431 = vmatprep.subr.bf16.mxu0 %v14272_v40  ;;  %13482 = vmatpush3.bf16.msra.mxu1 %v14276_v28  ;;  %v15249_v28 = vld [vmem:[%s14826_s13 + $0x18] sm:$0xff]   ;;  %v4373_v37 = vshrl.u32 %v14282_v24, 16  ;;  %v4376_v41 = vshll.u32 %v14282_v24, 16  ;;  %v2774_v56 = vsel %vm2631_vm3, %v2764_v22, %v2773_v35  ;;  %v15318_v24 = vld [vmem:[%s14826_s13 + $0x40] sm:$0xff]   ;;  %v3333_v22 = vsel %vm3300_vm2, %v3330_v15, %v3332_v17 }
  0xf1   : > { %13483 = vmatprep.subr.bf16.mxu1 %v14277_v43  ;;  %v3837_v46 = vrot.slane %v15249_v28, 2  ;;  %v4411_v15 = vshll.u32 %v15299_v2, 16  ;;  %v14288_v28 = vld [vmem:[%s17938_s1 + $0x230] sm:$0xff]  }
  0xf2   : > { %v15277_v52 = vrot.slane %v4373_v37, 2  ;;  %v15288_v58 = vrot.slane %v4376_v41, 3  ;;  %v3335_v41 = vsel %vm3300_vm2, %v3332_v17, %v3334_v39  ;;  %v17944_v17 = vrot.slane %v15315_v21, 2 }
  0xf3   : > { %13432 = vmatpush3.bf16.msra.mxu0 %v14272_v40  ;;  %v3336_v40 = vrot.slane %v15237_v19, 2 }
  0xf4   : > { %13484 = vmatpush3.bf16.msra.mxu1 %v14277_v43  ;;  %13521 = vmatprep.subr.bf16.mxu0 %v15208_v54  ;;  %v14284_v43 = vld [vmem:[%s14826_s13 + $0x20] sm:$0xff]  }
  0xf5   : > { %13346 = vmatmul.mubr.bf16.gmra.mxu0 %v2729_v59  ;;  %v14287_v59 = vld [vmem:[%s14826_s13 + $0x28] sm:$0xff]   ;;  %v4393_v51 = vshll.u32 %v14284_v43, 16 }
  0xf6   : > { %13398 = vmatmul.mubr.bf16.gmra.mxu1 %v3321_v62  ;;  %13349 = vmatprep.mubr.bf16.mxu0 %v2738_v63  ;;  %v4390_v62 = vshrl.u32 %v14284_v43, 16  ;;  %v4399_v1 = vshrl.u32 %v14287_v59, 16 }
  0xf7   : > { %13401 = vmatprep.mubr.bf16.mxu1 %v3323_v5  ;;  %v2782_v5 = vor.u32 %v2781_v14, %v2778_v13  ;;  %v4402_v13 = vshll.u32 %v14287_v59, 16  ;;  %v15311_v18 = vrot.slane %v4393_v51, 3 }
  0xf8   : > { %v15309_v16 = vrot.slane %v4390_v62, 2 }
  0xf9   : > { %v2792_v37 = vsel %vm2631_vm3, %v2782_v5, %v2791_v4  ;;  %v15343_v7 = vrot.slane %v4402_v13, 3  ;;  %v4379_v13 = vor.u32 %v15288_v58, %v15277_v52  ;;  %v14298_v52 = vld [vmem:[%s14826_s13 + $0x50] sm:$0xff]  }
  0xfd   : > { %13350 = vmatmul.mubr.bf16.gmra.mxu0 %v2747_v20  ;;  %v4408_v20 = vshrl.u32 %v15299_v2, 16  ;;  %v4417_v2 = vshrl.u32 %v14292_v31, 16 }
  0xfe   : > { %13402 = vmatmul.mubr.bf16.gmra.mxu1 %v3325_v25  ;;  %13353 = vmatprep.mubr.bf16.mxu0 %v2756_v26 }
  0xff   : > { %13405 = vmatprep.mubr.bf16.mxu1 %v3327_v29  ;;  %v2783_v29 = vsel %vm2631_vm3, %v2773_v35, %v2782_v5  ;;  %v15337_v35 = vrot.slane %v4399_v1, 2  ;;  %v15348_v9 = vrot.slane %v4408_v20, 2  ;;  %v15357_v5 = vld [vmem:[%s14826_s13 + $0x48] sm:$0xff]  }
 0x105   : > { %v13123_v63 = vpop.f32.mrf.mxu0  ;;  %13354 = vmatmul.mubr.bf16.gmra.mxu0 %v2765_v49 }
 0x106   : > { %v660_v57 = vadd.f32 %v13123_v63, %v15271_v44  ;;  %v13175_v3 = vpop.f32.mrf.mxu1  ;;  %13406 = vmatmul.mubr.bf16.gmra.mxu1 %v3329_v55  ;;  %13357 = vmatprep.mubr.bf16.mxu0 %v2774_v56  ;;  %v2800_v56 = vor.u32 %v15263_v38, %v15261_v36  ;;  %v4426_v36 = vshrl.u32 %v14293_v42, 16  ;;  %v4429_v38 = vshll.u32 %v14293_v42, 16 }
 0x107   : > { %v509_v50 = vpop.f32.mrf.mxu0  ;;  %13409 = vmatprep.mubr.bf16.mxu1 %v3331_v60  ;;  %v14297_v60 = vld [vmem:[%s14826_s13 + $0x48] sm:$0xff]  }
 0x108   : > { %v658_v10 = vadd.f32 %v15271_v44, %v509_v50  ;;  %v15307_v11 = vadd.f32 %v13175_v3, %v660_v57  ;;  %v1162_v12 = vpop.f32.mrf.mxu1  ;;  %v4420_v57 = vshll.u32 %v14292_v31, 16  ;;  %v15360_v50 = vld [vmem:[%s14826_s13 + $0x50] sm:$0xff]   ;;  %v4435_v31 = vshrl.u32 %v14297_v60, 16 }
 0x109   : > { %v13124_v14 = vpop.f32.mrf.mxu0  ;;  %v4438_v19 = vshll.u32 %v14297_v60, 16  ;;  %v15389_v33 = vrot.slane %v4426_v36, 2  ;;  %v4444_v60 = vshrl.u32 %v14298_v52, 16  ;;  %v4447_v36 = vshll.u32 %v14298_v52, 16 }
 0x10a   : > { %v661_v25 = vadd.f32 %v13124_v14, %v15271_v44  ;;  %v15321_v26 = vadd.f32 %v1162_v12, %v658_v10  ;;  %v13176_v27 = vpop.f32.mrf.mxu1  ;;  %v4387_v14 = vor.u32 %v4386_v6, %v15296_v61 }
 0x10b   : > { %v512_v32 = vpop.f32.mrf.mxu0 }
 0x10c   : > { %v659_v43 = vadd.f32 %v15271_v44, %v512_v32  ;;  %v15341_v48 = vadd.f32 %v13176_v27, %v661_v25  ;;  %v1165_v49 = vpop.f32.mrf.mxu1  ;;  %v2801_v25 = vsel %vm2631_vm3, %v2791_v4, %v2800_v56  ;;  %v3337_v27 = vsel %vm3300_vm2, %v3334_v39, %v3336_v40 }
 0x10d   : > { %v13127_v55 = vpop.f32.mrf.mxu0  ;;  %13358 = vmatmul.mubr.bf16.gmra.mxu0 %v2783_v29  ;;  %v3838_v29 = vsel %vm3300_vm2, %v3836_v45, %v3837_v46  ;;  %v15383_v4 = vrot.slane %v4411_v15, 3  ;;  %v15385_v32 = vrot.slane %v4417_v2, 2  ;;  %v15387_v39 = vrot.slane %v4420_v57, 3  ;;  %v15394_v45 = vld [vmem:[%s14826_s13 + $0x58] sm:$0xff]  }
 0x10e   : > { %v664_v62 = vadd.f32 %v13127_v55, %v15271_v44  ;;  %v15354_v63 = vadd.f32 %v1165_v49, %v659_v43  ;;  %v13179_v51 = vpop.f32.mrf.mxu1  ;;  %13410 = vmatmul.mubr.bf16.gmra.mxu1 %v3333_v22  ;;  %13361 = vmatprep.mubr.bf16.mxu0 %v2792_v37  ;;  %v15391_v40 = vrot.slane %v4429_v38, 3  ;;  %v4388_v42 = vsel %vm4371_vm4, %v4379_v13, %v4387_v14  ;;  %v14302_v49 = vld [vmem:[%s14826_s13 + $0x58] sm:$0xff]  }
 0x10f   : > { %v525_v3 = vpop.f32.mrf.mxu0  ;;  %13413 = vmatprep.mubr.bf16.mxu1 %v3335_v41  ;;  %v15403_v56 = vrot.slane %v4435_v31, 2  ;;  %v4453_v31 = vshrl.u32 %v14302_v49, 16  ;;  %v4456_v52 = vshll.u32 %v14302_v49, 16 }
 0x110   : > { %v662_v1 = vadd.f32 %v15271_v44, %v525_v3  ;;  %v15363_v10 = vadd.f32 %v13179_v51, %v664_v62  ;;  %v1178_v12 = vpop.f32.mrf.mxu1  ;;  %v14303_v62 = vld [vmem:[%s14826_s13 + $0x60] sm:$0xff]   ;;  %v15409_v3 = vrot.slane %v4438_v19, 3 }
 0x111   : > { %v13128_v20 = vpop.f32.mrf.mxu0 }
 0x112   : > { %v665_v58 = vadd.f32 %v13128_v20, %v15271_v44  ;;  %v15381_v61 = vadd.f32 %v1178_v12, %v662_v1  ;;  %v13180_v6 = vpop.f32.mrf.mxu1  ;;  %v4396_v1 = vor.u32 %v15311_v18, %v15309_v16  ;;  %v15415_v12 = vor.u32 %v15343_v7, %v15337_v35  ;;  %v15419_v20 = vld [vmem:[%s14826_s13 + $0x60] sm:$0xff]  }
 0x113   : > { %v528_v23 = vpop.f32.mrf.mxu0  ;;  %v3840_v16 = vsel %vm3300_vm2, %v3837_v46, %v3839_v47  ;;  %v15429_v18 = vrot.slane %v4444_v60, 2  ;;  %v4462_v35 = vshrl.u32 %v14303_v62, 16  ;;  %v4465_v46 = vshll.u32 %v14303_v62, 16  ;;  %v5483_v62 = vld [vmem:[%s17942_s5] sm:$0xff] }
 0x114   : > { %v663_v22 = vadd.f32 %v15271_v44, %v528_v23  ;;  %v15397_v37 = vadd.f32 %v13180_v6, %v665_v58  ;;  %v1181_v41 = vpop.f32.mrf.mxu1  ;;  %v3842_v23 = vsel %vm3300_vm2, %v3839_v47, %v3841_v8  ;;  %v4397_v49 = vsel %vm4371_vm4, %v4387_v14, %v4396_v1  ;;  %v15455_v47 = vld [vmem:[%s14826_s13 + $0x70] sm:$0xff]   ;;  %5521 = vperm.xlu0 %14099, %v5483_v62   ;;  %v5486_v62 = vld [vmem:[%s17942_s5 + $0x18] sm:$0xff] }
 0x115   : > { %v13131_v15 = vpop.f32.mrf.mxu0  ;;  %13362 = vmatmul.mubr.bf16.gmra.mxu0 %v2801_v25  ;;  %v15451_v60 = vrot.slane %v4447_v36, 3  ;;  %v15465_v14 = vrot.slane %v4456_v52, 3  ;;  %v5485_v36 = vld [vmem:[%s17942_s5 + $0x10] sm:$0xff] }
 0x116   : > { %v668_v51 = vadd.f32 %v13131_v15, %v15271_v44  ;;  %v15407_v2 = vadd.f32 %v1181_v41, %v663_v22  ;;  %v13183_v57 = vpop.f32.mrf.mxu1  ;;  %13414 = vmatmul.mubr.bf16.gmra.mxu1 %v3337_v27  ;;  %13433 = vmatprep.mubr.bf16.mxu0 %v3838_v29  ;;  %v15443_v22 = vld [vmem:[%s14826_s13 + $0x68] sm:$0xff]   ;;  %v4406_v15 = vsel %vm4371_vm4, %v4396_v1, %v15415_v12  ;;  %v15468_v1 = vld [vmem:[%s14826_s13 + $0x70] sm:$0xff]  }
 0x117   : > { %v541_v38 = vpop.f32.mrf.mxu0  ;;  %13485 = vmatprep.mubr.bf16.mxu1 %v4388_v42  ;;  %v15446_v41 = vld [vmem:[%s14826_s13 + $0x68] sm:$0xff]   ;;  %5531 = vperm.xlu1 %14100, %v5485_v36  }
 0x118   : > { %v666_v25 = vadd.f32 %v15271_v44, %v541_v38  ;;  %v15422_v27 = vadd.f32 %v13183_v57, %v668_v51  ;;  %v1194_v29 = vpop.f32.mrf.mxu1 }
 0x119   : > { %v13132_v58 = vpop.f32.mrf.mxu0 }
 0x11a   : > { %17952 = vst [vmem:[#allocation10_spill] sm:$0xff] %v15422_v27  ;;  %v669_v7 = vadd.f32 %v13132_v58, %v15271_v44  ;;  %v15432_v6 = vadd.f32 %v1194_v29, %v666_v25  ;;  %v13184_v19 = vpop.f32.mrf.mxu1  ;;  %v15463_v25 = vrot.slane %v4453_v31, 2  ;;  %v4414_v58 = vor.u32 %v15383_v4, %v15348_v9  ;;  %v5484_v31 = vld [vmem:[%s17942_s5 + $0x8] sm:$0xff] }
 0x11b   : > { %v544_v42 = vpop.f32.mrf.mxu0  ;;  %v15487_v9 = vld [vmem:[%s17938_s1 + $0x228] sm:$0xff]   ;;  %v15489_v4 = vrot.slane %v4465_v46, 3  ;;  %v4474_v46 = vshll.u32 %v15446_v41, 16  ;;  %5526 = vperm.xlu0 %14099, %v5484_v31   ;;  %5536 = vperm.xlu1 %14100, %v5486_v62  }
 0x11c   : > { %17953 = vst [vmem:[#allocation11_spill] sm:$0xff] %v15432_v6  ;;  %v667_v51 = vadd.f32 %v15271_v44, %v544_v42  ;;  %v15461_v57 = vadd.f32 %v13184_v19, %v669_v7  ;;  %v1197_v38 = vpop.f32.mrf.mxu1  ;;  %v15475_v7 = vrot.slane %v4462_v35, 2  ;;  %v15493_v35 = vld [vmem:[%s14826_s13 + $0x78] sm:$0xff]   ;;  %v4415_v0 = vsel %vm4371_vm4, %v15415_v12, %v4414_v58 }
 0x11d   : > { %v13135_v29 = vpop.f32.mrf.mxu0  ;;  %13434 = vmatmul.mubr.bf16.vlgmr.msra.gmra.mxu0 %v3840_v16  ;;  %v4471_v16 = vshrl.u32 %v15446_v41, 16  ;;  %v3846_v41 = vsel %vm3300_vm2, %v3843_v30, %v17944_v17  ;;  %v4492_v12 = vshll.u32 %v15493_v35, 16 }
 0x11e   : > { %17954 = vst [vmem:[#allocation12_spill] sm:$0xff] %v15461_v57  ;;  %v672_v52 = vadd.f32 %v13135_v29, %v15271_v44  ;;  %v15481_v19 = vadd.f32 %v1197_v38, %v667_v51  ;;  %13522 = vmatpush3.bf16.msra.mxu0 %v15208_v54  ;;  %v13187_v42 = vpop.f32.mrf.mxu1  ;;  %13486 = vmatmul.mubr.bf16.vlgmr.msra.gmra.mxu1 %v4397_v49  ;;  %v15504_v49 = vld [vmem:[%s14826_s13 + $0x80] sm:$0xff]  }
 0x11f   : > { %v557_v51 = vpop.f32.mrf.mxu0  ;;  %13437 = vmatprep.mubr.bf16.mxu0 %v3842_v23  ;;  %13489 = vmatprep.mubr.bf16.mxu1 %v4406_v15  ;;  %v15500_v54 = vor.u32 %v15387_v39, %v15385_v32  ;;  %v4480_v23 = vshrl.u32 %v15468_v1, 16  ;;  %v15512_v15 = vld [vmem:[%s14826_s13 + $0x78] sm:$0xff]   ;;  %v3844_v39 = vsel %vm3300_vm2, %v3841_v8, %v3843_v30  ;;  %v4489_v30 = vshrl.u32 %v15493_v35, 16 }
 0x120   : > { %17955 = vst [vmem:[#allocation13_spill] sm:$0xff] %v15481_v19  ;;  %v670_v38 = vadd.f32 %v15271_v44, %v557_v51  ;;  %v15507_v36 = vadd.f32 %v13187_v42, %v672_v52  ;;  %v1210_v29 = vpop.f32.mrf.mxu1  ;;  %13523 = vmatprep.subr.bf16.mxu0 %v14288_v28  ;;  %v4483_v42 = vshll.u32 %v15468_v1, 16  ;;  %v15527_v51 = vld [vmem:[%s14826_s13 + $0x80] sm:$0xff]   ;;  %v5488_v1 = vld [vmem:[%s17942_s5 + $0x28] sm:$0xff]  ;;  %5541 = vperm.xlu0 %14099, %v5487_v53   ;;  %v15580_v53 = vld [vmem:[%s14826_s13 + $0x90] sm:$0xff]  }
 0x121   : > { %v13136_v32 = vpop.f32.mrf.mxu0  ;;  %v15554_v52 = vld [vmem:[%s14826_s13 + $0x88] sm:$0xff]   ;;  %v4424_v17 = vsel %vm4371_vm4, %v4414_v58, %v15500_v54  ;;  %v15561_v59 = vrot.slane %v4480_v23, 2  ;;  %5546 = vperm.xlu1 %14100, %v5488_v1  }
 0x122   : > { %17956 = vst [vmem:[#allocation14_spill] sm:$0xff] %v15507_v36  ;;  %v673_v8 = vadd.f32 %v13136_v32, %v15271_v44  ;;  %v15533_v31 = vadd.f32 %v1210_v29, %v670_v38  ;;  %v13188_v34 = vpop.f32.mrf.mxu1  ;;  %13524 = vmatpush3.bf16.msra.mxu0 %v14288_v28  ;;  %v15545_v38 = vld [vmem:[%s17938_s1 + $0x220] sm:$0xff]   ;;  %v15547_v29 = vrot.slane %v4471_v16, 2  ;;  %v15549_v32 = vrot.slane %v4474_v46, 3  ;;  %v15564_v16 = vld [vmem:[%s14826_s13 + $0x88] sm:$0xff]  }
 0x123   : > { %v560_v62 = vpop.f32.mrf.mxu0  ;;  %13525 = vmatprep.subr.bf16.mxu0 %v15487_v9  ;;  %v4498_v28 = vshrl.u32 %v15504_v49, 16  ;;  %v15566_v35 = vrot.slane %v4483_v42, 3  ;;  %v15577_v42 = vrot.slane %v4489_v30, 2 }
 0x124   : > { %17957 = vst [vmem:[#allocation15_spill] sm:$0xff] %v15533_v31  ;;  %v671_v13 = vadd.f32 %v15271_v44, %v560_v62  ;;  %v15557_v55 = vadd.f32 %v13188_v34, %v673_v8  ;;  %v1213_v43 = vpop.f32.mrf.mxu1  ;;  %v4501_v62 = vshll.u32 %v15504_v49, 16  ;;  %v5489_v34 = vld [vmem:[%s17942_s5 + $0x30] sm:$0xff]  ;;  %v5490_v49 = vld [vmem:[%s17942_s5 + $0x38] sm:$0xff] }
 0x125   : > { %v13139_v46 = vpop.f32.mrf.mxu0  ;;  %13438 = vmatmul.mubr.bf16.gmra.mxu0 %v3844_v39  ;;  %5551 = vperm.xlu0 %14099, %v5489_v34  }
 0x126   : > { %17958 = vst [vmem:[#allocation16_spill] sm:$0xff] %v15557_v55  ;;  %v676_v58 = vadd.f32 %v13139_v46, %v15271_v44  ;;  %v15574_v23 = vadd.f32 %v1213_v43, %v671_v13  ;;  %v13191_v8 = vpop.f32.mrf.mxu1  ;;  %13490 = vmatmul.mubr.bf16.gmra.mxu1 %v4415_v0  ;;  %13441 = vmatprep.mubr.bf16.mxu0 %v3846_v41  ;;  %v15592_v41 = vrot.slane %v4492_v12, 3  ;;  %v15594_v0 = vrot.slane %v4498_v28, 2 }
 0x127   : > { %v573_v1 = vpop.f32.mrf.mxu0  ;;  %13493 = vmatprep.mubr.bf16.mxu1 %v4424_v17  ;;  %v4432_v43 = vor.u32 %v15391_v40, %v15389_v33  ;;  %13526 = vmatpush3.bf16.msra.mxu0 %v15487_v9  ;;  %v15590_v13 = vor.u32 %v15409_v3, %v15403_v56  ;;  %v14304_v17 = vld [vmem:[%s17938_s1 + $0x218] sm:$0xff]   ;;  %v4507_v40 = vshrl.u32 %v15564_v16, 16  ;;  %v15606_v56 = vld [vmem:[%s14826_s13 + $0x90] sm:$0xff]   ;;  %v17961_v12 = vrot.slane %v15318_v24, 2 }
 0x128   : > { %17959 = vst [vmem:[#allocation17_spill] sm:$0xff] %v15574_v23  ;;  %v674_v30 = vadd.f32 %v15271_v44, %v573_v1  ;;  %v15597_v46 = vadd.f32 %v13191_v8, %v676_v58  ;;  %v1226_v39 = vpop.f32.mrf.mxu1  ;;  %13527 = vmatprep.subr.bf16.mxu0 %v15545_v38  ;;  %v15609_v3 = vld [vmem:[%s14826_s13 + $0x98] sm:$0xff]   ;;  %v17962_v28 = vrot.slane %v15315_v21, 2  ;;  %v15616_v8 = vrot.slane %v4501_v62, 3  ;;  %5556 = vperm.xlu1 %14100, %v5490_v49   ;;  %v5491_v1 = vld [vmem:[%s17942_s5 + $0x40] sm:$0xff]  ;;  %v15627_v21 = vld [vmem:[%s17938_s1 + $0x210] sm:$0xff]  }
 0x129   : > { %v13140_v9 = vpop.f32.mrf.mxu0  ;;  %v4510_v62 = vshll.u32 %v15564_v16, 16  ;;  %v5492_v49 = vld [vmem:[%s17942_s5 + $0x48] sm:$0xff]  ;;  %v14322_v16 = vld [vmem:[%s14826_s13 + $0x98] sm:$0xff]   ;;  %v15651_v36 = vrot.slane %v4507_v40, 2  ;;  %v4516_v24 = vshrl.u32 %v15606_v56, 16  ;;  %5561 = vperm.xlu0 %14099, %v5491_v1  }
 0x12a   : > { %17960 = vst [vmem:[#allocation18_spill] sm:$0xff] %v15597_v46  ;;  %v3848_v58 = vsel %vm3300_vm2, %v17962_v28, %v17961_v12  ;;  %v677_v33 = vadd.f32 %v13140_v9, %v15271_v44  ;;  %v15622_v31 = vadd.f32 %v1226_v39, %v674_v30  ;;  %v13192_v34 = vpop.f32.mrf.mxu1  ;;  %v4433_v39 = vsel %vm4371_vm4, %v15500_v54, %v4432_v43  ;;  %v15646_v46 = vld [vmem:[%s14826_s13 + $0xa0] ss:$0 sps:$4 sm:$0x77]   ;;  %v15666_v40 = vld [vmem:[%s14826_s13 + $0x10] sm:$0xf8]  }
 0x12b   : > { %v576_v28 = vpop.f32.mrf.mxu0  ;;  %v17964_v30 = vrot.slane %v15357_v5, 2  ;;  %v17965_v9 = vmov %v17961_v12  ;;  %v4442_v12 = vsel %vm4371_vm4, %v4432_v43, %v15590_v13  ;;  %13528 = vmatpush3.bf16.msra.mxu0 %v15545_v38  ;;  %v4450_v38 = vor.u32 %v15451_v60, %v15429_v18  ;;  %v5494_v1 = vld [vmem:[%s17942_s5 + $0x58] sm:$0xff] }
 0x12c   : > { %17963 = vst [vmem:[#allocation19_spill] sm:$0xff] %v15622_v31  ;;  %v675_v23 = vadd.f32 %v15271_v44, %v576_v28  ;;  %v15649_v55 = vadd.f32 %v13192_v34, %v677_v33  ;;  %v1229_v54 = vpop.f32.mrf.mxu1  ;;  %13529 = vmatprep.subr.bf16.mxu0 %v14304_v17  ;;  %v4519_v33 = vshll.u32 %v15606_v56, 16  ;;  %v15669_v28 = vld [vmem:[%s14826_s13 + $0x18] sm:$0xff]   ;;  %5566 = vperm.xlu1 %14100, %v5492_v49   ;;  %v15682_v56 = vrot.slane %v4510_v62, 3  ;;  %v15693_v34 = vld [vmem:[%s14826_s13 + $0x20] sm:$0xff]   ;;  %v15696_v62 = vld [vmem:[%s14826_s13 + $0x28] sm:$0xff]  }
 0x12d   : > { %v3850_v31 = vsel %vm3300_vm2, %v17965_v9, %v17964_v30  ;;  %v15655_v30 = vld [vmem:[%s14826_s13 + $0xa0] ss:$0 sps:$4 sm:$0x33]   ;;  %v13143_v43 = vpop.f32.mrf.mxu0  ;;  %13442 = vmatmul.mubr.bf16.gmra.mxu0 %v3848_v58  ;;  %v15661_v9 = vor.u32 %v15465_v14, %v15463_v25  ;;  %v5493_v58 = vld [vmem:[%s17942_s5 + $0x50] sm:$0xff]  ;;  %v15680_v14 = vld [vmem:[%s17938_s1 + $0x208] sm:$0xff]   ;;  %v4534_v57 = vshrl.u32 %v15646_v46, 16 }
 0x12e   : > { %17966 = vst [vmem:[#allocation20_spill] sm:$0xff] %v15649_v55  ;;  %v680_v18 = vadd.f32 %v13143_v43, %v15271_v44  ;;  %v15675_v60 = vadd.f32 %v1229_v54, %v675_v23  ;;  %v13195_v25 = vpop.f32.mrf.mxu1  ;;  %13494 = vmatmul.mubr.bf16.gmra.mxu1 %v4433_v39  ;;  %13445 = vmatprep.mubr.bf16.mxu0 %v3850_v31  ;;  %v17968_v23 = vrot.slane %v15360_v50, 2  ;;  %v17969_v54 = vrot.slane %v15357_v5, 2 }
 0x12f   : > { %v589_v49 = vpop.f32.mrf.mxu0  ;;  %13497 = vmatprep.mubr.bf16.mxu1 %v4442_v12  ;;  %13530 = vmatpush3.bf16.msra.mxu0 %v14304_v17  ;;  %v4525_v39 = vshrl.u32 %v14322_v16, 16  ;;  %v4528_v43 = vshll.u32 %v14322_v16, 16  ;;  %v4537_v5 = vshll.u32 %v15646_v46, 16  ;;  %v15708_v17 = vld [vmem:[%s14826_s13 + $0x38] sm:$0xff]   ;;  %v4451_v16 = vsel %vm4371_vm4, %v15590_v13, %v4450_v38  ;;  %v5495_v46 = vld [vmem:[%s17942_s5 + $0x60] sm:$0xff] }
 0x130   : > { %17967 = vst [vmem:[#allocation21_spill] sm:$0xff] %v15675_v60  ;;  %v3852_v31 = vsel %vm3300_vm2, %v17969_v54, %v17968_v23  ;;  %v678_v60 = vadd.f32 %v15271_v44, %v589_v49  ;;  %v15699_v55 = vadd.f32 %v13195_v25, %v680_v18  ;;  %v1242_v19 = vpop.f32.mrf.mxu1  ;;  %13531 = vmatprep.subr.bf16.mxu0 %v15627_v21  ;;  %v15705_v23 = vld [vmem:[%s14826_s13 + $0x30] sm:$0xff]   ;;  %v17971_v49 = vrot.slane %v15394_v45, 2 }
 0x131   : > { %5571 = vperm.xlu0 %14099, %v5493_v58   ;;  %v13144_v12 = vpop.f32.mrf.mxu0  ;;  %v17972_v18 = vrot.slane %v15360_v50, 2  ;;  %v4460_v54 = vsel %vm4371_vm4, %v4450_v38, %v15661_v9  ;;  %5576 = vperm.xlu1 %14100, %v5494_v1   ;;  %v15727_v27 = vrot.slane %v4519_v33, 3  ;;  %v5496_v38 = vld [vmem:[%s17942_s5 + $0x68] sm:$0xff]  ;;  %v15734_v1 = vrot.slane %v4525_v39, 2  ;;  %v14320_v50 = vld [vmem:[%s17938_s1 + $0x200] sm:$0xff]  }
 0x132   : > { %17970 = vst [vmem:[#allocation22_spill] sm:$0xff] %v15699_v55  ;;  %v15719_v55 = vrot.slane %v4516_v24, 2  ;;  %v681_v58 = vadd.f32 %v13144_v12, %v15271_v44  ;;  %v15725_v6 = vadd.f32 %v1242_v19, %v678_v60  ;;  %v13196_v13 = vpop.f32.mrf.mxu1  ;;  %v15749_v39 = vrot.slane %v4537_v5, 3  ;;  %v5497_v19 = vld [vmem:[%s17942_s5 + $0x70] sm:$0xff] }
 0x133   : > { %v3854_v25 = vsel %vm3300_vm2, %v17972_v18, %v17971_v49  ;;  %v592_v24 = vpop.f32.mrf.mxu0  ;;  %13532 = vmatpush3.bf16.msra.mxu0 %v15627_v21  ;;  %v15736_v49 = vrot.slane %v4528_v43, 3  ;;  %v15747_v21 = vrot.slane %v4534_v57, 2  ;;  %v5498_v57 = vld [vmem:[%s17942_s5 + $0x78] sm:$0xff] }
 0x134   : > { %v679_v33 = vadd.f32 %v15271_v44, %v592_v24  ;;  %v15741_v60 = vadd.f32 %v13196_v13, %v681_v58  ;;  %v1245_v18 = vpop.f32.mrf.mxu1  ;;  %13533 = vmatprep.subr.bf16.mxu0 %v15680_v14  ;;  %v5499_v13 = vld [vmem:[%s17942_s5 + $0x80] sm:$0xff] }
 0x135   : > { %5581 = vperm.xlu0 %14099, %v5495_v46   ;;  %v13147_v43 = vpop.f32.mrf.mxu0  ;;  %13446 = vmatmul.mubr.bf16.gmra.mxu0 %v3852_v31 }
 0x136   : > { %5586 = vperm.xlu1 %14100, %v5496_v38   ;;  %v684_v5 = vadd.f32 %v13147_v43, %v15271_v44  ;;  %v15762_v31 = vadd.f32 %v1245_v18, %v679_v33  ;;  %v13199_v46 = vpop.f32.mrf.mxu1  ;;  %13498 = vmatmul.mubr.bf16.gmra.mxu1 %v4451_v16  ;;  %v4468_v38 = vor.u32 %v15489_v4, %v15475_v7  ;;  %v5500_v7 = vld [vmem:[%s17942_s5 + $0x88] sm:$0xff]  ;;  %v17973_v18 = vrot.slane %v15419_v20, 2 }
 0x137   : > { %13449 = vmatprep.mubr.bf16.mxu0 %v3854_v25  ;;  %v605_v24 = vpop.f32.mrf.mxu0  ;;  %13501 = vmatprep.mubr.bf16.mxu1 %v4460_v54  ;;  %v4477_v16 = vor.u32 %v15549_v32, %v15547_v29  ;;  %v17974_v43 = vrot.slane %v15394_v45, 2 }
 0x138   : > { %13534 = vmatpush3.bf16.msra.mxu0 %v15680_v14  ;;  %v682_v58 = vadd.f32 %v15271_v44, %v605_v24  ;;  %v15771_v12 = vadd.f32 %v13199_v46, %v684_v5  ;;  %v1258_v33 = vpop.f32.mrf.mxu1  ;;  %v4469_v32 = vsel %vm4371_vm4, %v15661_v9, %v4468_v38  ;;  %v17976_v5 = vmov %v17973_v18  ;;  %v5502_v9 = vld [vmem:[%s17942_s5 + $0x98] sm:$0xff] }
 0x139   : > { %13535 = vmatprep.subr.bf16.mxu0 %v14320_v50  ;;  %5591 = vperm.xlu0 %14099, %v5497_v19   ;;  %v13148_v4 = vpop.f32.mrf.mxu0  ;;  %v3856_v24 = vsel %vm3300_vm2, %v17974_v43, %v17973_v18  ;;  %v17975_v19 = vrot.slane %v15443_v22, 2 }
 0x13a   : > { %5596 = vperm.xlu1 %14100, %v5498_v57   ;;  %v685_v14 = vadd.f32 %v13148_v4, %v15271_v44  ;;  %v15779_v25 = vadd.f32 %v1258_v33, %v682_v58  ;;  %v13200_v54 = vpop.f32.mrf.mxu1  ;;  %v5501_v58 = vld [vmem:[%s17942_s5 + $0x90] sm:$0xff]  ;;  %v4478_v4 = vsel %vm4371_vm4, %v4468_v38, %v4477_v16  ;;  %v4486_v38 = vor.u32 %v15566_v35, %v15561_v59 }
 0x13b   : > { %v608_v29 = vpop.f32.mrf.mxu0  ;;  %v3858_v57 = vsel %vm3300_vm2, %v17976_v5, %v17975_v19 }
 0x13c   : > { %13536 = vmatpush3.bf16.msra.mxu0 %v14320_v50  ;;  %v683_v46 = vadd.f32 %v15271_v44, %v608_v29  ;;  %v15797_v45 = vadd.f32 %v13200_v54, %v685_v14  ;;  %v1261_v33 = vpop.f32.mrf.mxu1  ;;  %v4495_v29 = vor.u32 %v15592_v41, %v15577_v42  ;;  %v4487_v42 = vsel %vm4371_vm4, %v4477_v16, %v4486_v38 }
 0x13d   : > { %5601 = vperm.xlu0 %14099, %v5499_v13   ;;  %v13151_v20 = vpop.f32.mrf.mxu0  ;;  %13450 = vmatmul.mubr.bf16.gmra.mxu0 %v3856_v24  ;;  %v5503_v13 = vld [vmem:[%s17942_s5 + $0xa0] sm:$0xff]  ;;  %v17979_v41 = vrot.slane %v15512_v15, 2 }
 0x13e   : > { %5606 = vperm.xlu1 %14100, %v5500_v7   ;;  %v688_v50 = vadd.f32 %v13151_v20, %v15271_v44  ;;  %v15804_v18 = vadd.f32 %v1261_v33, %v683_v46  ;;  %v13203_v43 = vpop.f32.mrf.mxu1  ;;  %13502 = vmatmul.mubr.bf16.gmra.mxu1 %v4469_v32  ;;  %v5504_v32 = vld [vmem:[%s17942_s5 + $0xa8] sm:$0xff]  ;;  %v17978_v46 = vrot.slane %v15443_v22, 2  ;;  %v14585_v20 = vld [vmem:[%s17940_s3] ss:$0 sm:$0xff]  ;;  %v4496_v16 = vsel %vm4371_vm4, %v4486_v38, %v4495_v29 }
 0x13f   : > { %13453 = vmatprep.mubr.bf16.mxu0 %v3858_v57  ;;  %v621_v14 = vpop.f32.mrf.mxu0  ;;  %13505 = vmatprep.mubr.bf16.mxu1 %v4478_v4  ;;  %v17977_v57 = vrot.slane %v15455_v47, 2  ;;  %v5506_v47 = vld [vmem:[%s17942_s5 + $0xb8] sm:$0xff]  ;;  %v5507_v38 = vld [vmem:[%s17942_s5 + $0xc0] sm:$0xff] }
 0x140   : > { %v686_v54 = vadd.f32 %v15271_v44, %v621_v14  ;;  %v15812_v24 = vadd.f32 %v13203_v43, %v688_v50  ;;  %v1274_v7 = vpop.f32.mrf.mxu1 }
 0x141   : > { %5611 = vperm.xlu0 %14099, %v5501_v58   ;;  %v13152_v19 = vpop.f32.mrf.mxu0  ;;  %v3860_v33 = vsel %vm3300_vm2, %v17978_v46, %v17977_v57  ;;  %v17980_v58 = vmov %v17977_v57 }
 0x142   : > { %5616 = vperm.xlu1 %14100, %v5502_v9   ;;  %v689_v59 = vadd.f32 %v13152_v19, %v15271_v44  ;;  %v15820_v35 = vadd.f32 %v1274_v7, %v686_v54  ;;  %v13204_v5 = vpop.f32.mrf.mxu1  ;;  %v3862_v9 = vsel %vm3300_vm2, %v17980_v58, %v17979_v41  ;;  %v5505_v44 = vld [vmem:[%s17942_s5 + $0xb0] sm:$0xff]  ;;  %v17981_v41 = vrot.slane %v15527_v51, 2 }
 0x143   : > { %v624_v4 = vpop.f32.mrf.mxu0  ;;  %v17982_v58 = vrot.slane %v15512_v15, 2 }
 0x144   : > { %v687_v22 = vadd.f32 %v14585_v20, %v624_v4  ;;  %v15839_v50 = vadd.f32 %v13204_v5, %v689_v59  ;;  %v1277_v43 = vpop.f32.mrf.mxu1  ;;  %v4504_v59 = vor.u32 %v15616_v8, %v15594_v0 }
 0x145   : > { %5621 = vperm.xlu0 %14099, %v5503_v13   ;;  %v13155_v14 = vpop.f32.mrf.mxu0  ;;  %13454 = vmatmul.mubr.bf16.gmra.mxu0 %v3860_v33  ;;  %v5508_v33 = vld [vmem:[%s17942_s5 + $0xc8] sm:$0xff] }
 0x146   : > { %5626 = vperm.xlu1 %14100, %v5504_v32   ;;  %v692_v54 = vadd.f32 %v14585_v20, %v13155_v14  ;;  %v15845_v7 = vadd.f32 %v1277_v43, %v687_v22  ;;  %v13207_v19 = vpop.f32.mrf.mxu1  ;;  %13506 = vmatmul.mubr.bf16.gmra.mxu1 %v4487_v42  ;;  %v4513_v32 = vor.u32 %v15682_v56, %v15651_v36  ;;  %v17983_v56 = vrot.slane %v15554_v52, 2 }
 0x147   : > { %13457 = vmatprep.mubr.bf16.mxu0 %v3862_v9  ;;  %v637_v57 = vpop.f32.mrf.mxu0  ;;  %13509 = vmatprep.mubr.bf16.mxu1 %v4496_v16  ;;  %v3864_v9 = vsel %vm3300_vm2, %v17982_v58, %v17981_v41  ;;  %v4505_v36 = vsel %vm4371_vm4, %v4495_v29, %v4504_v59  ;;  %v5510_v29 = vld [vmem:[%s17942_s5 + $0xd8] sm:$0xff]  ;;  %v17987_v58 = vrot.slane %v15609_v3, 2 }
 0x148   : > { %v690_v13 = vadd.f32 %v14585_v20, %v637_v57  ;;  %v15852_v5 = vadd.f32 %v13207_v19, %v692_v54  ;;  %v1290_v46 = vpop.f32.mrf.mxu1  ;;  %v4514_v15 = vsel %vm4371_vm4, %v4504_v59, %v4513_v32  ;;  %v4522_v57 = vor.u32 %v15727_v27, %v15719_v55  ;;  %v5511_v59 = vld [vmem:[%s17942_s5 + $0xe0] sm:$0xff] }
 0x149   : > { %5631 = vperm.xlu0 %14099, %v5505_v44   ;;  %v13156_v4 = vpop.f32.mrf.mxu0  ;;  %v17984_v44 = vmov %v17981_v41 }
 0x14a   : > { %5636 = vperm.xlu1 %14100, %v5506_v47   ;;  %v693_v42 = vadd.f32 %v14585_v20, %v13156_v4  ;;  %v15859_v0 = vadd.f32 %v1290_v46, %v690_v13  ;;  %v13208_v8 = vpop.f32.mrf.mxu1  ;;  %v3866_v43 = vsel %vm3300_vm2, %v17984_v44, %v17983_v56  ;;  %v5509_v20 = vld [vmem:[%s17942_s5 + $0xd0] sm:$0xff] }
 0x14b   : > { %v15866_v22 = vpop.f32.mrf.mxu0 }
 0x14c   : > { %v15877_v16 = vadd.f32 %v13208_v8, %v693_v42  ;;  %v15879_v47 = vpop.f32.mrf.mxu1  ;;  %v17986_v8 = vmov %v17983_v56 }
 0x14d   : > { %5641 = vperm.xlu0 %14099, %v5507_v38   ;;  %v13227_v14 = vpop.f32.mrf.mxu0  ;;  %13458 = vmatmul.mubr.bf16.gmra.mxu0 %v3864_v9 }
 0x14e   : > { %5646 = vperm.xlu1 %14100, %v5508_v33   ;;  %v1843_v51 = vadd.f32 %v13227_v14, %v15307_v11  ;;  %v13279_v54 = vpop.f32.mrf.mxu1  ;;  %13510 = vmatmul.mubr.bf16.gmra.mxu1 %v4505_v36  ;;  %v4531_v11 = vor.u32 %v15736_v49, %v15734_v1  ;;  %v5512_v33 = vld [vmem:[%s17942_s5 + $0xe8] sm:$0xff]  ;;  %v4523_v49 = vsel %vm4371_vm4, %v4513_v32, %v4522_v57  ;;  %v5515_v14 = vld [vmem:[%s17942_s5 + $0x100] sm:$0xff] }
 0x14f   : > { %13461 = vmatprep.mubr.bf16.mxu0 %v3866_v43  ;;  %v1698_v19 = vpop.f32.mrf.mxu0  ;;  %13513 = vmatprep.mubr.bf16.mxu1 %v4514_v15 }
 0x150   : > { %v1841_v38 = vadd.f32 %v1698_v19, %v15321_v26  ;;  %v15892_v13 = vadd.f32 %v13279_v54, %v1843_v51  ;;  %v2233_v46 = vpop.f32.mrf.mxu1  ;;  %v17985_v26 = vrot.slane %v15580_v53, 2  ;;  %v4532_v43 = vsel %vm4371_vm4, %v4522_v57, %v4531_v11  ;;  %v5514_v53 = vld [vmem:[%s17942_s5 + $0xf8] sm:$0xff] }
 0x151   : > { %5651 = vperm.xlu0 %14099, %v5509_v20   ;;  %v13228_v4 = vpop.f32.mrf.mxu0 }
 0x152   : > { %5656 = vperm.xlu1 %14100, %v5510_v29   ;;  %v1844_v55 = vadd.f32 %v13228_v4, %v15341_v48  ;;  %v15900_v27 = vadd.f32 %v2233_v46, %v1841_v38  ;;  %v13280_v42 = vpop.f32.mrf.mxu1  ;;  %v3868_v41 = vsel %vm3300_vm2, %v17986_v8, %v17985_v26  ;;  %v17988_v9 = vmov %v17985_v26  ;;  %v5513_v48 = vld [vmem:[%s17942_s5 + $0xf0] sm:$0xff] }
 0x153   : > { %v1701_v1 = vpop.f32.mrf.mxu0  ;;  %v3870_v36 = vsel %vm3300_vm2, %v17988_v9, %v17987_v58  ;;  %v4540_v29 = vor.u32 %v15749_v39, %v15747_v21  ;;  %v17989_v39 = vrot.slane %v15655_v30, 2  ;;  %v17990_v46 = vmov %v17987_v58 }
 0x154   : > { %v15917_v56 = vadd.f32 %v1701_v1, %v15354_v63  ;;  %v15919_v44 = vadd.f32 %v13280_v42, %v1844_v55  ;;  %v15921_v52 = vpop.f32.mrf.mxu1  ;;  %v17991_v55 = vrot.slane %v15669_v28, 3  ;;  %v17992_v42 = vrot.slane %v15666_v40, 3  ;;  %v17993_v40 = vld [vmem:[#allocation10_spill] sm:$0xff] }
 0x155   : > { %5661 = vperm.xlu0 %14099, %v5511_v59   ;;  %v13231_v32 = vpop.f32.mrf.mxu0  ;;  %13462 = vmatmul.mubr.bf16.gmra.mxu0 %v3868_v41  ;;  %v4541_v4 = vsel %vm4371_vm4, %v4531_v11, %v4540_v29  ;;  %v5518_v11 = vld [vmem:[%s17942_s5 + $0x118] sm:$0xff]  ;;  %v18001_v28 = vld [vmem:[#allocation14_spill] sm:$0xff] }
 0x156   : > { %5666 = vperm.xlu1 %14100, %v5512_v33   ;;  %v1847_v20 = vadd.f32 %v13231_v32, %v15363_v10  ;;  %v13283_v15 = vpop.f32.mrf.mxu1  ;;  %13514 = vmatmul.mubr.bf16.gmra.mxu1 %v4523_v49  ;;  %v5516_v10 = vld [vmem:[%s17942_s5 + $0x108] sm:$0xff]  ;;  %v5043_v26 = vsel %vm5040_vm5, %v17992_v42, %v17991_v55  ;;  %v17997_v29 = vmov %v17991_v55  ;;  %v18002_v42 = vld [vmem:[#allocation15_spill] sm:$0xff] }
 0x157   : > { %13465 = vmatprep.mubr.bf16.mxu0 %v3870_v36  ;;  %v1714_v63 = vpop.f32.mrf.mxu0  ;;  %13517 = vmatprep.mubr.bf16.mxu1 %v4532_v43 }
 0x158   : > { %v1845_v51 = vadd.f32 %v1714_v63, %v15381_v61  ;;  %v15934_v54 = vadd.f32 %v13283_v15, %v1847_v20  ;;  %v2249_v19 = vpop.f32.mrf.mxu1  ;;  %v3872_v61 = vsel %vm3300_vm2, %v17990_v46, %v17989_v39  ;;  %v17996_v63 = vrot.slane %v15693_v34, 3 }
 0x159   : > { %5671 = vperm.xlu0 %14099, %v5513_v48   ;;  %v13232_v57 = vpop.f32.mrf.mxu0 }
 0x15a   : > { %5676 = vperm.xlu1 %14100, %v5514_v53   ;;  %v1848_v59 = vadd.f32 %v13232_v57, %v15397_v37  ;;  %v15940_v38 = vadd.f32 %v2249_v19, %v1845_v51  ;;  %v13284_v21 = vpop.f32.mrf.mxu1  ;;  %v5517_v37 = vld [vmem:[%s17942_s5 + $0x110] sm:$0xff]  ;;  %v17995_v53 = vld [vmem:[#allocation12_spill] sm:$0xff]  ;;  %v17998_v19 = vrot.slane %v15696_v62, 3 }
 0x15b   : > { %v1717_v33 = vpop.f32.mrf.mxu0  ;;  %v18009_v62 = vld [vmem:[#allocation18_spill] sm:$0xff] }
 0x15c   : > { %v15957_v8 = vadd.f32 %v1717_v33, %v15407_v2  ;;  %v15959_v30 = vadd.f32 %v13284_v21, %v1848_v59  ;;  %v15961_v3 = vpop.f32.mrf.mxu1  ;;  %v17994_v2 = vld [vmem:[#allocation11_spill] sm:$0xff]  ;;  %v18000_v59 = vld [vmem:[#allocation13_spill] sm:$0xff] }
 0x15d   : > { %5681 = vperm.xlu0 %14099, %v5515_v14   ;;  %v13235_v41 = vpop.f32.mrf.mxu0  ;;  %13466 = vmatmul.mubr.bf16.gmra.mxu0 %v3872_v61  ;;  %v5045_v14 = vsel %vm5040_vm5, %v17997_v29, %v17996_v63  ;;  %v18008_v29 = vld [vmem:[#allocation17_spill] sm:$0xff] }
 0x15e   : > { %5686 = vperm.xlu1 %14100, %v5516_v10   ;;  %v1851_v1 = vadd.f32 %v13235_v41, %v17993_v40  ;;  %v13287_v49 = vpop.f32.mrf.mxu1  ;;  %13518 = vmatmul.mubr.bf16.gmra.mxu1 %v4541_v4  ;;  %v17999_v10 = vmov %v17996_v63  ;;  %v18003_v41 = vld [vmem:[#allocation16_spill] sm:$0xff]  ;;  %v14331_v63 = vld [vmem:[%s14826_s13 + $0x48] sm:$0xff]  }
 0x15f   : > { %13537 = vmatprep.mubr.bf16.mxu0 %v5043_v26  ;;  %v1730_v58 = vpop.f32.mrf.mxu0  ;;  %v5047_v57 = vsel %vm5040_vm5, %v17999_v10, %v17998_v19 }
 0x160   : > { %v1849_v9 = vadd.f32 %v1730_v58, %v17994_v2  ;;  %v15968_v36 = vadd.f32 %v13287_v49, %v1851_v1  ;;  %v2265_v48 = vpop.f32.mrf.mxu1  ;;  %v18004_v58 = vrot.slane %v15705_v23, 3  ;;  %v18005_v2 = vmov %v17998_v19 }
 0x161   : > { %5691 = vperm.xlu0 %14099, %v5517_v37   ;;  %v13236_v43 = vpop.f32.mrf.mxu0 }
 0x162   : > { %5696 = vperm.xlu1 %14100, %v5518_v11   ;;  %v1852_v32 = vadd.f32 %v13236_v43, %v17995_v53  ;;  %v15971_v20 = vadd.f32 %v2265_v48, %v1849_v9  ;;  %v13288_v15 = vpop.f32.mrf.mxu1  ;;  %v5049_v9 = vsel %vm5040_vm5, %v18005_v2, %v18004_v58  ;;  %v14330_v48 = vld [vmem:[%s14826_s13 + $0x40] sm:$0xff]   ;;  %v18006_v53 = vrot.slane %v15708_v17, 3  ;;  %v14332_v2 = vld [vmem:[%s14826_s13 + $0x50] sm:$0xff]  }
 0x163   : > { %v1733_v51 = vpop.f32.mrf.mxu0 }
 0x164   : > { %v15984_v21 = vadd.f32 %v1733_v51, %v18000_v59  ;;  %v15986_v39 = vadd.f32 %v13288_v15, %v1852_v32  ;;  %v15988_v46 = vpop.f32.mrf.mxu1  ;;  %v18007_v32 = vmov %v18004_v58 }
 0x165   : > { %v13239_v61 = vpop.f32.mrf.mxu0  ;;  %13538 = vmatmul.mubr.bf16.vlgmr.msra.gmra.mxu0 %v5045_v14  ;;  %v5051_v15 = vsel %vm5040_vm5, %v18007_v32, %v18006_v53 }
 0x166   : > { %v1855_v33 = vadd.f32 %v13239_v61, %v18001_v28  ;;  %v13291_v4 = vpop.f32.mrf.mxu1  ;;  %13541 = vmatprep.mubr.bf16.mxu0 %v5047_v57  ;;  %v5052_v61 = vrot.slane %v14330_v48, 3  ;;  %v5054_v28 = vrot.slane %v14331_v63, 3 }
 0x167   : > { %v1746_v55 = vpop.f32.mrf.mxu0 }
 0x168   : > { %v1853_v34 = vadd.f32 %v1746_v55, %v18002_v42  ;;  %v15992_v26 = vadd.f32 %v13291_v4, %v1855_v33  ;;  %v2281_v37 = vpop.f32.mrf.mxu1  ;;  %v18010_v33 = vld [vmem:[#allocation19_spill] sm:$0xff]  ;;  %v5055_v48 = vsel %vm5040_vm5, %v5052_v61, %v5054_v28 }
 0x169   : > { %v13240_v11 = vpop.f32.mrf.mxu0 }
 0x16a   : > { %v1856_v40 = vadd.f32 %v13240_v11, %v18003_v41  ;;  %v15995_v1 = vadd.f32 %v2281_v37, %v1853_v34  ;;  %v13292_v49 = vpop.f32.mrf.mxu1  ;;  %v18011_v37 = vld [vmem:[#allocation20_spill] sm:$0xff] }
 0x16b   : > { %v1749_v43 = vpop.f32.mrf.mxu0 }
 0x16c   : > { %v16010_v14 = vadd.f32 %v1749_v43, %v18008_v29  ;;  %v16012_v51 = vadd.f32 %v13292_v49, %v1856_v40  ;;  %v16014_v19 = vpop.f32.mrf.mxu1  ;;  %v18012_v49 = vmov %v18006_v53  ;;  %v14333_v43 = vld [vmem:[%s14826_s13 + $0x58] sm:$0xff]   ;;  %v18013_v53 = vld [vmem:[#allocation21_spill] sm:$0xff] }
 0x16d   : > { %v13243_v10 = vpop.f32.mrf.mxu0  ;;  %13542 = vmatmul.mubr.bf16.gmra.mxu0 %v5049_v9  ;;  %v5053_v58 = vsel %vm5040_vm5, %v18012_v49, %v5052_v61  ;;  %v14334_v49 = vld [vmem:[%s14826_s13 + $0x60] sm:$0xff]  }
 0x16e   : > { %v1859_v57 = vadd.f32 %v13243_v10, %v18009_v62  ;;  %v13295_v59 = vpop.f32.mrf.mxu1  ;;  %13545 = vmatprep.mubr.bf16.mxu0 %v5051_v15  ;;  %v18014_v10 = vld [vmem:[#allocation22_spill] sm:$0xff] }
 0x16f   : > { %v1762_v23 = vpop.f32.mrf.mxu0 }
 0x170   : > { %v1857_v4 = vadd.f32 %v1762_v23, %v18010_v33  ;;  %v16018_v55 = vadd.f32 %v13295_v59, %v1859_v57  ;;  %v2297_v42 = vpop.f32.mrf.mxu1  ;;  %v5056_v57 = vrot.slane %v14332_v2, 3  ;;  %v5058_v23 = vrot.slane %v14333_v43, 3  ;;  %v14335_v2 = vld [vmem:[%s14826_s13 + $0x68] sm:$0xff]  }
 0x171   : > { %v13244_v34 = vpop.f32.mrf.mxu0 }
 0x172   : > { %v1860_v11 = vadd.f32 %v13244_v34, %v18011_v37  ;;  %v16021_v41 = vadd.f32 %v2297_v42, %v1857_v4  ;;  %v13296_v40 = vpop.f32.mrf.mxu1 }
 0x173   : > { %v1765_v9 = vpop.f32.mrf.mxu0 }
 0x174   : > { %v16030_v32 = vadd.f32 %v1765_v9, %v18013_v53  ;;  %v16032_v15 = vadd.f32 %v13296_v40, %v1860_v11  ;;  %v16034_v63 = vpop.f32.mrf.mxu1  ;;  %v5057_v40 = vsel %vm5040_vm5, %v5054_v28, %v5056_v57  ;;  %v5059_v9 = vsel %vm5040_vm5, %v5056_v57, %v5058_v23 }
 0x175   : > { %v13247_v29 = vpop.f32.mrf.mxu0  ;;  %13546 = vmatmul.mubr.bf16.gmra.mxu0 %v5053_v58  ;;  %v5060_v28 = vrot.slane %v14334_v49, 3 }
 0x176   : > { %v1863_v62 = vadd.f32 %v13247_v29, %v18014_v10  ;;  %v13299_v17 = vpop.f32.mrf.mxu1  ;;  %13549 = vmatprep.mubr.bf16.mxu0 %v5055_v48  ;;  %v14343_v10 = vld [vmem:[#allocation4 + $0x38] sm:$0xff]  }
 0x177   : > { %v1778_v59 = vpop.f32.mrf.mxu0  ;;  %13573 = vmatprep.subr.bf16.mxu1 %v14343_v10 }
 0x178   : > { %v1861_v61 = vadd.f32 %v1778_v59, %v15725_v6  ;;  %v16038_v33 = vadd.f32 %v13299_v17, %v1863_v62  ;;  %v2313_v4 = vpop.f32.mrf.mxu1  ;;  %v5062_v17 = vrot.slane %v14335_v2, 3  ;;  %13574 = vmatpush3.bf16.msra.mxu1 %v14343_v10 }
 0x179   : > { %v13248_v42 = vpop.f32.mrf.mxu0 }
 0x17a   : > { %v1864_v34 = vadd.f32 %v13248_v42, %v15741_v60  ;;  %v16041_v37 = vadd.f32 %v2313_v4, %v1861_v61  ;;  %v13300_v11 = vpop.f32.mrf.mxu1  ;;  %v5063_v49 = vsel %vm5040_vm5, %v5060_v28, %v5062_v17 }
 0x17b   : > { %v1781_v58 = vpop.f32.mrf.mxu0 }
 0x17c   : > { %v16048_v48 = vadd.f32 %v1781_v58, %v15762_v31  ;;  %v16050_v6 = vadd.f32 %v13300_v11, %v1864_v34  ;;  %v16052_v43 = vpop.f32.mrf.mxu1  ;;  %v5061_v34 = vsel %vm5040_vm5, %v5058_v23, %v5060_v28  ;;  %v14336_v11 = vld [vmem:[%s14826_s13 + $0x70] sm:$0xff]   ;;  %v14337_v58 = vld [vmem:[%s14826_s13 + $0x78] sm:$0xff]  }
 0x17d   : > { %v13251_v53 = vpop.f32.mrf.mxu0  ;;  %13550 = vmatmul.mubr.bf16.gmra.mxu0 %v5057_v40  ;;  %v5064_v23 = vrot.slane %v14336_v11, 3  ;;  %v5066_v28 = vrot.slane %v14337_v58, 3 }
 0x17e   : > { %v1867_v60 = vadd.f32 %v13251_v53, %v15771_v12  ;;  %v13303_v29 = vpop.f32.mrf.mxu1  ;;  %13553 = vmatprep.mubr.bf16.mxu0 %v5059_v9 }
 0x17f   : > { %v1794_v62 = vpop.f32.mrf.mxu0 }
 0x180   : > { %v1865_v57 = vadd.f32 %v1794_v62, %v15779_v25  ;;  %v16056_v31 = vadd.f32 %v13303_v29, %v1867_v60  ;;  %v2329_v59 = vpop.f32.mrf.mxu1  ;;  %v14344_v29 = vld [vmem:[#allocation4 + $0x30] sm:$0xff]  }
 0x181   : > { %v13252_v61 = vpop.f32.mrf.mxu0  ;;  %13575 = vmatprep.subr.bf16.mxu1 %v14344_v29 }
 0x182   : > { %v1868_v4 = vadd.f32 %v13252_v61, %v15797_v45  ;;  %v16059_v42 = vadd.f32 %v2329_v59, %v1865_v57  ;;  %v13304_v12 = vpop.f32.mrf.mxu1  ;;  %13576 = vmatpush3.bf16.msra.mxu1 %v14344_v29 }
 0x183   : > { %v1797_v40 = vpop.f32.mrf.mxu0 }
 0x184   : > { %v16066_v25 = vadd.f32 %v1797_v40, %v15804_v18  ;;  %v16068_v9 = vadd.f32 %v13304_v12, %v1868_v4  ;;  %v16070_v2 = vpop.f32.mrf.mxu1  ;;  %v5065_v12 = vsel %vm5040_vm5, %v5062_v17, %v5064_v23  ;;  %v5067_v40 = vsel %vm5040_vm5, %v5064_v23, %v5066_v28 }
 0x185   : > { %v13255_v53 = vpop.f32.mrf.mxu0  ;;  %13554 = vmatmul.mubr.bf16.gmra.mxu0 %v5061_v34  ;;  %v14338_v34 = vld [vmem:[%s14826_s13 + $0x80] sm:$0xff]  }
 0x186   : > { %v1871_v45 = vadd.f32 %v13255_v53, %v15812_v24  ;;  %v13307_v60 = vpop.f32.mrf.mxu1  ;;  %13557 = vmatprep.mubr.bf16.mxu0 %v5063_v49  ;;  %v14339_v49 = vld [vmem:[%s14826_s13 + $0x88] sm:$0xff]   ;;  %v5068_v17 = vrot.slane %v14338_v34, 3 }
 0x187   : > { %v1810_v10 = vpop.f32.mrf.mxu0 }
 0x188   : > { %v1869_v62 = vadd.f32 %v1810_v10, %v15820_v35  ;;  %v16074_v18 = vadd.f32 %v13307_v60, %v1871_v45  ;;  %v2345_v57 = vpop.f32.mrf.mxu1  ;;  %v5070_v10 = vrot.slane %v14339_v49, 3  ;;  %v14341_v49 = vld [vmem:[%s14826_s13 + $0x98] sm:$0xff]  }
 0x189   : > { %v13256_v59 = vpop.f32.mrf.mxu0 }
 0x18a   : > { %v1872_v61 = vadd.f32 %v13256_v59, %v15839_v50  ;;  %v16077_v4 = vadd.f32 %v2345_v57, %v1869_v62  ;;  %v13308_v24 = vpop.f32.mrf.mxu1  ;;  %v14345_v57 = vld [vmem:[#allocation4 + $0x28] sm:$0xff]  }
 0x18b   : > { %v1813_v11 = vpop.f32.mrf.mxu0  ;;  %13577 = vmatprep.subr.bf16.mxu1 %v14345_v57 }
 0x18c   : > { %v16084_v35 = vadd.f32 %v1813_v11, %v15845_v7  ;;  %v16086_v58 = vadd.f32 %v13308_v24, %v1872_v61  ;;  %v16088_v53 = vpop.f32.mrf.mxu1  ;;  %v14340_v11 = vld [vmem:[%s14826_s13 + $0x90] sm:$0xff]   ;;  %13578 = vmatpush3.bf16.msra.mxu1 %v14345_v57 }
 0x18d   : > { %18015 = vst [vmem:[#allocation10_spill] sm:$0xff] %v16088_v53  ;;  %v13259_v45 = vpop.f32.mrf.mxu0  ;;  %13558 = vmatmul.mubr.bf16.gmra.mxu0 %v5065_v12  ;;  %v14346_v57 = vld [vmem:[#allocation4 + $0x20] sm:$0xff]  }
 0x18e   : > { %v1875_v50 = vadd.f32 %v13259_v45, %v15852_v5  ;;  %v13311_v60 = vpop.f32.mrf.mxu1  ;;  %13561 = vmatprep.mubr.bf16.mxu0 %v5067_v40  ;;  %v5069_v5 = vsel %vm5040_vm5, %v5066_v28, %v5068_v17  ;;  %v5071_v40 = vsel %vm5040_vm5, %v5068_v17, %v5070_v10  ;;  %v5072_v28 = vrot.slane %v14340_v11, 3  ;;  %13579 = vmatprep.subr.bf16.mxu1 %v14346_v57 }
 0x18f   : > { %v1826_v29 = vpop.f32.mrf.mxu0 }
 0x190   : > { %v1873_v23 = vadd.f32 %v1826_v29, %v15859_v0  ;;  %v16092_v62 = vadd.f32 %v13311_v60, %v1875_v50  ;;  %v2361_v7 = vpop.f32.mrf.mxu1  ;;  %v5073_v53 = vsel %vm5040_vm5, %v5070_v10, %v5072_v28  ;;  %13580 = vmatpush3.bf16.msra.mxu1 %v14346_v57 }
 0x191   : > { %v13260_v59 = vpop.f32.mrf.mxu0 }
 0x192   : > { %v1876_v61 = vadd.f32 %v13260_v59, %v15877_v16  ;;  %v16095_v24 = vadd.f32 %v2361_v7, %v1873_v23  ;;  %v13312_v12 = vpop.f32.mrf.mxu1  ;;  %v5074_v23 = vrot.slane %v14341_v49, 3 }
 0x193   : > { %v16099_v34 = vpop.f32.mrf.mxu0 }
 0x194   : > { %v16103_v0 = vadd.f32 %v13312_v12, %v1876_v61  ;;  %v16105_v45 = vpop.f32.mrf.mxu1  ;;  %v5075_v11 = vsel %vm5040_vm5, %v5072_v28, %v5074_v23 }
 0x195   : > { %18016 = vst [vmem:[#allocation11_spill] sm:$0xff] %v16105_v45  ;;  %v13331_v50 = vpop.f32.mrf.mxu0  ;;  %13562 = vmatmul.mubr.bf16.gmra.mxu0 %v5069_v5 }
 0x196   : > { %v3047_v16 = vadd.f32 %v13331_v50, %v15892_v13  ;;  %v13383_v60 = vpop.f32.mrf.mxu1  ;;  %13565 = vmatprep.mubr.bf16.mxu0 %v5071_v40  ;;  %v14342_v13 = vld [vmem:[%s14826_s13 + $0xa0] ss:$0 sps:$4 sm:$0x77]  }
 0x197   : > { %v2902_v29 = vpop.f32.mrf.mxu0 }
 0x198   : > { %v3045_v7 = vadd.f32 %v2902_v29, %v15900_v27  ;;  %v16109_v59 = vadd.f32 %v13383_v60, %v3047_v16  ;;  %v3438_v17 = vpop.f32.mrf.mxu1  ;;  %v5076_v60 = vrot.slane %v14342_v13, 3 }
 0x199   : > { %v13332_v61 = vpop.f32.mrf.mxu0 }
 0x19a   : > { %v3048_v12 = vadd.f32 %v13332_v61, %v15919_v44  ;;  %v16112_v45 = vadd.f32 %v3438_v17, %v3045_v7  ;;  %v13384_v5 = vpop.f32.mrf.mxu1 }
 0x19b   : > { %v16116_v40 = vpop.f32.mrf.mxu0 }
 0x19c   : > { %v16119_v27 = vadd.f32 %v13384_v5, %v3048_v12  ;;  %v16121_v49 = vpop.f32.mrf.mxu1  ;;  %v5077_v5 = vsel %vm5040_vm5, %v5074_v23, %v5076_v60 }
 0x19d   : > { %18017 = vst [vmem:[#allocation12_spill] sm:$0xff] %v16121_v49  ;;  %v13335_v50 = vpop.f32.mrf.mxu0  ;;  %13566 = vmatmul.mubr.bf16.gmra.mxu0 %v5073_v53  ;;  %v14347_v53 = vld [vmem:[#allocation4 + $0x18] sm:$0xff]  }
 0x19e   : > { %v3051_v44 = vadd.f32 %v13335_v50, %v15934_v54  ;;  %v13387_v16 = vpop.f32.mrf.mxu1  ;;  %13569 = vmatprep.mubr.bf16.mxu0 %v5075_v11  ;;  %13581 = vmatprep.subr.bf16.mxu1 %v14347_v53 }
 0x19f   : > { %v2918_v29 = vpop.f32.mrf.mxu0  ;;  %13582 = vmatpush3.bf16.msra.mxu1 %v14347_v53 }
 0x1a0   : > { %v3049_v10 = vadd.f32 %v2918_v29, %v15940_v38  ;;  %v16125_v7 = vadd.f32 %v13387_v16, %v3051_v44  ;;  %v3454_v17 = vpop.f32.mrf.mxu1 }
 0x1a1   : > { %v13336_v61 = vpop.f32.mrf.mxu0 }
 0x1a2   : > { %v3052_v28 = vadd.f32 %v13336_v61, %v15959_v30  ;;  %v16128_v57 = vadd.f32 %v3454_v17, %v3049_v10  ;;  %v13388_v12 = vpop.f32.mrf.mxu1  ;;  %v14349_v61 = vld [vmem:[#allocation4 + $0x78] sm:$0xff]  }
 0x1a3   : > { %v16131_v49 = vpop.f32.mrf.mxu0  ;;  %13625 = vmatprep.subr.bf16.mxu0 %v14349_v61 }
 0x1a4   : > { %v16133_v54 = vadd.f32 %v13388_v12, %v3052_v28  ;;  %v16135_v13 = vpop.f32.mrf.mxu1  ;;  %13626 = vmatpush3.bf16.msra.mxu0 %v14349_v61 }
 0x1a5   : > { %18018 = vst [vmem:[#allocation13_spill] sm:$0xff] %v16135_v13  ;;  %v13339_v38 = vpop.f32.mrf.mxu0  ;;  %13570 = vmatmul.mubr.bf16.gmra.mxu0 %v5077_v5  ;;  %v5398_v5 = vld [vmem:[#allocation2 + $0x8] sm:$0x3] }
 0x1a6   : > { %v3055_v11 = vadd.f32 %v13339_v38, %v15968_v36  ;;  %v13391_v50 = vpop.f32.mrf.mxu1  ;;  %v5399_v53 = vsel %vm16151_vm8, 0, %v5398_v5 }
 0x1a7   : > { %v2934_v30 = vpop.f32.mrf.mxu0  ;;  %5400 = vst [vmem:[#allocation2 + $0x8] sm:$0x3] %v5399_v53  ;;  %v18024_v53 = vmov 0 }
 0x1a8   : > { %v3053_v44 = vadd.f32 %v2934_v30, %v15971_v20  ;;  %v16139_v16 = vadd.f32 %v13391_v50, %v3055_v11  ;;  %v3470_v23 = vpop.f32.mrf.mxu1  ;;  %v18020_v20 = vmov 0  ;;  %v14350_v30 = vld [vmem:[#allocation4 + $0x70] sm:$0xff]   ;;  %v18025_v53 = vsel %vm16170_vm11, 4294967295, %v18024_v53 }
 0x1a9   : > { %v13340_v60 = vpop.f32.mrf.mxu0  ;;  %v18021_v20 = vsel %vm16151_vm8, 4294967295, %v18020_v20  ;;  %13627 = vmatprep.subr.bf16.mxu0 %v14350_v30  ;;  %18026 = vst [vmem:[#allocation17_spill] sm:$0xff] %v18025_v53 }
 0x1aa   : > { %v3056_v29 = vadd.f32 %v13340_v60, %v15986_v39  ;;  %v16142_v10 = vadd.f32 %v3470_v23, %v3053_v44  ;;  %v13392_v17 = vpop.f32.mrf.mxu1  ;;  %18022 = vst [vmem:[#allocation15_spill] sm:$0xff] %v18021_v20  ;;  %13628 = vmatpush3.bf16.msra.mxu0 %v14350_v30  ;;  %v14352_v30 = vld [vmem:[#allocation4 + $0x68] sm:$0xff]  }
 0x1ab   : > { %v16144_v28 = vpop.f32.mrf.mxu0  ;;  %13629 = vmatprep.subr.bf16.mxu0 %v14352_v30 }
 0x1ac   : > { %v16146_v12 = vadd.f32 %v13392_v17, %v3056_v29  ;;  %v16148_v36 = vpop.f32.mrf.mxu1 }
 0x1ad   : > { %18019 = vst [vmem:[#allocation14_spill] sm:$0xff] %v16148_v36  ;;  %v13343_v39 = vpop.f32.mrf.mxu0 }
 0x1ae   : > { %v3059_v38 = vadd.f32 %v13343_v39, %v15992_v26  ;;  %v13395_v11 = vpop.f32.mrf.mxu1  ;;  %13630 = vmatpush3.bf16.msra.mxu0 %v14352_v30  ;;  %v14351_v30 = vld [vmem:[#allocation4 + $0x8] sm:$0xff]  }
 0x1af   : > { %v2950_v50 = vpop.f32.mrf.mxu0 }
 0x1b0   : > { %v3057_v44 = vadd.f32 %v2950_v50, %v15995_v1  ;;  %v16159_v23 = vadd.f32 %v13395_v11, %v3059_v38  ;;  %v3486_v60 = vpop.f32.mrf.mxu1  ;;  %v5404_v1 = vld [vmem:[#allocation2 + $0x98] sm:$0xe] }
 0x1b1   : > { %v13344_v29 = vpop.f32.mrf.mxu0  ;;  %v5405_v11 = vsel %vm16170_vm11, 0, %v5404_v1 }
 0x1b2   : > { %v3060_v17 = vadd.f32 %v13344_v29, %v16012_v51  ;;  %v16162_v36 = vadd.f32 %v3486_v60, %v3057_v44  ;;  %v13396_v20 = vpop.f32.mrf.mxu1  ;;  %5406 = vst [vmem:[#allocation2 + $0x98] sm:$0xe] %v5405_v11 }
 0x1b3   : > { %v16164_v61 = vpop.f32.mrf.mxu0 }
 0x1b4   : > { %v16166_v26 = vadd.f32 %v13396_v20, %v3060_v17  ;;  %v16168_v5 = vpop.f32.mrf.mxu1  ;;  %v14348_v20 = vld [vmem:[#allocation4 + $0x10] sm:$0xff]  }
 0x1b5   : > { %18023 = vst [vmem:[#allocation16_spill] sm:$0xff] %v16168_v5  ;;  %v13347_v39 = vpop.f32.mrf.mxu0  ;;  %13583 = vmatprep.subr.bf16.mxu1 %v14348_v20 }
 0x1b6   : > { %v3063_v51 = vadd.f32 %v13347_v39, %v16018_v55  ;;  %v13399_v38 = vpop.f32.mrf.mxu1  ;;  %13584 = vmatpush3.bf16.msra.mxu1 %v14348_v20 }
 0x1b7   : > { %v2966_v50 = vpop.f32.mrf.mxu0  ;;  %13585 = vmatprep.subr.bf16.mxu1 %v14351_v30 }
 0x1b8   : > { %v3061_v44 = vadd.f32 %v2966_v50, %v16021_v41  ;;  %v16178_v60 = vadd.f32 %v13399_v38, %v3063_v51  ;;  %v3502_v29 = vpop.f32.mrf.mxu1  ;;  %v14353_v41 = vld [vmem:[#allocation4 + $0x60] sm:$0xff]  }
 0x1b9   : > { %v13348_v17 = vpop.f32.mrf.mxu0  ;;  %13631 = vmatprep.subr.bf16.mxu0 %v14353_v41 }
 0x1ba   : > { %v3064_v5 = vadd.f32 %v13348_v17, %v16032_v15  ;;  %v16181_v13 = vadd.f32 %v3502_v29, %v3061_v44  ;;  %v13400_v55 = vpop.f32.mrf.mxu1  ;;  %13632 = vmatpush3.bf16.msra.mxu0 %v14353_v41  ;;  %v14355_v29 = vld [vmem:[#allocation4 + $0x58] sm:$0xff]   ;;  %13586 = vmatpush3.bf16.msra.mxu1 %v14351_v30 }
 0x1bb   : > { %v16183_v1 = vpop.f32.mrf.mxu0  ;;  %13633 = vmatprep.subr.bf16.mxu0 %v14355_v29 }
 0x1bc   : > { %18027 = vst [vmem:[#allocation18_spill] sm:$0xff] %v16183_v1  ;;  %v16185_v39 = vadd.f32 %v13400_v55, %v3064_v5  ;;  %v16187_v11 = vpop.f32.mrf.mxu1  ;;  %v14356_v1 = vld [vmem:[#allocation4 + $0x50] sm:$0xff]  }
 0x1bd   : > { %18028 = vst [vmem:[#allocation19_spill] sm:$0xff] %v16187_v11  ;;  %v13351_v51 = vpop.f32.mrf.mxu0 }
 0x1be   : > { %v3067_v38 = vadd.f32 %v13351_v51, %v16038_v33  ;;  %v13403_v50 = vpop.f32.mrf.mxu1  ;;  %13634 = vmatpush3.bf16.msra.mxu0 %v14355_v29  ;;  %v14354_v51 = vld [vmem:[#allocation4] sm:$0xff]  }
 0x1bf   : > { %v2982_v53 = vpop.f32.mrf.mxu0  ;;  %13587 = vmatprep.subr.bf16.mxu1 %v14354_v51  ;;  %13635 = vmatprep.subr.bf16.mxu0 %v14356_v1 }
 0x1c0   : > { %v3065_v15 = vadd.f32 %v2982_v53, %v16041_v37  ;;  %v16191_v44 = vadd.f32 %v13403_v50, %v3067_v38  ;;  %v3518_v20 = vpop.f32.mrf.mxu1  ;;  %13588 = vmatpush3.bf16.msra.mxu1 %v14354_v51 }
 0x1c1   : > { %v13352_v17 = vpop.f32.mrf.mxu0 }
 0x1c2   : > { %v3068_v5 = vadd.f32 %v13352_v17, %v16050_v6  ;;  %v16194_v55 = vadd.f32 %v3518_v20, %v3065_v15  ;;  %v13404_v11 = vpop.f32.mrf.mxu1  ;;  %13636 = vmatpush3.bf16.msra.mxu0 %v14356_v1 }
 0x1c3   : > { %v16196_v33 = vpop.f32.mrf.mxu0 }
 0x1c4   : > { %18029 = vst [vmem:[#allocation20_spill] sm:$0xff] %v16196_v33  ;;  %v16198_v41 = vadd.f32 %v13404_v11, %v3068_v5  ;;  %v16200_v37 = vpop.f32.mrf.mxu1 }
 0x1c5   : > { %18030 = vst [vmem:[#allocation21_spill] sm:$0xff] %v16200_v37  ;;  %v13355_v53 = vpop.f32.mrf.mxu0 }
 0x1c6   : > { %v3071_v38 = vadd.f32 %v13355_v53, %v16056_v31  ;;  %v13407_v50 = vpop.f32.mrf.mxu1 }
 0x1c7   : > { %v2998_v6 = vpop.f32.mrf.mxu0 }
 0x1c8   : > { %v3069_v15 = vadd.f32 %v2998_v6, %v16059_v42  ;;  %v16204_v20 = vadd.f32 %v13407_v50, %v3071_v38  ;;  %v3534_v17 = vpop.f32.mrf.mxu1  ;;  %v14357_v42 = vld [vmem:[#allocation2] sm:$0xff]   ;;  %v14358_v38 = vld [vmem:[#allocation4 + $0x48] sm:$0xff]  }
 0x1c9   : > { %v13356_v30 = vpop.f32.mrf.mxu0  ;;  %13589 = vmatprep.mubr.bf16.mxu1 %v14357_v42  ;;  %13637 = vmatprep.subr.bf16.mxu0 %v14358_v38 }
 0x1ca   : > { %v3072_v11 = vadd.f32 %v13356_v30, %v16068_v9  ;;  %v16207_v29 = vadd.f32 %v3534_v17, %v3069_v15  ;;  %v13408_v5 = vpop.f32.mrf.mxu1  ;;  %13638 = vmatpush3.bf16.msra.mxu0 %v14358_v38  ;;  %v14362_v30 = vld [vmem:[#allocation4 + $0x40] sm:$0xff]  }
 0x1cb   : > { %v16209_v37 = vpop.f32.mrf.mxu0  ;;  %13639 = vmatprep.subr.bf16.mxu0 %v14362_v30 }
 0x1cc   : > { %18031 = vst [vmem:[#allocation22_spill] sm:$0xff] %v16209_v37  ;;  %v16211_v31 = vadd.f32 %v13408_v5, %v3072_v11  ;;  %v16213_v53 = vpop.f32.mrf.mxu1 }
 0x1cd   : > { %18032 = vst [vmem:[#allocation23_spill] sm:$0xff] %v16213_v53  ;;  %v13359_v33 = vpop.f32.mrf.mxu0 }
 0x1ce   : > { %v3075_v50 = vadd.f32 %v13359_v33, %v16074_v18  ;;  %v13411_v51 = vpop.f32.mrf.mxu1  ;;  %13640 = vmatpush3.bf16.msra.mxu0 %v14362_v30 }
 0x1cf   : > { %v3014_v6 = vpop.f32.mrf.mxu0 }
 0x1d0   : > { %v3073_v9 = vadd.f32 %v3014_v6, %v16077_v4  ;;  %v16217_v1 = vadd.f32 %v13411_v51, %v3075_v50  ;;  %v3550_v15 = vpop.f32.mrf.mxu1 }
 0x1d1   : > { %v13360_v17 = vpop.f32.mrf.mxu0 }
 0x1d2   : > { %v3076_v11 = vadd.f32 %v13360_v17, %v16086_v58  ;;  %v16220_v5 = vadd.f32 %v3550_v15, %v3073_v9  ;;  %v13412_v53 = vpop.f32.mrf.mxu1 }
 0x1d3   : > { %v16222_v37 = vpop.f32.mrf.mxu0 }
 0x1d4   : > { %v16224_v18 = vadd.f32 %v13412_v53, %v3076_v11  ;;  %v16226_v33 = vpop.f32.mrf.mxu1 }
 0x1d5   : > { %18033 = vst [vmem:[#allocation24_spill] sm:$0xff] %v16226_v33  ;;  %v13363_v4 = vpop.f32.mrf.mxu0 }
 0x1d6   : > { %v3079_v42 = vadd.f32 %v13363_v4, %v16092_v62  ;;  %v13415_v50 = vpop.f32.mrf.mxu1 }
 0x1d7   : > { %v3030_v38 = vpop.f32.mrf.mxu0 }
 0x1d8   : > { %v3077_v51 = vadd.f32 %v3030_v38, %v16095_v24  ;;  %v16230_v6 = vadd.f32 %v13415_v50, %v3079_v42  ;;  %v3566_v58 = vpop.f32.mrf.mxu1 }
 0x1d9   : > { %v13364_v9 = vpop.f32.mrf.mxu0 }
 0x1da   : > { %v3080_v15 = vadd.f32 %v13364_v9, %v16103_v0  ;;  %v16233_v17 = vadd.f32 %v3566_v58, %v3077_v51  ;;  %v13416_v53 = vpop.f32.mrf.mxu1  ;;  %v16251_v51 = vld [vmem:[#allocation4 + $0xb8] sm:$0xff]  }
 0x1db   : > { %v16235_v11 = vpop.f32.mrf.mxu0  ;;  %18035 = vst [vmem:[#allocation26_spill] sm:$0xff] %v16251_v51  ;;  %13677 = vmatprep.subr.bf16.mxu1 %v16251_v51 }
 0x1dc   : > { %v16237_v33 = vadd.f32 %v13416_v53, %v3080_v15  ;;  %v16239_v30 = vpop.f32.mrf.mxu1 }
 0x1dd   : > { %v13435_v62 = vpop.f32.mrf.mxu0 }
 0x1de   : > { %18034 = vst [vmem:[#allocation25_spill] sm:$0xff] %v16237_v33  ;;  %v16242_v4 = vadd.f32 %v13435_v62, %v16109_v59  ;;  %v16244_v24 = vpop.f32.mrf.mxu1 }
 0x1df   : > { %v3973_v42 = vpop.f32.mrf.mxu0 }
 0x1e0   : > { %v16247_v50 = vadd.f32 %v3973_v42, %v16112_v45  ;;  %v16249_v0 = vpop.f32.mrf.mxu1 }
 0x1e1   : > { %v13436_v38 = vpop.f32.mrf.mxu0 }
 0x1e2   : > { %v16254_v58 = vadd.f32 %v13436_v38, %v16119_v27  ;;  %v16256_v9 = vpop.f32.mrf.mxu1 }
 0x1e3   : > { %18037 = vst [vmem:[#allocation28_spill] sm:$0xff] %v16256_v9  ;;  %v16258_v15 = vpop.f32.mrf.mxu0 }
 0x1e4   : > { %18036 = vst [vmem:[#allocation27_spill] sm:$0xff] %v16254_v58  ;;  %v16261_v59 = vpop.f32.mrf.mxu1 }
 0x1e5   : > { %18038 = vst [vmem:[#allocation29_spill] sm:$0xff] %v16261_v59  ;;  %v13439_v53 = vpop.f32.mrf.mxu0 }
 0x1e6   : > { %v16264_v45 = vadd.f32 %v13439_v53, %v16125_v7  ;;  %v16266_v62 = vpop.f32.mrf.mxu1 }
 0x1e7   : > { %18039 = vst [vmem:[#allocation30_spill] sm:$0xff] %v16266_v62  ;;  %v3989_v42 = vpop.f32.mrf.mxu0 }
 0x1e8   : > { %v16269_v33 = vadd.f32 %v3989_v42, %v16128_v57  ;;  %v16271_v27 = vpop.f32.mrf.mxu1 }
 0x1e9   : > { %18040 = vst [vmem:[#allocation31_spill] sm:$0xff] %v16271_v27  ;;  %v13440_v38 = vpop.f32.mrf.mxu0 }
 0x1ea   : > { %v16274_v9 = vadd.f32 %v13440_v38, %v16133_v54  ;;  %v16276_v58 = vpop.f32.mrf.mxu1 }
 0x1eb   : > { %18042 = vst [vmem:[#allocation33_spill] sm:$0xff] %v16276_v58  ;;  %v16278_v51 = vpop.f32.mrf.mxu0 }
 0x1ec   : > { %18041 = vst [vmem:[#allocation32_spill] sm:$0xff] %v16274_v9  ;;  %v16280_v59 = vpop.f32.mrf.mxu1 }
 0x1ed   : > { %18043 = vst [vmem:[#allocation34_spill] sm:$0xff] %v16280_v59  ;;  %v13443_v7 = vpop.f32.mrf.mxu0 }
 0x1ee   : > { %v16283_v53 = vadd.f32 %v13443_v7, %v16139_v16  ;;  %v16285_v62 = vpop.f32.mrf.mxu1 }
 0x1ef   : > { %18044 = vst [vmem:[#allocation35_spill] sm:$0xff] %v16285_v62  ;;  %v4005_v57 = vpop.f32.mrf.mxu0 }
 0x1f0   : > { %v16288_v42 = vadd.f32 %v4005_v57, %v16142_v10  ;;  %v16290_v27 = vpop.f32.mrf.mxu1 }
 0x1f1   : > { %18045 = vst [vmem:[#allocation36_spill] sm:$0xff] %v16290_v27  ;;  %v13444_v54 = vpop.f32.mrf.mxu0 }
 0x1f2   : > { %v16293_v38 = vadd.f32 %v13444_v54, %v16146_v12  ;;  %v16295_v58 = vpop.f32.mrf.mxu1 }
 0x1f3   : > { %18047 = vst [vmem:[#allocation38_spill] sm:$0xff] %v16295_v58  ;;  %v16297_v9 = vpop.f32.mrf.mxu0 }
 0x1f4   : > { %18046 = vst [vmem:[#allocation37_spill] sm:$0xff] %v16293_v38  ;;  %v16299_v59 = vpop.f32.mrf.mxu1 }
 0x1f5   : > { %18048 = vst [vmem:[#allocation39_spill] sm:$0xff] %v16299_v59  ;;  %v13447_v16 = vpop.f32.mrf.mxu0 }
 0x1f6   : > { %v16302_v7 = vadd.f32 %v13447_v16, %v16159_v23  ;;  %v16304_v62 = vpop.f32.mrf.mxu1 }
 0x1f7   : > { %18049 = vst [vmem:[#allocation40_spill] sm:$0xff] %v16304_v62  ;;  %v4021_v10 = vpop.f32.mrf.mxu0 }
 0x1f8   : > { %v16307_v57 = vadd.f32 %v4021_v10, %v16162_v36  ;;  %v16309_v27 = vpop.f32.mrf.mxu1 }
 0x1f9   : > { %18050 = vst [vmem:[#allocation41_spill] sm:$0xff] %v16309_v27  ;;  %v13448_v12 = vpop.f32.mrf.mxu0 }
 0x1fa   : > { %v16312_v54 = vadd.f32 %v13448_v12, %v16166_v26  ;;  %v16314_v58 = vpop.f32.mrf.mxu1 }
 0x1fb   : > { %18052 = vst [vmem:[#allocation43_spill] sm:$0xff] %v16314_v58  ;;  %v16316_v38 = vpop.f32.mrf.mxu0 }
 0x1fc   : > { %18051 = vst [vmem:[#allocation42_spill] sm:$0xff] %v16312_v54  ;;  %v16318_v59 = vpop.f32.mrf.mxu1 }
 0x1fd   : > { %18053 = vst [vmem:[#allocation44_spill] sm:$0xff] %v16318_v59  ;;  %v13451_v23 = vpop.f32.mrf.mxu0 }
 0x1fe   : > { %v16321_v16 = vadd.f32 %v13451_v23, %v16178_v60  ;;  %v16323_v62 = vpop.f32.mrf.mxu1 }
 0x1ff   : > { %18054 = vst [vmem:[#allocation45_spill] sm:$0xff] %v16323_v62  ;;  %v4037_v36 = vpop.f32.mrf.mxu0 }
 0x200   : > { %v16326_v10 = vadd.f32 %v4037_v36, %v16181_v13  ;;  %v16328_v27 = vpop.f32.mrf.mxu1 }
 0x201   : > { %18055 = vst [vmem:[#allocation46_spill] sm:$0xff] %v16328_v27  ;;  %v13452_v26 = vpop.f32.mrf.mxu0 }
 0x202   : > { %v16331_v12 = vadd.f32 %v13452_v26, %v16185_v39  ;;  %v16333_v58 = vpop.f32.mrf.mxu1 }
 0x203   : > { %18057 = vst [vmem:[#allocation48_spill] sm:$0xff] %v16333_v58  ;;  %v16335_v54 = vpop.f32.mrf.mxu0 }
 0x204   : > { %18056 = vst [vmem:[#allocation47_spill] sm:$0xff] %v16331_v12  ;;  %v16337_v59 = vpop.f32.mrf.mxu1 }
 0x205   : > { %18058 = vst [vmem:[#allocation49_spill] sm:$0xff] %v16337_v59  ;;  %v13455_v60 = vpop.f32.mrf.mxu0 }
 0x206   : > { %v16340_v23 = vadd.f32 %v13455_v60, %v16191_v44  ;;  %v16342_v62 = vpop.f32.mrf.mxu1 }
 0x207   : > { %18059 = vst [vmem:[#allocation50_spill] sm:$0xff] %v16342_v62  ;;  %v4053_v13 = vpop.f32.mrf.mxu0 }
 0x208   : > { %v16345_v36 = vadd.f32 %v4053_v13, %v16194_v55  ;;  %v16347_v27 = vpop.f32.mrf.mxu1  ;;  %v14586_v13 = vld [vmem:[%s17940_s3] ss:$0 sm:$0xff] }
 0x209   : > { %18061 = vst [vmem:[#allocation52_spill] sm:$0xff] %v16347_v27  ;;  %v13456_v39 = vpop.f32.mrf.mxu0  ;;  %v14363_v27 = vld [vmem:[#allocation2] sm:$0xff]  }
 0x20a   : > { %18060 = vst [vmem:[#allocation51_spill] sm:$0xff] %v16345_v36  ;;  %v16350_v26 = vadd.f32 %v13456_v39, %v16198_v41  ;;  %v16352_v58 = vpop.f32.mrf.mxu1  ;;  %v691_v41 = vadd.f32 %v14586_v13, %v15866_v22  ;;  %v2377_v22 = vadd.f32 %v15921_v52, %v15917_v56 }
 0x20b   : > { %18063 = vst [vmem:[#allocation54_spill] sm:$0xff] %v16352_v58  ;;  %v16354_v12 = vpop.f32.mrf.mxu0 }
 0x20c   : > { %18062 = vst [vmem:[#allocation53_spill] sm:$0xff] %v16350_v26  ;;  %v16356_v59 = vpop.f32.mrf.mxu1 }
 0x20d   : > { %18064 = vst [vmem:[#allocation55_spill] sm:$0xff] %v16356_v59  ;;  %v13459_v44 = vpop.f32.mrf.mxu0 }
 0x20e   : > { %v16359_v60 = vadd.f32 %v13459_v44, %v16204_v20  ;;  %v16361_v62 = vpop.f32.mrf.mxu1 }
 0x20f   : > { %18066 = vst [vmem:[#allocation57_spill] sm:$0xff] %v16361_v62  ;;  %v4069_v55 = vpop.f32.mrf.mxu0  ;;  %v1338_v62 = vadd.f32 %v15879_v47, %v691_v41  ;;  %v2385_v47 = vadd.f32 %v15988_v46, %v15984_v21  ;;  %v2389_v41 = vadd.f32 %v16014_v19, %v16010_v14  ;;  %v18068_v21 = vld [vmem:[#allocation10_spill] sm:$0xff]  ;;  %v18069_v19 = vld [vmem:[#allocation11_spill] sm:$0xff] }
 0x210   : > { %18065 = vst [vmem:[#allocation56_spill] sm:$0xff] %v16359_v60  ;;  %v16368_v39 = vadd.f32 %v4069_v55, %v16207_v29  ;;  %v16370_v58 = vpop.f32.mrf.mxu1  ;;  %v2405_v46 = vadd.f32 %v18068_v21, %v16084_v35  ;;  %v18073_v35 = vld [vmem:[#allocation12_spill] sm:$0xff] }
 0x211   : > { %v13460_v26 = vpop.f32.mrf.mxu0  ;;  %v1874_v29 = vadd.f32 %v16099_v34, %v1338_v62  ;;  %v6932_v34 = vshll.u32 %v14363_v27, 16  ;;  %v3054_v62 = vadd.f32 %v16144_v28, %v2385_v47  ;;  %v6930_v28 = vshrl.u32 %v14363_v27, 16  ;;  %v16427_v47 = vpop.permute.xlu0 %5521  ;;  %v18078_v27 = vld [vmem:[#allocation21_spill] sm:$0xff] }
 0x212   : > { %v16373_v59 = vadd.f32 %v13460_v26, %v16211_v31  ;;  %v16375_v20 = vpop.f32.mrf.mxu1  ;;  %v2381_v26 = vadd.f32 %v15961_v3, %v15957_v8  ;;  %v2397_v8 = vadd.f32 %v16052_v43, %v16048_v48  ;;  %v2401_v3 = vadd.f32 %v16070_v2, %v16066_v25  ;;  %v18071_v43 = vld [vmem:[#allocation20_spill] sm:$0xff]  ;;  %v18072_v25 = vld [vmem:[#allocation22_spill] sm:$0xff] }
 0x213   : > { %v16377_v44 = vpop.f32.mrf.mxu0 }
 0x214   : > { %v16380_v60 = vpop.f32.mrf.mxu1  ;;  %v3070_v2 = vadd.f32 %v18072_v25, %v2401_v3  ;;  %v18080_v25 = vld [vmem:[#allocation24_spill] sm:$0xff] }
 0x215   : > { %18067 = vst [vmem:[#allocation58_spill] sm:$0xff] %v16380_v60  ;;  %v13463_v36 = vpop.f32.mrf.mxu0  ;;  %v3046_v60 = vadd.f32 %v16116_v40, %v2377_v22  ;;  %v2409_v40 = vadd.f32 %v18069_v19, %v1874_v29  ;;  %v3066_v22 = vadd.f32 %v18071_v43, %v2397_v8  ;;  %v3074_v29 = vadd.f32 %v16222_v37, %v2405_v46  ;;  %v18075_v8 = vld [vmem:[#allocation14_spill] sm:$0xff]  ;;  %v18077_v46 = vld [vmem:[#allocation19_spill] sm:$0xff] }
 0x216   : > { %v16386_v55 = vadd.f32 %v13463_v36, %v16217_v1  ;;  %v16388_v31 = vpop.f32.mrf.mxu1  ;;  %v2393_v1 = vadd.f32 %v16034_v63, %v16030_v32  ;;  %v3058_v32 = vadd.f32 %v16164_v61, %v2389_v41  ;;  %v18070_v63 = vld [vmem:[#allocation18_spill] sm:$0xff]  ;;  %v18074_v41 = vld [vmem:[#allocation13_spill] sm:$0xff]  ;;  %v18079_v43 = vld [vmem:[#allocation23_spill] sm:$0xff] }
 0x217   : > { %v4085_v13 = vpop.f32.mrf.mxu0  ;;  %v3582_v21 = vadd.f32 %v18073_v35, %v3046_v60  ;;  %v18076_v60 = vld [vmem:[#allocation16_spill] sm:$0xff]  ;;  %v3610_v35 = vadd.f32 %v18080_v25, %v3074_v29  ;;  %v18094_v25 = vld [vmem:[#allocation38_spill] sm:$0xff] }
 0x218   : > { %v16398_v56 = vadd.f32 %v4085_v13, %v16220_v5  ;;  %v16400_v52 = vpop.f32.mrf.mxu1  ;;  %v3050_v5 = vadd.f32 %v16131_v49, %v2381_v26  ;;  %v3062_v48 = vadd.f32 %v18070_v63, %v2393_v1  ;;  %v6934_v26 = vrot.slane %v6932_v34, 1  ;;  %v18083_v29 = vld [vmem:[#allocation28_spill] sm:$0xff] }
 0x219   : > { %v13464_v14 = vpop.f32.mrf.mxu0  ;;  %v4117_v3 = vadd.f32 %v16258_v15, %v3582_v21  ;;  %v3594_v37 = vadd.f32 %v18076_v60, %v3058_v32  ;;  %v3602_v34 = vadd.f32 %v18078_v27, %v3066_v22  ;;  %v4787_v32 = vadd.f32 %v16244_v24, %v16242_v4  ;;  %v18082_v21 = vld [vmem:[#allocation27_spill] sm:$0xff]  ;;  %v18086_v4 = vld [vmem:[#allocation30_spill] sm:$0xff]  ;;  %v16477_v60 = vpop.permute.xlu0 %5526 }
 0x21a   : > { %v16414_v36 = vadd.f32 %v13464_v14, %v16224_v18  ;;  %v16424_v49 = vpop.f32.mrf.mxu1  ;;  %v3078_v18 = vadd.f32 %v16235_v11, %v2409_v40  ;;  %v3586_v1 = vadd.f32 %v18074_v41, %v3050_v5  ;;  %v3590_v14 = vadd.f32 %v18075_v8, %v3054_v62  ;;  %v18089_v8 = vld [vmem:[#allocation33_spill] sm:$0xff] }
 0x21b   : > { %v16420_v13 = vpop.f32.mrf.mxu0  ;;  %v3598_v63 = vadd.f32 %v18077_v46, %v3062_v48  ;;  %v3606_v11 = vadd.f32 %v18079_v43, %v3070_v2  ;;  %v4785_v48 = vadd.f32 %v16249_v0, %v16247_v50  ;;  %v16467_v24 = vadd.f32 %v18086_v4, %v16264_v45  ;;  %v18087_v50 = vld [vmem:[#allocation31_spill] sm:$0xff]  ;;  %v18098_v4 = vld [vmem:[#allocation42_spill] sm:$0xff] }
 0x21c   : > { %v4121_v5 = vadd.f32 %v16278_v51, %v3586_v1  ;;  %v16441_v41 = vpop.f32.mrf.mxu1  ;;  %v16449_v62 = vadd.f32 %v16239_v30, %v3078_v18  ;;  %v4125_v22 = vadd.f32 %v16297_v9, %v3590_v14  ;;  %v16456_v51 = vld [vmem:[#allocation4 + $0xf8] sm:$0xff]   ;;  %v4129_v30 = vadd.f32 %v16316_v38, %v3594_v37  ;;  %v18088_v9 = vld [vmem:[#allocation32_spill] sm:$0xff]  ;;  %v18090_v37 = vld [vmem:[#allocation34_spill] sm:$0xff] }
 0x21d   : > { %v13467_v61 = vpop.f32.mrf.mxu0  ;;  %18081 = vst [vmem:[#allocation10_spill] sm:$0xff] %v16456_v51  ;;  %v18085_v18 = vld [vmem:[#allocation25_spill] sm:$0xff]  ;;  %v16471_v0 = vadd.f32 %v18087_v50, %v16269_v33  ;;  %v16475_v14 = vadd.f32 %v18089_v8, %v18088_v9  ;;  %13729 = vmatprep.subr.bf16.mxu0 %v16456_v51  ;;  %v18091_v45 = vld [vmem:[#allocation35_spill] sm:$0xff]  ;;  %v18092_v33 = vld [vmem:[#allocation36_spill] sm:$0xff] }
 0x21e   : > { %v16433_v19 = vadd.f32 %v13467_v61, %v16230_v6  ;;  %v16446_v6 = vor.u32 %v6934_v26, %v6930_v28  ;;  %v18084_v61 = vld [vmem:[#allocation29_spill] sm:$0xff]  ;;  %v5532_v26 = vpop.permute.xlu1 %5531  ;;  %v16482_v46 = vadd.f32 %v18090_v37, %v4121_v5  ;;  %v16486_v27 = vadd.f32 %v18091_v45, %v16283_v53  ;;  %v18099_v50 = vld [vmem:[#allocation43_spill] sm:$0xff]  ;;  %v18100_v8 = vld [vmem:[#allocation44_spill] sm:$0xff] }
 0x21f   : > { %v4101_v40 = vpop.f32.mrf.mxu0  ;;  %v4786_v28 = vadd.f32 %v18084_v61, %v4117_v3  ;;  %v4133_v3 = vadd.f32 %v16335_v54, %v3598_v63  ;;  %v16490_v43 = vadd.f32 %v18092_v33, %v16288_v42  ;;  %v18095_v54 = vld [vmem:[#allocation39_spill] sm:$0xff]  ;;  %v18097_v61 = vld [vmem:[#allocation41_spill] sm:$0xff]  ;;  %v16510_v9 = vadd.f32 %v18099_v50, %v18098_v4  ;;  %v18102_v33 = vld [vmem:[#allocation46_spill] sm:$0xff] }
 0x220   : > { %v16444_v15 = vadd.f32 %v4101_v40, %v16233_v17  ;;  %v4788_v17 = vadd.f32 %v18083_v29, %v18082_v21  ;;  %v18093_v40 = vld [vmem:[#allocation37_spill] sm:$0xff]  ;;  %v13519_v21 = vpop.f32.mrf.mxu1  ;;  %v16497_v63 = vadd.f32 %v18095_v54, %v4125_v22  ;;  %v18096_v29 = vld [vmem:[#allocation40_spill] sm:$0xff]  ;;  %v16505_v53 = vadd.f32 %v18097_v61, %v16307_v57  ;;  %v18103_v57 = vld [vmem:[#allocation47_spill] sm:$0xff] }
 0x221   : > { %v13468_v2 = vpop.f32.mrf.mxu0  ;;  %v16501_v5 = vadd.f32 %v18096_v29, %v16302_v7  ;;  %v16513_v37 = vadd.f32 %v18100_v8, %v4129_v30  ;;  %v18101_v22 = vld [vmem:[#allocation45_spill] sm:$0xff]  ;;  %v4141_v29 = vadd.f32 %v16377_v44, %v3606_v11  ;;  %v18106_v4 = vld [vmem:[#allocation50_spill] sm:$0xff]  ;;  %v18111_v44 = vld [vmem:[#allocation55_spill] sm:$0xff] }
 0x222   : > { %v16463_v1 = vadd.f32 %v13468_v2, %v18085_v18  ;;  %v16494_v2 = vadd.f32 %v18094_v25, %v18093_v40  ;;  %v4137_v18 = vadd.f32 %v16354_v12, %v3602_v34  ;;  %v16517_v45 = vadd.f32 %v18101_v22, %v16321_v16  ;;  %v18104_v25 = vld [vmem:[#allocation48_spill] sm:$0xff]  ;;  %v18105_v34 = vld [vmem:[#allocation49_spill] sm:$0xff]  ;;  %v5537_v61 = vpop.permute.xlu1 %5536 }
 0x223   : > { %v4104_v38 = vpop.f32.mrf.mxu0  ;;  %v16521_v40 = vadd.f32 %v18102_v33, %v16326_v10  ;;  %v16525_v12 = vadd.f32 %v18104_v25, %v18103_v57  ;;  %v16528_v54 = vadd.f32 %v18105_v34, %v4133_v3  ;;  %v16533_v16 = vadd.f32 %v18106_v4, %v16340_v23  ;;  %v4770_v10 = vpop.f32.mrf.mxu1  ;;  %v18109_v57 = vld [vmem:[#allocation53_spill] sm:$0xff]  ;;  %v18110_v3 = vld [vmem:[#allocation54_spill] sm:$0xff]  ;;  %v18112_v34 = vld [vmem:[#allocation56_spill] sm:$0xff] }
 0x224   : > { %v16539_v33 = vpop.permute.xlu0 %5541  ;;  %v16543_v25 = vadd.f32 %v18110_v3, %v18109_v57  ;;  %v16546_v11 = vadd.f32 %v18111_v44, %v4137_v18  ;;  %v18113_v51 = vld [vmem:[#allocation57_spill] sm:$0xff]  ;;  %v4145_v4 = vadd.f32 %v16420_v13, %v3610_v35  ;;  %v16559_v57 = vadd.f32 %v16375_v20, %v16373_v59  ;;  %v18114_v18 = vld [vmem:[#allocation58_spill] sm:$0xff] }
 0x225   : > { %v13539_v42 = vpop.f32.mrf.mxu0  ;;  %v16550_v23 = vadd.f32 %v18113_v51, %v18112_v34  ;;  %v16562_v3 = vadd.f32 %v18114_v18, %v4141_v29  ;;  %v16566_v51 = vadd.f32 %v16388_v31, %v16386_v55  ;;  %v16570_v13 = vadd.f32 %v16400_v52, %v16398_v56 }
 0x226   : > { %v5323_v7 = vadd.f32 %v13539_v42, %v4787_v32  ;;  %v18107_v32 = vld [vmem:[#allocation51_spill] sm:$0xff]  ;;  %v18108_v42 = vld [vmem:[#allocation52_spill] sm:$0xff]  ;;  %v16575_v20 = vadd.f32 %v16424_v49, %v16414_v36  ;;  %v16578_v29 = vadd.f32 %v16441_v41, %v4145_v4  ;;  %v16581_v55 = vadd.f32 %v13519_v21, %v16433_v19  ;;  %v16586_v52 = vpop.permute.xlu1 %5546 }
 0x227   : > { %v5178_v30 = vpop.f32.mrf.mxu0  ;;  %v16537_v50 = vadd.f32 %v18108_v42, %v18107_v32  ;;  %v16584_v31 = vadd.f32 %v4770_v10, %v16444_v15  ;;  %v16589_v36 = vadd.f32 %v4104_v38, %v16449_v62 }
 0x228   : > { %v5449_v8 = vmax.f32 %v5323_v7, 0.0  ;;  %v5321_v22 = vadd.f32 %v5178_v30, %v4785_v48  ;;  %v16555_v7 = vadd.f32 %v16370_v58, %v16368_v39  ;;  %v13520_v39 = vpop.f32.mrf.mxu1  ;;  %v5552_v44 = vpop.permute.xlu0 %5551 }
 0x229   : > { %v13540_v32 = vpop.f32.mrf.mxu0  ;;  %v16592_v49 = vadd.f32 %v13520_v39, %v16463_v1 }
 0x22a   : > { %v5701_v48 = vmul.f32 %v5532_v26, %v5449_v8  ;;  %v5447_v30 = vmax.f32 %v5321_v22, 0.0  ;;  %v5324_v42 = vadd.f32 %v13540_v32, %v4788_v17 }
 0x22b   : > { %v5181_v58 = vpop.f32.mrf.mxu0 }
 0x22c   : > { %v12518_v35 = vpack.c.bf16 %v5701_v48, %v5701_v48  ;;  %v5699_v17 = vmul.f32 %v16427_v47, %v5447_v30  ;;  %v5450_v26 = vmax.f32 %v5324_v42, 0.0  ;;  %v5322_v59 = vadd.f32 %v5181_v58, %v4786_v28  ;;  %v6241_v58 = vld [vmem:[#allocation2 + $0x8] sm:$0xe] }
 0x22d   : > { %v13543_v56 = vpop.f32.mrf.mxu0 }
 0x22e   : > { %v5865_v8 = vshrl.u32 %v12518_v35, 16  ;;  %v5868_v47 = vshll.u32 %v12518_v35, 16  ;;  %v12516_v22 = vpack.c.bf16 %v5699_v17, %v5699_v17  ;;  %v5702_v28 = vmul.f32 %v5537_v61, %v5450_v26 }
 0x22f   : > { %v5448_v41 = vmax.f32 %v5322_v59, 0.0  ;;  %v5327_v19 = vadd.f32 %v13543_v56, %v16467_v24  ;;  %v5194_v21 = vpop.f32.mrf.mxu0  ;;  %v5557_v59 = vpop.permute.xlu1 %5556 }
 0x230   : > { %v5867_v15 = vrot.slane %v5865_v8, 6  ;;  %v5870_v10 = vrot.slane %v5868_v47, 7  ;;  %v5846_v34 = vshrl.u32 %v12516_v22, 16  ;;  %v5849_v4 = vshll.u32 %v12516_v22, 16  ;;  %v16598_v22 = vpop.permute.xlu0 %5561 }
 0x231   : > { %v12519_v32 = vpack.c.bf16 %v5702_v28, %v5702_v28  ;;  %v5700_v48 = vmul.f32 %v16477_v60, %v5448_v41  ;;  %v5453_v30 = vmax.f32 %v5327_v19, 0.0  ;;  %v5325_v61 = vadd.f32 %v5194_v21, %v16471_v0  ;;  %v13544_v42 = vpop.f32.mrf.mxu0 }
 0x232   : > { %v5871_v62 = vor.u32 %v5870_v10, %v5867_v15  ;;  %v5848_v38 = vrot.slane %v5846_v34, 6  ;;  %v5851_v18 = vrot.slane %v5849_v4, 7  ;;  %v5328_v1 = vadd.f32 %v13544_v42, %v16475_v14 }
 0x233   : > { %v5875_v39 = vshrl.u32 %v12519_v32, 16  ;;  %v5878_v24 = vshll.u32 %v12519_v32, 16  ;;  %v12517_v35 = vpack.c.bf16 %v5700_v48, %v5700_v48  ;;  %v5705_v17 = vmul.f32 %v5552_v44, %v5453_v30  ;;  %v5197_v26 = vpop.f32.mrf.mxu0 }
 0x234   : > { %v5873_v56 = vrot.slane %v5871_v62, 4  ;;  %v5852_v8 = vor.u32 %v5851_v18, %v5848_v38  ;;  %v5451_v47 = vmax.f32 %v5325_v61, 0.0  ;;  %v5454_v60 = vmax.f32 %v5328_v1, 0.0 }
 0x235   : > { %v5877_v0 = vrot.slane %v5875_v39, 6  ;;  %v5880_v28 = vrot.slane %v5878_v24, 7  ;;  %v5855_v41 = vshrl.u32 %v12517_v35, 16  ;;  %v5858_v19 = vshll.u32 %v12517_v35, 16  ;;  %v13547_v21 = vpop.f32.mrf.mxu0 }
 0x236   : > { %v5853_v44 = vrot.slane %v5852_v8, 4  ;;  %v6242_v10 = vsel %vm16170_vm11, %v5852_v8, %v6241_v58  ;;  %v12522_v34 = vpack.c.bf16 %v5705_v17, %v5705_v17  ;;  %v5703_v4 = vmul.f32 %v16539_v33, %v5451_v47  ;;  %v5567_v8 = vpop.permute.xlu1 %5566 }
 0x237   : > { %6243 = vst [vmem:[#allocation2 + $0x8] sm:$0xe] %v6242_v10  ;;  %v5881_v32 = vor.u32 %v5880_v28, %v5877_v0  ;;  %v5857_v48 = vrot.slane %v5855_v41, 6  ;;  %v5860_v30 = vrot.slane %v5858_v19, 7  ;;  %v5706_v61 = vmul.f32 %v5557_v59, %v5454_v60  ;;  %v5210_v42 = vpop.f32.mrf.mxu0  ;;  %v5572_v59 = vpop.permute.xlu0 %5571 }
 0x238   : > { %v5905_v38 = vshrl.u32 %v12522_v34, 16  ;;  %v5908_v18 = vshll.u32 %v12522_v34, 16  ;;  %v12520_v1 = vpack.c.bf16 %v5703_v4, %v5703_v4  ;;  %v5326_v39 = vadd.f32 %v5197_v26, %v16482_v46 }
 0x239   : > { %v5882_v24 = vsel %vm16602_vm13, %v5873_v56, %v5881_v32  ;;  %v5883_v35 = vrot.slane %v5881_v32, 4  ;;  %v5861_v15 = vor.u32 %v5860_v30, %v5857_v48  ;;  %v12523_v58 = vpack.c.bf16 %v5706_v61, %v5706_v61  ;;  %v13548_v17 = vpop.f32.mrf.mxu0 }
 0x23a   : > { %6246 = vst [vmem:[#allocation2 + $0x14] sm:$0xf] %v5882_v24  ;;  %v5907_v33 = vrot.slane %v5905_v38, 6  ;;  %v5910_v47 = vrot.slane %v5908_v18, 7  ;;  %v5885_v0 = vshrl.u32 %v12520_v1, 16  ;;  %v5888_v28 = vshll.u32 %v12520_v1, 16 }
 0x23b   : > { %v5862_v60 = vsel %vm16602_vm13, %v5853_v44, %v5861_v15  ;;  %v5863_v41 = vrot.slane %v5861_v15, 4  ;;  %v5915_v19 = vshrl.u32 %v12523_v58, 16  ;;  %v5918_v46 = vshll.u32 %v12523_v58, 16  ;;  %v5213_v26 = vpop.f32.mrf.mxu0 }
 0x23c   : > { %6244 = vst [vmem:[#allocation2 + $0xc] sm:$0xf] %v5862_v60  ;;  %v16614_v56 = vor.u32 %v5910_v47, %v5907_v33  ;;  %v5887_v10 = vrot.slane %v5885_v0, 6  ;;  %v5890_v34 = vrot.slane %v5888_v28, 7  ;;  %v5452_v4 = vmax.f32 %v5326_v39, 0.0  ;;  %v5577_v47 = vpop.permute.xlu1 %5576  ;;  %v16628_v60 = vpop.permute.xlu0 %5581 }
 0x23d   : > { %v5872_v32 = vsel %vm16602_vm13, %v5863_v41, %v5871_v62  ;;  %v5917_v48 = vrot.slane %v5915_v19, 6  ;;  %v5920_v30 = vrot.slane %v5918_v46, 7  ;;  %v5331_v61 = vadd.f32 %v13547_v21, %v16486_v27  ;;  %v13551_v38 = vpop.f32.mrf.mxu0  ;;  %v14367_v46 = vld [vmem:[#allocation4 + $0xb0] sm:$0xff]  }
 0x23e   : > { %6245 = vst [vmem:[#allocation2 + $0x10] sm:$0xf] %v5872_v32  ;;  %v5913_v44 = vrot.slane %v16614_v56, 4  ;;  %v5891_v18 = vor.u32 %v5890_v34, %v5887_v10  ;;  %v5704_v1 = vmul.f32 %v16586_v52, %v5452_v4  ;;  %v5329_v24 = vadd.f32 %v5210_v42, %v16490_v43 }
 0x23f   : > { %v16622_v15 = vor.u32 %v5920_v30, %v5917_v48  ;;  %v5457_v58 = vmax.f32 %v5331_v61, 0.0  ;;  %v5332_v39 = vadd.f32 %v13548_v17, %v16494_v2  ;;  %v5330_v62 = vadd.f32 %v5213_v26, %v16497_v63  ;;  %v5226_v33 = vpop.f32.mrf.mxu0 }
 0x240   : > { %v5892_v27 = vsel %vm16602_vm13, %v5883_v35, %v5891_v18  ;;  %v5893_v21 = vrot.slane %v5891_v18, 4  ;;  %v12521_v0 = vpack.c.bf16 %v5704_v1, %v5704_v1  ;;  %v5455_v28 = vmax.f32 %v5329_v24, 0.0 }
 0x241   : > { %6247 = vst [vmem:[#allocation2 + $0x18] sm:$0xf] %v5892_v27  ;;  %v5922_v43 = vsel %vm16602_vm13, %v5913_v44, %v16622_v15  ;;  %v5923_v52 = vrot.slane %v16622_v15, 4  ;;  %v5709_v2 = vmul.f32 %v5572_v59, %v5457_v58  ;;  %v5458_v42 = vmax.f32 %v5332_v39, 0.0  ;;  %v16634_v63 = vpop.f32.mrf.mxu0  ;;  %v14373_v27 = vld [vmem:[#allocation4 + $0xa8] sm:$0xff]  }
 0x242   : > { %6250 = vst [vmem:[#allocation2 + $0x24] sm:$0xf] %v5922_v43  ;;  %v5895_v17 = vshrl.u32 %v12521_v0, 16  ;;  %v5898_v41 = vshll.u32 %v12521_v0, 16  ;;  %v5707_v35 = vmul.f32 %v16598_v22, %v5455_v28  ;;  %v5456_v19 = vmax.f32 %v5330_v62, 0.0  ;;  %v16641_v62 = vpop.permute.xlu1 %5586  ;;  %v5592_v0 = vpop.permute.xlu0 %5591 }
 0x243   : > { %v12526_v26 = vpack.c.bf16 %v5709_v2, %v5709_v2  ;;  %v5710_v10 = vmul.f32 %v5577_v47, %v5458_v42  ;;  %v5335_v34 = vadd.f32 %v13551_v38, %v16501_v5  ;;  %v5333_v4 = vadd.f32 %v5226_v33, %v16505_v53  ;;  %v16639_v32 = vpop.f32.mrf.mxu0  ;;  %v14359_v48 = vld [vmem:[#allocation2 + $0x8] sm:$0xff]  }
 0x244   : > { %v5897_v59 = vrot.slane %v5895_v17, 6  ;;  %v5900_v30 = vrot.slane %v5898_v41, 7  ;;  %v12524_v61 = vpack.c.bf16 %v5707_v35, %v5707_v35  ;;  %v5708_v44 = vmul.f32 %v5567_v8, %v5456_v19  ;;  %13590 = vmatmul.mubr.bf16.vlgmr.msra.gmra.mxu1 %v14359_v48  ;;  %v18118_v33 = vld [vmem:[#allocation26_spill] sm:$0xff] }
 0x245   : > { %v5945_v18 = vshrl.u32 %v12526_v26, 16  ;;  %v5948_v1 = vshll.u32 %v12526_v26, 16  ;;  %v12527_v24 = vpack.c.bf16 %v5710_v10, %v5710_v10  ;;  %v5461_v58 = vmax.f32 %v5335_v34, 0.0  ;;  %v13555_v22 = vpop.f32.mrf.mxu0  ;;  %v14361_v39 = vld [vmem:[#allocation2 + $0x10] sm:$0xff]   ;;  %13678 = vmatpush3.bf16.msra.mxu1 %v18118_v33 }
 0x246   : > { %v5901_v47 = vor.u32 %v5900_v30, %v5897_v59  ;;  %v5925_v5 = vshrl.u32 %v12524_v61, 16  ;;  %v5928_v38 = vshll.u32 %v12524_v61, 16  ;;  %v12525_v53 = vpack.c.bf16 %v5708_v44, %v5708_v44  ;;  %13593 = vmatprep.mubr.bf16.mxu1 %v14361_v39  ;;  %13679 = vmatprep.subr.bf16.mxu1 %v14367_v46 }
 0x247   : > { %v5947_v28 = vrot.slane %v5945_v18, 6  ;;  %v5950_v43 = vrot.slane %v5948_v1, 7  ;;  %v5955_v8 = vshrl.u32 %v12527_v24, 16  ;;  %v5958_v2 = vshll.u32 %v12527_v24, 16  ;;  %v5242_v42 = vpop.f32.mrf.mxu0 }
 0x248   : > { %v5902_v17 = vsel %vm16602_vm13, %v5893_v21, %v5901_v47  ;;  %v5903_v41 = vrot.slane %v5901_v47, 4  ;;  %v5927_v35 = vrot.slane %v5925_v5, 6  ;;  %v5930_v19 = vrot.slane %v5928_v38, 7  ;;  %v14378_v47 = vld [vmem:[#allocation4 + $0xa0] sm:$0xff]   ;;  %v5597_v5 = vpop.permute.xlu1 %5596 }
 0x249   : > { %6248 = vst [vmem:[#allocation2 + $0x1c] sm:$0xf] %v5902_v17  ;;  %v5951_v26 = vor.u32 %v5950_v43, %v5947_v28  ;;  %v5957_v10 = vrot.slane %v5955_v8, 6  ;;  %v5960_v34 = vrot.slane %v5958_v2, 7  ;;  %v5935_v48 = vshrl.u32 %v12525_v53, 16  ;;  %v16646_v59 = vpop.f32.mrf.mxu0  ;;  %13680 = vmatpush3.bf16.msra.mxu1 %v14367_v46 }
 0x24a   : > { %v5912_v30 = vsel %vm16602_vm13, %v5903_v41, %v16614_v56  ;;  %v5931_v61 = vor.u32 %v5930_v19, %v5927_v35  ;;  %v5938_v44 = vshll.u32 %v12525_v53, 16  ;;  %v5713_v18 = vmul.f32 %v5592_v0, %v5461_v58  ;;  %13681 = vmatprep.subr.bf16.mxu1 %v14373_v27  ;;  %v5602_v53 = vpop.permute.xlu0 %5601 }
 0x24b   : > { %6249 = vst [vmem:[#allocation2 + $0x20] sm:$0xf] %v5912_v30  ;;  %v5953_v21 = vrot.slane %v5951_v26, 4  ;;  %v16651_v1 = vor.u32 %v5960_v34, %v5957_v10  ;;  %v5937_v24 = vrot.slane %v5935_v48, 6  ;;  %v5459_v39 = vmax.f32 %v5333_v4, 0.0  ;;  %v16664_v15 = vpop.f32.mrf.mxu0 }
 0x24c   : > { %v5932_v38 = vsel %vm16602_vm13, %v5923_v52, %v5931_v61  ;;  %v5933_v33 = vrot.slane %v5931_v61, 4  ;;  %v5940_v56 = vrot.slane %v5938_v44, 7  ;;  %v12530_v28 = vpack.c.bf16 %v5713_v18, %v5713_v18  ;;  %v16674_v44 = vpop.permute.xlu1 %5606  ;;  %v16680_v18 = vld [vmem:[#allocation2 + $0x8] sm:$0xff]  }
 0x24d   : > { %6251 = vst [vmem:[#allocation2 + $0x28] sm:$0xf] %v5932_v38  ;;  %v5962_v46 = vsel %vm16602_vm13, %v5953_v21, %v16651_v1  ;;  %v5963_v58 = vrot.slane %v16651_v1, 4  ;;  %v5711_v4 = vmul.f32 %v16628_v60, %v5459_v39  ;;  %v5336_v0 = vadd.f32 %v16634_v63, %v16510_v9  ;;  %13682 = vmatpush3.bf16.msra.mxu1 %v14373_v27  ;;  %v14383_v60 = vld [vmem:[#allocation4 + $0x98] sm:$0xff]   ;;  %v16672_v27 = vpop.f32.mrf.mxu0 }
 0x24e   : > { %6254 = vst [vmem:[#allocation2 + $0x34] sm:$0xf] %v5962_v46  ;;  %v5941_v52 = vor.u32 %v5940_v56, %v5937_v24  ;;  %v5985_v43 = vshrl.u32 %v12530_v28, 16  ;;  %v5988_v8 = vshll.u32 %v12530_v28, 16  ;;  %v5334_v2 = vadd.f32 %v16639_v32, %v16513_v37  ;;  %13683 = vmatprep.subr.bf16.mxu1 %v14378_v47  ;;  %v5612_v1 = vpop.permute.xlu0 %5611  ;;  %v14389_v46 = vld [vmem:[#allocation4 + $0x90] sm:$0xff]  }
 0x24f   : > { %v12528_v17 = vpack.c.bf16 %v5711_v4, %v5711_v4  ;;  %v5462_v41 = vmax.f32 %v5336_v0, 0.0  ;;  %v5339_v35 = vadd.f32 %v13555_v22, %v16517_v45  ;;  %v5337_v19 = vadd.f32 %v5242_v42, %v16521_v40 }
 0x250   : > { %v5942_v9 = vsel %vm16602_vm13, %v5933_v33, %v5941_v52  ;;  %v5943_v63 = vrot.slane %v5941_v52, 4  ;;  %v5987_v10 = vrot.slane %v5985_v43, 6  ;;  %v5990_v34 = vrot.slane %v5988_v8, 7  ;;  %v14366_v48 = vld [vmem:[#allocation2 + $0x18] sm:$0xff]   ;;  %v16686_v8 = vpop.f32.mrf.mxu0 }
 0x251   : > { %6252 = vst [vmem:[#allocation2 + $0x2c] sm:$0xf] %v5942_v9  ;;  %v5965_v30 = vshrl.u32 %v12528_v17, 16  ;;  %v5968_v61 = vshll.u32 %v12528_v17, 16  ;;  %v5714_v37 = vmul.f32 %v5597_v5, %v5462_v41  ;;  %v5460_v32 = vmax.f32 %v5334_v2, 0.0  ;;  %13594 = vmatmul.mubr.bf16.gmra.mxu1 %v14366_v48 }
 0x252   : > { %v5952_v45 = vsel %vm16602_vm13, %v5943_v63, %v5951_v26  ;;  %v16678_v40 = vor.u32 %v5990_v34, %v5987_v10  ;;  %v5465_v22 = vmax.f32 %v5339_v35, 0.0  ;;  %v5463_v42 = vmax.f32 %v5337_v19, 0.0  ;;  %v14368_v21 = vld [vmem:[#allocation2 + $0x20] sm:$0xff]   ;;  %13684 = vmatpush3.bf16.msra.mxu1 %v14378_v47  ;;  %v5617_v19 = vpop.permute.xlu1 %5616 }
 0x253   : > { %6253 = vst [vmem:[#allocation2 + $0x30] sm:$0xf] %v5952_v45  ;;  %v5967_v24 = vrot.slane %v5965_v30, 6  ;;  %v5970_v39 = vrot.slane %v5968_v61, 7  ;;  %v12531_v5 = vpack.c.bf16 %v5714_v37, %v5714_v37  ;;  %v5712_v38 = vmul.f32 %v16641_v62, %v5460_v32  ;;  %13597 = vmatprep.mubr.bf16.mxu1 %v14368_v21  ;;  %13685 = vmatprep.subr.bf16.mxu1 %v14383_v60  ;;  %v16691_v32 = vld [vmem:[#allocation2 + $0x10] sm:$0xff]   ;;  %v13560_v45 = vpop.f32.mrf.mxu0 }
 0x254   : > { %v5993_v33 = vrot.slane %v16678_v40, 4  ;;  %v5717_v56 = vmul.f32 %v5612_v1, %v5465_v22  ;;  %v5715_v26 = vmul.f32 %v5602_v53, %v5463_v42  ;;  %v5340_v28 = vadd.f32 %v16646_v59, %v16525_v12  ;;  %v14396_v59 = vld [vmem:[#allocation4 + $0x88] sm:$0xff]  }
 0x255   : > { %v5971_v4 = vor.u32 %v5970_v39, %v5967_v24  ;;  %v5995_v0 = vshrl.u32 %v12531_v5, 16  ;;  %v5998_v52 = vshll.u32 %v12531_v5, 16  ;;  %v12529_v43 = vpack.c.bf16 %v5712_v38, %v5712_v38 }
 0x256   : > { %v12534_v2 = vpack.c.bf16 %v5717_v56, %v5717_v56  ;;  %v12532_v17 = vpack.c.bf16 %v5715_v26, %v5715_v26  ;;  %v5466_v62 = vmax.f32 %v5340_v28, 0.0  ;;  %v6937_v47 = vshll.u32 %v16680_v18, 16  ;;  %13686 = vmatpush3.bf16.msra.mxu1 %v14383_v60 }
 0x257   : > { %v5972_v53 = vsel %vm16602_vm13, %v5963_v58, %v5971_v4  ;;  %v5973_v41 = vrot.slane %v5971_v4, 4  ;;  %v5997_v35 = vrot.slane %v5995_v0, 6  ;;  %v6000_v12 = vrot.slane %v5998_v52, 7  ;;  %13687 = vmatprep.subr.bf16.mxu1 %v14389_v46 }
 0x258   : > { %6255 = vst [vmem:[#allocation2 + $0x38] sm:$0xf] %v5972_v53  ;;  %v5975_v9 = vshrl.u32 %v12529_v43, 16  ;;  %v5978_v63 = vshll.u32 %v12529_v43, 16  ;;  %v6025_v10 = vshrl.u32 %v12534_v2, 16  ;;  %v6028_v34 = vshll.u32 %v12534_v2, 16  ;;  %v16703_v2 = vpop.f32.mrf.mxu0 }
 0x259   : > { %v6001_v48 = vor.u32 %v6000_v12, %v5997_v35  ;;  %v6005_v30 = vshrl.u32 %v12532_v17, 16  ;;  %v6008_v61 = vshll.u32 %v12532_v17, 16  ;;  %v5718_v37 = vmul.f32 %v5617_v19, %v5466_v62  ;;  %v14371_v58 = vld [vmem:[#allocation2 + $0x28] sm:$0xff]   ;;  %v5622_v62 = vpop.permute.xlu0 %5621  ;;  %v16708_v12 = vld [vmem:[#allocation2 + $0x18] sm:$0xff]  }
 0x25a   : > { %v5977_v22 = vrot.slane %v5975_v9, 6  ;;  %v5980_v42 = vrot.slane %v5978_v63, 7  ;;  %v6027_v21 = vrot.slane %v6025_v10, 6  ;;  %v6030_v60 = vrot.slane %v6028_v34, 7  ;;  %13598 = vmatmul.mubr.bf16.gmra.mxu1 %v14371_v58  ;;  %v14372_v38 = vld [vmem:[#allocation2 + $0x30] sm:$0xff]   ;;  %v16725_v58 = vpop.f32.mrf.mxu0 }
 0x25b   : > { %v6002_v1 = vsel %vm16602_vm13, %v5993_v33, %v6001_v48  ;;  %v6003_v24 = vrot.slane %v6001_v48, 4  ;;  %v6007_v39 = vrot.slane %v6005_v30, 6  ;;  %v6010_v5 = vrot.slane %v6008_v61, 7  ;;  %13688 = vmatpush3.bf16.msra.mxu1 %v14389_v46  ;;  %13601 = vmatprep.mubr.bf16.mxu1 %v14372_v38  ;;  %v14404_v17 = vld [vmem:[#allocation4 + $0x80] sm:$0xff]  }
 0x25c   : > { %6258 = vst [vmem:[#allocation2 + $0x44] sm:$0xf] %v6002_v1  ;;  %v5981_v56 = vor.u32 %v5980_v42, %v5977_v22  ;;  %v16695_v26 = vor.u32 %v6030_v60, %v6027_v21  ;;  %v12535_v28 = vpack.c.bf16 %v5718_v37, %v5718_v37  ;;  %v6939_v4 = vrot.slane %v6937_v47, 1  ;;  %13689 = vmatprep.subr.bf16.mxu1 %v14396_v59  ;;  %v16731_v21 = vld [vmem:[#allocation2 + $0x20] sm:$0xff]  }
 0x25d   : > { %v16697_v0 = vor.u32 %v6010_v5, %v6007_v39  ;;  %v6941_v52 = vshrl.u32 %v16680_v18, 16  ;;  %v5338_v43 = vadd.f32 %v16664_v15, %v16528_v54  ;;  %v6945_v33 = vshll.u32 %v16691_v32, 16  ;;  %v16710_v18 = vpop.permute.xlu1 %5626  ;;  %v14394_v60 = vld [vmem:[#allocation4 + $0xf0] sm:$0xff]  }
 0x25e   : > { %v5982_v53 = vsel %vm16602_vm13, %v5973_v41, %v5981_v56  ;;  %v5983_v47 = vrot.slane %v5981_v56, 4  ;;  %v6033_v46 = vrot.slane %v16695_v26, 4  ;;  %v6035_v35 = vshrl.u32 %v12535_v28, 16  ;;  %v14416_v41 = vld [vmem:[#allocation4 + $0x138] sm:$0xff]  }
 0x25f   : > { %6256 = vst [vmem:[#allocation2 + $0x3c] sm:$0xf] %v5982_v53  ;;  %v6012_v54 = vsel %vm16602_vm13, %v6003_v24, %v16697_v0  ;;  %v6013_v15 = vrot.slane %v16697_v0, 4  ;;  %v6038_v19 = vshll.u32 %v12535_v28, 16  ;;  %v6940_v9 = vsel %vm913_vm0, %v16446_v6, %v6939_v4  ;;  %13690 = vmatpush3.bf16.msra.mxu1 %v14396_v59  ;;  %v16740_v28 = vpop.f32.mrf.mxu0 }
 0x260   : > { %v5992_v63 = vsel %vm16602_vm13, %v5983_v47, %v16678_v40  ;;  %6259 = vst [vmem:[#allocation2 + $0x48] sm:$0xf] %v6012_v54  ;;  %v6037_v10 = vrot.slane %v6035_v35, 6  ;;  %v6943_v34 = vor.u32 %v6941_v52, %v6939_v4  ;;  %13641 = vmatprep.mubr.bf16.mxu0 %v6940_v9  ;;  %v5464_v48 = vmax.f32 %v5338_v43, 0.0  ;;  %13691 = vmatprep.subr.bf16.mxu1 %v14404_v17  ;;  %v18119_v4 = vld [vmem:[#allocation10_spill] sm:$0xff]  ;;  %v14398_v47 = vld [vmem:[#allocation4 + $0xe8] sm:$0xff]  }
 0x261   : > { %6257 = vst [vmem:[#allocation2 + $0x40] sm:$0xf] %v5992_v63  ;;  %v6040_v30 = vrot.slane %v6038_v19, 7  ;;  %v6947_v61 = vrot.slane %v6945_v33, 1  ;;  %v5343_v37 = vadd.f32 %v16672_v27, %v16533_v16  ;;  %v5341_v6 = vadd.f32 %v16686_v8, %v16537_v50  ;;  %v5632_v8 = vpop.permute.xlu0 %5631 }
 0x262   : > { %v5716_v40 = vmul.f32 %v16674_v44, %v5464_v48  ;;  %v5344_v22 = vadd.f32 %v13560_v45, %v16543_v25  ;;  %v6949_v42 = vshrl.u32 %v16691_v32, 16  ;;  %v6953_v59 = vshll.u32 %v16708_v12, 16  ;;  %v5637_v25 = vpop.permute.xlu1 %5636 }
 0x263   : > { %v16733_v1 = vor.u32 %v6040_v30, %v6037_v10  ;;  %v6948_v16 = vsel %vm913_vm0, %v6943_v34, %v6947_v61  ;;  %v5469_v27 = vmax.f32 %v5343_v37, 0.0  ;;  %v5467_v50 = vmax.f32 %v5341_v6, 0.0  ;;  %13692 = vmatpush3.bf16.msra.mxu1 %v14404_v17  ;;  %v13564_v37 = vpop.f32.mrf.mxu0 }
 0x264   : > { %v12533_v24 = vpack.c.bf16 %v5716_v40, %v5716_v40  ;;  %13642 = vmatmul.mubr.bf16.vlgmr.msra.gmra.mxu0 %v6948_v16  ;;  %v5470_v39 = vmax.f32 %v5344_v22, 0.0  ;;  %v6951_v44 = vor.u32 %v6949_v42, %v6947_v61  ;;  %v6955_v5 = vrot.slane %v6953_v59, 1  ;;  %13781 = vmatprep.subr.bf16.mxu1 %v14416_v41 }
 0x265   : > { %v6042_v32 = vsel %vm16602_vm13, %v6033_v46, %v16733_v1  ;;  %v6043_v45 = vrot.slane %v16733_v1, 4  ;;  %v5721_v38 = vmul.f32 %v5632_v8, %v5469_v27  ;;  %v5719_v56 = vmul.f32 %v5622_v62, %v5467_v50  ;;  %13730 = vmatpush3.bf16.msra.mxu0 %v18119_v4 }
 0x266   : > { %6262 = vst [vmem:[#allocation2 + $0x54] sm:$0xf] %v6042_v32  ;;  %v6015_v52 = vshrl.u32 %v12533_v24, 16  ;;  %v6018_v43 = vshll.u32 %v12533_v24, 16  ;;  %v5722_v33 = vmul.f32 %v5637_v25, %v5470_v39  ;;  %v6956_v17 = vsel %vm913_vm0, %v6951_v44, %v6955_v5  ;;  %v14376_v53 = vld [vmem:[#allocation2 + $0x38] sm:$0xff]   ;;  %13731 = vmatprep.subr.bf16.mxu0 %v14394_v60 }
 0x267   : > { %v12538_v35 = vpack.c.bf16 %v5721_v38, %v5721_v38  ;;  %v12536_v46 = vpack.c.bf16 %v5719_v56, %v5719_v56  ;;  %13645 = vmatprep.mubr.bf16.mxu0 %v6956_v17  ;;  %v5342_v62 = vadd.f32 %v16703_v2, %v16546_v11  ;;  %v6957_v54 = vshrl.u32 %v16708_v12, 16  ;;  %13602 = vmatmul.mubr.bf16.gmra.mxu1 %v14376_v53  ;;  %v14401_v11 = vld [vmem:[#allocation4 + $0xe0] sm:$0xff]   ;;  %v5642_v2 = vpop.permute.xlu0 %5641  ;;  %v5277_v38 = vpop.f32.mrf.mxu0 }
 0x268   : > { %v6017_v19 = vrot.slane %v6015_v52, 6  ;;  %v6020_v9 = vrot.slane %v6018_v43, 7  ;;  %v12539_v41 = vpack.c.bf16 %v5722_v33, %v5722_v33  ;;  %v6961_v63 = vshll.u32 %v16731_v21, 16  ;;  %v14377_v10 = vld [vmem:[#allocation2 + $0x40] sm:$0xff]   ;;  %v5647_v56 = vpop.permute.xlu1 %5646  ;;  %v16764_v43 = vld [vmem:[#allocation2 + $0x28] sm:$0xff]  }
 0x269   : > { %v6065_v34 = vshrl.u32 %v12538_v35, 16  ;;  %v6068_v48 = vshll.u32 %v12538_v35, 16  ;;  %v6045_v30 = vshrl.u32 %v12536_v46, 16  ;;  %v6048_v61 = vshll.u32 %v12536_v46, 16  ;;  %13732 = vmatpush3.bf16.msra.mxu0 %v14394_v60  ;;  %13605 = vmatprep.mubr.bf16.mxu1 %v14377_v10  ;;  %v14405_v33 = vld [vmem:[#allocation4 + $0xd8] sm:$0xff]  }
 0x26a   : > { %v6021_v6 = vor.u32 %v6020_v9, %v6017_v19  ;;  %v6075_v40 = vshrl.u32 %v12539_v41, 16  ;;  %v6078_v22 = vshll.u32 %v12539_v41, 16  ;;  %v5468_v42 = vmax.f32 %v5342_v62, 0.0  ;;  %13733 = vmatprep.subr.bf16.mxu0 %v14398_v47 }
 0x26b   : > { %v6067_v12 = vrot.slane %v6065_v34, 6  ;;  %v6070_v59 = vrot.slane %v6068_v48, 7  ;;  %v6047_v16 = vrot.slane %v6045_v30, 6  ;;  %v6050_v27 = vrot.slane %v6048_v61, 7  ;;  %v5652_v35 = vpop.permute.xlu0 %5651  ;;  %v14409_v48 = vld [vmem:[#allocation4 + $0xd0] sm:$0xff]  }
 0x26c   : > { %v6022_v50 = vsel %vm16602_vm13, %v6013_v15, %v6021_v6  ;;  %v6023_v8 = vrot.slane %v6021_v6, 4  ;;  %v6077_v24 = vrot.slane %v6075_v40, 6  ;;  %v6080_v60 = vrot.slane %v6078_v22, 7  ;;  %v5657_v30 = vpop.permute.xlu1 %5656 }
 0x26d   : > { %6260 = vst [vmem:[#allocation2 + $0x4c] sm:$0xf] %v6022_v50  ;;  %v16752_v39 = vor.u32 %v6070_v59, %v6067_v12  ;;  %v16754_v44 = vor.u32 %v6050_v27, %v6047_v16  ;;  %v5720_v25 = vmul.f32 %v16710_v18, %v5468_v42  ;;  %v6959_v32 = vor.u32 %v6957_v54, %v6955_v5  ;;  %v16781_v54 = vpop.f32.mrf.mxu0 }
 0x26e   : > { %13734 = vmatpush3.bf16.msra.mxu0 %v14398_v47  ;;  %v6032_v0 = vsel %vm16602_vm13, %v6023_v8, %v16695_v26  ;;  %v16760_v4 = vor.u32 %v6080_v60, %v6077_v24  ;;  %v6963_v15 = vrot.slane %v6961_v63, 1  ;;  %v5347_v52 = vadd.f32 %v16725_v58, %v16550_v23  ;;  %v14412_v8 = vld [vmem:[#allocation4 + $0xc8] sm:$0xff]  }
 0x26f   : > { %13735 = vmatprep.subr.bf16.mxu0 %v14401_v11  ;;  %6261 = vst [vmem:[#allocation2 + $0x50] sm:$0xf] %v6032_v0  ;;  %v6073_v18 = vrot.slane %v16752_v39, 4  ;;  %v6052_v5 = vsel %vm16602_vm13, %v6043_v45, %v16754_v44  ;;  %v6053_v26 = vrot.slane %v16754_v44, 4  ;;  %v12537_v17 = vpack.c.bf16 %v5720_v25, %v5720_v25  ;;  %v5290_v59 = vpop.f32.mrf.mxu0  ;;  %v16790_v25 = vld [vmem:[#allocation2 + $0x30] sm:$0xff]  }
 0x270   : > { %6263 = vst [vmem:[#allocation2 + $0x58] sm:$0xf] %v6052_v5  ;;  %v6083_v53 = vrot.slane %v16760_v4, 4  ;;  %v6964_v23 = vsel %vm913_vm0, %v6959_v32, %v6963_v15  ;;  %v5473_v58 = vmax.f32 %v5347_v52, 0.0  ;;  %v5345_v47 = vadd.f32 %v16740_v28, %v16555_v7  ;;  %v5662_v52 = vpop.permute.xlu0 %5661 }
 0x271   : > { %v6082_v1 = vsel %vm16602_vm13, %v6073_v18, %v16760_v4  ;;  %v6055_v46 = vshrl.u32 %v12537_v17, 16  ;;  %v6058_v62 = vshll.u32 %v12537_v17, 16  ;;  %13646 = vmatmul.mubr.bf16.gmra.mxu0 %v6964_v23  ;;  %v5348_v45 = vadd.f32 %v13564_v37, %v16559_v57  ;;  %v16811_v4 = vld [vmem:[#allocation4 + $0x178] sm:$0xff]  }
 0x272   : > { %6266 = vst [vmem:[#allocation2 + $0x64] sm:$0xf] %v6082_v1  ;;  %v5725_v19 = vmul.f32 %v5652_v35, %v5473_v58  ;;  %v5471_v9 = vmax.f32 %v5345_v47, 0.0  ;;  %v6965_v41 = vshrl.u32 %v16731_v21, 16  ;;  %v6969_v63 = vshll.u32 %v16764_v43, 16  ;;  %13736 = vmatpush3.bf16.msra.mxu0 %v14401_v11 }
 0x273   : > { %v6057_v7 = vrot.slane %v6055_v46, 6  ;;  %v6060_v28 = vrot.slane %v6058_v62, 7  ;;  %v5474_v10 = vmax.f32 %v5348_v45, 0.0  ;;  %v5346_v34 = vadd.f32 %v5277_v38, %v16562_v3  ;;  %13737 = vmatprep.subr.bf16.mxu0 %v14405_v33  ;;  %v16795_v62 = vld [vmem:[#allocation2 + $0x38] sm:$0xff]   ;;  %v14418_v45 = vld [vmem:[#allocation4 + $0xc0] sm:$0xff]  }
 0x274   : > { %v12542_v61 = vpack.c.bf16 %v5725_v19, %v5725_v19  ;;  %v5723_v57 = vmul.f32 %v5642_v2, %v5471_v9  ;;  %v6967_v37 = vor.u32 %v6965_v41, %v6963_v15  ;;  %v6971_v6 = vrot.slane %v6969_v63, 1  ;;  %v14381_v40 = vld [vmem:[#allocation2 + $0x48] sm:$0xff]   ;;  %v5667_v63 = vpop.permute.xlu1 %5666 }
 0x275   : > { %v6061_v22 = vor.u32 %v6060_v28, %v6057_v7  ;;  %v5726_v42 = vmul.f32 %v5657_v30, %v5474_v10  ;;  %v5472_v12 = vmax.f32 %v5346_v34, 0.0  ;;  %v6973_v21 = vshrl.u32 %v16764_v43, 16  ;;  %13606 = vmatmul.mubr.bf16.gmra.mxu1 %v14381_v40 }
 0x276   : > { %v6105_v11 = vshrl.u32 %v12542_v61, 16  ;;  %v6108_v16 = vshll.u32 %v12542_v61, 16  ;;  %v12540_v27 = vpack.c.bf16 %v5723_v57, %v5723_v57  ;;  %v6972_v50 = vsel %vm913_vm0, %v6967_v37, %v6971_v6  ;;  %v14382_v3 = vld [vmem:[#allocation2 + $0x50] sm:$0xff]   ;;  %13738 = vmatpush3.bf16.msra.mxu0 %v14405_v33 }
 0x277   : > { %v6062_v2 = vsel %vm16602_vm13, %v6053_v26, %v6061_v22  ;;  %v6063_v24 = vrot.slane %v6061_v22, 4  ;;  %v12543_v60 = vpack.c.bf16 %v5726_v42, %v5726_v42  ;;  %13649 = vmatprep.mubr.bf16.mxu0 %v6972_v50  ;;  %v5724_v44 = vmul.f32 %v5647_v56, %v5472_v12  ;;  %13739 = vmatprep.subr.bf16.mxu0 %v14409_v48  ;;  %v13568_v26 = vpop.f32.mrf.mxu0 }
 0x278   : > { %6264 = vst [vmem:[#allocation2 + $0x5c] sm:$0xf] %v6062_v2  ;;  %v6107_v32 = vrot.slane %v6105_v11, 6  ;;  %v6110_v38 = vrot.slane %v6108_v16, 7  ;;  %v6085_v0 = vshrl.u32 %v12540_v27, 16  ;;  %v6088_v15 = vshll.u32 %v12540_v27, 16  ;;  %13609 = vmatprep.mubr.bf16.mxu1 %v14382_v3 }
 0x279   : > { %v6072_v43 = vsel %vm16602_vm13, %v6063_v24, %v16752_v39  ;;  %v6115_v33 = vshrl.u32 %v12543_v60, 16  ;;  %v6118_v18 = vshll.u32 %v12543_v60, 16  ;;  %v12541_v5 = vpack.c.bf16 %v5724_v44, %v5724_v44 }
 0x27a   : > { %6265 = vst [vmem:[#allocation2 + $0x60] sm:$0xf] %v6072_v43  ;;  %v6111_v56 = vor.u32 %v6110_v38, %v6107_v32  ;;  %v6087_v17 = vrot.slane %v6085_v0, 6  ;;  %v6090_v23 = vrot.slane %v6088_v15, 7  ;;  %v6975_v58 = vor.u32 %v6973_v21, %v6971_v6  ;;  %13740 = vmatpush3.bf16.msra.mxu0 %v14409_v48  ;;  %v5293_v48 = vpop.f32.mrf.mxu0  ;;  %v5672_v6 = vpop.permute.xlu0 %5671  ;;  %v16822_v38 = vld [vmem:[#allocation2 + $0x40] sm:$0xff]  }
 0x27b   : > { %v6117_v47 = vrot.slane %v6115_v33, 6  ;;  %v6120_v35 = vrot.slane %v6118_v18, 7  ;;  %v6095_v1 = vshrl.u32 %v12541_v5, 16  ;;  %v6098_v46 = vshll.u32 %v12541_v5, 16  ;;  %13741 = vmatprep.subr.bf16.mxu0 %v14412_v8 }
 0x27c   : > { %v6113_v19 = vrot.slane %v6111_v56, 4  ;;  %v6091_v39 = vor.u32 %v6090_v23, %v6087_v17  ;;  %v6977_v9 = vshll.u32 %v16790_v25, 16  ;;  %v5351_v41 = vadd.f32 %v16781_v54, %v16566_v51  ;;  %v13571_v50 = vpop.f32.mrf.mxu0 }
 0x27d   : > { %v16800_v7 = vor.u32 %v6120_v35, %v6117_v47  ;;  %v6097_v28 = vrot.slane %v6095_v1, 6  ;;  %v6100_v10 = vrot.slane %v6098_v46, 7  ;;  %v5349_v34 = vadd.f32 %v5290_v59, %v16570_v13  ;;  %v4773_v1 = vpop.f32.mrf.mxu1 }
 0x27e   : > { %v6092_v30 = vsel %vm16602_vm13, %v6083_v53, %v6091_v39  ;;  %v6093_v61 = vrot.slane %v6091_v39, 4  ;;  %v6979_v57 = vrot.slane %v6977_v9, 1  ;;  %v5477_v37 = vmax.f32 %v5351_v41, 0.0  ;;  %13742 = vmatpush3.bf16.msra.mxu0 %v14412_v8  ;;  %v5306_v17 = vpop.f32.mrf.mxu0 }
 0x27f   : > { %6267 = vst [vmem:[#allocation2 + $0x68] sm:$0xf] %v6092_v30  ;;  %v6122_v51 = vsel %vm16602_vm13, %v6113_v19, %v16800_v7  ;;  %v6123_v54 = vrot.slane %v16800_v7, 4  ;;  %v6101_v40 = vor.u32 %v6100_v10, %v6097_v28  ;;  %v5475_v13 = vmax.f32 %v5349_v34, 0.0  ;;  %v14386_v22 = vld [vmem:[#allocation2 + $0x58] sm:$0xff]   ;;  %13743 = vmatprep.subr.bf16.mxu0 %v14418_v45 }
 0x280   : > { %6270 = vst [vmem:[#allocation2 + $0x74] sm:$0xf] %v6122_v51  ;;  %v6980_v53 = vsel %vm913_vm0, %v6975_v58, %v6979_v57  ;;  %v5729_v42 = vmul.f32 %v5672_v6, %v5477_v37  ;;  %v5352_v12 = vadd.f32 %v13568_v26, %v16575_v20  ;;  %v6981_v21 = vshrl.u32 %v16790_v25, 16  ;;  %13610 = vmatmul.mubr.bf16.gmra.mxu1 %v14386_v22  ;;  %v5677_v20 = vpop.permute.xlu1 %5676 }
 0x281   : > { %v6102_v59 = vsel %vm16602_vm13, %v6093_v61, %v6101_v40  ;;  %v6103_v11 = vrot.slane %v6101_v40, 4  ;;  %13650 = vmatmul.mubr.bf16.gmra.mxu0 %v6980_v53  ;;  %v5727_v16 = vmul.f32 %v5662_v52, %v5475_v13  ;;  %v6985_v27 = vshll.u32 %v16795_v62, 16  ;;  %v14387_v3 = vld [vmem:[#allocation2 + $0x60] sm:$0xff]   ;;  %v13572_v61 = vpop.f32.mrf.mxu0 }
 0x282   : > { %6268 = vst [vmem:[#allocation2 + $0x6c] sm:$0xf] %v6102_v59  ;;  %v12546_v8 = vpack.c.bf16 %v5729_v42, %v5729_v42  ;;  %v5478_v2 = vmax.f32 %v5352_v12, 0.0  ;;  %v6983_v24 = vor.u32 %v6981_v21, %v6979_v57  ;;  %v5350_v60 = vadd.f32 %v5293_v48, %v16578_v29  ;;  %13744 = vmatpush3.bf16.msra.mxu0 %v14418_v45  ;;  %v5682_v29 = vpop.permute.xlu0 %5681  ;;  %v16830_v57 = vld [vmem:[#allocation2 + $0x48] sm:$0xff]  }
 0x283   : > { %v6112_v44 = vsel %vm16602_vm13, %v6103_v11, %v6111_v56  ;;  %v12544_v25 = vpack.c.bf16 %v5727_v16, %v5727_v16  ;;  %v6987_v32 = vrot.slane %v6985_v27, 1  ;;  %v6989_v0 = vshrl.u32 %v16795_v62, 16  ;;  %13613 = vmatprep.mubr.bf16.mxu1 %v14387_v3  ;;  %13833 = vmatprep.subr.bf16.mxu0 %v16811_v4 }
 0x284   : > { %6269 = vst [vmem:[#allocation2 + $0x70] sm:$0xf] %v6112_v44  ;;  %v6145_v15 = vshrl.u32 %v12546_v8, 16  ;;  %v6148_v52 = vshll.u32 %v12546_v8, 16  ;;  %v5730_v43 = vmul.f32 %v5677_v20, %v5478_v2  ;;  %v5476_v33 = vmax.f32 %v5350_v60, 0.0  ;;  %v5687_v6 = vpop.permute.xlu1 %5686 }
 0x285   : > { %v6125_v18 = vshrl.u32 %v12544_v25, 16  ;;  %v6128_v5 = vshll.u32 %v12544_v25, 16  ;;  %v6988_v26 = vsel %vm913_vm0, %v6983_v24, %v6987_v32  ;;  %v6991_v56 = vor.u32 %v6989_v0, %v6987_v32  ;;  %v14385_v32 = vld [vmem:[#allocation2 + $0x50] sm:$0xff]  }
 0x286   : > { %v6147_v23 = vrot.slane %v6145_v15, 6  ;;  %v6150_v58 = vrot.slane %v6148_v52, 7  ;;  %v12547_v47 = vpack.c.bf16 %v5730_v43, %v5730_v43  ;;  %13653 = vmatprep.mubr.bf16.mxu0 %v6988_v26  ;;  %v5728_v35 = vmul.f32 %v5667_v63, %v5476_v33  ;;  %v14388_v26 = vld [vmem:[#allocation2 + $0x58] sm:$0xff]  }
 0x287   : > { %v6127_v46 = vrot.slane %v6125_v18, 6  ;;  %v6130_v62 = vrot.slane %v6128_v5, 7  ;;  %v6993_v45 = vshll.u32 %v16822_v38, 16  ;;  %v5355_v19 = vadd.f32 %v13571_v50, %v16581_v55  ;;  %v5692_v55 = vpop.permute.xlu0 %5691 }
 0x288   : > { %v6151_v39 = vor.u32 %v6150_v58, %v6147_v23  ;;  %v6155_v9 = vshrl.u32 %v12547_v47, 16  ;;  %v6158_v41 = vshll.u32 %v12547_v47, 16  ;;  %v12545_v28 = vpack.c.bf16 %v5728_v35, %v5728_v35 }
 0x289   : > { %v6131_v10 = vor.u32 %v6130_v62, %v6127_v46  ;;  %v6995_v34 = vrot.slane %v6993_v45, 1  ;;  %v5481_v48 = vmax.f32 %v5355_v19, 0.0  ;;  %v5353_v30 = vadd.f32 %v5306_v17, %v16584_v31  ;;  %v14392_v63 = vld [vmem:[#allocation2 + $0x68] sm:$0xff]  }
 0x28a   : > { %v4818_v37 = vadd.f32 %v4773_v1, %v16589_v36  ;;  %v6157_v51 = vrot.slane %v6155_v9, 6  ;;  %v6160_v40 = vrot.slane %v6158_v41, 7  ;;  %v6135_v13 = vshrl.u32 %v12545_v28, 16  ;;  %13614 = vmatmul.mubr.bf16.gmra.mxu1 %v14392_v63  ;;  %v14390_v9 = vld [vmem:[#allocation2 + $0x60] sm:$0xff]   ;;  %v14395_v63 = vld [vmem:[#allocation2 + $0x68] sm:$0xff]  }
 0x28b   : > { %v6153_v22 = vrot.slane %v6151_v39, 4  ;;  %v6132_v53 = vsel %vm16602_vm13, %v6123_v54, %v6131_v10  ;;  %v6138_v42 = vshll.u32 %v12545_v28, 16  ;;  %v6996_v31 = vsel %vm913_vm0, %v6991_v56, %v6995_v34  ;;  %v14393_v12 = vld [vmem:[#allocation2 + $0x70] sm:$0xff]   ;;  %v5309_v54 = vpop.f32.mrf.mxu0 }
 0x28c   : > { %6271 = vst [vmem:[#allocation2 + $0x78] sm:$0xf] %v6132_v53  ;;  %v16838_v21 = vor.u32 %v6160_v40, %v6157_v51  ;;  %v6137_v36 = vrot.slane %v6135_v13, 6  ;;  %13654 = vmatmul.mubr.bf16.gmra.mxu0 %v6996_v31  ;;  %v5733_v59 = vmul.f32 %v5692_v55, %v5481_v48  ;;  %v5479_v11 = vmax.f32 %v5353_v30, 0.0  ;;  %13617 = vmatprep.mubr.bf16.mxu1 %v14393_v12 }
 0x28d   : > { %v6140_v16 = vrot.slane %v6138_v42, 7  ;;  %v5356_v27 = vadd.f32 %v13572_v61, %v16592_v49  ;;  %v6997_v7 = vshrl.u32 %v16822_v38, 16  ;;  %v7001_v50 = vshll.u32 %v16830_v57, 16  ;;  %v5697_v49 = vpop.permute.xlu1 %5696  ;;  %v14397_v42 = vld [vmem:[#allocation2 + $0x70] sm:$0xff]  }
 0x28e   : > { %v6133_v3 = vrot.slane %v6131_v10, 4  ;;  %v6162_v8 = vsel %vm16602_vm13, %v6153_v22, %v16838_v21  ;;  %v12550_v2 = vpack.c.bf16 %v5733_v59, %v5733_v59  ;;  %v5731_v24 = vmul.f32 %v5682_v29, %v5479_v11  ;;  %v6279_v22 = vld [vmem:[#allocation2 + $0x98] sm:$0x3] }
 0x28f   : > { %6274 = vst [vmem:[#allocation2 + $0x84] sm:$0xf] %v6162_v8  ;;  %v6141_v60 = vor.u32 %v6140_v16, %v6137_v36  ;;  %v5482_v20 = vmax.f32 %v5356_v27, 0.0  ;;  %v6999_v44 = vor.u32 %v6997_v7, %v6995_v34  ;;  %v7003_v25 = vrot.slane %v7001_v50, 1 }
 0x290   : > { %v6185_v0 = vshrl.u32 %v12550_v2, 16  ;;  %v6188_v38 = vshll.u32 %v12550_v2, 16  ;;  %v12548_v15 = vpack.c.bf16 %v5731_v24, %v5731_v24  ;;  %v5354_v52 = vadd.f32 %v5309_v54, %v4818_v37 }
 0x291   : > { %v6142_v43 = vsel %vm16602_vm13, %v6133_v3, %v6141_v60  ;;  %v6143_v33 = vrot.slane %v6141_v60, 4  ;;  %v5734_v18 = vmul.f32 %v5697_v49, %v5482_v20  ;;  %v7004_v5 = vsel %vm913_vm0, %v6999_v44, %v7003_v25  ;;  %v14433_v49 = vld [vmem:[#allocation4 + $0x120] sm:$0xff]  }
 0x292   : > { %6272 = vst [vmem:[#allocation2 + $0x7c] sm:$0xf] %v6142_v43  ;;  %v6187_v29 = vrot.slane %v6185_v0, 6  ;;  %v6190_v56 = vrot.slane %v6188_v38, 7  ;;  %v6165_v17 = vshrl.u32 %v12548_v15, 16  ;;  %v6168_v23 = vshll.u32 %v12548_v15, 16  ;;  %13657 = vmatprep.mubr.bf16.mxu0 %v7004_v5 }
 0x293   : > { %v6152_v58 = vsel %vm16602_vm13, %v6143_v33, %v6151_v39  ;;  %v12551_v47 = vpack.c.bf16 %v5734_v18, %v5734_v18  ;;  %v5480_v35 = vmax.f32 %v5354_v52, 0.0  ;;  %v7005_v1 = vshrl.u32 %v16830_v57, 16 }
 0x294   : > { %6273 = vst [vmem:[#allocation2 + $0x80] sm:$0xf] %v6152_v58  ;;  %v16852_v46 = vor.u32 %v6190_v56, %v6187_v29  ;;  %v6167_v62 = vrot.slane %v6165_v17, 6  ;;  %v6170_v45 = vrot.slane %v6168_v23, 7  ;;  %v7009_v19 = vshll.u32 %v14385_v32, 16  ;;  %v14408_v17 = vld [vmem:[#allocation2 + $0x8] sm:$0xff]  }
 0x295   : > { %v6195_v41 = vshrl.u32 %v12551_v47, 16  ;;  %v6198_v28 = vshll.u32 %v12551_v47, 16  ;;  %v5732_v10 = vmul.f32 %v5687_v6, %v5480_v35  ;;  %v7007_v34 = vor.u32 %v7005_v1, %v7003_v25  ;;  %v14407_v56 = vld [vmem:[#allocation2] sm:$0xfe]  }
 0x296   : > { %v6163_v48 = vrot.slane %v16838_v21, 4  ;;  %v6171_v30 = vor.u32 %v6170_v45, %v6167_v62  ;;  %v7011_v61 = vrot.slane %v7009_v19, 1  ;;  %v7013_v39 = vshrl.u32 %v14385_v32, 16 }
 0x297   : > { %v6197_v37 = vrot.slane %v6195_v41, 6  ;;  %v6200_v51 = vrot.slane %v6198_v28, 7  ;;  %v12549_v57 = vpack.c.bf16 %v5732_v10, %v5732_v10  ;;  %v7017_v40 = vshll.u32 %v14388_v26, 16  ;;  %v14413_v10 = vld [vmem:[#allocation2 + $0x10] sm:$0xff]  }
 0x298   : > { %v6193_v13 = vrot.slane %v16852_v46, 4  ;;  %v6172_v55 = vsel %vm16602_vm13, %v6163_v48, %v6171_v30  ;;  %v7012_v53 = vsel %vm913_vm0, %v7007_v34, %v7011_v61  ;;  %v7015_v6 = vor.u32 %v7013_v39, %v7011_v61 }
 0x299   : > { %6275 = vst [vmem:[#allocation2 + $0x88] sm:$0xf] %v6172_v55  ;;  %v6201_v31 = vor.u32 %v6200_v51, %v6197_v37  ;;  %v6175_v12 = vshrl.u32 %v12549_v57, 16  ;;  %v6178_v21 = vshll.u32 %v12549_v57, 16  ;;  %13658 = vmatmul.mubr.bf16.gmra.mxu0 %v7012_v53  ;;  %v7019_v36 = vrot.slane %v7017_v40, 1  ;;  %v14399_v59 = vld [vmem:[#allocation2 + $0x78] sm:$0xff]  }
 0x29a   : > { %v7021_v11 = vshrl.u32 %v14388_v26, 16  ;;  %v7025_v16 = vshll.u32 %v14390_v9, 16  ;;  %v7029_v27 = vshrl.u32 %v14390_v9, 16  ;;  %v7033_v7 = vshll.u32 %v14395_v63, 16  ;;  %13618 = vmatmul.mubr.bf16.gmra.mxu1 %v14399_v59  ;;  %v14402_v25 = vld [vmem:[#allocation2 + $0x78] sm:$0xff]   ;;  %v14420_v59 = vld [vmem:[#allocation2 + $0x20] sm:$0xff]  }
 0x29b   : > { %v6202_v50 = vsel %vm16602_vm13, %v6193_v13, %v6201_v31  ;;  %v6203_v54 = vrot.slane %v6201_v31, 4  ;;  %v6177_v3 = vrot.slane %v6175_v12, 6  ;;  %v6180_v8 = vrot.slane %v6178_v21, 7  ;;  %v14400_v2 = vld [vmem:[#allocation2 + $0x80] sm:$0xff]  }
 0x29c   : > { %6278 = vst [vmem:[#allocation2 + $0x94] sm:$0xf] %v6202_v50  ;;  %v7020_v24 = vsel %vm913_vm0, %v7015_v6, %v7019_v36  ;;  %v7023_v60 = vor.u32 %v7021_v11, %v7019_v36  ;;  %v7027_v20 = vrot.slane %v7025_v16, 1  ;;  %v7035_v44 = vrot.slane %v7033_v7, 1  ;;  %13621 = vmatprep.mubr.bf16.mxu1 %v14400_v2  ;;  %v14403_v47 = vld [vmem:[#allocation2 + $0x80] sm:$0xff]   ;;  %v14415_v36 = vld [vmem:[#allocation2 + $0x10] sm:$0xff]  }
 0x29d   : > { %v6173_v32 = vrot.slane %v6171_v30, 4  ;;  %v6280_v0 = vsel %vm16151_vm8, %v6203_v54, %v6279_v22  ;;  %v6181_v38 = vor.u32 %v6180_v8, %v6177_v3  ;;  %13661 = vmatprep.mubr.bf16.mxu0 %v7020_v24  ;;  %v7041_v15 = vshll.u32 %v14397_v42, 16  ;;  %v14417_v30 = vld [vmem:[#allocation2 + $0x18] sm:$0xff]   ;;  %v14422_v16 = vld [vmem:[#allocation2 + $0x28] sm:$0xff]  }
 0x29e   : > { %6281 = vst [vmem:[#allocation2 + $0x98] sm:$0x3] %v6280_v0  ;;  %v7028_v52 = vsel %vm913_vm0, %v7023_v60, %v7027_v20  ;;  %v7031_v43 = vor.u32 %v7029_v27, %v7027_v20  ;;  %v7049_v5 = vshll.u32 %v14402_v25, 16  ;;  %v7037_v29 = vshrl.u32 %v14395_v63, 16  ;;  %v14423_v31 = vld [vmem:[#allocation4 + $0x130] sm:$0xff]   ;;  %v14587_v54 = vld [vmem:[#allocation4 + $0x138] sm:$0xff]  }
 0x29f   : > { %v6182_v33 = vsel %vm16602_vm13, %v6173_v32, %v6181_v38  ;;  %v6183_v18 = vrot.slane %v6181_v38, 4  ;;  %v7043_v58 = vrot.slane %v7041_v15, 1  ;;  %v7045_v1 = vshrl.u32 %v14397_v42, 16  ;;  %v14414_v50 = vld [vmem:[#allocation2 + $0x8] sm:$0xfe]   ;;  %v14428_v8 = vld [vmem:[#allocation4 + $0x128] sm:$0xff]  }
 0x2a0   : > { %6276 = vst [vmem:[#allocation2 + $0x8c] sm:$0xf] %v6182_v33  ;;  %v7036_v26 = vsel %vm913_vm0, %v7031_v43, %v7035_v44  ;;  %v7039_v35 = vor.u32 %v7037_v29, %v7035_v44  ;;  %v7051_v62 = vrot.slane %v7049_v5, 1  ;;  %v7057_v19 = vshll.u32 %v14403_v47, 16  ;;  %v14419_v44 = vld [vmem:[#allocation2 + $0x18] sm:$0xff]   ;;  %v14425_v32 = vld [vmem:[#allocation2 + $0x30] sm:$0xff]  }
 0x2a1   : > { %v6192_v23 = vsel %vm16602_vm13, %v6183_v18, %v16852_v46  ;;  %13662 = vmatmul.mubr.bf16.gmra.mxu0 %v7028_v52  ;;  %v7047_v45 = vor.u32 %v7045_v1, %v7043_v58  ;;  %v7575_v9 = vrot.slane %v14407_v56, 1  ;;  %v7576_v41 = vrot.slane %v14408_v17, 1  ;;  %v14421_v38 = vld [vmem:[#allocation2 + $0x20] sm:$0xff]   ;;  %v14427_v52 = vld [vmem:[#allocation2 + $0x38] sm:$0xff]   ;;  %v14424_v29 = vld [vmem:[#allocation2 + $0x28] sm:$0xff]  }
 0x2a2   : > { %6277 = vst [vmem:[#allocation2 + $0x90] sm:$0xf] %v6192_v23  ;;  %13665 = vmatprep.mubr.bf16.mxu0 %v7036_v26  ;;  %v7044_v28 = vsel %vm913_vm0, %v7039_v35, %v7043_v58  ;;  %v7053_v14 = vshrl.u32 %v14402_v25, 16  ;;  %v7059_v61 = vrot.slane %v7057_v19, 1  ;;  %v7061_v57 = vshrl.u32 %v14403_v47, 16  ;;  %v14438_v18 = vld [vmem:[#allocation4 + $0x118] sm:$0xff]  }
 0x2a3   : > { %v7052_v34 = vsel %vm913_vm0, %v7047_v45, %v7051_v62  ;;  %v7577_v39 = vsel %vm1560_vm1, %v7575_v9, %v7576_v41  ;;  %v7578_v13 = vrot.slane %v14413_v10, 1  ;;  %v7580_v53 = vrot.slane %v14417_v30, 1  ;;  %v14426_v56 = vld [vmem:[#allocation2 + $0x30] sm:$0xff]   ;;  %v14430_v17 = vld [vmem:[#allocation2 + $0x40] sm:$0xff]   ;;  %v14432_v45 = vld [vmem:[#allocation2 + $0x48] sm:$0xff]  }
 0x2a4   : > { %v7055_v37 = vor.u32 %v7053_v14, %v7051_v62  ;;  %v7063_v55 = vor.u32 %v7061_v57, %v7059_v61  ;;  %v7582_v3 = vrot.slane %v14420_v59, 1  ;;  %v8111_v2 = vrot.slane %v14415_v36, 1  ;;  %v14443_v47 = vld [vmem:[#allocation4 + $0x110] sm:$0xff]  }
 0x2a5   : > { %v7579_v21 = vsel %vm1560_vm1, %v7576_v41, %v7578_v13  ;;  %v7581_v11 = vsel %vm1560_vm1, %v7578_v13, %v7580_v53  ;;  %v7584_v24 = vrot.slane %v14422_v16, 1  ;;  %v8110_v20 = vrot.slane %v14414_v50, 1  ;;  %v14449_v35 = vld [vmem:[#allocation4 + $0x170] sm:$0xff]   ;;  %v14450_v41 = vld [vmem:[#allocation4 + $0x108] sm:$0xff]   ;;  %v14459_v13 = vld [vmem:[#allocation4 + $0x158] sm:$0xff]  }
 0x2a6   : > { %v7060_v6 = vsel %vm913_vm0, %v7055_v37, %v7059_v61  ;;  %v7583_v25 = vsel %vm1560_vm1, %v7580_v53, %v7582_v3  ;;  %v8113_v43 = vrot.slane %v14419_v44, 1  ;;  %v7586_v33 = vrot.slane %v14425_v32, 1  ;;  %v14431_v14 = vld [vmem:[#allocation2 + $0x40] sm:$0xff]   ;;  %v14442_v16 = vld [vmem:[#allocation2 + $0x68] sm:$0xff]   ;;  %v14466_v50 = vld [vmem:[#allocation4 + $0x148] sm:$0xff]  }
 0x2a7   : > { %v14406_v48 = vld [vmem:[#allocation2 + $0x88] sm:$0xff]   ;;  %v8112_v0 = vsel %vm1560_vm1, %v8110_v20, %v8111_v2  ;;  %v7585_v15 = vsel %vm1560_vm1, %v7582_v3, %v7584_v24  ;;  %v8115_v5 = vrot.slane %v14421_v38, 1  ;;  %v7588_v26 = vrot.slane %v14427_v52, 1  ;;  %v14464_v36 = vld [vmem:[#allocation4 + $0x150] sm:$0xff]  }
 0x2a8   : > { %v14410_v46 = vld [vmem:[#allocation2 + $0x88] sm:$0xff]   ;;  %13622 = vmatmul.mubr.bf16.gmra.mxu1 %v14406_v48  ;;  %v8114_v23 = vsel %vm1560_vm1, %v8111_v2, %v8113_v43  ;;  %v7587_v58 = vsel %vm1560_vm1, %v7584_v24, %v7586_v33  ;;  %v8117_v19 = vrot.slane %v14424_v29, 1  ;;  %v7590_v9 = vrot.slane %v14430_v17, 1  ;;  %v14429_v48 = vld [vmem:[#allocation2 + $0x38] sm:$0xff]  }
 0x2a9   : > { %13666 = vmatmul.mubr.bf16.gmra.mxu0 %v7044_v28  ;;  %v14411_v63 = vld [vmem:[#allocation2 + $0x90] ss:$0 sps:$4 sm:$0x11]   ;;  %13693 = vmatprep.mubr.bf16.mxu1 %v7577_v39  ;;  %v7065_v51 = vshll.u32 %v14410_v46, 16  ;;  %v7069_v12 = vshrl.u32 %v14410_v46, 16  ;;  %v8116_v1 = vsel %vm1560_vm1, %v8113_v43, %v8115_v5  ;;  %v7589_v62 = vsel %vm1560_vm1, %v7586_v33, %v7588_v26  ;;  %v14452_v28 = vld [vmem:[#allocation4 + $0x168] sm:$0xff]  }
 0x2aa   : > { %13669 = vmatprep.mubr.bf16.mxu0 %v7052_v34  ;;  %v7073_v22 = vshll.u32 %v14411_v63, 16  ;;  %v8119_v10 = vrot.slane %v14426_v56, 1  ;;  %v7592_v34 = vrot.slane %v14432_v45, 1  ;;  %v14456_v46 = vld [vmem:[#allocation4 + $0x160] sm:$0xff]   ;;  %v8118_v30 = vsel %vm1560_vm1, %v8115_v5, %v8117_v19  ;;  %v14453_v56 = vld [vmem:[#allocation2 + $0x80] sm:$0xff]  }
 0x2ab   : > { %v7067_v40 = vrot.slane %v7065_v51, 1  ;;  %v7591_v61 = vsel %vm1560_vm1, %v7588_v26, %v7590_v9  ;;  %v14435_v39 = vld [vmem:[#allocation2 + $0x50] sm:$0xff]   ;;  %v14437_v51 = vld [vmem:[#allocation2 + $0x58] sm:$0xff]   ;;  %v8121_v57 = vrot.slane %v14429_v48, 1  ;;  %v7600_v3 = vrot.slane %v14442_v16, 1  ;;  %v14444_v33 = vld [vmem:[#allocation2 + $0x68] sm:$0xff]  }
 0x2ac   : > { %v7075_v7 = vrot.slane %v7073_v22, 1  ;;  %v8120_v63 = vsel %vm1560_vm1, %v8117_v19, %v8119_v10  ;;  %v7593_v37 = vsel %vm1560_vm1, %v7590_v9, %v7592_v34  ;;  %v8123_v22 = vrot.slane %v14431_v14, 1  ;;  %v14472_v20 = vld [vmem:[#allocation4 + $0x140] sm:$0xff]  }
 0x2ad   : > { %v7068_v42 = vsel %vm913_vm0, %v7063_v55, %v7067_v40  ;;  %v7071_v27 = vor.u32 %v7069_v12, %v7067_v40  ;;  %v7594_v40 = vrot.slane %v14435_v39, 1  ;;  %v16891_v55 = vld [vmem:[#allocation4 + $0x1b8] sm:$0xff]   ;;  %v7596_v53 = vrot.slane %v14437_v51, 1  ;;  %v14436_v12 = vld [vmem:[#allocation2 + $0x50] sm:$0xff]  }
 0x2ae   : > { %v8124_v59 = vsel %vm1560_vm1, %v8121_v57, %v8123_v22  ;;  %v14463_v5 = vld [vmem:[#allocation2 + $0x10] sm:$0xff]  }
 0x2af   : > { %v7076_v60 = vsel %vm913_vm0, %v7071_v27, %v7075_v7  ;;  %v8654_v19 = vshrl.u32 %v14463_v5, 16  ;;  %v8657_v9 = vshll.u32 %v14463_v5, 16  ;;  %v14476_v16 = vld [vmem:[#allocation2 + $0x30] sm:$0xff]  }
 0x2b0   : > { %13694 = vmatmul.mubr.bf16.vlgmr.msra.gmra.mxu1 %v7579_v21  ;;  %v14440_v21 = vld [vmem:[#allocation2 + $0x60] sm:$0xff]  }
 0x2b1   : > { %13670 = vmatmul.mubr.bf16.gmra.mxu0 %v7060_v6  ;;  %13697 = vmatprep.mubr.bf16.mxu1 %v7581_v11  ;;  %v14434_v6 = vld [vmem:[#allocation2 + $0x48] sm:$0xff]   ;;  %v7597_v11 = vsel %vm1560_vm1, %v7594_v40, %v7596_v53  ;;  %v7598_v7 = vrot.slane %v14440_v21, 1 }
 0x2b2   : > { %13673 = vmatprep.mubr.bf16.mxu0 %v7068_v42  ;;  %13782 = vmatpush3.bf16.msra.mxu1 %v14587_v54  ;;  %v8122_v42 = vsel %vm1560_vm1, %v8119_v10, %v8121_v57  ;;  %v8125_v27 = vrot.slane %v14434_v6, 1  ;;  %v8127_v54 = vrot.slane %v14436_v12, 1  ;;  %v14467_v10 = vld [vmem:[#allocation2 + $0x18] sm:$0xff]   ;;  %v14474_v21 = vld [vmem:[#allocation2 + $0x28] sm:$0xff]  }
 0x2b3   : > { %13783 = vmatprep.subr.bf16.mxu1 %v14423_v31  ;;  %v7599_v24 = vsel %vm1560_vm1, %v7596_v53, %v7598_v7  ;;  %v7601_v32 = vsel %vm1560_vm1, %v7598_v7, %v7600_v3  ;;  %v8663_v53 = vshrl.u32 %v14467_v10, 16  ;;  %v8666_v6 = vshll.u32 %v14467_v10, 16 }
 0x2b4   : > { %v8126_v2 = vsel %vm1560_vm1, %v8123_v22, %v8125_v27  ;;  %v8128_v44 = vsel %vm1560_vm1, %v8125_v27, %v8127_v54 }
 0x2b6   : > { %13784 = vmatpush3.bf16.msra.mxu1 %v14423_v31  ;;  %v7595_v31 = vsel %vm1560_vm1, %v7592_v34, %v7594_v40 }
 0x2b7   : > { %13785 = vmatprep.subr.bf16.mxu1 %v14428_v8 }
 0x2b8   : > { %13698 = vmatmul.mubr.bf16.gmra.mxu1 %v7583_v25  ;;  %v14441_v25 = vld [vmem:[#allocation2 + $0x60] sm:$0xff]  }
 0x2b9   : > { %13674 = vmatmul.mubr.bf16.gmra.mxu0 %v7076_v60  ;;  %13701 = vmatprep.mubr.bf16.mxu1 %v7585_v15  ;;  %v14446_v60 = vld [vmem:[#allocation2 + $0x70] sm:$0xff]   ;;  %v16902_v15 = vld [vmem:[#allocation4 + $0x1f8] sm:$0xff]   ;;  %v8131_v52 = vrot.slane %v14441_v25, 1  ;;  %v8684_v25 = vshll.u32 %v14474_v21, 16 }
 0x2ba   : > { %13745 = vmatprep.mubr.bf16.mxu0 %v8112_v0  ;;  %13786 = vmatpush3.bf16.msra.mxu1 %v14428_v8  ;;  %v14439_v8 = vld [vmem:[#allocation2 + $0x58] sm:$0xff]   ;;  %v7602_v38 = vrot.slane %v14446_v60, 1 }
 0x2bb   : > { %13787 = vmatprep.subr.bf16.mxu1 %v14433_v49  ;;  %v8129_v0 = vrot.slane %v14439_v8, 1 }
 0x2bc   : > { %v7603_v29 = vsel %vm1560_vm1, %v7600_v3, %v7602_v38 }
 0x2bd   : > { %v8130_v26 = vsel %vm1560_vm1, %v8127_v54, %v8129_v0  ;;  %v8132_v17 = vsel %vm1560_vm1, %v8129_v0, %v8131_v52  ;;  %v8668_v54 = vrot.slane %v8666_v6, 2  ;;  %v8690_v0 = vshrl.u32 %v14476_v16, 16 }
 0x2be   : > { %13788 = vmatpush3.bf16.msra.mxu1 %v14433_v49  ;;  %v14448_v49 = vld [vmem:[#allocation2 + $0x78] sm:$0xff]  }
 0x2bf   : > { %13789 = vmatprep.subr.bf16.mxu1 %v14438_v18  ;;  %v7604_v43 = vrot.slane %v14448_v49, 1 }
 0x2c0   : > { %13702 = vmatmul.mubr.bf16.gmra.mxu1 %v7587_v58  ;;  %v14455_v58 = vld [vmem:[#allocation2 + $0x88] sm:$0xff]  }
 0x2c1   : > { %13746 = vmatmul.mubr.bf16.vlgmr.msra.gmra.mxu0 %v8114_v23  ;;  %13705 = vmatprep.mubr.bf16.mxu1 %v7589_v62  ;;  %v7605_v23 = vsel %vm1560_vm1, %v7602_v38, %v7604_v43  ;;  %v7608_v45 = vrot.slane %v14455_v58, 1  ;;  %v8693_v38 = vshll.u32 %v14476_v16, 16 }
 0x2c2   : > { %13749 = vmatprep.mubr.bf16.mxu0 %v8116_v1  ;;  %13790 = vmatpush3.bf16.msra.mxu1 %v14438_v18  ;;  %v14447_v18 = vld [vmem:[#allocation2 + $0x70] sm:$0xff]   ;;  %v7606_v1 = vrot.slane %v14453_v56, 1  ;;  %v14479_v56 = vld [vmem:[#allocation2 + $0x38] sm:$0xff]  }
 0x2c3   : > { %13834 = vmatpush3.bf16.msra.mxu0 %v16811_v4  ;;  %13791 = vmatprep.subr.bf16.mxu1 %v14443_v47  ;;  %v14458_v4 = vld [vmem:[#allocation4 + $0x100] sm:$0xff]   ;;  %v8135_v62 = vrot.slane %v14447_v18, 1  ;;  %v14465_v18 = vld [vmem:[#allocation2 + $0x98] ss:$0 sps:$4 sm:$0x11]  }
 0x2c4   : > { %13835 = vmatprep.subr.bf16.mxu0 %v14449_v35  ;;  %v7609_v39 = vsel %vm1560_vm1, %v7606_v1, %v7608_v45 }
 0x2c6   : > { %13792 = vmatpush3.bf16.msra.mxu1 %v14443_v47  ;;  %v14462_v47 = vld [vmem:[#allocation2 + $0x8] sm:$0xfe]  }
 0x2c7   : > { %13836 = vmatpush3.bf16.msra.mxu0 %v14449_v35  ;;  %13793 = vmatprep.subr.bf16.mxu1 %v14450_v41  ;;  %v8133_v35 = vrot.slane %v14444_v33, 1  ;;  %v8646_v34 = vshrl.u32 %v14462_v47, 16  ;;  %v8649_v48 = vshll.u32 %v14462_v47, 16  ;;  %v8692_v47 = vrot.slane %v8690_v0, 1  ;;  %v14491_v0 = vld [vmem:[#allocation2 + $0x60] sm:$0xff]  }
 0x2c8   : > { %13837 = vmatprep.subr.bf16.mxu0 %v14452_v28  ;;  %13706 = vmatmul.mubr.bf16.gmra.mxu1 %v7591_v61 }
 0x2c9   : > { %13750 = vmatmul.mubr.bf16.gmra.mxu0 %v8118_v30  ;;  %13709 = vmatprep.mubr.bf16.mxu1 %v7593_v37  ;;  %v8134_v14 = vsel %vm1560_vm1, %v8131_v52, %v8133_v35  ;;  %v14454_v30 = vld [vmem:[#allocation2 + $0x80] sm:$0xff]   ;;  %v8136_v61 = vsel %vm1560_vm1, %v8133_v35, %v8135_v62  ;;  %v8648_v57 = vrot.slane %v8646_v34, 1  ;;  %v8651_v40 = vrot.slane %v8649_v48, 2  ;;  %v16917_v52 = vld [vmem:[#allocation2 + $0x10] sm:$0xff]  }
 0x2ca   : > { %13753 = vmatprep.mubr.bf16.mxu0 %v8120_v63  ;;  %13794 = vmatpush3.bf16.msra.mxu1 %v14450_v41  ;;  %v14451_v41 = vld [vmem:[#allocation2 + $0x78] sm:$0xff]   ;;  %v8659_v63 = vrot.slane %v8657_v9, 2  ;;  %v14471_v37 = vld [vmem:[#allocation2 + $0x20] sm:$0xff]   ;;  %v8695_v35 = vrot.slane %v8693_v38, 2  ;;  %v8702_v9 = vshll.u32 %v14479_v56, 16  ;;  %v8145_v48 = vrot.slane %v14465_v18, 1 }
 0x2cb   : > { %13838 = vmatpush3.bf16.msra.mxu0 %v14452_v28  ;;  %13795 = vmatprep.subr.bf16.mxu1 %v14458_v4  ;;  %v14460_v28 = vld [vmem:[#allocation2 + $0x90] ss:$0 sps:$4 sm:$0x11]   ;;  %v8137_v51 = vrot.slane %v14451_v41, 1  ;;  %v8675_v12 = vshll.u32 %v14471_v37, 16  ;;  %v9314_v41 = vrot.slane %v16917_v52, 2 }
 0x2cc   : > { %13839 = vmatprep.subr.bf16.mxu0 %v14456_v46  ;;  %v7610_v22 = vrot.slane %v14460_v28, 1  ;;  %v8696_v28 = vor.u32 %v8695_v35, %v8692_v47  ;;  %v16946_v47 = vld [vmem:[#allocation2 + $0x40] sm:$0xff]  }
 0x2cd   : > { %v8138_v27 = vsel %vm1560_vm1, %v8135_v62, %v8137_v51  ;;  %v14482_v62 = vld [vmem:[#allocation4 + $0x1a8] sm:$0xff]  }
 0x2ce   : > { %13796 = vmatpush3.bf16.msra.mxu1 %v14458_v4  ;;  %v8656_v4 = vrot.slane %v8654_v19, 1  ;;  %v7611_v7 = vsel %vm1560_vm1, %v7608_v45, %v7610_v22  ;;  %v8699_v19 = vshrl.u32 %v14479_v56, 16 }
 0x2cf   : > { %13840 = vmatpush3.bf16.msra.mxu0 %v14456_v46  ;;  %13885 = vmatprep.subr.bf16.mxu1 %v16891_v55  ;;  %v7607_v46 = vsel %vm1560_vm1, %v7604_v43, %v7606_v1  ;;  %v14477_v43 = vld [vmem:[#allocation4 + $0x1b0] sm:$0xff]   ;;  %v14468_v1 = vld [vmem:[#allocation2 + $0x8] sm:$0xfc]  }
 0x2d0   : > { %13841 = vmatprep.subr.bf16.mxu0 %v14459_v13  ;;  %13710 = vmatmul.mubr.bf16.gmra.mxu1 %v7595_v31  ;;  %v8672_v31 = vshrl.u32 %v14471_v37, 16  ;;  %v14486_v37 = vld [vmem:[#allocation2 + $0x50] sm:$0xff]  }
 0x2d1   : > { %13754 = vmatmul.mubr.bf16.gmra.mxu0 %v8122_v42  ;;  %13713 = vmatprep.mubr.bf16.mxu1 %v7597_v11  ;;  %v8660_v42 = vor.u32 %v8659_v63, %v8656_v4  ;;  %v8652_v11 = vor.u32 %v8651_v40, %v8648_v57  ;;  %v8701_v4 = vrot.slane %v8699_v19, 1  ;;  %v8704_v63 = vrot.slane %v8702_v9, 2 }
 0x2d2   : > { %13757 = vmatprep.mubr.bf16.mxu0 %v8124_v59  ;;  %v14461_v59 = vld [vmem:[#allocation2 + $0x90] sm:$0xff]  }
 0x2d3   : > { %13842 = vmatpush3.bf16.msra.mxu0 %v14459_v13  ;;  %v8139_v13 = vrot.slane %v14454_v30, 1  ;;  %v8661_v8 = vsel %vm2631_vm3, %v8652_v11, %v8660_v42  ;;  %v16925_v30 = vld [vmem:[#allocation2 + $0x20] sm:$0xff]   ;;  %v8729_v11 = vshll.u32 %v14486_v37, 16 }
 0x2d4   : > { %13843 = vmatprep.subr.bf16.mxu0 %v14464_v36 }
 0x2d5   : > { %v8140_v3 = vsel %vm1560_vm1, %v8137_v51, %v8139_v13  ;;  %v14487_v51 = vld [vmem:[#allocation4 + $0x1a0] sm:$0xff]  }
 0x2d7   : > { %13844 = vmatpush3.bf16.msra.mxu0 %v14464_v36  ;;  %v14457_v36 = vld [vmem:[#allocation2 + $0x88] sm:$0xff]  }
 0x2d8   : > { %13845 = vmatprep.subr.bf16.mxu0 %v14466_v50  ;;  %13714 = vmatmul.mubr.bf16.gmra.mxu1 %v7599_v24  ;;  %v8677_v24 = vrot.slane %v8675_v12, 2  ;;  %v8141_v60 = vrot.slane %v14457_v36, 1  ;;  %v8705_v12 = vor.u32 %v8704_v63, %v8701_v4  ;;  %v14488_v4 = vld [vmem:[#allocation2 + $0x48] sm:$0xff]  }
 0x2d9   : > { %13758 = vmatmul.mubr.bf16.gmra.mxu0 %v8126_v2  ;;  %13717 = vmatprep.mubr.bf16.mxu1 %v7601_v32  ;;  %v8674_v2 = vrot.slane %v8672_v31, 1  ;;  %v8143_v32 = vrot.slane %v14461_v59, 1  ;;  %v14492_v31 = vld [vmem:[#allocation4 + $0x198] sm:$0xff]   ;;  %v8726_v59 = vshrl.u32 %v14486_v37, 16 }
 0x2da   : > { %13761 = vmatprep.mubr.bf16.mxu0 %v8128_v44  ;;  %v8681_v44 = vshrl.u32 %v14474_v21, 16  ;;  %v8142_v33 = vsel %vm1560_vm1, %v8139_v13, %v8141_v60  ;;  %v9318_v21 = vrot.slane %v16925_v30, 2 }
 0x2db   : > { %13846 = vmatpush3.bf16.msra.mxu0 %v14466_v50  ;;  %v8665_v50 = vrot.slane %v8663_v53, 1  ;;  %v8678_v49 = vor.u32 %v8677_v24, %v8674_v2  ;;  %v8706_v2 = vsel %vm2631_vm3, %v8696_v28, %v8705_v12 }
 0x2dc   : > { %13847 = vmatprep.subr.bf16.mxu0 %v14472_v20 }
 0x2df   : > { %13848 = vmatpush3.bf16.msra.mxu0 %v14472_v20  ;;  %v8669_v20 = vor.u32 %v8668_v54, %v8665_v50  ;;  %v14489_v50 = vld [vmem:[#allocation2 + $0x58] sm:$0xff]  }
 0x2e0   : > { %13937 = vmatprep.subr.bf16.mxu0 %v16902_v15  ;;  %13718 = vmatmul.mubr.bf16.gmra.mxu1 %v7603_v29  ;;  %v8686_v29 = vrot.slane %v8684_v25, 2  ;;  %v14497_v54 = vld [vmem:[#allocation4 + $0x190] sm:$0xff]  }
 0x2e1   : > { %13762 = vmatmul.mubr.bf16.gmra.mxu0 %v8130_v26  ;;  %13721 = vmatprep.mubr.bf16.mxu1 %v7605_v23  ;;  %v8670_v5 = vsel %vm2631_vm3, %v8660_v42, %v8669_v20  ;;  %v8683_v26 = vrot.slane %v8681_v44, 1  ;;  %v8144_v23 = vsel %vm1560_vm1, %v8141_v60, %v8143_v32  ;;  %v8679_v58 = vsel %vm2631_vm3, %v8669_v20, %v8678_v49  ;;  %v14503_v60 = vld [vmem:[#allocation4 + $0x1f0] sm:$0xff]   ;;  %v16939_v44 = vld [vmem:[#allocation2 + $0x30] sm:$0xff]  }
 0x2e2   : > { %13765 = vmatprep.mubr.bf16.mxu0 %v8132_v17  ;;  %v14481_v17 = vld [vmem:[#allocation2 + $0x40] sm:$0xff]  }
 0x2e3   : > { %v8687_v45 = vor.u32 %v8686_v29, %v8683_v26  ;;  %v8708_v10 = vshrl.u32 %v14481_v17, 16  ;;  %v8711_v34 = vshll.u32 %v14481_v17, 16  ;;  %v14506_v26 = vld [vmem:[#allocation4 + $0x1e8] sm:$0xff]   ;;  %v9322_v29 = vrot.slane %v16939_v44, 2 }
 0x2e4   : > { %v8744_v17 = vshrl.u32 %v14491_v0, 16 }
 0x2e5   : > { %v8697_v40 = vsel %vm2631_vm3, %v8687_v45, %v8696_v28  ;;  %v8710_v13 = vrot.slane %v8708_v10, 1  ;;  %v8713_v22 = vrot.slane %v8711_v34, 2  ;;  %v14512_v28 = vld [vmem:[#allocation4 + $0x180] sm:$0xff]  }
 0x2e7   : > { %v8714_v36 = vor.u32 %v8713_v22, %v8710_v13 }
 0x2e8   : > { %13722 = vmatmul.mubr.bf16.gmra.mxu1 %v7607_v46  ;;  %v9313_v46 = vrot.slane %v14468_v1, 2  ;;  %v14494_v1 = vld [vmem:[#allocation2 + $0x68] sm:$0xff]  }
 0x2e9   : > { %13766 = vmatmul.mubr.bf16.gmra.mxu0 %v8134_v14  ;;  %13725 = vmatprep.mubr.bf16.mxu1 %v7609_v39  ;;  %v14473_v14 = vld [vmem:[#allocation2 + $0x18] sm:$0xff]   ;;  %v8146_v39 = vsel %vm1560_vm1, %v8143_v32, %v8145_v48  ;;  %v8715_v25 = vsel %vm2631_vm3, %v8705_v12, %v8714_v36  ;;  %v8728_v32 = vrot.slane %v8726_v59, 1  ;;  %v8746_v48 = vrot.slane %v8744_v17, 1  ;;  %v14502_v12 = vld [vmem:[#allocation2 + $0x80] sm:$0xff]  }
 0x2ea   : > { %13769 = vmatprep.mubr.bf16.mxu0 %v8136_v61  ;;  %v14484_v61 = vld [vmem:[#allocation2 + $0x48] sm:$0xff]   ;;  %v9315_v57 = vsel %vm3300_vm2, %v9313_v46, %v9314_v41  ;;  %v9316_v53 = vrot.slane %v14473_v14, 2  ;;  %v8756_v37 = vshll.u32 %v14494_v1, 16 }
 0x2eb   : > { %v8717_v6 = vshrl.u32 %v14484_v61, 16  ;;  %v8720_v42 = vshll.u32 %v14484_v61, 16  ;;  %v9326_v61 = vrot.slane %v16946_v47, 2 }
 0x2ec   : > { %v9319_v20 = vsel %vm3300_vm2, %v9316_v53, %v9318_v21  ;;  %v8758_v59 = vrot.slane %v8756_v37, 2 }
 0x2ed   : > { %v8722_v24 = vrot.slane %v8720_v42, 2 }
 0x2f0   : > { %13726 = vmatmul.mubr.bf16.gmra.mxu1 %v7611_v7  ;;  %v8719_v7 = vrot.slane %v8717_v6, 1  ;;  %v14500_v6 = vld [vmem:[#allocation2 + $0x78] sm:$0xff]  }
 0x2f1   : > { %13770 = vmatmul.mubr.bf16.gmra.mxu0 %v8138_v27  ;;  %13797 = vmatprep.mubr.bf16.mxu1 %v8661_v8  ;;  %v14478_v27 = vld [vmem:[#allocation2 + $0x28] sm:$0xff]   ;;  %v9317_v8 = vsel %vm3300_vm2, %v9314_v41, %v9316_v53 }
 0x2f2   : > { %13773 = vmatprep.mubr.bf16.mxu0 %v8140_v3  ;;  %v9320_v52 = vrot.slane %v14478_v27, 2  ;;  %v8723_v18 = vor.u32 %v8722_v24, %v8719_v7  ;;  %v14510_v41 = vld [vmem:[#allocation4 + $0x1e0] sm:$0xff]   ;;  %v14518_v27 = vld [vmem:[#allocation4 + $0x1d0] sm:$0xff]  }
 0x2f4   : > { %v9323_v10 = vsel %vm3300_vm2, %v9320_v52, %v9322_v29 }
 0x2f8   : > { %13798 = vmatmul.mubr.bf16.vlgmr.msra.gmra.mxu1 %v8670_v5  ;;  %v8738_v5 = vshll.u32 %v14489_v50, 16 }
 0x2f9   : > { %13774 = vmatmul.mubr.bf16.gmra.mxu0 %v8142_v33  ;;  %13801 = vmatprep.mubr.bf16.mxu1 %v8679_v58  ;;  %v14504_v33 = vld [vmem:[#allocation4 + $0x188] sm:$0xff]  }
 0x2fa   : > { %13777 = vmatprep.mubr.bf16.mxu0 %v8144_v23  ;;  %13886 = vmatpush3.bf16.msra.mxu1 %v16891_v55  ;;  %v8688_v55 = vsel %vm2631_vm3, %v8678_v49, %v8687_v45  ;;  %v8731_v49 = vrot.slane %v8729_v11, 2  ;;  %v8747_v23 = vshll.u32 %v14491_v0, 16  ;;  %v14483_v58 = vld [vmem:[#allocation2 + $0x38] sm:$0xff]   ;;  %v8724_v45 = vsel %vm2631_vm3, %v8714_v36, %v8723_v18 }
 0x2fb   : > { %13887 = vmatprep.subr.bf16.mxu1 %v14477_v43  ;;  %v8740_v9 = vrot.slane %v8738_v5, 2  ;;  %v9324_v30 = vrot.slane %v14483_v58, 2  ;;  %v8780_v0 = vshrl.u32 %v14502_v12, 16  ;;  %v16982_v5 = vld [vmem:[%s17941_s4] ss:$0 sm:$0xff]  ;;  %v14509_v58 = vld [vmem:[#allocation2 + $0x90] sm:$0xff]  }
 0x2fc   : > { %v8732_v56 = vor.u32 %v8731_v49, %v8728_v32  ;;  %v8749_v14 = vrot.slane %v8747_v23, 2  ;;  %v14520_v32 = vld [vmem:[#allocation4 + $0x1c8] sm:$0xff]   ;;  %v14507_v23 = vld [vmem:[#allocation2 + $0x88] sm:$0xff]  }
 0x2fd   : > { %v9327_v7 = vsel %vm3300_vm2, %v9324_v30, %v9326_v61 }
 0x2fe   : > { %13888 = vmatpush3.bf16.msra.mxu1 %v14477_v43  ;;  %v8735_v43 = vshrl.u32 %v14489_v50, 16  ;;  %v8733_v34 = vsel %vm2631_vm3, %v8723_v18, %v8732_v56  ;;  %v8750_v13 = vor.u32 %v8749_v14, %v8746_v48  ;;  %v16977_v18 = vld [vmem:[#allocation2 + $0x60] sm:$0xff]   ;;  %v8789_v48 = vshrl.u32 %v14507_v23, 16 }
 0x2ff   : > { %13889 = vmatprep.subr.bf16.mxu1 %v14482_v62  ;;  %v8792_v14 = vshll.u32 %v14507_v23, 16 }
 0x300   : > { %13802 = vmatmul.mubr.bf16.gmra.mxu1 %v8688_v55  ;;  %v8737_v19 = vrot.slane %v8735_v43, 1  ;;  %v14513_v55 = vld [vmem:[#allocation4 + $0x1d8] sm:$0xff]  }
 0x301   : > { %13778 = vmatmul.mubr.bf16.gmra.mxu0 %v8146_v39  ;;  %13805 = vmatprep.mubr.bf16.mxu1 %v8697_v40  ;;  %v8753_v39 = vshrl.u32 %v14494_v1, 16  ;;  %v16961_v40 = vld [vmem:[#allocation2 + $0x50] sm:$0xff]  }
 0x302   : > { %13849 = vmatprep.mubr.bf16.mxu0 %v9315_v57  ;;  %13890 = vmatpush3.bf16.msra.mxu1 %v14482_v62  ;;  %v14496_v62 = vld [vmem:[#allocation2 + $0x70] sm:$0xff]   ;;  %v8741_v63 = vor.u32 %v8740_v9, %v8737_v19  ;;  %v16959_v57 = vld [vmem:[#allocation4 + $0x238] sm:$0xff]   ;;  %v9330_v24 = vrot.slane %v16961_v40, 2 }
 0x303   : > { %13891 = vmatprep.subr.bf16.mxu1 %v14487_v51  ;;  %v8762_v22 = vshrl.u32 %v14496_v62, 16  ;;  %v8765_v53 = vshll.u32 %v14496_v62, 16  ;;  %v14526_v1 = vld [vmem:[#allocation4 + $0x1c0] sm:$0xff]  }
 0x304   : > { %v16932_v16 = vpop.f32.mrf.mxu1  ;;  %v8742_v36 = vsel %vm2631_vm3, %v8732_v56, %v8741_v63  ;;  %v8751_v50 = vsel %vm2631_vm3, %v8741_v63, %v8750_v13  ;;  %v8801_v63 = vshll.u32 %v14509_v58, 16 }
 0x306   : > { %13892 = vmatpush3.bf16.msra.mxu1 %v14487_v51  ;;  %v16934_v3 = vpop.f32.mrf.mxu1 }
 0x307   : > { %13893 = vmatprep.subr.bf16.mxu1 %v14492_v31 }
 0x308   : > { %13806 = vmatmul.mubr.bf16.gmra.mxu1 %v8706_v2  ;;  %v16942_v38 = vpop.f32.mrf.mxu1  ;;  %v9328_v2 = vrot.slane %v14488_v4, 2 }
 0x309   : > { %13850 = vmatmul.mubr.bf16.vlgmr.msra.gmra.mxu0 %v9317_v8  ;;  %13809 = vmatprep.mubr.bf16.mxu1 %v8715_v25  ;;  %v8767_v8 = vrot.slane %v8765_v53, 2  ;;  %v8774_v25 = vshll.u32 %v14500_v6, 16  ;;  %v14498_v53 = vld [vmem:[#allocation2 + $0x68] sm:$0xff]  }
 0x30a   : > { %13853 = vmatprep.mubr.bf16.mxu0 %v9319_v20  ;;  %13894 = vmatpush3.bf16.msra.mxu1 %v14492_v31  ;;  %v16948_v35 = vpop.f32.mrf.mxu1  ;;  %v8755_v31 = vrot.slane %v8753_v39, 1  ;;  %v9331_v62 = vsel %vm3300_vm2, %v9328_v2, %v9330_v24 }
 0x30b   : > { %13938 = vmatpush3.bf16.msra.mxu0 %v16902_v15  ;;  %13895 = vmatprep.subr.bf16.mxu1 %v14497_v54  ;;  %v9321_v15 = vsel %vm3300_vm2, %v9318_v21, %v9320_v52  ;;  %v9325_v21 = vsel %vm3300_vm2, %v9322_v29, %v9324_v30  ;;  %v8783_v52 = vshll.u32 %v14502_v12, 16  ;;  %v8776_v17 = vrot.slane %v8774_v25, 2 }
 0x30c   : > { %13939 = vmatprep.subr.bf16.mxu0 %v14503_v60  ;;  %v8759_v44 = vor.u32 %v8758_v59, %v8755_v31  ;;  %v8798_v30 = vshrl.u32 %v14509_v58, 16  ;;  %v8791_v31 = vrot.slane %v8789_v48, 1  ;;  %v8794_v12 = vrot.slane %v8792_v14, 2  ;;  %v14501_v59 = vld [vmem:[#allocation2 + $0x70] sm:$0xff]   ;;  %v14517_v58 = vld [vmem:[#allocation2 + $0x18] sm:$0xff]  }
 0x30d   : > { %v8785_v19 = vrot.slane %v8783_v52, 2  ;;  %v9338_v25 = vrot.slane %v14501_v59, 2  ;;  %v9849_v48 = vrot.slane %v14517_v58, 2  ;;  %v14522_v59 = vld [vmem:[#allocation2 + $0x10] sm:$0xfc]  }
 0x30e   : > { %13896 = vmatpush3.bf16.msra.mxu1 %v14497_v54  ;;  %v8764_v54 = vrot.slane %v8762_v22, 1  ;;  %v8760_v29 = vsel %vm2631_vm3, %v8750_v13, %v8759_v44  ;;  %v6677_v13 = vadd.f32 %v16942_v38, %v16982_v5  ;;  %v6675_v38 = vadd.f32 %v16982_v5, %v16948_v35  ;;  %v14519_v58 = vld [vmem:[#allocation2 + $0x98] ss:$0 sps:$4 sm:$0x33]  }
 0x30f   : > { %13940 = vmatpush3.bf16.msra.mxu0 %v14503_v60  ;;  %13897 = vmatprep.subr.bf16.mxu1 %v14504_v33  ;;  %v8771_v60 = vshrl.u32 %v14500_v6, 16 }
 0x310   : > { %13941 = vmatprep.subr.bf16.mxu0 %v14506_v26  ;;  %13810 = vmatmul.mubr.bf16.gmra.mxu1 %v8724_v45  ;;  %v8768_v49 = vor.u32 %v8767_v8, %v8764_v54  ;;  %v8782_v45 = vrot.slane %v8780_v0, 1  ;;  %v14514_v8 = vld [vmem:[#allocation2 + $0x98] ss:$0 sps:$4 sm:$0x33]  }
 0x311   : > { %13854 = vmatmul.mubr.bf16.gmra.mxu0 %v9321_v15  ;;  %13813 = vmatprep.mubr.bf16.mxu1 %v8733_v34  ;;  %v16954_v46 = vpop.f32.mrf.mxu1  ;;  %v8773_v56 = vrot.slane %v8771_v60, 1  ;;  %v9336_v60 = vrot.slane %v14498_v53, 2  ;;  %v8810_v0 = vshll.u32 %v14514_v8, 16  ;;  %v14521_v53 = vld [vmem:[#allocation2 + $0x20] sm:$0xff]  }
 0x312   : > { %13857 = vmatprep.mubr.bf16.mxu0 %v9323_v10  ;;  %13898 = vmatpush3.bf16.msra.mxu1 %v14504_v33  ;;  %v14493_v33 = vld [vmem:[#allocation2 + $0x58] sm:$0xff]   ;;  %v8769_v15 = vsel %vm2631_vm3, %v8759_v44, %v8768_v49  ;;  %v8786_v39 = vor.u32 %v8785_v19, %v8782_v45  ;;  %v8795_v44 = vor.u32 %v8794_v12, %v8791_v31  ;;  %v14515_v31 = vld [vmem:[#allocation2 + $0x90] sm:$0xff]  }
 0x313   : > { %13942 = vmatpush3.bf16.msra.mxu0 %v14506_v26  ;;  %v16957_v51 = vpop.f32.mrf.mxu1  ;;  %13899 = vmatprep.subr.bf16.mxu1 %v14512_v28  ;;  %v9329_v26 = vsel %vm3300_vm2, %v9326_v61, %v9328_v2  ;;  %v9332_v9 = vrot.slane %v14493_v33, 2  ;;  %v8777_v10 = vor.u32 %v8776_v17, %v8773_v56  ;;  %v14505_v33 = vld [vmem:[#allocation2 + $0x78] sm:$0xff]   ;;  %v14508_v56 = vld [vmem:[#allocation2 + $0x80] sm:$0xff]  }
 0x314   : > { %13943 = vmatprep.subr.bf16.mxu0 %v14510_v41 }
 0x315   : > { %v16963_v42 = vpop.f32.mrf.mxu1  ;;  %v9333_v40 = vsel %vm3300_vm2, %v9330_v24, %v9332_v9  ;;  %v8778_v6 = vsel %vm2631_vm3, %v8768_v49, %v8777_v10  ;;  %v8807_v49 = vshrl.u32 %v14514_v8, 16 }
 0x316   : > { %13900 = vmatpush3.bf16.msra.mxu1 %v14512_v28  ;;  %v6676_v28 = vadd.f32 %v16932_v16, %v16982_v5 }
 0x317   : > { %13944 = vmatpush3.bf16.msra.mxu0 %v14510_v41  ;;  %v16967_v11 = vpop.f32.mrf.mxu1  ;;  %13989 = vmatprep.subr.bf16.mxu1 %v16959_v57  ;;  %v9334_v41 = vrot.slane %v16977_v18, 2  ;;  %v6680_v18 = vadd.f32 %v16954_v46, %v16982_v5  ;;  %v8812_v46 = vrot.slane %v8810_v0, 2  ;;  %v14527_v0 = vld [vmem:[#allocation2 + $0x20] sm:$0xff]  }
 0x318   : > { %13945 = vmatprep.subr.bf16.mxu0 %v14513_v55  ;;  %13814 = vmatmul.mubr.bf16.gmra.mxu1 %v8742_v36 }
 0x319   : > { %13858 = vmatmul.mubr.bf16.gmra.mxu0 %v9325_v21  ;;  %13817 = vmatprep.mubr.bf16.mxu1 %v8751_v50  ;;  %v9335_v16 = vsel %vm3300_vm2, %v9332_v9, %v9334_v41  ;;  %v9337_v35 = vsel %vm3300_vm2, %v9334_v41, %v9336_v60  ;;  %v14516_v9 = vld [vmem:[#allocation2 + $0x10] sm:$0xfc]   ;;  %v9340_v41 = vrot.slane %v14505_v33, 2 }
 0x31a   : > { %13861 = vmatprep.mubr.bf16.mxu0 %v9327_v7  ;;  %v16973_v20 = vpop.f32.mrf.mxu1  ;;  %v8803_v7 = vrot.slane %v8801_v63, 2  ;;  %v9848_v63 = vrot.slane %v14516_v9, 2 }
 0x31b   : > { %13946 = vmatpush3.bf16.msra.mxu0 %v14513_v55  ;;  %v6674_v55 = vadd.f32 %v16982_v5, %v16934_v3  ;;  %v8800_v3 = vrot.slane %v8798_v30, 1 }
 0x31c   : > { %13947 = vmatprep.subr.bf16.mxu0 %v14518_v27  ;;  %v16975_v43 = vpop.f32.mrf.mxu1  ;;  %v9850_v12 = vsel %vm3300_vm2, %v9848_v63, %v9849_v48 }
 0x31e   : > { %v16986_v47 = vpop.f32.mrf.mxu1 }
 0x31f   : > { %13948 = vmatpush3.bf16.msra.mxu0 %v14518_v27  ;;  %v8787_v27 = vsel %vm2631_vm3, %v8777_v10, %v8786_v39 }
 0x320   : > { %13949 = vmatprep.subr.bf16.mxu0 %v14520_v32  ;;  %13818 = vmatmul.mubr.bf16.gmra.mxu1 %v8760_v29  ;;  %v16993_v61 = vpop.f32.mrf.mxu1  ;;  %v9339_v29 = vsel %vm3300_vm2, %v9336_v60, %v9338_v25 }
 0x321   : > { %13862 = vmatmul.mubr.bf16.gmra.mxu0 %v9329_v26  ;;  %13821 = vmatprep.mubr.bf16.mxu1 %v8769_v15  ;;  %v8796_v26 = vsel %vm2631_vm3, %v8786_v39, %v8795_v44  ;;  %v8809_v15 = vrot.slane %v8807_v49, 1  ;;  %v10387_v49 = vshll.u32 %v14522_v59, 16 }
 0x322   : > { %13865 = vmatprep.mubr.bf16.mxu0 %v9331_v62 }
 0x323   : > { %13950 = vmatpush3.bf16.msra.mxu0 %v14520_v32  ;;  %v8804_v32 = vor.u32 %v8803_v7, %v8800_v3  ;;  %v8813_v30 = vor.u32 %v8812_v46, %v8809_v15  ;;  %v14523_v3 = vld [vmem:[#allocation2 + $0x18] sm:$0xff]   ;;  %v9851_v7 = vrot.slane %v14521_v53, 2  ;;  %v9348_v53 = vrot.slane %v14519_v58, 2 }
 0x324   : > { %v13643_v34 = vpop.f32.mrf.mxu0  ;;  %13951 = vmatprep.subr.bf16.mxu0 %v14526_v1  ;;  %v10392_v8 = vshrl.u32 %v14523_v3, 16  ;;  %v10395_v60 = vshll.u32 %v14523_v3, 16  ;;  %v6683_v3 = vadd.f32 %v16982_v5, %v16993_v61  ;;  %v14534_v61 = vld [vmem:[#allocation2 + $0x38] sm:$0xff]  }
 0x325   : > { %v16997_v4 = vadd.f32 %v13643_v34, %v6676_v28  ;;  %v8805_v17 = vsel %vm2631_vm3, %v8795_v44, %v8804_v32  ;;  %v6681_v28 = vadd.f32 %v16963_v42, %v16982_v5  ;;  %v9342_v34 = vrot.slane %v14508_v56, 2  ;;  %v14531_v56 = vld [vmem:[#allocation4 + $0x230] sm:$0xff]  }
 0x326   : > { %v7177_v37 = vpop.f32.mrf.mxu0  ;;  %v8814_v42 = vsel %vm2631_vm3, %v8804_v32, %v8813_v30  ;;  %v10384_v32 = vshrl.u32 %v14522_v59, 16  ;;  %v10397_v15 = vrot.slane %v10395_v60, 3  ;;  %v14532_v60 = vld [vmem:[#allocation2 + $0x30] sm:$0xff]  }
 0x327   : > { %v17003_v22 = vadd.f32 %v7177_v37, %v6674_v55  ;;  %13952 = vmatpush3.bf16.msra.mxu0 %v14526_v1  ;;  %v17006_v36 = vpop.f32.mrf.mxu1  ;;  %v6678_v1 = vadd.f32 %v16982_v5, %v16957_v51  ;;  %v6679_v51 = vadd.f32 %v16982_v5, %v16967_v11  ;;  %v9343_v11 = vsel %vm3300_vm2, %v9340_v41, %v9342_v34 }
 0x328   : > { %v13644_v21 = vpop.f32.mrf.mxu0  ;;  %13822 = vmatmul.mubr.bf16.gmra.mxu1 %v8778_v6 }
 0x329   : > { %13866 = vmatmul.mubr.bf16.gmra.mxu0 %v9333_v40  ;;  %v17011_v50 = vadd.f32 %v13644_v21, %v6677_v13  ;;  %13825 = vmatprep.mubr.bf16.mxu1 %v8787_v27  ;;  %v17013_v2 = vpop.f32.mrf.mxu1  ;;  %v9341_v40 = vsel %vm3300_vm2, %v9338_v25, %v9340_v41  ;;  %v17049_v21 = vld [vmem:[#allocation2 + $0x28] sm:$0xff]  }
 0x32a   : > { %13869 = vmatprep.mubr.bf16.mxu0 %v9335_v16  ;;  %v7180_v54 = vpop.f32.mrf.mxu0  ;;  %v14511_v16 = vld [vmem:[#allocation2 + $0x88] sm:$0xff]   ;;  %v9853_v44 = vrot.slane %v17049_v21, 2 }
 0x32b   : > { %v17015_v24 = vadd.f32 %v7180_v54, %v6675_v38  ;;  %v17017_v52 = vpop.f32.mrf.mxu1  ;;  %v9344_v38 = vrot.slane %v14511_v16, 2  ;;  %v9346_v54 = vrot.slane %v14515_v31, 2 }
 0x32c   : > { %v9854_v46 = vsel %vm3300_vm2, %v9851_v7, %v9853_v44 }
 0x32d   : > { %v17029_v45 = vpop.f32.mrf.mxu1  ;;  %v9345_v33 = vsel %vm3300_vm2, %v9342_v34, %v9344_v38  ;;  %v10389_v34 = vrot.slane %v10387_v49, 3 }
 0x330   : > { %13826 = vmatmul.mubr.bf16.gmra.mxu1 %v8796_v26  ;;  %v9852_v26 = vsel %vm3300_vm2, %v9849_v48, %v9851_v7 }
 0x331   : > { %13870 = vmatmul.mubr.bf16.gmra.mxu0 %v9337_v35  ;;  %v13647_v23 = vpop.f32.mrf.mxu0  ;;  %13829 = vmatprep.mubr.bf16.mxu1 %v8805_v17  ;;  %v14528_v35 = vld [vmem:[#allocation2 + $0x30] sm:$0xff]   ;;  %v9347_v17 = vsel %vm3300_vm2, %v9344_v38, %v9346_v54 }
 0x332   : > { %13873 = vmatprep.mubr.bf16.mxu0 %v9339_v29  ;;  %v17027_v62 = vadd.f32 %v13647_v23, %v6680_v18  ;;  %v6684_v18 = vadd.f32 %v16973_v20, %v16982_v5  ;;  %v14529_v29 = vld [vmem:[#allocation2 + $0x28] sm:$0xff]   ;;  %v6682_v20 = vadd.f32 %v16982_v5, %v16975_v43  ;;  %v9855_v30 = vrot.slane %v14528_v35, 2 }
 0x333   : > { %v7193_v19 = vpop.f32.mrf.mxu0  ;;  %v10410_v16 = vshrl.u32 %v14529_v29, 16  ;;  %v10413_v43 = vshll.u32 %v14529_v29, 16 }
 0x334   : > { %v17033_v10 = vadd.f32 %v7193_v19, %v6678_v1  ;;  %v10394_v1 = vrot.slane %v10392_v8, 2  ;;  %v17062_v19 = vld [vmem:[#allocation2 + $0x38] sm:$0xff]  }
 0x335   : > { %v13648_v14 = vpop.f32.mrf.mxu0  ;;  %v17039_v55 = vpop.f32.mrf.mxu1  ;;  %v10412_v35 = vrot.slane %v10410_v16, 2 }
 0x336   : > { %v17037_v39 = vadd.f32 %v13648_v14, %v6681_v28  ;;  %v10386_v28 = vrot.slane %v10384_v32, 2  ;;  %v10401_v14 = vshrl.u32 %v14527_v0, 16 }
 0x337   : > { %v7196_v37 = vpop.f32.mrf.mxu0  ;;  %v17045_v6 = vpop.f32.mrf.mxu1 }
 0x338   : > { %v17043_v13 = vadd.f32 %v7196_v37, %v6679_v51  ;;  %13830 = vmatmul.mubr.bf16.gmra.mxu1 %v8814_v42  ;;  %v10404_v51 = vshll.u32 %v14527_v0, 16  ;;  %v6685_v37 = vadd.f32 %v16986_v47, %v16982_v5  ;;  %v14536_v42 = vld [vmem:[#allocation4 + $0x228] sm:$0xff]   ;;  %v9349_v47 = vsel %vm3300_vm2, %v9346_v54, %v9348_v53 }
 0x339   : > { %13874 = vmatmul.mubr.bf16.gmra.mxu0 %v9341_v40  ;;  %13901 = vmatprep.mubr.bf16.mxu1 %v9850_v12  ;;  %v17051_v27 = vpop.f32.mrf.mxu1  ;;  %v9857_v12 = vrot.slane %v17062_v19, 2  ;;  %v10390_v59 = vor.u32 %v10389_v34, %v10386_v28  ;;  %v10403_v7 = vrot.slane %v10401_v14, 2  ;;  %v9856_v0 = vsel %vm3300_vm2, %v9853_v44, %v9855_v30  ;;  %v14546_v28 = vld [vmem:[#allocation4 + $0x218] sm:$0xff]  }
 0x33a   : > { %13877 = vmatprep.mubr.bf16.mxu0 %v9343_v11  ;;  %v10398_v11 = vor.u32 %v10397_v15, %v10394_v1  ;;  %v10406_v8 = vrot.slane %v10404_v51, 3  ;;  %v10419_v44 = vshrl.u32 %v14532_v60, 16  ;;  %v6686_v34 = vadd.f32 %v16982_v5, %v17013_v2 }
 0x33b   : > { %v17054_v25 = vpop.f32.mrf.mxu1  ;;  %v9858_v29 = vsel %vm3300_vm2, %v9855_v30, %v9857_v12  ;;  %v10431_v14 = vshll.u32 %v14534_v61, 16  ;;  %v6689_v30 = vadd.f32 %v17017_v52, %v16982_v5  ;;  %v6687_v52 = vadd.f32 %v16982_v5, %v17029_v45 }
 0x33c   : > { %v10399_v54 = vsel %vm4371_vm4, %v10390_v59, %v10398_v11  ;;  %v10407_v15 = vor.u32 %v10406_v8, %v10403_v7  ;;  %v10421_v16 = vrot.slane %v10419_v44, 2  ;;  %v14537_v59 = vld [vmem:[#allocation2 + $0x40] sm:$0xff]  }
 0x33d   : > { %v14551_v7 = vld [vmem:[#allocation4 + $0x210] sm:$0xff]   ;;  %v10437_v45 = vshrl.u32 %v14537_v59, 16 }
 0x33e   : > { %v10408_v53 = vsel %vm4371_vm4, %v10398_v11, %v10407_v15 }
 0x340   : > { %13902 = vmatmul.mubr.bf16.vlgmr.msra.gmra.mxu1 %v9852_v26  ;;  %v17064_v9 = vpop.f32.mrf.mxu1  ;;  %v14541_v26 = vld [vmem:[#allocation4 + $0x220] sm:$0xff]  }
 0x341   : > { %13878 = vmatmul.mubr.bf16.gmra.mxu0 %v9345_v33  ;;  %v13651_v23 = vpop.f32.mrf.mxu0  ;;  %13905 = vmatprep.mubr.bf16.mxu1 %v9854_v46  ;;  %v10415_v33 = vrot.slane %v10413_v43, 3 }
 0x342   : > { %13881 = vmatprep.mubr.bf16.mxu0 %v9347_v17  ;;  %v17068_v41 = vadd.f32 %v13651_v23, %v6684_v18  ;;  %13990 = vmatpush3.bf16.msra.mxu1 %v16959_v57  ;;  %v17071_v63 = vpop.f32.mrf.mxu1  ;;  %v14533_v18 = vld [vmem:[#allocation2 + $0x40] sm:$0xff]   ;;  %v6688_v17 = vadd.f32 %v17006_v36, %v16982_v5  ;;  %v10422_v23 = vshll.u32 %v14532_v60, 16  ;;  %v10433_v60 = vrot.slane %v10431_v14, 3 }
 0x343   : > { %v7209_v48 = vpop.f32.mrf.mxu0  ;;  %13991 = vmatprep.subr.bf16.mxu1 %v14531_v56  ;;  %v10416_v46 = vor.u32 %v10415_v33, %v10412_v35  ;;  %v9859_v19 = vrot.slane %v14533_v18, 2  ;;  %v17117_v35 = vld [vmem:[#allocation2 + $0x58] sm:$0xff]  }
 0x344   : > { %v17075_v40 = vadd.f32 %v7209_v48, %v6682_v20  ;;  %v17078_v57 = vpop.f32.mrf.mxu1  ;;  %v10428_v20 = vshrl.u32 %v14534_v61, 16  ;;  %v10424_v43 = vrot.slane %v10422_v23, 3  ;;  %v9865_v23 = vrot.slane %v17117_v35, 2 }
 0x345   : > { %v13652_v31 = vpop.f32.mrf.mxu0  ;;  %v10417_v2 = vsel %vm4371_vm4, %v10407_v15, %v10416_v46 }
 0x346   : > { %v17082_v21 = vadd.f32 %v13652_v31, %v6685_v37  ;;  %13992 = vmatpush3.bf16.msra.mxu1 %v14531_v56  ;;  %v17085_v32 = vpop.f32.mrf.mxu1  ;;  %v17092_v56 = vld [vmem:[#allocation2 + $0x48] sm:$0xff]   ;;  %v10425_v18 = vor.u32 %v10424_v43, %v10421_v16 }
 0x347   : > { %v7212_v38 = vpop.f32.mrf.mxu0  ;;  %13993 = vmatprep.subr.bf16.mxu1 %v14536_v42  ;;  %v9861_v36 = vrot.slane %v17092_v56, 2 }
 0x348   : > { %v17087_v49 = vadd.f32 %v7212_v38, %v6683_v3  ;;  %13906 = vmatmul.mubr.bf16.gmra.mxu1 %v9856_v0  ;;  %v9860_v3 = vsel %vm3300_vm2, %v9857_v12, %v9859_v19  ;;  %v14538_v38 = vld [vmem:[#allocation2 + $0x50] sm:$0xff]   ;;  %v14539_v0 = vld [vmem:[#allocation2 + $0x48] sm:$0xff]  }
 0x349   : > { %13882 = vmatmul.mubr.bf16.gmra.mxu0 %v9349_v47  ;;  %13909 = vmatprep.mubr.bf16.mxu1 %v9858_v29  ;;  %v10430_v47 = vrot.slane %v10428_v20, 2  ;;  %v9862_v11 = vsel %vm3300_vm2, %v9859_v19, %v9861_v36  ;;  %v14556_v29 = vld [vmem:[#allocation4 + $0x208] sm:$0xff]   ;;  %v10449_v44 = vshll.u32 %v14539_v0, 16  ;;  %v6692_v20 = vadd.f32 %v17039_v55, %v16982_v5 }
 0x34a   : > { %13953 = vmatprep.mubr.bf16.mxu0 %v10399_v54  ;;  %13994 = vmatpush3.bf16.msra.mxu1 %v14536_v42  ;;  %v17096_v58 = vpop.f32.mrf.mxu1  ;;  %v9863_v54 = vrot.slane %v14538_v38, 2  ;;  %v14542_v19 = vld [vmem:[#allocation2 + $0x50] sm:$0xff]   ;;  %v6690_v55 = vadd.f32 %v16982_v5, %v17045_v6 }
 0x34b   : > { %13995 = vmatprep.subr.bf16.mxu1 %v14541_v26  ;;  %v10434_v56 = vor.u32 %v10433_v60, %v10430_v47  ;;  %v10458_v38 = vshll.u32 %v14542_v19, 16 }
 0x34c   : > { %v13655_v1 = vpop.f32.mrf.mxu0  ;;  %v17107_v42 = vpop.f32.mrf.mxu1  ;;  %v9864_v14 = vsel %vm3300_vm2, %v9861_v36, %v9863_v54 }
 0x34d   : > { %v17100_v48 = vadd.f32 %v13655_v1, %v6688_v17  ;;  %v10446_v17 = vshrl.u32 %v14539_v0, 16  ;;  %v10426_v1 = vsel %vm4371_vm4, %v10416_v46, %v10425_v18  ;;  %v10435_v43 = vsel %vm4371_vm4, %v10425_v18, %v10434_v56 }
 0x34e   : > { %v7225_v51 = vpop.f32.mrf.mxu0  ;;  %13996 = vmatpush3.bf16.msra.mxu1 %v14541_v26  ;;  %v17121_v61 = vpop.f32.mrf.mxu1  ;;  %v10440_v26 = vshll.u32 %v14537_v59, 16  ;;  %v10455_v59 = vshrl.u32 %v14542_v19, 16  ;;  %v6696_v19 = vadd.f32 %v17064_v9, %v16982_v5  ;;  %v17161_v9 = vld [vmem:[#allocation2 + $0x78] sm:$0xff]  }
 0x34f   : > { %v17105_v37 = vadd.f32 %v7225_v51, %v6686_v34  ;;  %13997 = vmatprep.subr.bf16.mxu1 %v14546_v28  ;;  %v14543_v51 = vld [vmem:[#allocation2 + $0x60] sm:$0xff]   ;;  %v10448_v46 = vrot.slane %v10446_v17, 2 }
 0x350   : > { %v13656_v31 = vpop.f32.mrf.mxu0  ;;  %13910 = vmatmul.mubr.bf16.gmra.mxu1 %v9860_v3  ;;  %v17125_v15 = vpop.f32.mrf.mxu1  ;;  %v10442_v34 = vrot.slane %v10440_v26, 3  ;;  %v17132_v3 = vld [vmem:[#allocation2 + $0x68] sm:$0xff]   ;;  %v9867_v0 = vrot.slane %v14543_v51, 2 }
 0x351   : > { %13954 = vmatmul.mubr.bf16.vlgmr.msra.gmra.mxu0 %v10408_v53  ;;  %v17114_v8 = vadd.f32 %v13656_v31, %v6689_v30  ;;  %13913 = vmatprep.mubr.bf16.mxu1 %v9862_v11  ;;  %v14562_v30 = vld [vmem:[#allocation4 + $0x200] sm:$0xff]   ;;  %v10451_v53 = vrot.slane %v10449_v44, 3  ;;  %v14544_v31 = vld [vmem:[#allocation2 + $0x58] sm:$0xff]   ;;  %v10460_v44 = vrot.slane %v10458_v38, 3 }
 0x352   : > { %13957 = vmatprep.mubr.bf16.mxu0 %v10417_v2  ;;  %v7228_v12 = vpop.f32.mrf.mxu0  ;;  %13998 = vmatpush3.bf16.msra.mxu1 %v14546_v28  ;;  %v10439_v28 = vrot.slane %v10437_v45, 2  ;;  %v9866_v2 = vsel %vm3300_vm2, %v9863_v54, %v9865_v23  ;;  %v10467_v18 = vshll.u32 %v14544_v31, 16  ;;  %v9869_v45 = vrot.slane %v17132_v3, 2 }
 0x353   : > { %v17119_v33 = vadd.f32 %v7228_v12, %v6687_v52  ;;  %13999 = vmatprep.subr.bf16.mxu1 %v14551_v7  ;;  %v6693_v52 = vadd.f32 %v17051_v27, %v16982_v5  ;;  %v10452_v6 = vor.u32 %v10451_v53, %v10448_v46  ;;  %v10464_v12 = vshrl.u32 %v14544_v31, 16  ;;  %v14549_v53 = vld [vmem:[#allocation2 + $0x68] sm:$0xff]  }
 0x354   : > { %v10443_v11 = vor.u32 %v10442_v34, %v10439_v28  ;;  %v6691_v54 = vadd.f32 %v16982_v5, %v17054_v25  ;;  %v10457_v27 = vrot.slane %v10455_v59, 2  ;;  %v9868_v34 = vsel %vm3300_vm2, %v9865_v23, %v9867_v0 }
 0x355   : > { %v9870_v46 = vsel %vm3300_vm2, %v9867_v0, %v9869_v45 }
 0x356   : > { %14000 = vmatpush3.bf16.msra.mxu1 %v14551_v7  ;;  %v10444_v28 = vsel %vm4371_vm4, %v10434_v56, %v10443_v11  ;;  %v10453_v25 = vsel %vm4371_vm4, %v10443_v11, %v10452_v6  ;;  %v6694_v56 = vadd.f32 %v16982_v5, %v17071_v63  ;;  %v10461_v31 = vor.u32 %v10460_v44, %v10457_v27  ;;  %v14552_v44 = vld [vmem:[#allocation2 + $0x70] sm:$0xff]  }
 0x357   : > { %14001 = vmatprep.subr.bf16.mxu1 %v14556_v29  ;;  %v10485_v63 = vshll.u32 %v14549_v53, 16 }
 0x358   : > { %13914 = vmatmul.mubr.bf16.gmra.mxu1 %v9864_v14  ;;  %v14548_v14 = vld [vmem:[#allocation2 + $0x70] sm:$0xff]  }
 0x359   : > { %v13659_v16 = vpop.f32.mrf.mxu0  ;;  %13958 = vmatmul.mubr.bf16.gmra.mxu0 %v10426_v1  ;;  %13917 = vmatprep.mubr.bf16.mxu1 %v9866_v2  ;;  %v14547_v1 = vld [vmem:[#allocation2 + $0x60] sm:$0xff]   ;;  %v9871_v38 = vrot.slane %v14548_v14, 2 }
 0x35a   : > { %v17136_v47 = vadd.f32 %v13659_v16, %v6692_v20  ;;  %13961 = vmatprep.mubr.bf16.mxu0 %v10435_v43  ;;  %v17138_v7 = vpop.f32.mrf.mxu1  ;;  %14002 = vmatpush3.bf16.msra.mxu1 %v14556_v29  ;;  %v10466_v16 = vrot.slane %v10464_v12, 2  ;;  %v10469_v43 = vrot.slane %v10467_v18, 3  ;;  %v10473_v3 = vshrl.u32 %v14547_v1, 16  ;;  %v14553_v14 = vld [vmem:[#allocation2 + $0x80] sm:$0xff]  }
 0x35b   : > { %v7241_v36 = vpop.f32.mrf.mxu0  ;;  %14003 = vmatprep.subr.bf16.mxu1 %v14562_v30  ;;  %v10476_v59 = vshll.u32 %v14547_v1, 16  ;;  %v9873_v12 = vrot.slane %v17161_v9, 2  ;;  %v6695_v18 = vadd.f32 %v16982_v5, %v17085_v32  ;;  %v6700_v1 = vadd.f32 %v17096_v58, %v16982_v5 }
 0x35c   : > { %v17142_v60 = vadd.f32 %v7241_v36, %v6690_v55  ;;  %v17145_v26 = vpop.f32.mrf.mxu1  ;;  %v6697_v55 = vadd.f32 %v17078_v57, %v16982_v5  ;;  %v10470_v11 = vor.u32 %v10469_v43, %v10466_v16  ;;  %v10462_v57 = vsel %vm4371_vm4, %v10452_v6, %v10461_v31 }
 0x35d   : > { %v13660_v35 = vpop.f32.mrf.mxu0  ;;  %v10475_v27 = vrot.slane %v10473_v3, 2  ;;  %v10487_v6 = vrot.slane %v10485_v63, 3  ;;  %v9874_v43 = vsel %vm3300_vm2, %v9871_v38, %v9873_v12  ;;  %v6698_v58 = vadd.f32 %v16982_v5, %v17107_v42 }
 0x35e   : > { %v17149_v29 = vadd.f32 %v13660_v35, %v6693_v52  ;;  %14004 = vmatpush3.bf16.msra.mxu1 %v14562_v30  ;;  %v17159_v30 = vpop.f32.mrf.mxu1  ;;  %v10482_v35 = vshrl.u32 %v14549_v53, 16  ;;  %v10471_v32 = vsel %vm4371_vm4, %v10461_v31, %v10470_v11  ;;  %v17188_v53 = vld [vmem:[#allocation2 + $0x88] sm:$0xff]   ;;  %v10494_v31 = vshll.u32 %v14552_v44, 16 }
 0x35f   : > { %v7244_v17 = vpop.f32.mrf.mxu0  ;;  %v6701_v3 = vadd.f32 %v17121_v61, %v16982_v5 }
 0x360   : > { %v17153_v20 = vadd.f32 %v7244_v17, %v6691_v54  ;;  %13918 = vmatmul.mubr.bf16.gmra.mxu1 %v9868_v34  ;;  %v17171_v0 = vpop.f32.mrf.mxu1  ;;  %v9872_v34 = vsel %vm3300_vm2, %v9869_v45, %v9871_v38  ;;  %v10484_v16 = vrot.slane %v10482_v35, 2  ;;  %v9875_v38 = vrot.slane %v14553_v14, 2 }
 0x361   : > { %v13663_v51 = vpop.f32.mrf.mxu0  ;;  %13962 = vmatmul.mubr.bf16.gmra.mxu0 %v10444_v28  ;;  %13921 = vmatprep.mubr.bf16.mxu1 %v9870_v46  ;;  %v10478_v28 = vrot.slane %v10476_v59, 3  ;;  %v14554_v46 = vld [vmem:[#allocation2 + $0x78] sm:$0xff]  }
 0x362   : > { %v17165_v2 = vadd.f32 %v13663_v51, %v6696_v19  ;;  %13965 = vmatprep.mubr.bf16.mxu0 %v10453_v25  ;;  %v10488_v35 = vor.u32 %v10487_v6, %v10484_v16  ;;  %v10500_v42 = vshrl.u32 %v14554_v46, 16  ;;  %v9876_v16 = vsel %vm3300_vm2, %v9873_v12, %v9875_v38  ;;  %v14558_v6 = vld [vmem:[#allocation2 + $0x90] sm:$0xff]  }
 0x363   : > { %v7257_v23 = vpop.f32.mrf.mxu0  ;;  %v10479_v59 = vor.u32 %v10478_v28, %v10475_v27  ;;  %v14557_v27 = vld [vmem:[#allocation2 + $0x80] sm:$0xff]   ;;  %v6704_v28 = vadd.f32 %v17138_v7, %v16982_v5  ;;  %v6702_v7 = vadd.f32 %v16982_v5, %v17145_v26 }
 0x364   : > { %v17169_v36 = vadd.f32 %v7257_v23, %v6694_v56  ;;  %v10491_v23 = vshrl.u32 %v14552_v44, 16 }
 0x365   : > { %v13664_v52 = vpop.f32.mrf.mxu0 }
 0x366   : > { %v17176_v54 = vadd.f32 %v13664_v52, %v6697_v55  ;;  %v10493_v61 = vrot.slane %v10491_v23, 2  ;;  %v14559_v23 = vld [vmem:[#allocation2 + $0x88] sm:$0xff]  }
 0x367   : > { %v7260_v17 = vpop.f32.mrf.mxu0 }
 0x368   : > { %v17181_v19 = vadd.f32 %v7260_v17, %v6695_v18  ;;  %v17185_v25 = vpop.f32.mrf.mxu1  ;;  %13922 = vmatmul.mubr.bf16.gmra.mxu1 %v9872_v34  ;;  %v10503_v18 = vshll.u32 %v14554_v46, 16  ;;  %v9877_v17 = vrot.slane %v17188_v53, 2  ;;  %v10502_v53 = vrot.slane %v10500_v42, 2  ;;  %v17224_v42 = vld [vmem:[#allocation2 + $0x98] sm:$0xff]  }
 0x369   : > { %v13667_v51 = vpop.f32.mrf.mxu0  ;;  %13966 = vmatmul.mubr.bf16.gmra.mxu0 %v10462_v57  ;;  %13925 = vmatprep.mubr.bf16.mxu1 %v9874_v43  ;;  %v6699_v57 = vadd.f32 %v16982_v5, %v17125_v15  ;;  %v10489_v15 = vsel %vm4371_vm4, %v10479_v59, %v10488_v35 }
 0x36a   : > { %v17192_v9 = vadd.f32 %v13667_v51, %v6700_v1  ;;  %13969 = vmatprep.mubr.bf16.mxu0 %v10471_v32  ;;  %v17194_v56 = vpop.f32.mrf.mxu1  ;;  %v10496_v51 = vrot.slane %v10494_v31, 3  ;;  %v10480_v32 = vsel %vm4371_vm4, %v10470_v11, %v10479_v59 }
 0x36b   : > { %v7273_v45 = vpop.f32.mrf.mxu0 }
 0x36c   : > { %v17198_v55 = vadd.f32 %v7273_v45, %v6698_v58  ;;  %v17200_v63 = vpop.f32.mrf.mxu1  ;;  %v10505_v58 = vrot.slane %v10503_v18, 3  ;;  %v9878_v45 = vsel %vm3300_vm2, %v9875_v38, %v9877_v17  ;;  %v6705_v38 = vadd.f32 %v17159_v30, %v16982_v5  ;;  %v14561_v30 = vld [vmem:[#allocation2 + $0x90] sm:$0xff]  }
 0x36d   : > { %v13668_v52 = vpop.f32.mrf.mxu0 }
 0x36e   : > { %v17205_v1 = vadd.f32 %v13668_v52, %v6701_v3  ;;  %v17207_v34 = vpop.f32.mrf.mxu1  ;;  %v10497_v3 = vor.u32 %v10496_v51, %v10493_v61  ;;  %v10509_v52 = vshrl.u32 %v14557_v27, 16  ;;  %v6703_v61 = vadd.f32 %v16982_v5, %v17171_v0 }
 0x36f   : > { %v7276_v44 = vpop.f32.mrf.mxu0 }
 0x370   : > { %v17211_v14 = vadd.f32 %v7276_v44, %v6699_v57  ;;  %v13695_v46 = vpop.f32.mrf.mxu1  ;;  %13926 = vmatmul.mubr.bf16.gmra.mxu1 %v9876_v16  ;;  %v10512_v57 = vshll.u32 %v14557_v27, 16  ;;  %v9879_v44 = vrot.slane %v14558_v6, 2  ;;  %v10518_v16 = vshrl.u32 %v14559_v23, 16 }
 0x371   : > { %v13671_v43 = vpop.f32.mrf.mxu0  ;;  %13970 = vmatmul.mubr.bf16.gmra.mxu0 %v10480_v32  ;;  %v17222_v11 = vadd.f32 %v13695_v46, %v16997_v4  ;;  %13929 = vmatprep.mubr.bf16.mxu1 %v9878_v45  ;;  %v10506_v4 = vor.u32 %v10505_v58, %v10502_v53  ;;  %v10498_v46 = vsel %vm4371_vm4, %v10488_v35, %v10497_v3  ;;  %v10511_v45 = vrot.slane %v10509_v52, 2 }
 0x372   : > { %v17219_v31 = vadd.f32 %v13671_v43, %v6704_v28  ;;  %13973 = vmatprep.mubr.bf16.mxu0 %v10489_v15  ;;  %v7712_v59 = vpop.f32.mrf.mxu1  ;;  %v10521_v43 = vshll.u32 %v14559_v23, 16  ;;  %v10514_v6 = vrot.slane %v10512_v57, 3  ;;  %v9881_v53 = vrot.slane %v17224_v42, 2 }
 0x373   : > { %v7289_v12 = vpop.f32.mrf.mxu0  ;;  %v17231_v26 = vadd.f32 %v7712_v59, %v17003_v22  ;;  %v6708_v58 = vadd.f32 %v17185_v25, %v16982_v5  ;;  %v10507_v35 = vsel %vm4371_vm4, %v10497_v3, %v10506_v4  ;;  %v10520_v52 = vrot.slane %v10518_v16, 2 }
 0x374   : > { %v17228_v18 = vadd.f32 %v7289_v12, %v6702_v7  ;;  %v13696_v32 = vpop.f32.mrf.mxu1  ;;  %v14563_v7 = vld [vmem:[#allocation2 + $0xa0] ss:$0 sps:$4 sm:$0x33]   ;;  %v10523_v57 = vrot.slane %v10521_v43, 3  ;;  %v9882_v42 = vsel %vm3300_vm2, %v9879_v44, %v9881_v53  ;;  %v6706_v25 = vadd.f32 %v16982_v5, %v17194_v56  ;;  %v14564_v43 = vld [vmem:[#allocation2 + $0x98] sm:$0xff]  }
 0x375   : > { %v13672_v28 = vpop.f32.mrf.mxu0  ;;  %v17238_v27 = vadd.f32 %v13696_v32, %v17011_v50  ;;  %v9880_v50 = vsel %vm3300_vm2, %v9877_v17, %v9879_v44  ;;  %v10515_v32 = vor.u32 %v10514_v6, %v10511_v45  ;;  %v10530_v16 = vshll.u32 %v14561_v30, 16 }
 0x376   : > { %v17235_v51 = vadd.f32 %v13672_v28, %v6705_v38  ;;  %v7715_v22 = vpop.f32.mrf.mxu1  ;;  %v17252_v38 = vld [vmem:[#allocation2 + $0x18] sm:$0xff]   ;;  %v10527_v28 = vshrl.u32 %v14561_v30, 16  ;;  %v6709_v44 = vadd.f32 %v17200_v63, %v16982_v5  ;;  %v6707_v45 = vadd.f32 %v16982_v5, %v17207_v34  ;;  %v14567_v34 = vld [vmem:[#allocation2 + $0xa0] ss:$0 sps:$4 sm:$0x77]  }
 0x377   : > { %v7292_v15 = vpop.f32.mrf.mxu0  ;;  %v17247_v0 = vadd.f32 %v7715_v22, %v17015_v24  ;;  %v9883_v22 = vrot.slane %v14563_v7, 2 }
 0x378   : > { %v17244_v23 = vadd.f32 %v7292_v15, %v6703_v61  ;;  %v13699_v59 = vpop.f32.mrf.mxu1  ;;  %13930 = vmatmul.mubr.bf16.gmra.mxu1 %v9880_v50  ;;  %v14565_v15 = vld [vmem:[#allocation2 + $0x10] sm:$0xf8]   ;;  %v10529_v63 = vrot.slane %v10527_v28, 2 }
 0x379   : > { %v13675_v12 = vpop.f32.mrf.mxu0  ;;  %13974 = vmatmul.mubr.bf16.gmra.mxu0 %v10498_v46  ;;  %v17259_v17 = vadd.f32 %v13699_v59, %v17027_v62  ;;  %13933 = vmatprep.mubr.bf16.mxu1 %v9882_v42  ;;  %v10524_v62 = vor.u32 %v10523_v57, %v10520_v52  ;;  %v10532_v42 = vrot.slane %v10530_v16, 3  ;;  %v11051_v7 = vrot.slane %v14565_v15, 3 }
 0x37a   : > { %v17256_v24 = vadd.f32 %v13675_v12, %v6708_v58  ;;  %13977 = vmatprep.mubr.bf16.mxu0 %v10507_v35  ;;  %v7728_v61 = vpop.f32.mrf.mxu1  ;;  %v11052_v12 = vrot.slane %v17252_v38, 3  ;;  %v10516_v57 = vsel %vm4371_vm4, %v10506_v4, %v10515_v32  ;;  %v9884_v5 = vsel %vm3300_vm2, %v9881_v53, %v9883_v22 }
 0x37b   : > { %v7305_v3 = vpop.f32.mrf.mxu0  ;;  %v17266_v56 = vadd.f32 %v7728_v61, %v17033_v10  ;;  %v10536_v10 = vshrl.u32 %v14564_v43, 16  ;;  %v10525_v28 = vsel %vm4371_vm4, %v10515_v32, %v10524_v62 }
 0x37c   : > { %v17263_v46 = vadd.f32 %v7305_v3, %v6706_v25  ;;  %v13700_v50 = vpop.f32.mrf.mxu1  ;;  %v10539_v25 = vshll.u32 %v14564_v43, 16  ;;  %v14568_v3 = vld [vmem:[#allocation2 + $0x20] sm:$0xff]   ;;  %v11053_v16 = vsel %vm5040_vm5, %v11051_v7, %v11052_v12  ;;  %v14569_v43 = vld [vmem:[#allocation2 + $0x28] sm:$0xff]  }
 0x37d   : > { %v13676_v58 = vpop.f32.mrf.mxu0  ;;  %v17274_v6 = vadd.f32 %v13700_v50, %v17037_v39  ;;  %v10538_v53 = vrot.slane %v10536_v10, 2  ;;  %v11054_v50 = vrot.slane %v14568_v3, 3 }
 0x37e   : > { %v17271_v30 = vadd.f32 %v13676_v58, %v6709_v44  ;;  %v7731_v59 = vpop.f32.mrf.mxu1  ;;  %v10533_v44 = vor.u32 %v10532_v42, %v10529_v63  ;;  %v10541_v22 = vrot.slane %v10539_v25, 3 }
 0x37f   : > { %v7308_v35 = vpop.f32.mrf.mxu0  ;;  %v17280_v38 = vadd.f32 %v7731_v59, %v17043_v13  ;;  %v10548_v59 = vshll.u32 %v14567_v34, 16 }
 0x380   : > { %v17276_v52 = vadd.f32 %v7308_v35, %v6707_v45  ;;  %v13703_v61 = vpop.f32.mrf.mxu1  ;;  %13934 = vmatmul.mubr.bf16.gmra.mxu1 %v9884_v5  ;;  %v10545_v35 = vshrl.u32 %v14567_v34, 16  ;;  %v10534_v42 = vsel %vm4371_vm4, %v10524_v62, %v10533_v44  ;;  %v10542_v10 = vor.u32 %v10541_v22, %v10538_v53 }
 0x381   : > { %v13747_v39 = vpop.f32.mrf.mxu0  ;;  %13978 = vmatmul.mubr.bf16.gmra.mxu0 %v10516_v57  ;;  %v7865_v4 = vadd.f32 %v13703_v61, %v17068_v41  ;;  %14005 = vmatprep.mubr.bf16.mxu1 %v11053_v16  ;;  %v11056_v57 = vrot.slane %v14569_v43, 3  ;;  %v14571_v16 = vld [vmem:[#allocation2 + $0x38] sm:$0xff]  }
 0x382   : > { %v17286_v15 = vadd.f32 %v13747_v39, %v17222_v11  ;;  %13981 = vmatprep.mubr.bf16.mxu0 %v10525_v28  ;;  %v7744_v58 = vpop.f32.mrf.mxu1  ;;  %v10547_v34 = vrot.slane %v10545_v35, 2  ;;  %v10550_v39 = vrot.slane %v10548_v59, 3  ;;  %v14570_v28 = vld [vmem:[#allocation2 + $0x30] sm:$0xff]  }
 0x383   : > { %v8247_v13 = vpop.f32.mrf.mxu0  ;;  %v7863_v45 = vadd.f32 %v7744_v58, %v17075_v40  ;;  %v11057_v62 = vsel %vm5040_vm5, %v11054_v50, %v11056_v57  ;;  %v11058_v22 = vrot.slane %v14570_v28, 3 }
 0x384   : > { %v17290_v32 = vadd.f32 %v8247_v13, %v17231_v26  ;;  %v13704_v11 = vpop.f32.mrf.mxu1  ;;  %v11055_v26 = vsel %vm5040_vm5, %v11052_v12, %v11054_v50  ;;  %v10551_v53 = vor.u32 %v10550_v39, %v10547_v34  ;;  %v11060_v50 = vrot.slane %v14571_v16, 3  ;;  %v14573_v34 = vld [vmem:[#allocation2 + $0x48] sm:$0xff]  }
 0x385   : > { %v13748_v7 = vpop.f32.mrf.mxu0  ;;  %v7866_v41 = vadd.f32 %v13704_v11, %v17082_v21 }
 0x386   : > { %v17294_v5 = vadd.f32 %v13748_v7, %v17238_v27  ;;  %v7747_v25 = vpop.f32.mrf.mxu1  ;;  %v10543_v27 = vsel %vm4371_vm4, %v10533_v44, %v10542_v10 }
 0x387   : > { %v8250_v63 = vpop.f32.mrf.mxu0  ;;  %v7864_v40 = vadd.f32 %v7747_v25, %v17087_v49 }
 0x388   : > { %v17300_v3 = vadd.f32 %v8250_v63, %v17247_v0  ;;  %v13707_v21 = vpop.f32.mrf.mxu1  ;;  %14006 = vmatmul.mubr.bf16.vlgmr.msra.gmra.mxu1 %v11055_v26 }
 0x389   : > { %v13751_v61 = vpop.f32.mrf.mxu0  ;;  %13982 = vmatmul.mubr.bf16.gmra.mxu0 %v10534_v42  ;;  %v7869_v0 = vadd.f32 %v13707_v21, %v17100_v48  ;;  %14009 = vmatprep.mubr.bf16.mxu1 %v11057_v62  ;;  %v14572_v42 = vld [vmem:[#allocation2 + $0x40] sm:$0xff]   ;;  %v11064_v21 = vrot.slane %v14573_v34, 3 }
 0x38a   : > { %v17306_v43 = vadd.f32 %v13751_v61, %v17259_v17  ;;  %13985 = vmatprep.mubr.bf16.mxu0 %v10543_v27  ;;  %v7760_v12 = vpop.f32.mrf.mxu1 }
 0x38b   : > { %v8263_v49 = vpop.f32.mrf.mxu0  ;;  %v7867_v44 = vadd.f32 %v7760_v12, %v17105_v37  ;;  %v11059_v37 = vsel %vm5040_vm5, %v11056_v57, %v11058_v22  ;;  %v11062_v57 = vrot.slane %v14572_v42, 3 }
 0x38c   : > { %v17310_v13 = vadd.f32 %v8263_v49, %v17266_v56  ;;  %v13708_v35 = vpop.f32.mrf.mxu1  ;;  %v10552_v56 = vsel %vm4371_vm4, %v10542_v10, %v10551_v53 }
 0x38d   : > { %v13752_v58 = vpop.f32.mrf.mxu0  ;;  %v7870_v17 = vadd.f32 %v13708_v35, %v17114_v8  ;;  %v11063_v53 = vsel %vm5040_vm5, %v11060_v50, %v11062_v57  ;;  %v14575_v35 = vld [vmem:[#allocation2 + $0x58] sm:$0xff]  }
 0x38e   : > { %v17314_v59 = vadd.f32 %v13752_v58, %v17274_v6  ;;  %v7763_v48 = vpop.f32.mrf.mxu1  ;;  %v11061_v6 = vsel %vm5040_vm5, %v11058_v22, %v11060_v50  ;;  %v11068_v42 = vrot.slane %v14575_v35, 3 }
 0x38f   : > { %v8266_v7 = vpop.f32.mrf.mxu0  ;;  %v7868_v63 = vadd.f32 %v7763_v48, %v17119_v33 }
 0x390   : > { %v17318_v11 = vadd.f32 %v8266_v7, %v17280_v38  ;;  %v13711_v26 = vpop.f32.mrf.mxu1  ;;  %14010 = vmatmul.mubr.bf16.gmra.mxu1 %v11059_v37 }
 0x391   : > { %v13755_v25 = vpop.f32.mrf.mxu0  ;;  %13986 = vmatmul.mubr.bf16.gmra.mxu0 %v10552_v56  ;;  %v7873_v39 = vadd.f32 %v13711_v26, %v17136_v47  ;;  %14013 = vmatprep.mubr.bf16.mxu1 %v11061_v6 }
 0x392   : > { %v17324_v8 = vadd.f32 %v13755_v25, %v7865_v4  ;;  %v7776_v28 = vpop.f32.mrf.mxu1 }
 0x393   : > { %v8279_v38 = vpop.f32.mrf.mxu0  ;;  %v7871_v33 = vadd.f32 %v7776_v28, %v17142_v60  ;;  %v11065_v60 = vsel %vm5040_vm5, %v11062_v57, %v11064_v21 }
 0x394   : > { %v17327_v10 = vadd.f32 %v8279_v38, %v7863_v45  ;;  %v13712_v27 = vpop.f32.mrf.mxu1  ;;  %v14574_v45 = vld [vmem:[#allocation2 + $0x50] sm:$0xff]  }
 0x395   : > { %v13756_v61 = vpop.f32.mrf.mxu0  ;;  %v7874_v16 = vadd.f32 %v13712_v27, %v17149_v29  ;;  %v11066_v56 = vrot.slane %v14574_v45, 3 }
 0x396   : > { %v17330_v62 = vadd.f32 %v13756_v61, %v7866_v41  ;;  %v7779_v4 = vpop.f32.mrf.mxu1  ;;  %v14577_v61 = vld [vmem:[#allocation2 + $0x68] sm:$0xff]  }
 0x397   : > { %v8282_v49 = vpop.f32.mrf.mxu0  ;;  %v7872_v47 = vadd.f32 %v7779_v4, %v17153_v20  ;;  %v11067_v38 = vsel %vm5040_vm5, %v11064_v21, %v11066_v56  ;;  %v11072_v45 = vrot.slane %v14577_v61, 3 }
 0x398   : > { %v17333_v12 = vadd.f32 %v8282_v49, %v7864_v40  ;;  %v13715_v58 = vpop.f32.mrf.mxu1  ;;  %14014 = vmatmul.mubr.bf16.gmra.mxu1 %v11063_v53 }
 0x399   : > { %v13759_v22 = vpop.f32.mrf.mxu0  ;;  %v7877_v41 = vadd.f32 %v13715_v58, %v17165_v2  ;;  %14017 = vmatprep.mubr.bf16.mxu1 %v11065_v60 }
 0x39a   : > { %v17338_v7 = vadd.f32 %v13759_v22, %v7869_v0  ;;  %v7792_v48 = vpop.f32.mrf.mxu1 }
 0x39b   : > { %v8295_v29 = vpop.f32.mrf.mxu0  ;;  %v7875_v20 = vadd.f32 %v7792_v48, %v17169_v36  ;;  %v11069_v36 = vsel %vm5040_vm5, %v11066_v56, %v11068_v42 }
 0x39c   : > { %v17341_v40 = vadd.f32 %v8295_v29, %v7867_v44  ;;  %v13716_v37 = vpop.f32.mrf.mxu1  ;;  %v14576_v44 = vld [vmem:[#allocation2 + $0x60] sm:$0xff]  }
 0x39d   : > { %v13760_v50 = vpop.f32.mrf.mxu0  ;;  %v7878_v26 = vadd.f32 %v13716_v37, %v17176_v54  ;;  %v11070_v4 = vrot.slane %v14576_v44, 3 }
 0x39e   : > { %v17344_v25 = vadd.f32 %v13760_v50, %v7870_v17  ;;  %v7795_v0 = vpop.f32.mrf.mxu1  ;;  %v14579_v50 = vld [vmem:[#allocation2 + $0x78] sm:$0xff]  }
 0x39f   : > { %v8298_v6 = vpop.f32.mrf.mxu0  ;;  %v7876_v2 = vadd.f32 %v7795_v0, %v17181_v19  ;;  %v11071_v29 = vsel %vm5040_vm5, %v11068_v42, %v11070_v4  ;;  %v11076_v44 = vrot.slane %v14579_v50, 3 }
 0x3a0   : > { %v17347_v34 = vadd.f32 %v8298_v6, %v7868_v63  ;;  %v13719_v57 = vpop.f32.mrf.mxu1  ;;  %14018 = vmatmul.mubr.bf16.gmra.mxu1 %v11067_v38 }
 0x3a1   : > { %v13763_v28 = vpop.f32.mrf.mxu0  ;;  %v7881_v17 = vadd.f32 %v13719_v57, %v17192_v9  ;;  %14021 = vmatprep.mubr.bf16.mxu1 %v11069_v36 }
 0x3a2   : > { %v17352_v27 = vadd.f32 %v13763_v28, %v7873_v39  ;;  %v7808_v49 = vpop.f32.mrf.mxu1 }
 0x3a3   : > { %v8311_v54 = vpop.f32.mrf.mxu0  ;;  %v7879_v19 = vadd.f32 %v7808_v49, %v17198_v55  ;;  %v11073_v55 = vsel %vm5040_vm5, %v11070_v4, %v11072_v45 }
 0x3a4   : > { %v17355_v63 = vadd.f32 %v8311_v54, %v7871_v33  ;;  %v13720_v53 = vpop.f32.mrf.mxu1  ;;  %v14578_v33 = vld [vmem:[#allocation2 + $0x70] sm:$0xff]  }
 0x3a5   : > { %v13764_v21 = vpop.f32.mrf.mxu0  ;;  %v7882_v58 = vadd.f32 %v13720_v53, %v17205_v1  ;;  %v11074_v0 = vrot.slane %v14578_v33, 3 }
 0x3a6   : > { %v17358_v22 = vadd.f32 %v13764_v21, %v7874_v16  ;;  %v7811_v39 = vpop.f32.mrf.mxu1  ;;  %v14581_v21 = vld [vmem:[#allocation2 + $0x88] sm:$0xff]  }
 0x3a7   : > { %v8314_v60 = vpop.f32.mrf.mxu0  ;;  %v7880_v9 = vadd.f32 %v7811_v39, %v17211_v14  ;;  %v11075_v54 = vsel %vm5040_vm5, %v11072_v45, %v11074_v0  ;;  %v11080_v33 = vrot.slane %v14581_v21, 3 }
 0x3a8   : > { %v17361_v35 = vadd.f32 %v8314_v60, %v7872_v47  ;;  %v13723_v56 = vpop.f32.mrf.mxu1  ;;  %14022 = vmatmul.mubr.bf16.gmra.mxu1 %v11071_v29 }
 0x3a9   : > { %v13767_v48 = vpop.f32.mrf.mxu0  ;;  %v7885_v16 = vadd.f32 %v13723_v56, %v17219_v31  ;;  %14025 = vmatprep.mubr.bf16.mxu1 %v11073_v55 }
 0x3aa   : > { %v17366_v37 = vadd.f32 %v13767_v48, %v7877_v41  ;;  %v7824_v6 = vpop.f32.mrf.mxu1 }
 0x3ab   : > { %v8327_v1 = vpop.f32.mrf.mxu0  ;;  %v7883_v14 = vadd.f32 %v7824_v6, %v17228_v18  ;;  %v11077_v18 = vsel %vm5040_vm5, %v11074_v0, %v11076_v44 }
 0x3ac   : > { %v17369_v47 = vadd.f32 %v8327_v1, %v7875_v20  ;;  %v13724_v38 = vpop.f32.mrf.mxu1  ;;  %v14580_v20 = vld [vmem:[#allocation2 + $0x80] sm:$0xff]  }
 0x3ad   : > { %v13768_v42 = vpop.f32.mrf.mxu0  ;;  %v7886_v57 = vadd.f32 %v13724_v38, %v17235_v51  ;;  %v11078_v39 = vrot.slane %v14580_v20, 3 }
 0x3ae   : > { %v17372_v28 = vadd.f32 %v13768_v42, %v7878_v26  ;;  %v7827_v41 = vpop.f32.mrf.mxu1 }
 0x3af   : > { %v8330_v36 = vpop.f32.mrf.mxu0  ;;  %v7884_v31 = vadd.f32 %v7827_v41, %v17244_v23  ;;  %v11079_v1 = vsel %vm5040_vm5, %v11076_v44, %v11078_v39 }
 0x3b0   : > { %v17375_v61 = vadd.f32 %v8330_v36, %v7876_v2  ;;  %v13727_v4 = vpop.f32.mrf.mxu1  ;;  %14026 = vmatmul.mubr.bf16.gmra.mxu1 %v11075_v54  ;;  %v14583_v36 = vld [vmem:[#allocation2 + $0x98] sm:$0xff]  }
 0x3b1   : > { %v13771_v49 = vpop.f32.mrf.mxu0  ;;  %v7889_v26 = vadd.f32 %v13727_v4, %v17256_v24  ;;  %14029 = vmatprep.mubr.bf16.mxu1 %v11077_v18  ;;  %v11084_v18 = vrot.slane %v14583_v36, 3 }
 0x3b2   : > { %v17380_v53 = vadd.f32 %v13771_v49, %v7881_v17  ;;  %v7840_v60 = vpop.f32.mrf.mxu1 }
 0x3b3   : > { %v8343_v51 = vpop.f32.mrf.mxu0  ;;  %v7887_v23 = vadd.f32 %v7840_v60, %v17263_v46  ;;  %v11081_v46 = vsel %vm5040_vm5, %v11078_v39, %v11080_v33 }
 0x3b4   : > { %v17383_v2 = vadd.f32 %v8343_v51, %v7879_v19  ;;  %v13728_v29 = vpop.f32.mrf.mxu1  ;;  %v14582_v19 = vld [vmem:[#allocation2 + $0x90] sm:$0xff]  }
 0x3b5   : > { %v13772_v45 = vpop.f32.mrf.mxu0  ;;  %v7890_v56 = vadd.f32 %v13728_v29, %v17271_v30  ;;  %v11082_v41 = vrot.slane %v14582_v19, 3 }
 0x3b6   : > { %v17386_v48 = vadd.f32 %v13772_v45, %v7882_v58  ;;  %v7843_v17 = vpop.f32.mrf.mxu1 }
 0x3b7   : > { %v8346_v55 = vpop.f32.mrf.mxu0  ;;  %v7888_v24 = vadd.f32 %v7843_v17, %v17276_v52  ;;  %v11083_v51 = vsel %vm5040_vm5, %v11080_v33, %v11082_v41 }
 0x3b8   : > { %v17389_v50 = vadd.f32 %v8346_v55, %v7880_v9  ;;  %v13799_v0 = vpop.f32.mrf.mxu1  ;;  %14030 = vmatmul.mubr.bf16.gmra.mxu1 %v11079_v1 }
 0x3b9   : > { %v13775_v6 = vpop.f32.mrf.mxu0  ;;  %v9060_v58 = vadd.f32 %v13799_v0, %v17286_v15  ;;  %14033 = vmatprep.mubr.bf16.mxu1 %v11081_v46 }
 0x3ba   : > { %v17394_v42 = vadd.f32 %v13775_v6, %v7885_v16  ;;  %v8915_v38 = vpop.f32.mrf.mxu1 }
 0x3bb   : > { %v8359_v30 = vpop.f32.mrf.mxu0  ;;  %v9058_v52 = vadd.f32 %v8915_v38, %v17290_v32  ;;  %v11085_v32 = vsel %vm5040_vm5, %v11082_v41, %v11084_v18 }
 0x3bc   : > { %v17397_v9 = vadd.f32 %v8359_v30, %v7883_v14  ;;  %v13800_v54 = vpop.f32.mrf.mxu1  ;;  %v14584_v14 = vld [vmem:[#allocation2 + $0xa0] ss:$0 sps:$4 sm:$0x77]  }
 0x3bd   : > { %v13776_v44 = vpop.f32.mrf.mxu0  ;;  %v9061_v49 = vadd.f32 %v13800_v54, %v17294_v5 }
 0x3be   : > { %v17400_v20 = vadd.f32 %v13776_v44, %v7886_v57  ;;  %v8918_v16 = vpop.f32.mrf.mxu1 }
 0x3bf   : > { %v8362_v4 = vpop.f32.mrf.mxu0  ;;  %v9059_v15 = vadd.f32 %v8918_v16, %v17300_v3  ;;  %v11086_v3 = vrot.slane %v14584_v14, 3 }
 0x3c0   : > { %v17403_v21 = vadd.f32 %v8362_v4, %v7884_v31  ;;  %v13803_v39 = vpop.f32.mrf.mxu1  ;;  %14034 = vmatmul.mubr.bf16.gmra.mxu1 %v11083_v51 }
 0x3c1   : > { %v13779_v60 = vpop.f32.mrf.mxu0  ;;  %v9064_v57 = vadd.f32 %v13803_v39, %v17306_v43  ;;  %14037 = vmatprep.mubr.bf16.mxu1 %v11085_v32  ;;  %v11087_v46 = vsel %vm5040_vm5, %v11084_v18, %v11086_v3 }
 0x3c2   : > { %v17408_v45 = vadd.f32 %v13779_v60, %v7889_v26  ;;  %v8931_v29 = vpop.f32.mrf.mxu1 }
 0x3c3   : > { %v8375_v5 = vpop.f32.mrf.mxu0  ;;  %v9062_v31 = vadd.f32 %v8931_v29, %v17310_v13 }
 0x3c4   : > { %v17411_v55 = vadd.f32 %v8375_v5, %v7887_v23  ;;  %v13804_v33 = vpop.f32.mrf.mxu1 }
 0x3c5   : > { %v13780_v17 = vpop.f32.mrf.mxu0  ;;  %v9065_v19 = vadd.f32 %v13804_v33, %v17314_v59 }
 0x3c6   : > { %v17414_v1 = vadd.f32 %v13780_v17, %v7890_v56  ;;  %v8934_v0 = vpop.f32.mrf.mxu1 }
 0x3c7   : > { %v8378_v6 = vpop.f32.mrf.mxu0  ;;  %v9063_v43 = vadd.f32 %v8934_v0, %v17318_v11 }
 0x3c8   : > { %v17417_v26 = vadd.f32 %v8378_v6, %v7888_v24  ;;  %v13807_v23 = vpop.f32.mrf.mxu1  ;;  %14038 = vmatmul.mubr.bf16.gmra.mxu1 %v11087_v46 }
 0x3c9   : > { %v13851_v30 = vpop.f32.mrf.mxu0  ;;  %v9068_v13 = vadd.f32 %v13807_v23, %v17324_v8 }
 0x3ca   : > { %v17421_v38 = vadd.f32 %v13851_v30, %v9060_v58  ;;  %v8947_v56 = vpop.f32.mrf.mxu1 }
 0x3cb   : > { %v9450_v36 = vpop.f32.mrf.mxu0  ;;  %v9066_v59 = vadd.f32 %v8947_v56, %v17327_v10 }
 0x3cc   : > { %v17424_v41 = vadd.f32 %v9450_v36, %v9058_v52  ;;  %v13808_v24 = vpop.f32.mrf.mxu1 }
 0x3cd   : > { %v13852_v44 = vpop.f32.mrf.mxu0  ;;  %v9069_v11 = vadd.f32 %v13808_v24, %v17330_v62 }
 0x3ce   : > { %v17427_v54 = vadd.f32 %v13852_v44, %v9061_v49  ;;  %v8950_v16 = vpop.f32.mrf.mxu1 }
 0x3cf   : > { %v9453_v4 = vpop.f32.mrf.mxu0  ;;  %v9067_v58 = vadd.f32 %v8950_v16, %v17333_v12 }
 0x3d0   : > { %v17430_v18 = vadd.f32 %v9453_v4, %v9059_v15  ;;  %v13811_v8 = vpop.f32.mrf.mxu1 }
 0x3d1   : > { %v13855_v51 = vpop.f32.mrf.mxu0  ;;  %v9072_v52 = vadd.f32 %v13811_v8, %v17338_v7 }
 0x3d2   : > { %v17433_v14 = vadd.f32 %v13855_v51, %v9064_v57  ;;  %v8963_v10 = vpop.f32.mrf.mxu1 }
 0x3d3   : > { %v9466_v60 = vpop.f32.mrf.mxu0  ;;  %v9070_v49 = vadd.f32 %v8963_v10, %v17341_v40 }
 0x3d4   : > { %v17436_v39 = vadd.f32 %v9466_v60, %v9062_v31  ;;  %v13812_v62 = vpop.f32.mrf.mxu1 }
 0x3d5   : > { %v13856_v32 = vpop.f32.mrf.mxu0  ;;  %v9073_v15 = vadd.f32 %v13812_v62, %v17344_v25 }
 0x3d6   : > { %v17439_v5 = vadd.f32 %v13856_v32, %v9065_v19  ;;  %v8966_v12 = vpop.f32.mrf.mxu1 }
 0x3d7   : > { %v9469_v29 = vpop.f32.mrf.mxu0  ;;  %v9071_v57 = vadd.f32 %v8966_v12, %v17347_v34 }
 0x3d8   : > { %v17442_v3 = vadd.f32 %v9469_v29, %v9063_v43  ;;  %v13815_v7 = vpop.f32.mrf.mxu1 }
 0x3d9   : > { %v13859_v17 = vpop.f32.mrf.mxu0  ;;  %v9076_v31 = vadd.f32 %v13815_v7, %v17352_v27 }
 0x3da   : > { %v17445_v33 = vadd.f32 %v13859_v17, %v9068_v13  ;;  %v8979_v40 = vpop.f32.mrf.mxu1 }
 0x3db   : > { %v9482_v6 = vpop.f32.mrf.mxu0  ;;  %v9074_v19 = vadd.f32 %v8979_v40, %v17355_v63 }
 0x3dc   : > { %v17448_v0 = vadd.f32 %v9482_v6, %v9066_v59  ;;  %v13816_v25 = vpop.f32.mrf.mxu1 }
 0x3dd   : > { %v13860_v46 = vpop.f32.mrf.mxu0  ;;  %v9077_v43 = vadd.f32 %v13816_v25, %v17358_v22 }
 0x3de   : > { %v17451_v30 = vadd.f32 %v13860_v46, %v9069_v11  ;;  %v8982_v34 = vpop.f32.mrf.mxu1 }
 0x3df   : > { %v9485_v23 = vpop.f32.mrf.mxu0  ;;  %v9075_v13 = vadd.f32 %v8982_v34, %v17361_v35 }
 0x3e0   : > { %v17454_v36 = vadd.f32 %v9485_v23, %v9067_v58  ;;  %v13819_v27 = vpop.f32.mrf.mxu1 }
 0x3e1   : > { %v13863_v56 = vpop.f32.mrf.mxu0  ;;  %v9080_v59 = vadd.f32 %v13819_v27, %v17366_v37 }
 0x3e2   : > { %v17457_v44 = vadd.f32 %v13863_v56, %v9072_v52  ;;  %v8995_v63 = vpop.f32.mrf.mxu1 }
 0x3e3   : > { %v9498_v24 = vpop.f32.mrf.mxu0  ;;  %v9078_v11 = vadd.f32 %v8995_v63, %v17369_v47 }
 0x3e4   : > { %v17460_v4 = vadd.f32 %v9498_v24, %v9070_v49  ;;  %v13820_v22 = vpop.f32.mrf.mxu1 }
 0x3e5   : > { %v13864_v16 = vpop.f32.mrf.mxu0  ;;  %v9081_v58 = vadd.f32 %v13820_v22, %v17372_v28 }
 0x3e6   : > { %v17463_v51 = vadd.f32 %v13864_v16, %v9073_v15  ;;  %v8998_v35 = vpop.f32.mrf.mxu1 }
 0x3e7   : > { %v9501_v8 = vpop.f32.mrf.mxu0  ;;  %v9079_v52 = vadd.f32 %v8998_v35, %v17375_v61 }
 0x3e8   : > { %v17466_v60 = vadd.f32 %v9501_v8, %v9071_v57  ;;  %v13823_v37 = vpop.f32.mrf.mxu1 }
 0x3e9   : > { %v13867_v10 = vpop.f32.mrf.mxu0  ;;  %v9084_v49 = vadd.f32 %v13823_v37, %v17380_v53 }
 0x3ea   : > { %v17469_v32 = vadd.f32 %v13867_v10, %v9076_v31  ;;  %v9011_v47 = vpop.f32.mrf.mxu1 }
 0x3eb   : > { %v9514_v62 = vpop.f32.mrf.mxu0  ;;  %v9082_v15 = vadd.f32 %v9011_v47, %v17383_v2 }
 0x3ec   : > { %v17472_v29 = vadd.f32 %v9514_v62, %v9074_v19  ;;  %v13824_v28 = vpop.f32.mrf.mxu1 }
 0x3ed   : > { %v13868_v12 = vpop.f32.mrf.mxu0  ;;  %v9085_v57 = vadd.f32 %v13824_v28, %v17386_v48 }
 0x3ee   : > { %v17475_v17 = vadd.f32 %v13868_v12, %v9077_v43  ;;  %v9014_v61 = vpop.f32.mrf.mxu1 }
 0x3ef   : > { %v9517_v7 = vpop.f32.mrf.mxu0  ;;  %v9083_v31 = vadd.f32 %v9014_v61, %v17389_v50 }
 0x3f0   : > { %v17478_v6 = vadd.f32 %v9517_v7, %v9075_v13  ;;  %v13827_v53 = vpop.f32.mrf.mxu1 }
 0x3f1   : > { %v13871_v40 = vpop.f32.mrf.mxu0  ;;  %v9088_v19 = vadd.f32 %v13827_v53, %v17394_v42 }
 0x3f2   : > { %v17481_v46 = vadd.f32 %v13871_v40, %v9080_v59  ;;  %v9027_v2 = vpop.f32.mrf.mxu1 }
 0x3f3   : > { %v9530_v25 = vpop.f32.mrf.mxu0  ;;  %v9086_v43 = vadd.f32 %v9027_v2, %v17397_v9 }
 0x3f4   : > { %v17484_v23 = vadd.f32 %v9530_v25, %v9078_v11  ;;  %v13828_v48 = vpop.f32.mrf.mxu1 }
 0x3f5   : > { %v13872_v34 = vpop.f32.mrf.mxu0  ;;  %v9089_v13 = vadd.f32 %v13828_v48, %v17400_v20 }
 0x3f6   : > { %v17487_v56 = vadd.f32 %v13872_v34, %v9081_v58  ;;  %v9030_v50 = vpop.f32.mrf.mxu1 }
 0x3f7   : > { %v9533_v27 = vpop.f32.mrf.mxu0  ;;  %v9087_v59 = vadd.f32 %v9030_v50, %v17403_v21 }
 0x3f8   : > { %v17490_v24 = vadd.f32 %v9533_v27, %v9079_v52  ;;  %v13831_v42 = vpop.f32.mrf.mxu1 }
 0x3f9   : > { %v13875_v63 = vpop.f32.mrf.mxu0  ;;  %v9092_v11 = vadd.f32 %v13831_v42, %v17408_v45 }
 0x3fa   : > { %v17493_v16 = vadd.f32 %v13875_v63, %v9084_v49  ;;  %v9043_v9 = vpop.f32.mrf.mxu1 }
 0x3fb   : > { %v9546_v22 = vpop.f32.mrf.mxu0  ;;  %v9090_v58 = vadd.f32 %v9043_v9, %v17411_v55 }
 0x3fc   : > { %v17496_v8 = vadd.f32 %v9546_v22, %v9082_v15  ;;  %v13832_v20 = vpop.f32.mrf.mxu1 }
 0x3fd   : > { %v13876_v35 = vpop.f32.mrf.mxu0  ;;  %v9093_v52 = vadd.f32 %v13832_v20, %v17414_v1 }
 0x3fe   : > { %v17499_v10 = vadd.f32 %v13876_v35, %v9085_v57  ;;  %v9046_v21 = vpop.f32.mrf.mxu1 }
 0x3ff   : > { %v9549_v37 = vpop.f32.mrf.mxu0  ;;  %v9091_v49 = vadd.f32 %v9046_v21, %v17417_v26 }
 0x400   : > { %v17502_v62 = vadd.f32 %v9549_v37, %v9083_v31  ;;  %v13903_v45 = vpop.f32.mrf.mxu1 }
 0x401   : > { %v13879_v47 = vpop.f32.mrf.mxu0  ;;  %v17508_v15 = vadd.f32 %v13903_v45, %v17421_v38 }
 0x402   : > { %v17505_v12 = vadd.f32 %v13879_v47, %v9088_v19  ;;  %v9985_v28 = vpop.f32.mrf.mxu1 }
 0x403   : > { %v9562_v55 = vpop.f32.mrf.mxu0  ;;  %v17513_v57 = vadd.f32 %v9985_v28, %v17424_v41 }
 0x404   : > { %v17510_v7 = vadd.f32 %v9562_v55, %v9086_v43  ;;  %v13904_v61 = vpop.f32.mrf.mxu1 }
 0x405   : > { %v13880_v1 = vpop.f32.mrf.mxu0  ;;  %v17518_v26 = vadd.f32 %v13904_v61, %v17427_v54 }
 0x406   : > { %v17515_v31 = vadd.f32 %v13880_v1, %v9089_v13  ;;  %v9988_v53 = vpop.f32.mrf.mxu1 }
 0x407   : > { %v9565_v40 = vpop.f32.mrf.mxu0  ;;  %v17523_v38 = vadd.f32 %v9988_v53, %v17430_v18 }
 0x408   : > { %v17520_v19 = vadd.f32 %v9565_v40, %v9087_v59  ;;  %v13907_v2 = vpop.f32.mrf.mxu1 }
 0x409   : > { %v13883_v25 = vpop.f32.mrf.mxu0  ;;  %v17528_v41 = vadd.f32 %v13907_v2, %v17433_v14 }
 0x40a   : > { %v17525_v43 = vadd.f32 %v13883_v25, %v9092_v11  ;;  %v10001_v48 = vpop.f32.mrf.mxu1 }
 0x40b   : > { %v9578_v34 = vpop.f32.mrf.mxu0  ;;  %v17533_v54 = vadd.f32 %v10001_v48, %v17436_v39 }
 0x40c   : > { %v17530_v13 = vadd.f32 %v9578_v34, %v9090_v58  ;;  %v13908_v50 = vpop.f32.mrf.mxu1 }
 0x40d   : > { %v13884_v27 = vpop.f32.mrf.mxu0  ;;  %v17538_v18 = vadd.f32 %v13908_v50, %v17439_v5 }
 0x40e   : > { %v17535_v59 = vadd.f32 %v13884_v27, %v9093_v52  ;;  %v10004_v42 = vpop.f32.mrf.mxu1 }
 0x40f   : > { %v9581_v63 = vpop.f32.mrf.mxu0  ;;  %v17543_v14 = vadd.f32 %v10004_v42, %v17442_v3 }
 0x410   : > { %v17540_v11 = vadd.f32 %v9581_v63, %v9091_v49  ;;  %v13911_v9 = vpop.f32.mrf.mxu1 }
 0x411   : > { %v17545_v22 = vpop.f32.mrf.mxu0  ;;  %v17548_v39 = vadd.f32 %v13911_v9, %v17445_v33 }
 0x412   : > { %v10017_v35 = vpop.f32.mrf.mxu1 }
 0x413   : > { %v17550_v58 = vpop.f32.mrf.mxu0  ;;  %v17553_v20 = vadd.f32 %v10017_v35, %v17448_v0 }
 0x414   : > { %v13912_v52 = vpop.f32.mrf.mxu1 }
 0x415   : > { %v17555_v5 = vpop.f32.mrf.mxu0  ;;  %v17558_v37 = vadd.f32 %v13912_v52, %v17451_v30 }
 0x416   : > { %v10020_v21 = vpop.f32.mrf.mxu1 }
 0x417   : > { %v17560_v3 = vpop.f32.mrf.mxu0  ;;  %v17563_v49 = vadd.f32 %v10020_v21, %v17454_v36 }
 0x418   : > { %v13915_v47 = vpop.f32.mrf.mxu1 }
 0x419   : > { %v17565_v33 = vpop.f32.mrf.mxu0  ;;  %v17568_v45 = vadd.f32 %v13915_v47, %v17457_v44 }
 0x41a   : > { %v10033_v55 = vpop.f32.mrf.mxu1 }
 0x41b   : > { %v17570_v0 = vpop.f32.mrf.mxu0  ;;  %v17573_v28 = vadd.f32 %v10033_v55, %v17460_v4 }
 0x41c   : > { %v13916_v1 = vpop.f32.mrf.mxu1 }
 0x41d   : > { %v17575_v30 = vpop.f32.mrf.mxu0  ;;  %v17578_v61 = vadd.f32 %v13916_v1, %v17463_v51 }
 0x41e   : > { %v10036_v40 = vpop.f32.mrf.mxu1 }
 0x41f   : > { %v17580_v36 = vpop.f32.mrf.mxu0  ;;  %v17583_v53 = vadd.f32 %v10036_v40, %v17466_v60 }
 0x420   : > { %v13919_v25 = vpop.f32.mrf.mxu1 }
 0x421   : > { %v17585_v44 = vpop.f32.mrf.mxu0  ;;  %v17588_v2 = vadd.f32 %v13919_v25, %v17469_v32 }
 0x422   : > { %v10049_v34 = vpop.f32.mrf.mxu1 }
 0x423   : > { %v17590_v4 = vpop.f32.mrf.mxu0  ;;  %v17593_v48 = vadd.f32 %v10049_v34, %v17472_v29 }
 0x424   : > { %v13920_v51 = vpop.f32.mrf.mxu1 }
 0x425   : > { %v17596_v27 = vadd.f32 %v13920_v51, %v17475_v17  ;;  %v17598_v50 = vpop.f32.mrf.mxu0 }
 0x426   : > { %v10052_v60 = vpop.f32.mrf.mxu1 }
 0x427   : > { %v17601_v63 = vadd.f32 %v10052_v60, %v17478_v6  ;;  %v17606_v9 = vpop.f32.mrf.mxu0 }
 0x428   : > { %v13923_v42 = vpop.f32.mrf.mxu1 }
 0x429   : > { %v17604_v32 = vadd.f32 %v13923_v42, %v17481_v46  ;;  %v17614_v21 = vpop.f32.mrf.mxu0 }
 0x42a   : > { %v10065_v35 = vpop.f32.mrf.mxu1 }
 0x42b   : > { %v17609_v29 = vadd.f32 %v10065_v35, %v17484_v23  ;;  %v17622_v1 = vpop.f32.mrf.mxu0 }
 0x42c   : > { %v13924_v52 = vpop.f32.mrf.mxu1 }
 0x42d   : > { %18121 = vst [vmem:[#allocation11_spill] sm:$0xff] %v17609_v29  ;;  %v17612_v17 = vadd.f32 %v13924_v52, %v17487_v56  ;;  %v17630_v34 = vpop.f32.mrf.mxu0 }
 0x42e   : > { %v10068_v47 = vpop.f32.mrf.mxu1 }
 0x42f   : > { %18122 = vst [vmem:[#allocation18_spill] sm:$0xff] %v17612_v17  ;;  %v17617_v6 = vadd.f32 %v10068_v47, %v17490_v24  ;;  %v17638_v42 = vpop.f32.mrf.mxu0  ;;  %v12620_v47 = vld [vmem:[%s14826_s13 + $0x10] sm:$0xff]  }
 0x430   : > { %v13927_v55 = vpop.f32.mrf.mxu1 }
 0x431   : > { %18123 = vst [vmem:[#allocation20_spill] sm:$0xff] %v17617_v6  ;;  %v17620_v46 = vadd.f32 %v13927_v55, %v17493_v16  ;;  %v17647_v55 = vpop.f32.mrf.mxu0 }
 0x432   : > { %v10081_v40 = vpop.f32.mrf.mxu1 }
 0x433   : > { %18124 = vst [vmem:[#allocation22_spill] sm:$0xff] %v17620_v46  ;;  %v17625_v23 = vadd.f32 %v10081_v40, %v17496_v8 }
 0x434   : > { %v13928_v25 = vpop.f32.mrf.mxu1 }
 0x435   : > { %18125 = vst [vmem:[#allocation12_spill] sm:$0xff] %v17625_v23  ;;  %v17628_v56 = vadd.f32 %v13928_v25, %v17499_v10  ;;  %v11404_v25 = vld [vmem:[%s14826_s13 + $0xc] sm:$0xf] }
 0x436   : > { %v10084_v24 = vpop.f32.mrf.mxu1 }
 0x437   : > { %18126 = vst [vmem:[#allocation13_spill] sm:$0xff] %v17628_v56  ;;  %v17633_v51 = vadd.f32 %v10084_v24, %v17502_v62 }
 0x438   : > { %v13931_v16 = vpop.f32.mrf.mxu1 }
 0x439   : > { %18127 = vst [vmem:[#allocation14_spill] sm:$0xff] %v17633_v51  ;;  %v17636_v60 = vadd.f32 %v13931_v16, %v17505_v12  ;;  %v11403_v12 = vld [vmem:[%s14826_s13 + $0x8] sm:$0xe]  ;;  %v12554_v16 = vunpack.c.l.bf16 %v12620_v47 }
 0x43a   : > { %v10097_v8 = vpop.f32.mrf.mxu1 }
 0x43b   : > { %18128 = vst [vmem:[#allocation16_spill] sm:$0xff] %v17636_v60  ;;  %v17641_v35 = vadd.f32 %v10097_v8, %v17510_v7  ;;  %v12555_v60 = vunpack.c.h.bf16 %v12620_v47  ;;  %v12621_v8 = vld [vmem:[%s14826_s13 + $0x18] sm:$0xff]  }
 0x43c   : > { %v13932_v10 = vpop.f32.mrf.mxu1  ;;  %v12558_v56 = vunpack.c.l.bf16 %v12621_v8 }
 0x43d   : > { %18129 = vst [vmem:[#allocation19_spill] sm:$0xff] %v17641_v35  ;;  %v17644_v52 = vadd.f32 %v13932_v10, %v17515_v31  ;;  %v17658_v31 = vpop.f32.mrf.mxu0  ;;  %v11441_v35 = vunpack.c.l.bf16 %v11404_v25  ;;  %v11556_v51 = vrot.slane %v12555_v60, 3  ;;  %v10798_v25 = vadd.f32 %v17545_v22, %v17508_v15 }
 0x43e   : > { %v10100_v62 = vpop.f32.mrf.mxu1  ;;  %v12559_v22 = vunpack.c.h.bf16 %v12621_v8  ;;  %v12624_v8 = vld [vmem:[%s14826_s13 + $0x30] sm:$0xff]  }
 0x43f   : > { %18130 = vst [vmem:[#allocation21_spill] sm:$0xff] %v17644_v52  ;;  %v17650_v40 = vadd.f32 %v10100_v62, %v17520_v19  ;;  %v11440_v52 = vunpack.c.l.bf16 %v11403_v12  ;;  %v17668_v47 = vpop.f32.mrf.mxu0  ;;  %v11552_v12 = vrot.slane %v11441_v35, 3  ;;  %v17683_v35 = vld [vmem:[%s14826_s13 + $0x28] sm:$0xff]  }
 0x440   : > { %v13935_v24 = vpop.f32.mrf.mxu1 }
 0x441   : > { %18131 = vst [vmem:[#allocation23_spill] sm:$0xff] %v17650_v40  ;;  %v17655_v7 = vadd.f32 %v13935_v24, %v17525_v43  ;;  %v11554_v40 = vrot.slane %v12554_v16, 3  ;;  %v12622_v43 = vld [vmem:[%s14826_s13 + $0x20] sm:$0xff]   ;;  %v11558_v16 = vrot.slane %v12558_v56, 3 }
 0x442   : > { %v10113_v10 = vpop.f32.mrf.mxu1 }
 0x443   : > { %18132 = vst [vmem:[#allocation24_spill] sm:$0xff] %v17655_v7  ;;  %v17661_v19 = vadd.f32 %v10113_v10, %v17530_v13  ;;  %v11551_v7 = vrot.slane %v11440_v52, 3  ;;  %v12562_v10 = vunpack.c.l.bf16 %v12622_v43  ;;  %v11559_v46 = vsel %vm5040_vm5, %v11556_v51, %v11558_v16 }
 0x444   : > { %v13936_v62 = vpop.f32.mrf.mxu1 }
 0x445   : > { %18133 = vst [vmem:[#allocation27_spill] sm:$0xff] %v17661_v19  ;;  %v17664_v23 = vadd.f32 %v13936_v62, %v17535_v59  ;;  %v11557_v59 = vsel %vm5040_vm5, %v11554_v40, %v11556_v51  ;;  %v12563_v62 = vunpack.c.h.bf16 %v12622_v43  ;;  %v17685_v19 = vpop.f32.mrf.mxu0  ;;  %v10802_v51 = vadd.f32 %v17565_v33, %v17528_v41 }
 0x446   : > { %v10116_v24 = vpop.f32.mrf.mxu1 }
 0x447   : > { %18134 = vst [vmem:[#allocation28_spill] sm:$0xff] %v17664_v23  ;;  %v17673_v13 = vadd.f32 %v10116_v24, %v17540_v11  ;;  %v10796_v23 = vadd.f32 %v17550_v58, %v17513_v57  ;;  %v11553_v11 = vsel %vm5040_vm5, %v11551_v7, %v11552_v12  ;;  %v10799_v24 = vadd.f32 %v17555_v5, %v17518_v26  ;;  %v17695_v29 = vpop.f32.mrf.mxu0 }
 0x448   : > { %v14007_v60 = vpop.f32.mrf.mxu1  ;;  %v11562_v57 = vrot.slane %v12562_v10, 3  ;;  %v11564_v58 = vrot.slane %v12563_v62, 3  ;;  %v11555_v5 = vsel %vm5040_vm5, %v11552_v12, %v11554_v40  ;;  %v12571_v40 = vunpack.c.h.bf16 %v12624_v8 }
 0x449   : > { %18135 = vst [vmem:[#allocation29_spill] sm:$0xff] %v17673_v13  ;;  %v11333_v52 = vadd.f32 %v14007_v60, %v10798_v25  ;;  %v12566_v25 = vunpack.c.l.bf16 %v17683_v35  ;;  %v10797_v60 = vadd.f32 %v17560_v3, %v17523_v38  ;;  %v10800_v12 = vadd.f32 %v17570_v0, %v17533_v54 }
 0x44a   : > { %v11188_v15 = vpop.f32.mrf.mxu1  ;;  %v11565_v10 = vsel %vm5040_vm5, %v11562_v57, %v11564_v58 }
 0x44b   : > { %v11662_v13 = vadd.f32 %v11557_v59, %v11333_v52  ;;  %v11331_v56 = vadd.f32 %v11188_v15, %v10796_v23  ;;  %v11560_v23 = vrot.slane %v12559_v22, 3  ;;  %v11566_v62 = vrot.slane %v12566_v25, 3 }
 0x44c   : > { %v14008_v43 = vpop.f32.mrf.mxu1  ;;  %v12570_v52 = vunpack.c.l.bf16 %v12624_v8  ;;  %v12567_v22 = vunpack.c.h.bf16 %v17683_v35 }
 0x44d   : > { %v11698_v6 = vmax.f32 %v11662_v13, 0.0  ;;  %v11660_v17 = vadd.f32 %v11553_v11, %v11331_v56  ;;  %v11334_v7 = vadd.f32 %v14008_v43, %v10799_v24  ;;  %v17709_v11 = vld [vmem:[%s14826_s13 + $0x38] sm:$0xff]   ;;  %v10803_v24 = vadd.f32 %v17575_v30, %v17538_v18  ;;  %v12626_v18 = vld [vmem:[%s14826_s13 + $0x40] sm:$0xff]  }
 0x44e   : > { %v11191_v26 = vpop.f32.mrf.mxu1  ;;  %v11567_v25 = vsel %vm5040_vm5, %v11564_v58, %v11566_v62  ;;  %v12574_v8 = vunpack.c.l.bf16 %v17709_v11  ;;  %v10806_v58 = vadd.f32 %v17585_v44, %v17548_v39 }
 0x44f   : > { %11734 = vst [vmem:[%s17701_s28 + $0x10] sm:$0xff] %v11698_v6  ;;  %v11696_v38 = vmax.f32 %v11660_v17, 0.0  ;;  %v11663_v3 = vadd.f32 %v11559_v46, %v11334_v7  ;;  %v11332_v13 = vadd.f32 %v11191_v26, %v10797_v60  ;;  %v17711_v17 = vpop.f32.mrf.mxu0  ;;  %v11561_v46 = vsel %vm5040_vm5, %v11558_v16, %v11560_v23 }
 0x450   : > { %v14011_v59 = vpop.f32.mrf.mxu1  ;;  %v11570_v60 = vrot.slane %v12570_v52, 3  ;;  %v11572_v7 = vrot.slane %v12571_v40, 3  ;;  %v10801_v16 = vadd.f32 %v17580_v36, %v17543_v14  ;;  %v11574_v52 = vrot.slane %v12574_v8, 3 }
 0x451   : > { %11732 = vst [vmem:[%s17701_s28] sm:$0xff] %v11696_v38  ;;  %v11699_v41 = vmax.f32 %v11663_v3, 0.0  ;;  %v11661_v33 = vadd.f32 %v11555_v5, %v11332_v13  ;;  %v11337_v15 = vadd.f32 %v14011_v59, %v10802_v51  ;;  %v17724_v30 = vpop.f32.mrf.mxu0  ;;  %v11563_v38 = vsel %vm5040_vm5, %v11560_v23, %v11562_v57 }
 0x452   : > { %v11204_v6 = vpop.f32.mrf.mxu1  ;;  %v11568_v3 = vrot.slane %v12567_v22, 3  ;;  %v12578_v40 = vunpack.c.l.bf16 %v12626_v18  ;;  %v10807_v22 = vadd.f32 %v17598_v50, %v17558_v37  ;;  %v12628_v37 = vld [vmem:[%s14826_s13 + $0x50] sm:$0xff]  }
 0x453   : > { %11735 = vst [vmem:[%s17701_s28 + $0x18] sm:$0xff] %v11699_v41  ;;  %v11697_v54 = vmax.f32 %v11661_v33, 0.0  ;;  %v11666_v0 = vadd.f32 %v11565_v10, %v11337_v15  ;;  %v11335_v56 = vadd.f32 %v11204_v6, %v10800_v12  ;;  %v11573_v10 = vsel %vm5040_vm5, %v11570_v60, %v11572_v7  ;;  %v17735_v15 = vld [vmem:[%s14826_s13 + $0x48] sm:$0xff]   ;;  %v17737_v39 = vpop.f32.mrf.mxu0 }
 0x454   : > { %v14012_v43 = vpop.f32.mrf.mxu1  ;;  %v12579_v12 = vunpack.c.h.bf16 %v12626_v18  ;;  %v10804_v41 = vadd.f32 %v17590_v4, %v17553_v20  ;;  %v11569_v6 = vsel %vm5040_vm5, %v11566_v62, %v11568_v3  ;;  %v10805_v62 = vadd.f32 %v17606_v9, %v17563_v49 }
 0x455   : > { %11733 = vst [vmem:[%s17701_s28 + $0x8] sm:$0xff] %v11697_v54  ;;  %v11702_v35 = vmax.f32 %v11666_v0, 0.0  ;;  %v11664_v26 = vadd.f32 %v11561_v46, %v11335_v56  ;;  %v11338_v5 = vadd.f32 %v14012_v43, %v10803_v24  ;;  %v12575_v46 = vunpack.c.h.bf16 %v17709_v11  ;;  %v17750_v50 = vpop.f32.mrf.mxu0 }
 0x456   : > { %v11207_v51 = vpop.f32.mrf.mxu1  ;;  %v11575_v0 = vsel %vm5040_vm5, %v11572_v7, %v11574_v52  ;;  %v11578_v56 = vrot.slane %v12578_v40, 3  ;;  %v11580_v43 = vrot.slane %v12579_v12, 3  ;;  %v10810_v7 = vadd.f32 %v17614_v21, %v17568_v45 }
 0x457   : > { %11738 = vst [vmem:[%s17701_s28 + $0x30] sm:$0xff] %v11702_v35  ;;  %v11700_v13 = vmax.f32 %v11664_v26, 0.0  ;;  %v11667_v59 = vadd.f32 %v11567_v25, %v11338_v5  ;;  %v11336_v14 = vadd.f32 %v11207_v51, %v10801_v16  ;;  %v12582_v25 = vunpack.c.l.bf16 %v17735_v15  ;;  %v17763_v45 = vpop.f32.mrf.mxu0 }
 0x458   : > { %v14015_v36 = vpop.f32.mrf.mxu1  ;;  %v11571_v26 = vsel %vm5040_vm5, %v11568_v3, %v11570_v60  ;;  %v11576_v5 = vrot.slane %v12575_v46, 3  ;;  %v12583_v12 = vunpack.c.h.bf16 %v17735_v15 }
 0x459   : > { %11736 = vst [vmem:[%s17701_s28 + $0x20] sm:$0xff] %v11700_v13  ;;  %v11703_v57 = vmax.f32 %v11667_v59, 0.0  ;;  %v11665_v23 = vadd.f32 %v11563_v38, %v11336_v14  ;;  %v11341_v33 = vadd.f32 %v14015_v36, %v10806_v58  ;;  %v11581_v38 = vsel %vm5040_vm5, %v11578_v56, %v11580_v43 }
 0x45a   : > { %v11220_v44 = vpop.f32.mrf.mxu1  ;;  %v11582_v58 = vrot.slane %v12582_v25, 3  ;;  %v12586_v13 = vunpack.c.l.bf16 %v12628_v37  ;;  %v12587_v59 = vunpack.c.h.bf16 %v12628_v37  ;;  %v10808_v14 = vadd.f32 %v17622_v1, %v17573_v28 }
 0x45b   : > { %11739 = vst [vmem:[%s17701_s28 + $0x38] sm:$0xff] %v11703_v57  ;;  %v11701_v20 = vmax.f32 %v11665_v23, 0.0  ;;  %v11670_v4 = vadd.f32 %v11573_v10, %v11341_v33  ;;  %v11339_v24 = vadd.f32 %v11220_v44, %v10804_v41  ;;  %v17761_v10 = vld [vmem:[%s14826_s13 + $0x58] sm:$0xff]   ;;  %v11577_v40 = vsel %vm5040_vm5, %v11574_v52, %v11576_v5 }
 0x45c   : > { %v14016_v54 = vpop.f32.mrf.mxu1  ;;  %v10811_v41 = vadd.f32 %v17630_v34, %v17578_v61  ;;  %v11583_v33 = vsel %vm5040_vm5, %v11580_v43, %v11582_v58  ;;  %v11586_v44 = vrot.slane %v12586_v13, 3  ;;  %v12590_v46 = vunpack.c.l.bf16 %v17761_v10  ;;  %v12630_v61 = vld [vmem:[%s14826_s13 + $0x60] sm:$0xff]   ;;  %v17776_v34 = vpop.f32.mrf.mxu0 }
 0x45d   : > { %11737 = vst [vmem:[%s17701_s28 + $0x28] sm:$0xff] %v11701_v20  ;;  %v11706_v11 = vmax.f32 %v11670_v4, 0.0  ;;  %v11668_v8 = vadd.f32 %v11569_v6, %v11339_v24  ;;  %v11342_v16 = vadd.f32 %v14016_v54, %v10807_v22  ;;  %v11588_v6 = vrot.slane %v12587_v59, 3 }
 0x45e   : > { %v11223_v35 = vpop.f32.mrf.mxu1  ;;  %v10809_v52 = vadd.f32 %v17638_v42, %v17583_v53  ;;  %v11579_v24 = vsel %vm5040_vm5, %v11576_v5, %v11578_v56  ;;  %v11584_v54 = vrot.slane %v12583_v12, 3  ;;  %v10812_v37 = vadd.f32 %v17658_v31, %v17593_v48  ;;  %v17787_v5 = vld [vmem:[%s14826_s13 + $0x68] sm:$0xff]  }
 0x45f   : > { %11742 = vst [vmem:[%s17701_s28 + $0x50] sm:$0xff] %v11706_v11  ;;  %v11704_v18 = vmax.f32 %v11668_v8, 0.0  ;;  %v11671_v51 = vadd.f32 %v11575_v0, %v11342_v16  ;;  %v11340_v49 = vadd.f32 %v11223_v35, %v10805_v62  ;;  %v10814_v0 = vadd.f32 %v17647_v55, %v17588_v2  ;;  %v17789_v2 = vpop.f32.mrf.mxu0 }
 0x460   : > { %v14019_v9 = vpop.f32.mrf.mxu1  ;;  %v11589_v62 = vsel %vm5040_vm5, %v11586_v44, %v11588_v6  ;;  %v11590_v11 = vrot.slane %v12590_v46, 3  ;;  %v12594_v8 = vunpack.c.l.bf16 %v12630_v61  ;;  %v12595_v16 = vunpack.c.h.bf16 %v12630_v61 }
 0x461   : > { %11740 = vst [vmem:[%s17701_s28 + $0x40] sm:$0xff] %v11704_v18  ;;  %v11707_v60 = vmax.f32 %v11671_v51, 0.0  ;;  %v11669_v3 = vadd.f32 %v11571_v26, %v11340_v49  ;;  %v11345_v36 = vadd.f32 %v14019_v9, %v10810_v7  ;;  %v11585_v7 = vsel %vm5040_vm5, %v11582_v58, %v11584_v54 }
 0x462   : > { %v11236_v21 = vpop.f32.mrf.mxu1  ;;  %v12591_v18 = vunpack.c.h.bf16 %v17761_v10  ;;  %v10815_v51 = vadd.f32 %v17668_v47, %v17596_v27  ;;  %v11594_v13 = vrot.slane %v12594_v8, 3  ;;  %v11596_v59 = vrot.slane %v12595_v16, 3  ;;  %v12632_v27 = vld [vmem:[%s14826_s13 + $0x70] sm:$0xff]   ;;  %v17802_v47 = vpop.f32.mrf.mxu0  ;;  %v18138_v8 = vld [vmem:[#allocation20_spill] sm:$0xff] }
 0x463   : > { %11743 = vst [vmem:[%s17701_s28 + $0x58] sm:$0xff] %v11707_v60  ;;  %v11705_v28 = vmax.f32 %v11669_v3, 0.0  ;;  %v11674_v1 = vadd.f32 %v11581_v38, %v11345_v36  ;;  %v11343_v57 = vadd.f32 %v11236_v21, %v10808_v14  ;;  %v11591_v38 = vsel %vm5040_vm5, %v11588_v6, %v11590_v11  ;;  %v18136_v6 = vld [vmem:[#allocation11_spill] sm:$0xff] }
 0x464   : > { %v14020_v23 = vpop.f32.mrf.mxu1  ;;  %v12598_v14 = vunpack.c.l.bf16 %v17787_v5  ;;  %v10813_v58 = vadd.f32 %v17685_v19, %v17601_v63  ;;  %v11587_v21 = vsel %vm5040_vm5, %v11584_v54, %v11586_v44  ;;  %v10818_v12 = vadd.f32 %v17695_v29, %v17604_v32  ;;  %v17815_v32 = vpop.f32.mrf.mxu0 }
 0x465   : > { %11741 = vst [vmem:[%s17701_s28 + $0x48] sm:$0xff] %v11705_v28  ;;  %v11710_v15 = vmax.f32 %v11674_v1, 0.0  ;;  %v11672_v22 = vadd.f32 %v11577_v40, %v11343_v57  ;;  %v11346_v20 = vadd.f32 %v14020_v23, %v10811_v41  ;;  %v11592_v40 = vrot.slane %v12591_v18, 3 }
 0x466   : > { %v11239_v4 = vpop.f32.mrf.mxu1  ;;  %v11597_v1 = vsel %vm5040_vm5, %v11594_v13, %v11596_v59  ;;  %v11598_v57 = vrot.slane %v12598_v14, 3  ;;  %v12602_v23 = vunpack.c.l.bf16 %v12632_v27  ;;  %v10816_v46 = vadd.f32 %v17711_v17, %v18136_v6  ;;  %v18140_v14 = vld [vmem:[#allocation12_spill] sm:$0xff]  ;;  %v18142_v6 = vld [vmem:[#allocation14_spill] sm:$0xff] }
 0x467   : > { %11746 = vst [vmem:[%s17701_s28 + $0x70] sm:$0xff] %v11710_v15  ;;  %v11708_v43 = vmax.f32 %v11672_v22, 0.0  ;;  %v11675_v25 = vadd.f32 %v11583_v33, %v11346_v20  ;;  %v11344_v53 = vadd.f32 %v11239_v4, %v10809_v52  ;;  %v12603_v33 = vunpack.c.h.bf16 %v12632_v27  ;;  %v17813_v22 = vld [vmem:[%s14826_s13 + $0x78] sm:$0xff]   ;;  %v18137_v4 = vld [vmem:[#allocation18_spill] sm:$0xff] }
 0x468   : > { %v14023_v42 = vpop.f32.mrf.mxu1  ;;  %v11593_v20 = vsel %vm5040_vm5, %v11590_v11, %v11592_v40  ;;  %v12599_v61 = vunpack.c.h.bf16 %v17787_v5  ;;  %v10817_v11 = vadd.f32 %v17737_v39, %v18138_v8  ;;  %v11595_v5 = vsel %vm5040_vm5, %v11592_v40, %v11594_v13  ;;  %v18141_v40 = vld [vmem:[#allocation13_spill] sm:$0xff] }
 0x469   : > { %11744 = vst [vmem:[%s17701_s28 + $0x60] sm:$0xff] %v11708_v43  ;;  %v11711_v56 = vmax.f32 %v11675_v25, 0.0  ;;  %v11673_v35 = vadd.f32 %v11579_v24, %v11344_v53  ;;  %v11349_v26 = vadd.f32 %v14023_v42, %v10814_v0  ;;  %v10819_v24 = vadd.f32 %v17724_v30, %v18137_v4  ;;  %v12634_v30 = vld [vmem:[%s14826_s13 + $0x80] sm:$0xff]  }
 0x46a   : > { %v11252_v55 = vpop.f32.mrf.mxu1  ;;  %v11599_v25 = vsel %vm5040_vm5, %v11596_v59, %v11598_v57  ;;  %v11602_v53 = vrot.slane %v12602_v23, 3  ;;  %v11604_v42 = vrot.slane %v12603_v33, 3  ;;  %v12611_v59 = vunpack.c.h.bf16 %v12634_v30 }
 0x46b   : > { %11747 = vst [vmem:[%s17701_s28 + $0x78] sm:$0xff] %v11711_v56  ;;  %v11709_v48 = vmax.f32 %v11673_v35, 0.0  ;;  %v11678_v31 = vadd.f32 %v11589_v62, %v11349_v26  ;;  %v11347_v49 = vadd.f32 %v11252_v55, %v10812_v37  ;;  %v12606_v62 = vunpack.c.l.bf16 %v17813_v22  ;;  %v17828_v35 = vpop.f32.mrf.mxu0 }
 0x46c   : > { %v14024_v9 = vpop.f32.mrf.mxu1  ;;  %v11600_v55 = vrot.slane %v12599_v61, 3  ;;  %v11612_v23 = vrot.slane %v12611_v59, 3  ;;  %v18143_v61 = vld [vmem:[#allocation16_spill] sm:$0xff] }
 0x46d   : > { %11745 = vst [vmem:[%s17701_s28 + $0x68] sm:$0xff] %v11709_v48  ;;  %v11714_v60 = vmax.f32 %v11678_v31, 0.0  ;;  %v11676_v3 = vadd.f32 %v11585_v7, %v11347_v49  ;;  %v11350_v36 = vadd.f32 %v14024_v9, %v10815_v51  ;;  %v18139_v7 = vld [vmem:[#allocation22_spill] sm:$0xff]  ;;  %v11605_v49 = vsel %vm5040_vm5, %v11602_v53, %v11604_v42 }
 0x46e   : > { %v11255_v10 = vpop.f32.mrf.mxu1  ;;  %v10822_v18 = vadd.f32 %v17750_v50, %v18139_v7  ;;  %v11606_v9 = vrot.slane %v12606_v62, 3  ;;  %v10768_v50 = vpop.f32.mrf.mxu0  ;;  %v10826_v4 = vadd.f32 %v17802_v47, %v18143_v61  ;;  %v18144_v62 = vld [vmem:[#allocation19_spill] sm:$0xff] }
 0x46f   : > { %11750 = vst [vmem:[%s17701_s28 + $0x90] sm:$0xff] %v11714_v60  ;;  %v11712_v41 = vmax.f32 %v11676_v3, 0.0  ;;  %v11679_v28 = vadd.f32 %v11591_v38, %v11350_v36  ;;  %v11348_v63 = vadd.f32 %v11255_v10, %v10813_v58  ;;  %v12610_v38 = vunpack.c.l.bf16 %v12634_v30  ;;  %v17839_v36 = vld [vmem:[%s14826_s13 + $0x88] sm:$0xff]  }
 0x470   : > { %v14027_v19 = vpop.f32.mrf.mxu1  ;;  %v10820_v58 = vadd.f32 %v17763_v45, %v18140_v14  ;;  %v11601_v10 = vsel %vm5040_vm5, %v11598_v57, %v11600_v55  ;;  %v12614_v33 = vunpack.c.l.bf16 %v17839_v36  ;;  %v10821_v57 = vadd.f32 %v17789_v2, %v18142_v6 }
 0x471   : > { %11748 = vst [vmem:[%s17701_s28 + $0x80] sm:$0xff] %v11712_v41  ;;  %v11715_v44 = vmax.f32 %v11679_v28, 0.0  ;;  %v11677_v52 = vadd.f32 %v11587_v21, %v11348_v63  ;;  %v11353_v15 = vadd.f32 %v14027_v19, %v10818_v12  ;;  %v12607_v21 = vunpack.c.h.bf16 %v17813_v22 }
 0x472   : > { %v11268_v29 = vpop.f32.mrf.mxu1  ;;  %v10823_v12 = vadd.f32 %v17776_v34, %v18141_v40  ;;  %v11607_v19 = vsel %vm5040_vm5, %v11604_v42, %v11606_v9  ;;  %v12636_v34 = vld [vmem:[%s14826_s13 + $0x90] sm:$0xff]   ;;  %v10824_v8 = vadd.f32 %v17815_v32, %v18144_v62 }
 0x473   : > { %11751 = vst [vmem:[%s17701_s28 + $0x98] sm:$0xff] %v11715_v44  ;;  %v11713_v17 = vmax.f32 %v11677_v52, 0.0  ;;  %v11682_v54 = vadd.f32 %v11597_v1, %v11353_v15  ;;  %v11351_v0 = vadd.f32 %v11268_v29, %v10816_v46  ;;  %v11610_v1 = vrot.slane %v12610_v38, 3  ;;  %v13987_v15 = vpop.f32.mrf.mxu0  ;;  %v18146_v38 = vld [vmem:[#allocation23_spill] sm:$0xff] }
 0x474   : > { %v14028_v43 = vpop.f32.mrf.mxu1  ;;  %v11603_v29 = vsel %vm5040_vm5, %v11600_v55, %v11602_v53  ;;  %v12619_v42 = vunpack.c.h.bf16 %v12636_v34  ;;  %v10825_v59 = vadd.f32 %v10768_v50, %v18146_v38 }
 0x475   : > { %11749 = vst [vmem:[%s17701_s28 + $0x88] sm:$0xff] %v11713_v17  ;;  %v11718_v16 = vmax.f32 %v11682_v54, 0.0  ;;  %v11680_v37 = vadd.f32 %v11593_v20, %v11351_v0  ;;  %v11354_v56 = vadd.f32 %v14028_v43, %v10819_v24  ;;  %v11608_v20 = vrot.slane %v12607_v21, 3  ;;  %v10781_v47 = vpop.f32.mrf.mxu0 }
 0x476   : > { %v11271_v26 = vpop.f32.mrf.mxu1  ;;  %v11613_v0 = vsel %vm5040_vm5, %v11610_v1, %v11612_v23  ;;  %v11614_v43 = vrot.slane %v12614_v33, 3 }
 0x477   : > { %11754 = vst [vmem:[%s17701_s28 + $0xb0] sm:$0xff] %v11718_v16  ;;  %v11716_v51 = vmax.f32 %v11680_v37, 0.0  ;;  %v11683_v48 = vadd.f32 %v11599_v25, %v11354_v56  ;;  %v11352_v39 = vadd.f32 %v11271_v26, %v10817_v11  ;;  %v12618_v25 = vunpack.c.l.bf16 %v12636_v34  ;;  %v11439_v37 = vld [vmem:[%s14826_s13 + $0x98] sm:$0x3]  ;;  %s14043_s13 = smul.u32 4608, %s14743_s25  ;;  %s17897_s25 = scalar_lea.sflag [#allocation6], %s257_s20 }
 0x478   : > { %v14031_v31 = vpop.f32.mrf.mxu1  ;;  %v11609_v30 = vsel %vm5040_vm5, %v11606_v9, %v11608_v20  ;;  %v12615_v26 = vunpack.c.h.bf16 %v17839_v36  ;;  %v18147_v36 = vld [vmem:[#allocation24_spill] sm:$0xff] }
 0x479   : > { %11752 = vst [vmem:[%s17701_s28 + $0xa0] sm:$0xff] %v11716_v51  ;;  %v11719_v13 = vmax.f32 %v11683_v48, 0.0  ;;  %v11681_v60 = vadd.f32 %v11595_v5, %v11352_v39  ;;  %v11357_v3 = vadd.f32 %v14031_v31, %v10822_v18  ;;  %v18145_v5 = vld [vmem:[#allocation21_spill] sm:$0xff]  ;;  %v11615_v48 = vsel %vm5040_vm5, %v11612_v23, %v11614_v43  ;;  %s17889_s11 = scalar_lea.hbm %s17943_s6, %s14043_s13 }
 0x47a   : > { %v11284_v27 = vpop.f32.mrf.mxu1  ;;  %v10827_v55 = vadd.f32 %v17828_v35, %v18145_v5  ;;  %v11618_v39 = vrot.slane %v12618_v25, 3  ;;  %v11620_v31 = vrot.slane %v12619_v42, 3 }
 0x47b   : > { %11755 = vst [vmem:[%s17701_s28 + $0xb8] sm:$0xff] %v11719_v13  ;;  %v11717_v41 = vmax.f32 %v11681_v60, 0.0  ;;  %v11686_v45 = vadd.f32 %v11605_v49, %v11357_v3  ;;  %v11355_v28 = vadd.f32 %v11284_v27, %v10820_v58  ;;  %v11476_v49 = vunpack.c.l.bf16 %v11439_v37  ;;  %v13988_v13 = vpop.f32.mrf.mxu0 }
 0x47c   : > { %v14032_v63 = vpop.f32.mrf.mxu1  ;;  %v11611_v60 = vsel %vm5040_vm5, %v11608_v20, %v11610_v1  ;;  %v11616_v3 = vrot.slane %v12615_v26, 3  ;;  %v10830_v27 = vadd.f32 %v13987_v15, %v18147_v36  ;;  %v11621_v50 = vsel %vm5040_vm5, %v11618_v39, %v11620_v31 }
 0x47d   : > { %11753 = vst [vmem:[%s17701_s28 + $0xa8] sm:$0xff] %v11717_v41  ;;  %v11722_v46 = vmax.f32 %v11686_v45, 0.0  ;;  %v11684_v44 = vadd.f32 %v11601_v10, %v11355_v28  ;;  %v11358_v52 = vadd.f32 %v14032_v63, %v10823_v12  ;;  %v11622_v41 = vrot.slane %v11476_v49, 3  ;;  %v18148_v45 = vld [vmem:[#allocation27_spill] sm:$0xff]  ;;  %v10784_v1 = vpop.f32.mrf.mxu0 }
 0x47e   : > { %v11287_v22 = vpop.f32.mrf.mxu1  ;;  %v10828_v28 = vadd.f32 %v10781_v47, %v18148_v45  ;;  %v11617_v6 = vsel %vm5040_vm5, %v11614_v43, %v11616_v3 }
 0x47f   : > { %11758 = vst [vmem:[%s17701_s28 + $0xd0] sm:$0xff] %v11722_v46  ;;  %v11720_v24 = vmax.f32 %v11684_v44, 0.0  ;;  %v11687_v17 = vadd.f32 %v11607_v19, %v11358_v52  ;;  %v11356_v54 = vadd.f32 %v11287_v22, %v10821_v57  ;;  %v18149_v57 = vld [vmem:[#allocation28_spill] sm:$0xff]  ;;  %v11623_v22 = vsel %vm5040_vm5, %v11620_v31, %v11622_v41 }
 0x480   : > { %v14035_v2 = vpop.f32.mrf.mxu1  ;;  %v10831_v46 = vadd.f32 %v13988_v13, %v18149_v57 }
 0x481   : > { %11756 = vst [vmem:[%s17701_s28 + $0xc0] sm:$0xff] %v11720_v24  ;;  %v11723_v53 = vmax.f32 %v11687_v17, 0.0  ;;  %v11685_v11 = vadd.f32 %v11603_v29, %v11356_v54  ;;  %v11361_v16 = vadd.f32 %v14035_v2, %v10826_v4  ;;  %v18150_v29 = vld [vmem:[#allocation29_spill] sm:$0xff]  ;;  %v11619_v54 = vsel %vm5040_vm5, %v11616_v3, %v11618_v39 }
 0x482   : > { %v11300_v56 = vpop.f32.mrf.mxu1  ;;  %v10829_v20 = vadd.f32 %v10784_v1, %v18150_v29 }
 0x483   : > { %11759 = vst [vmem:[%s17701_s28 + $0xd8] sm:$0xff] %v11723_v53  ;;  %v11721_v7 = vmax.f32 %v11685_v11, 0.0  ;;  %v11690_v18 = vadd.f32 %v11613_v0, %v11361_v16  ;;  %v11359_v51 = vadd.f32 %v11300_v56, %v10824_v8 }
 0x484   : > { %v14036_v32 = vpop.f32.mrf.mxu1 }
 0x485   : > { %11757 = vst [vmem:[%s17701_s28 + $0xc8] sm:$0xff] %v11721_v7  ;;  %v11726_v9 = vmax.f32 %v11690_v18, 0.0  ;;  %v11688_v14 = vadd.f32 %v11609_v30, %v11359_v51  ;;  %v11362_v58 = vadd.f32 %v14036_v32, %v10827_v55 }
 0x486   : > { %v11303_v35 = vpop.f32.mrf.mxu1 }
 0x487   : > { %11762 = vst [vmem:[%s17701_s28 + $0xf0] sm:$0xff] %v11726_v9  ;;  %v11724_v10 = vmax.f32 %v11688_v14, 0.0  ;;  %v11691_v21 = vadd.f32 %v11615_v48, %v11362_v58  ;;  %v11360_v40 = vadd.f32 %v11303_v35, %v10825_v59 }
 0x488   : > { %v14039_v12 = vpop.f32.mrf.mxu1 }
 0x489   : > { %11760 = vst [vmem:[%s17701_s28 + $0xe0] sm:$0xff] %v11724_v10  ;;  %v11727_v63 = vmax.f32 %v11691_v21, 0.0  ;;  %v11689_v19 = vadd.f32 %v11611_v60, %v11360_v40  ;;  %v11365_v23 = vadd.f32 %v14039_v12, %v10830_v27 }
 0x48a   : > { %v11316_v33 = vpop.f32.mrf.mxu1 }
 0x48b   : > { %11763 = vst [vmem:[%s17701_s28 + $0xf8] sm:$0xff] %v11727_v63  ;;  %v11725_v44 = vmax.f32 %v11689_v19, 0.0  ;;  %v11694_v52 = vadd.f32 %v11621_v50, %v11365_v23  ;;  %v11363_v34 = vadd.f32 %v11316_v33, %v10828_v28 }
 0x48c   : > { %v14040_v15 = vpop.f32.mrf.mxu1 }
 0x48d   : > { %11761 = vst [vmem:[%s17701_s28 + $0xe8] sm:$0xff] %v11725_v44  ;;  %v11730_v61 = vmax.f32 %v11694_v52, 0.0  ;;  %v11692_v4 = vadd.f32 %v11617_v6, %v11363_v34  ;;  %v11366_v24 = vadd.f32 %v14040_v15, %v10831_v46 }
 0x48e   : > { %v11319_v17 = vpop.f32.mrf.mxu1 }
 0x48f   : > { %11766 = vst [vmem:[%s17701_s28 + $0x110] sm:$0xff] %v11730_v61  ;;  %v11728_v2 = vmax.f32 %v11692_v4, 0.0  ;;  %v11695_v0 = vadd.f32 %v11623_v22, %v11366_v24  ;;  %v11364_v43 = vadd.f32 %v11319_v17, %v10829_v20 }
 0x491   : > { %11764 = vst [vmem:[%s17701_s28 + $0x100] sm:$0xff] %v11728_v2  ;;  %v11731_v25 = vmax.f32 %v11695_v0, 0.0  ;;  %v11693_v42 = vadd.f32 %v11619_v54, %v11364_v43 }
 0x493   : > { %11767 = vst [vmem:[%s17701_s28 + $0x118] sm:$0xff] %v11731_v25  ;;  %v11729_v62 = vmax.f32 %v11693_v42, 0.0 }
 0x495   : > { %11765 = vst [vmem:[%s17701_s28 + $0x108] sm:$0xff] %v11729_v62 }
 0x496   : > { %14627 = shalt.err (!%p14624_p0)
}
 0x497   : > { %s14628_s17 = scalar_lea.hbm %s17889_s11, 4608  ;;  %s14632_s20 = scalar_lea.hbm %s17943_s6, 9216 }
 0x498   : > { %p14629_p1 = scmp.ne.s32.totalorder %s17889_s11, %s14628_s17  ;;  %p14633_p4 = scmp.lt.s32.totalorder %s17889_s11, %s17943_s6 }
 0x499   : > { %p14634_p7 = scmp.lt.s32.totalorder %s14632_s20, %s14628_s17 }
 0x49a   : > { %p14630_p2 = pnand %p14629_p1, %p14760_p5 }
 0x49b   : > { %p14635_p6 = por %p14634_p7, %p14633_p4 }
 0x49c   : > { %p14631_p3 = pneg %p14630_p2 }
 0x49e   : > { %p14636_p8 = pnand %p14635_p6, %p14631_p3 }
 0x4a0   : > { %14639 = shalt.err (!%p14636_p8)
}
 0x4a1   : > { %s14685_s13 = smov 128   ;;  %s14686_s9 = smov 8  }
 0x4a2   : > { %14048 = dma.vmem_to_hbm [thread:$0]  (%p14760_p5), %s17892_s29, 4608, %s17889_s11, %s17897_s25, %s14685_s13, %s14685_s13, %s14686_s9  }
 0x4a3 PF: > { %p14060_p9 = scmp.ge.s32.totalorder %s14678_s24, 2  ;;  %s11797_s10 = sand.u32 1, %s14666_s21  }
 0x4a4   : > { %p18151_p10 = scmp.ne.s32.totalorder %s17950_s8, 0  ;;  %s11798_s12 = scalar_lea.sflag [#allocation6], %s11797_s10 }
 0x4a6   : > { %p14055_p11 = pnand %p14060_p9, %p18151_p10 }
 0x4a8   : > { %p14056_p12 = pneg %p14055_p11 }
 0x4aa   : > { %14661 = dma.done.wait (%p14056_p12), %s11798_s12, 4608  }
 0x4ab   : > { %14663 = vsyncadd (%p14056_p12), %s11798_s12, 4294962688  ;;  %p17_p13 = scmp.ge.s32.totalorder %s14747_s27, 4   ;;  %s18152_s21 = smov %s14670_s22 }
 0x4ac   : > { %s18153_s22 = smov %s14674_s23  ;;  %s18154_s23 = smov %s14758_s30 }
 0x4ad   : > { %s18155_s24 = smov %s14747_s27  ;;  %19 = sbr.rel (!%p17_p13) target bundleno = 4 (0x4), region = 100 }
 0x4b2   :  { %11803 = vsyncpa [#allocation5], 1 }
 0x4b3   :  { %11805 = vsyncpa [#allocation5 + $0x1], 1 }
 0x4b4   :  { %11806 = vsyncpa [#allocation6], 1 }
 0x4b5   :  { %11808 = vsyncpa [#allocation6 + $0x1], 1 }

</bundles_post_ra>
